<compile_context>
chip_gen: v7x
topology: tpu7x:2x2x1
jax: 0.10.0
libtpu: 0.0.40
codegen_flags: <defaults>
</compile_context>

<pallas_src>
import jax
import jax.numpy as jnp
from jax.experimental import pallas as pl
from jax.experimental.pallas import tpu as pltpu

GEMM_DTYPE = jnp.bfloat16            # MXU operand dtype; accumulation stays f32
_VMEM_LIMIT = 32 * 1024 * 1024       # explicit scoped-VMEM budget (safe on v7x)


def _choose_block(dim, pref, align):
    """Largest `align`-aligned divisor of dim that is <= pref, else full dim."""
    if dim <= pref:
        return dim
    b = (min(pref, dim) // align) * align
    while b >= align:
        if dim % b == 0:
            return b
        b -= align
    return dim


# ---------------------------------------------------------------------------
# Linear layer GEMM with fused bias (single K step, N-parallel tiles)
# ---------------------------------------------------------------------------
def _linear_bias_kernel(a_ref, b_ref, bias_ref, o_ref):
    acc = jnp.dot(a_ref[...], b_ref[...], preferred_element_type=jnp.float32)
    o_ref[...] = (acc + bias_ref[...]).astype(o_ref.dtype)


def pallas_linear_bias(a, b, bias, *, out_dtype, tn_pref=4096):
    M, K = a.shape
    K2, N = b.shape
    assert K == K2 and bias.shape == (1, N)
    tn = _choose_block(N, tn_pref, 128)
    return pl.pallas_call(
        _linear_bias_kernel,
        out_shape=jax.ShapeDtypeStruct((M, N), out_dtype),
        grid_spec=pltpu.PrefetchScalarGridSpec(
            num_scalar_prefetch=0,
            grid=(N // tn,),
            in_specs=[pl.BlockSpec((M, K), lambda j: (0, 0)),
                      pl.BlockSpec((K, tn), lambda j: (0, j)),
                      pl.BlockSpec((1, tn), lambda j: (0, j))],
            out_specs=pl.BlockSpec((M, tn), lambda j: (0, j))),
        compiler_params=pltpu.CompilerParams(
            dimension_semantics=("parallel",),
            vmem_limit_bytes=_VMEM_LIMIT),
    )(a, b, bias)


# ---------------------------------------------------------------------------
# Per-phase GEMM with BatchNorm statistics fused into the epilogue.
#   a: (4, M, K) bf16, b: (4, K, Cpad) bf16
#   -> y (4, M, Cpad) f32, per-phase channel sum / sumsq (4, 1, Cpad) f32.
# Full-M / full-K blocks: grid is just the 4 phases (all parallel).
# Stats are computed on the f32 accumulator (avoids bf16 E[x^2]-E[x]^2 loss).
# ---------------------------------------------------------------------------
def _phase_gemm_stats_kernel(a_ref, b_ref, y_ref, sum_ref, sq_ref):
    acc = jnp.dot(a_ref[0], b_ref[0], preferred_element_type=jnp.float32)
    y_ref[0] = acc.astype(y_ref.dtype)
    sum_ref[0] = jnp.sum(acc, axis=0, keepdims=True)
    sq_ref[0] = jnp.sum(acc * acc, axis=0, keepdims=True)


def pallas_phase_matmul_stats(a, b):
    P, M, K = a.shape
    P2, K2, C = b.shape
    assert P == 4 and P2 == 4 and K == K2
    return pl.pallas_call(
        _phase_gemm_stats_kernel,
        out_shape=(jax.ShapeDtypeStruct((P, M, C), jnp.float32),
                   jax.ShapeDtypeStruct((P, 1, C), jnp.float32),
                   jax.ShapeDtypeStruct((P, 1, C), jnp.float32)),
        grid_spec=pltpu.PrefetchScalarGridSpec(
            num_scalar_prefetch=0,
            grid=(P,),
            in_specs=[pl.BlockSpec((1, M, K), lambda p: (p, 0, 0)),
                      pl.BlockSpec((1, K, C), lambda p: (p, 0, 0))],
            out_specs=(pl.BlockSpec((1, M, C), lambda p: (p, 0, 0)),
                       pl.BlockSpec((1, 1, C), lambda p: (p, 0, 0)),
                       pl.BlockSpec((1, 1, C), lambda p: (p, 0, 0)))),
        compiler_params=pltpu.CompilerParams(
            dimension_semantics=("parallel",),
            vmem_limit_bytes=_VMEM_LIMIT),
    )(a, b)


# ---------------------------------------------------------------------------
# Per-phase GEMM with fused tanh epilogue (final layer). bf16 store.
# ---------------------------------------------------------------------------
def _phase_gemm_tanh_kernel(a_ref, b_ref, y_ref):
    acc = jnp.dot(a_ref[0], b_ref[0], preferred_element_type=jnp.float32)
    y_ref[0] = jnp.tanh(acc).astype(y_ref.dtype)   # EUP slot: free under MXU


def pallas_phase_matmul_tanh(a, b, *, out_dtype):
    P, M, K = a.shape
    P2, K2, C = b.shape
    assert P == 4 and P2 == 4 and K == K2
    return pl.pallas_call(
        _phase_gemm_tanh_kernel,
        out_shape=jax.ShapeDtypeStruct((P, M, C), out_dtype),
        grid_spec=pltpu.PrefetchScalarGridSpec(
            num_scalar_prefetch=0,
            grid=(P,),
            in_specs=[pl.BlockSpec((1, M, K), lambda p: (p, 0, 0)),
                      pl.BlockSpec((1, K, C), lambda p: (p, 0, 0))],
            out_specs=pl.BlockSpec((1, M, C), lambda p: (p, 0, 0))),
        compiler_params=pltpu.CompilerParams(
            dimension_semantics=("parallel",),
            vmem_limit_bytes=_VMEM_LIMIT),
    )(a, b)


# ---------------------------------------------------------------------------
# Normalize + affine + ReLU: pure FMA stream (scale/shift precomputed once).
# ---------------------------------------------------------------------------
def _scale_shift_relu_kernel(x_ref, scale_ref, shift_ref, o_ref):
    y = x_ref[...] * scale_ref[...] + shift_ref[...]
    o_ref[...] = jnp.maximum(y, 0.0).astype(o_ref.dtype)


def pallas_scale_shift_relu(x, scale, shift, *, out_dtype, tr_pref=1024):
    R, C = x.shape
    # keep >=2 row tiles where possible so both v7x TensorCores participate
    tr = _choose_block(R, min(tr_pref, max(R // 2, 8)), 8)
    vec = pl.BlockSpec((1, C), lambda i: (0, 0))
    return pl.pallas_call(
        _scale_shift_relu_kernel,
        out_shape=jax.ShapeDtypeStruct((R, C), out_dtype),
        grid_spec=pltpu.PrefetchScalarGridSpec(
            num_scalar_prefetch=0,
            grid=(R // tr,),
            in_specs=[pl.BlockSpec((tr, C), lambda i: (i, 0)), vec, vec],
            out_specs=pl.BlockSpec((tr, C), lambda i: (i, 0))),
        compiler_params=pltpu.CompilerParams(
            dimension_semantics=("parallel",),
            vmem_limit_bytes=_VMEM_LIMIT),
    )(x, scale, shift)


def _bn_scale_shift(psum, psq, gamma, beta, count):
    """Tiny finalize on (4,1,C) partial stats -> per-channel scale/shift."""
    s = jnp.sum(psum, axis=0)                                   # (1, C)
    q = jnp.sum(psq, axis=0)
    mean = s / count
    var = jnp.maximum(q / count - mean * mean, 0.0)             # biased var
    scale = gamma * jax.lax.rsqrt(var + 1e-5)
    shift = beta - mean * scale
    return scale, shift


# ---------------------------------------------------------------------------
# ConvTranspose2d(k=4, s=2, p=1, bias=False) via 4-phase decomposition.
# Output parity (rh, rw) only sees kernel taps kh = 3-rh-2*dh, kw = 3-rw-2*dw
# applied to the input shifted by (dh, dw) over a 1-pixel zero-padded frame.
# ---------------------------------------------------------------------------
def _phase_cols(x):
    """x: NHWC (N,H,W,Cin) -> (4 phases, N*H*W, 4*Cin) im2col (2x2 taps)."""
    N, H, W, C = x.shape
    xp = jnp.pad(x, ((0, 0), (1, 1), (1, 1), (0, 0)))
    phases = []
    for rh in range(2):
        for rw in range(2):
            taps = [xp[:, rh + dh:rh + dh + H, rw + dw:rw + dw + W, :]
                    for dh in range(2) for dw in range(2)]
            cols = jnp.concatenate(taps, axis=-1)          # (N, H, W, 4*Cin)
            phases.append(cols.reshape(N * H * W, 4 * C))
    return jnp.stack(phases, axis=0)                       # (4, N*H*W, 4*Cin)


def _interleave_phases(yp, N, H, W, C):
    """(4, N*H*W, Cpad) phase outputs -> NHWC (N, 2H, 2W, C)."""
    y = yp[:, :, :C].reshape(2, 2, N, H, W, C)
    y = y.transpose(2, 3, 0, 4, 1, 5)                      # (N, H, rh, W, rw, C)
    return y.reshape(N, 2 * H, 2 * W, C)


def deconv_bn_relu(x, w_phase, gamma, beta, cout):
    N, H, W, _ = x.shape
    cols = _phase_cols(x)                                   # bf16
    y, psum, psq = pallas_phase_matmul_stats(cols, w_phase)  # fused GEMM+stats
    cpad = w_phase.shape[-1]
    count = 4 * N * H * W                                   # = B*OH*OW
    scale, shift = _bn_scale_shift(psum, psq, gamma, beta, count)
    y2 = pallas_scale_shift_relu(y.reshape(count, cpad), scale, shift,
                                 out_dtype=GEMM_DTYPE)
    return _interleave_phases(y2.reshape(4, N * H * W, cpad), N, H, W, cout)


def deconv_tanh(x, w_phase, cout):
    N, H, W, _ = x.shape
    cols = _phase_cols(x)
    y = pallas_phase_matmul_tanh(cols, w_phase, out_dtype=GEMM_DTYPE)
    return _interleave_phases(y, N, H, W, cout)


# ---------------------------------------------------------------------------
# Full Generator forward (NHWC internally, NCHW at the API boundary)
# ---------------------------------------------------------------------------
def generator_forward(prep, noise, text_ids):
    B = noise.shape[0]
    emb = prep["emb"][text_ids]                           # embedding gather (XLA glue)
    x = jnp.concatenate([noise, emb], axis=1).astype(GEMM_DTYPE)      # (B, 32)
    x = pallas_linear_bias(x, prep["lin_w_t"], prep["lin_b"],
                           out_dtype=GEMM_DTYPE)                      # (B, 8192)
    # PyTorch view(-1, 512, 4, 4) is channel-major; convert to NHWC once.
    x = x.reshape(B, 512, 4, 4).transpose(0, 2, 3, 1)                 # (B,4,4,512)
    x = deconv_bn_relu(x, prep["wp1"], prep["g1"], prep["be1"], 256)  # (B,8,8,256)
    x = deconv_bn_relu(x, prep["wp2"], prep["g2"], prep["be2"], 128)  # (B,16,16,128)
    x = deconv_bn_relu(x, prep["wp3"], prep["g3"], prep["be3"], 64)   # (B,32,32,64)
    x = deconv_tanh(x, prep["wp4"], 3)                                # (B,64,64,3)
    return x.transpose(0, 3, 1, 2).astype(jnp.float32)                # NCHW f32


# ---------------------------------------------------------------------------
# Parameter init (mirrors the PyTorch module) + one-time weight preprocessing
# ---------------------------------------------------------------------------
def init_params(key, dim_noise, dim_text, num_classes=10):
    ks = jax.random.split(key, 12)
    f32 = jnp.float32
    return {
        "emb": jax.random.normal(ks[0], (num_classes, dim_text), f32),
        "lin_w": 0.02 * jax.random.normal(
            ks[1], (4 * 4 * 512, dim_noise + dim_text), f32),
        "lin_b": jnp.zeros((4 * 4 * 512,), f32),
        "w1": 0.02 * jax.random.normal(ks[2], (512, 256, 4, 4), f32),
        "w2": 0.02 * jax.random.normal(ks[3], (256, 128, 4, 4), f32),
        "w3": 0.02 * jax.random.normal(ks[4], (128, 64, 4, 4), f32),
        "w4": 0.02 * jax.random.normal(ks[5], (64, 3, 4, 4), f32),
        "g1": 1.0 + 0.02 * jax.random.normal(ks[6], (256,), f32),
        "g2": 1.0 + 0.02 * jax.random.normal(ks[7], (128,), f32),
        "g3": 1.0 + 0.02 * jax.random.normal(ks[8], (64,), f32),
        "be1": jnp.zeros((256,), f32),
        "be2": jnp.zeros((128,), f32),
        "be3": jnp.zeros((64,), f32),
    }


def _phase_weights(w, cpad, dtype):
    """(Cin, Cout, 4, 4) ConvTranspose2d weight -> (4, 4*Cin, cpad) per-phase
    GEMM weights; column order matches _phase_cols' (dh, dw) tap order."""
    cout = w.shape[1]
    phases = []
    for rh in range(2):
        for rw in range(2):
            taps = [w[:, :, 3 - rh - 2 * dh, 3 - rw - 2 * dw]
                    for dh in range(2) for dw in range(2)]
            phases.append(jnp.concatenate(taps, axis=0))    # (4*Cin, Cout)
    wp = jnp.stack(phases, axis=0)                          # (4, 4*Cin, Cout)
    wp = jnp.pad(wp, ((0, 0), (0, 0), (0, cpad - cout)))    # lane-dense pad
    return wp.astype(dtype)


def _pad_row(v, cpad):
    return jnp.pad(v, (0, cpad - v.shape[0])).reshape(1, cpad).astype(jnp.float32)


def prepare_params(params):
    """One-time preprocessing (run eagerly, outside the jit hot path)."""
    cpad = {"1": 256, "2": 128, "3": 128, "4": 128}
    prep = {
        "emb": params["emb"],
        "lin_w_t": params["lin_w"].T.astype(GEMM_DTYPE),            # (32, 8192)
        "lin_b": params["lin_b"].reshape(1, -1).astype(jnp.float32),
    }
    for i in ("1", "2", "3", "4"):
        prep["wp" + i] = _phase_weights(params["w" + i], cpad[i], GEMM_DTYPE)
    for i in ("1", "2", "3"):
        prep["g" + i] = _pad_row(params["g" + i], cpad[i])
        prep["be" + i] = _pad_row(params["be" + i], cpad[i])
    return prep


if __name__ == "__main__":
    dim_noise, dim_text, num_classes, B = 16, 16, 10, 2

    key = jax.random.PRNGKey(0)
    kp, kn, kt = jax.random.split(key, 3)
    params = init_params(kp, dim_noise, dim_text, num_classes)
    prep = prepare_params(params)          # eager, one-time weight prep

    noise = jax.random.normal(kn, (B, dim_noise), jnp.float32)
    text = jax.random.randint(kt, (B,), 0, num_classes, dtype=jnp.int32)

    fwd = jax.jit(generator_forward)
    out = jax.block_until_ready(fwd(prep, noise, text))

    assert out.shape == (B, 3, 64, 64), out.shape
    assert out.dtype == jnp.float32
    assert bool(jnp.all(jnp.isfinite(out)))
    assert bool(jnp.all(jnp.abs(out) <= 1.0 + 1e-6))   # tanh range
    print("KERNEL_OK")
</pallas_src>

<mosaic_0001>
module attributes {stable_mosaic.version = 11 : i64} {
  func.func @_linear_bias_kernel(%arg0: i32, %arg1: memref<2x32xbf16, #tpu.memory_space<vmem>>, %arg2: memref<32x4096xbf16, #tpu.memory_space<vmem>>, %arg3: memref<1x4096xf32, #tpu.memory_space<vmem>>, %arg4: memref<2x4096xbf16, #tpu.memory_space<vmem>>) attributes {dimension_semantics = [#tpu.dimension_semantics<parallel>], iteration_bounds = array<i64: 2>, scalar_prefetch = 0 : i64, scratch_operands = 0 : i64, tpu.core_type = #tpu.core_type<tc>, window_params = [{pipeline_mode = #tpu.pipeline_mode<synchronous>, transform_indices = @transform_0, window_bounds = array<i64: 2, 32>}, {transform_indices = @transform_1, window_bounds = array<i64: 32, 4096>}, {transform_indices = @transform_2, window_bounds = array<i64: 1, 4096>}, {transform_indices = @transform_3, window_bounds = array<i64: 2, 4096>}]} {
    %c0 = arith.constant 0 : index
    %c0_0 = arith.constant 0 : index
    %0 = vector.load %arg1[%c0, %c0_0] : memref<2x32xbf16, #tpu.memory_space<vmem>>, vector<2x32xbf16>
    %c0_1 = arith.constant 0 : index
    %c0_2 = arith.constant 0 : index
    %1 = vector.load %arg2[%c0_1, %c0_2] : memref<32x4096xbf16, #tpu.memory_space<vmem>>, vector<32x4096xbf16>
    %cst = arith.constant dense<0.000000e+00> : vector<2x4096xf32>
    %2 = tpu.matmul %0, %1, %cst {dimension_numbers = #tpu.dot_dimension_numbers<[1], [0], [0], [1], [0, 0, 1, 1], [], []>} : vector<2x32xbf16>, vector<32x4096xbf16>, vector<2x4096xf32> -> vector<2x4096xf32>
    %c0_3 = arith.constant 0 : index
    %c0_4 = arith.constant 0 : index
    %3 = vector.load %arg3[%c0_3, %c0_4] : memref<1x4096xf32, #tpu.memory_space<vmem>>, vector<1x4096xf32>
    %4 = vector.broadcast %3 : vector<1x4096xf32> to vector<2x4096xf32>
    %5 = arith.addf %2, %4 : vector<2x4096xf32>
    %6 = arith.truncf %5 : vector<2x4096xf32> to vector<2x4096xbf16>
    %c0_5 = arith.constant 0 : index
    %c0_6 = arith.constant 0 : index
    %7 = vector.load %arg4[%c0_5, %c0_6] : memref<2x4096xbf16, #tpu.memory_space<vmem>>, vector<2x4096xbf16>
    tpu.vector_store %arg4[%c0_5, %c0_6], %6 {strides = array<i32>} : memref<2x4096xbf16, #tpu.memory_space<vmem>>, vector<2x4096xbf16>,
    return
  }
  func.func @transform_0(%arg0: i32) -> (i32, i32) {
    %c0_i32 = arith.constant 0 : i32
    %c0_i32_0 = arith.constant 0 : i32
    %c0_i32_1 = arith.constant 0 : i32
    return %c0_i32, %c0_i32_0 : i32, i32
  }
  func.func @transform_1(%arg0: i32) -> (i32, i32) {
    %c0_i32 = arith.constant 0 : i32
    %c0_i32_0 = arith.constant 0 : i32
    return %c0_i32, %arg0 : i32, i32
  }
  func.func @transform_2(%arg0: i32) -> (i32, i32) {
    %c0_i32 = arith.constant 0 : i32
    %c0_i32_0 = arith.constant 0 : i32
    return %c0_i32, %arg0 : i32, i32
  }
  func.func @transform_3(%arg0: i32) -> (i32, i32) {
    %c0_i32 = arith.constant 0 : i32
    %c0_i32_0 = arith.constant 0 : i32
    return %c0_i32, %arg0 : i32, i32
  }
}

module attributes {stable_mosaic.version = 11 : i64} {
  func.func @_phase_gemm_stats_kernel(%arg0: i32, %arg1: memref<1x32x2048xbf16, #tpu.memory_space<vmem>>, %arg2: memref<1x2048x256xbf16, #tpu.memory_space<vmem>>, %arg3: memref<1x32x256xf32, #tpu.memory_space<vmem>>, %arg4: memref<1x1x256xf32, #tpu.memory_space<vmem>>, %arg5: memref<1x1x256xf32, #tpu.memory_space<vmem>>) attributes {dimension_semantics = [#tpu.dimension_semantics<parallel>], iteration_bounds = array<i64: 4>, scalar_prefetch = 0 : i64, scratch_operands = 0 : i64, tpu.core_type = #tpu.core_type<tc>, window_params = [{transform_indices = @transform_0, window_bounds = array<i64: 1, 32, 2048>}, {transform_indices = @transform_1, window_bounds = array<i64: 1, 2048, 256>}, {transform_indices = @transform_2, window_bounds = array<i64: 1, 32, 256>}, {transform_indices = @transform_3, window_bounds = array<i64: 1, 1, 256>}, {transform_indices = @transform_4, window_bounds = array<i64: 1, 1, 256>}]} {
    %c0 = arith.constant 0 : index
    %c0_0 = arith.constant 0 : index
    %c0_1 = arith.constant 0 : index
    %0 = vector.load %arg1[%c0, %c0_0, %c0_1] : memref<1x32x2048xbf16, #tpu.memory_space<vmem>>, vector<1x32x2048xbf16>
    %1 = vector.shape_cast %0 : vector<1x32x2048xbf16> to vector<32x2048xbf16>
    %c0_2 = arith.constant 0 : index
    %c0_3 = arith.constant 0 : index
    %c0_4 = arith.constant 0 : index
    %2 = vector.load %arg2[%c0_2, %c0_3, %c0_4] : memref<1x2048x256xbf16, #tpu.memory_space<vmem>>, vector<1x2048x256xbf16>
    %3 = vector.shape_cast %2 : vector<1x2048x256xbf16> to vector<2048x256xbf16>
    %cst = arith.constant dense<0.000000e+00> : vector<32x256xf32>
    %4 = tpu.matmul %1, %3, %cst {dimension_numbers = #tpu.dot_dimension_numbers<[1], [0], [0], [1], [0, 0, 1, 1], [], []>} : vector<32x2048xbf16>, vector<2048x256xbf16>, vector<32x256xf32> -> vector<32x256xf32>
    %c0_5 = arith.constant 0 : index
    %c0_6 = arith.constant 0 : index
    %c0_7 = arith.constant 0 : index
    %5 = vector.load %arg3[%c0_5, %c0_6, %c0_7] : memref<1x32x256xf32, #tpu.memory_space<vmem>>, vector<1x32x256xf32>
    %6 = vector.shape_cast %5 : vector<1x32x256xf32> to vector<32x256xf32>
    %7 = vector.shape_cast %4 : vector<32x256xf32> to vector<1x32x256xf32>
    tpu.vector_store %arg3[%c0_5, %c0_6, %c0_7], %7 {strides = array<i32>} : memref<1x32x256xf32, #tpu.memory_space<vmem>>, vector<1x32x256xf32>,
    %cst_8 = arith.constant dense<0.000000e+00> : vector<256xf32>
    %8 = vector.multi_reduction <add>, %4, %cst_8 [0] : vector<32x256xf32> to vector<256xf32>
    %9 = vector.shape_cast %8 : vector<256xf32> to vector<1x256xf32>
    %c0_9 = arith.constant 0 : index
    %c0_10 = arith.constant 0 : index
    %c0_11 = arith.constant 0 : index
    %10 = vector.load %arg4[%c0_9, %c0_10, %c0_11] : memref<1x1x256xf32, #tpu.memory_space<vmem>>, vector<1x1x256xf32>
    %11 = vector.shape_cast %10 : vector<1x1x256xf32> to vector<1x256xf32>
    %12 = vector.shape_cast %9 : vector<1x256xf32> to vector<1x1x256xf32>
    tpu.vector_store %arg4[%c0_9, %c0_10, %c0_11], %12 {strides = array<i32>} : memref<1x1x256xf32, #tpu.memory_space<vmem>>, vector<1x1x256xf32>,
    %13 = arith.mulf %4, %4 : vector<32x256xf32>
    %cst_12 = arith.constant dense<0.000000e+00> : vector<256xf32>
    %14 = vector.multi_reduction <add>, %13, %cst_12 [0] : vector<32x256xf32> to vector<256xf32>
    %15 = vector.shape_cast %14 : vector<256xf32> to vector<1x256xf32>
    %c0_13 = arith.constant 0 : index
    %c0_14 = arith.constant 0 : index
    %c0_15 = arith.constant 0 : index
    %16 = vector.load %arg5[%c0_13, %c0_14, %c0_15] : memref<1x1x256xf32, #tpu.memory_space<vmem>>, vector<1x1x256xf32>
    %17 = vector.shape_cast %16 : vector<1x1x256xf32> to vector<1x256xf32>
    %18 = vector.shape_cast %15 : vector<1x256xf32> to vector<1x1x256xf32>
    tpu.vector_store %arg5[%c0_13, %c0_14, %c0_15], %18 {strides = array<i32>} : memref<1x1x256xf32, #tpu.memory_space<vmem>>, vector<1x1x256xf32>,
    return
  }
  func.func @transform_0(%arg0: i32) -> (i32, i32, i32) {
    %c0_i32 = arith.constant 0 : i32
    %c0_i32_0 = arith.constant 0 : i32
    %c0_i32_1 = arith.constant 0 : i32
    return %arg0, %c0_i32, %c0_i32_0 : i32, i32, i32
  }
  func.func @transform_1(%arg0: i32) -> (i32, i32, i32) {
    %c0_i32 = arith.constant 0 : i32
    %c0_i32_0 = arith.constant 0 : i32
    %c0_i32_1 = arith.constant 0 : i32
    return %arg0, %c0_i32, %c0_i32_0 : i32, i32, i32
  }
  func.func @transform_2(%arg0: i32) -> (i32, i32, i32) {
    %c0_i32 = arith.constant 0 : i32
    %c0_i32_0 = arith.constant 0 : i32
    %c0_i32_1 = arith.constant 0 : i32
    return %arg0, %c0_i32, %c0_i32_0 : i32, i32, i32
  }
  func.func @transform_3(%arg0: i32) -> (i32, i32, i32) {
    %c0_i32 = arith.constant 0 : i32
    %c0_i32_0 = arith.constant 0 : i32
    %c0_i32_1 = arith.constant 0 : i32
    return %arg0, %c0_i32, %c0_i32_0 : i32, i32, i32
  }
  func.func @transform_4(%arg0: i32) -> (i32, i32, i32) {
    %c0_i32 = arith.constant 0 : i32
    %c0_i32_0 = arith.constant 0 : i32
    %c0_i32_1 = arith.constant 0 : i32
    return %arg0, %c0_i32, %c0_i32_0 : i32, i32, i32
  }
}

module attributes {stable_mosaic.version = 11 : i64} {
  func.func @_scale_shift_relu_kernel(%arg0: i32, %arg1: memref<64x256xf32, #tpu.memory_space<vmem>>, %arg2: memref<1x256xf32, #tpu.memory_space<vmem>>, %arg3: memref<1x256xf32, #tpu.memory_space<vmem>>, %arg4: memref<64x256xbf16, #tpu.memory_space<vmem>>) attributes {dimension_semantics = [#tpu.dimension_semantics<parallel>], iteration_bounds = array<i64: 2>, scalar_prefetch = 0 : i64, scratch_operands = 0 : i64, tpu.core_type = #tpu.core_type<tc>, window_params = [{transform_indices = @transform_0, window_bounds = array<i64: 64, 256>}, {pipeline_mode = #tpu.pipeline_mode<synchronous>, transform_indices = @transform_1, window_bounds = array<i64: 1, 256>}, {pipeline_mode = #tpu.pipeline_mode<synchronous>, transform_indices = @transform_2, window_bounds = array<i64: 1, 256>}, {transform_indices = @transform_3, window_bounds = array<i64: 64, 256>}]} {
    %c0 = arith.constant 0 : index
    %c0_0 = arith.constant 0 : index
    %0 = vector.load %arg1[%c0, %c0_0] : memref<64x256xf32, #tpu.memory_space<vmem>>, vector<64x256xf32>
    %c0_1 = arith.constant 0 : index
    %c0_2 = arith.constant 0 : index
    %1 = vector.load %arg2[%c0_1, %c0_2] : memref<1x256xf32, #tpu.memory_space<vmem>>, vector<1x256xf32>
    %2 = vector.broadcast %1 : vector<1x256xf32> to vector<64x256xf32>
    %3 = arith.mulf %0, %2 : vector<64x256xf32>
    %c0_3 = arith.constant 0 : index
    %c0_4 = arith.constant 0 : index
    %4 = vector.load %arg3[%c0_3, %c0_4] : memref<1x256xf32, #tpu.memory_space<vmem>>, vector<1x256xf32>
    %5 = vector.broadcast %4 : vector<1x256xf32> to vector<64x256xf32>
    %6 = arith.addf %3, %5 : vector<64x256xf32>
    %cst = arith.constant 0.000000e+00 : f32
    %7 = vector.broadcast %cst : f32 to vector<64x256xf32>
    %8 = arith.maximumf %6, %7 : vector<64x256xf32>
    %9 = arith.truncf %8 : vector<64x256xf32> to vector<64x256xbf16>
    %c0_5 = arith.constant 0 : index
    %c0_6 = arith.constant 0 : index
    %10 = vector.load %arg4[%c0_5, %c0_6] : memref<64x256xbf16, #tpu.memory_space<vmem>>, vector<64x256xbf16>
    tpu.vector_store %arg4[%c0_5, %c0_6], %9 {strides = array<i32>} : memref<64x256xbf16, #tpu.memory_space<vmem>>, vector<64x256xbf16>,
    return
  }
  func.func @transform_0(%arg0: i32) -> (i32, i32) {
    %c0_i32 = arith.constant 0 : i32
    %c0_i32_0 = arith.constant 0 : i32
    return %arg0, %c0_i32 : i32, i32
  }
  func.func @transform_1(%arg0: i32) -> (i32, i32) {
    %c0_i32 = arith.constant 0 : i32
    %c0_i32_0 = arith.constant 0 : i32
    %c0_i32_1 = arith.constant 0 : i32
    return %c0_i32, %c0_i32_0 : i32, i32
  }
  func.func @transform_2(%arg0: i32) -> (i32, i32) {
    %c0_i32 = arith.constant 0 : i32
    %c0_i32_0 = arith.constant 0 : i32
    %c0_i32_1 = arith.constant 0 : i32
    return %c0_i32, %c0_i32_0 : i32, i32
  }
  func.func @transform_3(%arg0: i32) -> (i32, i32) {
    %c0_i32 = arith.constant 0 : i32
    %c0_i32_0 = arith.constant 0 : i32
    return %arg0, %c0_i32 : i32, i32
  }
}

module attributes {stable_mosaic.version = 11 : i64} {
  func.func @_phase_gemm_stats_kernel(%arg0: i32, %arg1: memref<1x128x1024xbf16, #tpu.memory_space<vmem>>, %arg2: memref<1x1024x128xbf16, #tpu.memory_space<vmem>>, %arg3: memref<1x128x128xf32, #tpu.memory_space<vmem>>, %arg4: memref<1x1x128xf32, #tpu.memory_space<vmem>>, %arg5: memref<1x1x128xf32, #tpu.memory_space<vmem>>) attributes {dimension_semantics = [#tpu.dimension_semantics<parallel>], iteration_bounds = array<i64: 4>, scalar_prefetch = 0 : i64, scratch_operands = 0 : i64, tpu.core_type = #tpu.core_type<tc>, window_params = [{transform_indices = @transform_0, window_bounds = array<i64: 1, 128, 1024>}, {transform_indices = @transform_1, window_bounds = array<i64: 1, 1024, 128>}, {transform_indices = @transform_2, window_bounds = array<i64: 1, 128, 128>}, {transform_indices = @transform_3, window_bounds = array<i64: 1, 1, 128>}, {transform_indices = @transform_4, window_bounds = array<i64: 1, 1, 128>}]} {
    %c0 = arith.constant 0 : index
    %c0_0 = arith.constant 0 : index
    %c0_1 = arith.constant 0 : index
    %0 = vector.load %arg1[%c0, %c0_0, %c0_1] : memref<1x128x1024xbf16, #tpu.memory_space<vmem>>, vector<1x128x1024xbf16>
    %1 = vector.shape_cast %0 : vector<1x128x1024xbf16> to vector<128x1024xbf16>
    %c0_2 = arith.constant 0 : index
    %c0_3 = arith.constant 0 : index
    %c0_4 = arith.constant 0 : index
    %2 = vector.load %arg2[%c0_2, %c0_3, %c0_4] : memref<1x1024x128xbf16, #tpu.memory_space<vmem>>, vector<1x1024x128xbf16>
    %3 = vector.shape_cast %2 : vector<1x1024x128xbf16> to vector<1024x128xbf16>
    %cst = arith.constant dense<0.000000e+00> : vector<128x128xf32>
    %4 = tpu.matmul %1, %3, %cst {dimension_numbers = #tpu.dot_dimension_numbers<[1], [0], [0], [1], [0, 0, 1, 1], [], []>} : vector<128x1024xbf16>, vector<1024x128xbf16>, vector<128x128xf32> -> vector<128x128xf32>
    %c0_5 = arith.constant 0 : index
    %c0_6 = arith.constant 0 : index
    %c0_7 = arith.constant 0 : index
    %5 = vector.load %arg3[%c0_5, %c0_6, %c0_7] : memref<1x128x128xf32, #tpu.memory_space<vmem>>, vector<1x128x128xf32>
    %6 = vector.shape_cast %5 : vector<1x128x128xf32> to vector<128x128xf32>
    %7 = vector.shape_cast %4 : vector<128x128xf32> to vector<1x128x128xf32>
    tpu.vector_store %arg3[%c0_5, %c0_6, %c0_7], %7 {strides = array<i32>} : memref<1x128x128xf32, #tpu.memory_space<vmem>>, vector<1x128x128xf32>,
    %cst_8 = arith.constant dense<0.000000e+00> : vector<128xf32>
    %8 = vector.multi_reduction <add>, %4, %cst_8 [0] : vector<128x128xf32> to vector<128xf32>
    %9 = vector.shape_cast %8 : vector<128xf32> to vector<1x128xf32>
    %c0_9 = arith.constant 0 : index
    %c0_10 = arith.constant 0 : index
    %c0_11 = arith.constant 0 : index
    %10 = vector.load %arg4[%c0_9, %c0_10, %c0_11] : memref<1x1x128xf32, #tpu.memory_space<vmem>>, vector<1x1x128xf32>
    %11 = vector.shape_cast %10 : vector<1x1x128xf32> to vector<1x128xf32>
    %12 = vector.shape_cast %9 : vector<1x128xf32> to vector<1x1x128xf32>
    tpu.vector_store %arg4[%c0_9, %c0_10, %c0_11], %12 {strides = array<i32>} : memref<1x1x128xf32, #tpu.memory_space<vmem>>, vector<1x1x128xf32>,
    %13 = arith.mulf %4, %4 : vector<128x128xf32>
    %cst_12 = arith.constant dense<0.000000e+00> : vector<128xf32>
    %14 = vector.multi_reduction <add>, %13, %cst_12 [0] : vector<128x128xf32> to vector<128xf32>
    %15 = vector.shape_cast %14 : vector<128xf32> to vector<1x128xf32>
    %c0_13 = arith.constant 0 : index
    %c0_14 = arith.constant 0 : index
    %c0_15 = arith.constant 0 : index
    %16 = vector.load %arg5[%c0_13, %c0_14, %c0_15] : memref<1x1x128xf32, #tpu.memory_space<vmem>>, vector<1x1x128xf32>
    %17 = vector.shape_cast %16 : vector<1x1x128xf32> to vector<1x128xf32>
    %18 = vector.shape_cast %15 : vector<1x128xf32> to vector<1x1x128xf32>
    tpu.vector_store %arg5[%c0_13, %c0_14, %c0_15], %18 {strides = array<i32>} : memref<1x1x128xf32, #tpu.memory_space<vmem>>, vector<1x1x128xf32>,
    return
  }
  func.func @transform_0(%arg0: i32) -> (i32, i32, i32) {
    %c0_i32 = arith.constant 0 : i32
    %c0_i32_0 = arith.constant 0 : i32
    %c0_i32_1 = arith.constant 0 : i32
    return %arg0, %c0_i32, %c0_i32_0 : i32, i32, i32
  }
  func.func @transform_1(%arg0: i32) -> (i32, i32, i32) {
    %c0_i32 = arith.constant 0 : i32
    %c0_i32_0 = arith.constant 0 : i32
    %c0_i32_1 = arith.constant 0 : i32
    return %arg0, %c0_i32, %c0_i32_0 : i32, i32, i32
  }
  func.func @transform_2(%arg0: i32) -> (i32, i32, i32) {
    %c0_i32 = arith.constant 0 : i32
    %c0_i32_0 = arith.constant 0 : i32
    %c0_i32_1 = arith.constant 0 : i32
    return %arg0, %c0_i32, %c0_i32_0 : i32, i32, i32
  }
  func.func @transform_3(%arg0: i32) -> (i32, i32, i32) {
    %c0_i32 = arith.constant 0 : i32
    %c0_i32_0 = arith.constant 0 : i32
    %c0_i32_1 = arith.constant 0 : i32
    return %arg0, %c0_i32, %c0_i32_0 : i32, i32, i32
  }
  func.func @transform_4(%arg0: i32) -> (i32, i32, i32) {
    %c0_i32 = arith.constant 0 : i32
    %c0_i32_0 = arith.constant 0 : i32
    %c0_i32_1 = arith.constant 0 : i32
    return %arg0, %c0_i32, %c0_i32_0 : i32, i32, i32
  }
}

module attributes {stable_mosaic.version = 11 : i64} {
  func.func @_scale_shift_relu_kernel(%arg0: i32, %arg1: memref<256x128xf32, #tpu.memory_space<vmem>>, %arg2: memref<1x128xf32, #tpu.memory_space<vmem>>, %arg3: memref<1x128xf32, #tpu.memory_space<vmem>>, %arg4: memref<256x128xbf16, #tpu.memory_space<vmem>>) attributes {dimension_semantics = [#tpu.dimension_semantics<parallel>], iteration_bounds = array<i64: 2>, scalar_prefetch = 0 : i64, scratch_operands = 0 : i64, tpu.core_type = #tpu.core_type<tc>, window_params = [{transform_indices = @transform_0, window_bounds = array<i64: 256, 128>}, {pipeline_mode = #tpu.pipeline_mode<synchronous>, transform_indices = @transform_1, window_bounds = array<i64: 1, 128>}, {pipeline_mode = #tpu.pipeline_mode<synchronous>, transform_indices = @transform_2, window_bounds = array<i64: 1, 128>}, {transform_indices = @transform_3, window_bounds = array<i64: 256, 128>}]} {
    %c0 = arith.constant 0 : index
    %c0_0 = arith.constant 0 : index
    %0 = vector.load %arg1[%c0, %c0_0] : memref<256x128xf32, #tpu.memory_space<vmem>>, vector<256x128xf32>
    %c0_1 = arith.constant 0 : index
    %c0_2 = arith.constant 0 : index
    %1 = vector.load %arg2[%c0_1, %c0_2] : memref<1x128xf32, #tpu.memory_space<vmem>>, vector<1x128xf32>
    %2 = vector.broadcast %1 : vector<1x128xf32> to vector<256x128xf32>
    %3 = arith.mulf %0, %2 : vector<256x128xf32>
    %c0_3 = arith.constant 0 : index
    %c0_4 = arith.constant 0 : index
    %4 = vector.load %arg3[%c0_3, %c0_4] : memref<1x128xf32, #tpu.memory_space<vmem>>, vector<1x128xf32>
    %5 = vector.broadcast %4 : vector<1x128xf32> to vector<256x128xf32>
    %6 = arith.addf %3, %5 : vector<256x128xf32>
    %cst = arith.constant 0.000000e+00 : f32
    %7 = vector.broadcast %cst : f32 to vector<256x128xf32>
    %8 = arith.maximumf %6, %7 : vector<256x128xf32>
    %9 = arith.truncf %8 : vector<256x128xf32> to vector<256x128xbf16>
    %c0_5 = arith.constant 0 : index
    %c0_6 = arith.constant 0 : index
    %10 = vector.load %arg4[%c0_5, %c0_6] : memref<256x128xbf16, #tpu.memory_space<vmem>>, vector<256x128xbf16>
    tpu.vector_store %arg4[%c0_5, %c0_6], %9 {strides = array<i32>} : memref<256x128xbf16, #tpu.memory_space<vmem>>, vector<256x128xbf16>,
    return
  }
  func.func @transform_0(%arg0: i32) -> (i32, i32) {
    %c0_i32 = arith.constant 0 : i32
    %c0_i32_0 = arith.constant 0 : i32
    return %arg0, %c0_i32 : i32, i32
  }
  func.func @transform_1(%arg0: i32) -> (i32, i32) {
    %c0_i32 = arith.constant 0 : i32
    %c0_i32_0 = arith.constant 0 : i32
    %c0_i32_1 = arith.constant 0 : i32
    return %c0_i32, %c0_i32_0 : i32, i32
  }
  func.func @transform_2(%arg0: i32) -> (i32, i32) {
    %c0_i32 = arith.constant 0 : i32
    %c0_i32_0 = arith.constant 0 : i32
    %c0_i32_1 = arith.constant 0 : i32
    return %c0_i32, %c0_i32_0 : i32, i32
  }
  func.func @transform_3(%arg0: i32) -> (i32, i32) {
    %c0_i32 = arith.constant 0 : i32
    %c0_i32_0 = arith.constant 0 : i32
    return %arg0, %c0_i32 : i32, i32
  }
}

module attributes {stable_mosaic.version = 11 : i64} {
  func.func @_phase_gemm_stats_kernel(%arg0: i32, %arg1: memref<1x512x512xbf16, #tpu.memory_space<vmem>>, %arg2: memref<1x512x128xbf16, #tpu.memory_space<vmem>>, %arg3: memref<1x512x128xf32, #tpu.memory_space<vmem>>, %arg4: memref<1x1x128xf32, #tpu.memory_space<vmem>>, %arg5: memref<1x1x128xf32, #tpu.memory_space<vmem>>) attributes {dimension_semantics = [#tpu.dimension_semantics<parallel>], iteration_bounds = array<i64: 4>, scalar_prefetch = 0 : i64, scratch_operands = 0 : i64, tpu.core_type = #tpu.core_type<tc>, window_params = [{transform_indices = @transform_0, window_bounds = array<i64: 1, 512, 512>}, {transform_indices = @transform_1, window_bounds = array<i64: 1, 512, 128>}, {transform_indices = @transform_2, window_bounds = array<i64: 1, 512, 128>}, {transform_indices = @transform_3, window_bounds = array<i64: 1, 1, 128>}, {transform_indices = @transform_4, window_bounds = array<i64: 1, 1, 128>}]} {
    %c0 = arith.constant 0 : index
    %c0_0 = arith.constant 0 : index
    %c0_1 = arith.constant 0 : index
    %0 = vector.load %arg1[%c0, %c0_0, %c0_1] : memref<1x512x512xbf16, #tpu.memory_space<vmem>>, vector<1x512x512xbf16>
    %1 = vector.shape_cast %0 : vector<1x512x512xbf16> to vector<512x512xbf16>
    %c0_2 = arith.constant 0 : index
    %c0_3 = arith.constant 0 : index
    %c0_4 = arith.constant 0 : index
    %2 = vector.load %arg2[%c0_2, %c0_3, %c0_4] : memref<1x512x128xbf16, #tpu.memory_space<vmem>>, vector<1x512x128xbf16>
    %3 = vector.shape_cast %2 : vector<1x512x128xbf16> to vector<512x128xbf16>
    %cst = arith.constant dense<0.000000e+00> : vector<512x128xf32>
    %4 = tpu.matmul %1, %3, %cst {dimension_numbers = #tpu.dot_dimension_numbers<[1], [0], [0], [1], [0, 0, 1, 1], [], []>} : vector<512x512xbf16>, vector<512x128xbf16>, vector<512x128xf32> -> vector<512x128xf32>
    %c0_5 = arith.constant 0 : index
    %c0_6 = arith.constant 0 : index
    %c0_7 = arith.constant 0 : index
    %5 = vector.load %arg3[%c0_5, %c0_6, %c0_7] : memref<1x512x128xf32, #tpu.memory_space<vmem>>, vector<1x512x128xf32>
    %6 = vector.shape_cast %5 : vector<1x512x128xf32> to vector<512x128xf32>
    %7 = vector.shape_cast %4 : vector<512x128xf32> to vector<1x512x128xf32>
    tpu.vector_store %arg3[%c0_5, %c0_6, %c0_7], %7 {strides = array<i32>} : memref<1x512x128xf32, #tpu.memory_space<vmem>>, vector<1x512x128xf32>,
    %cst_8 = arith.constant dense<0.000000e+00> : vector<128xf32>
    %8 = vector.multi_reduction <add>, %4, %cst_8 [0] : vector<512x128xf32> to vector<128xf32>
    %9 = vector.shape_cast %8 : vector<128xf32> to vector<1x128xf32>
    %c0_9 = arith.constant 0 : index
    %c0_10 = arith.constant 0 : index
    %c0_11 = arith.constant 0 : index
    %10 = vector.load %arg4[%c0_9, %c0_10, %c0_11] : memref<1x1x128xf32, #tpu.memory_space<vmem>>, vector<1x1x128xf32>
    %11 = vector.shape_cast %10 : vector<1x1x128xf32> to vector<1x128xf32>
    %12 = vector.shape_cast %9 : vector<1x128xf32> to vector<1x1x128xf32>
    tpu.vector_store %arg4[%c0_9, %c0_10, %c0_11], %12 {strides = array<i32>} : memref<1x1x128xf32, #tpu.memory_space<vmem>>, vector<1x1x128xf32>,
    %13 = arith.mulf %4, %4 : vector<512x128xf32>
    %cst_12 = arith.constant dense<0.000000e+00> : vector<128xf32>
    %14 = vector.multi_reduction <add>, %13, %cst_12 [0] : vector<512x128xf32> to vector<128xf32>
    %15 = vector.shape_cast %14 : vector<128xf32> to vector<1x128xf32>
    %c0_13 = arith.constant 0 : index
    %c0_14 = arith.constant 0 : index
    %c0_15 = arith.constant 0 : index
    %16 = vector.load %arg5[%c0_13, %c0_14, %c0_15] : memref<1x1x128xf32, #tpu.memory_space<vmem>>, vector<1x1x128xf32>
    %17 = vector.shape_cast %16 : vector<1x1x128xf32> to vector<1x128xf32>
    %18 = vector.shape_cast %15 : vector<1x128xf32> to vector<1x1x128xf32>
    tpu.vector_store %arg5[%c0_13, %c0_14, %c0_15], %18 {strides = array<i32>} : memref<1x1x128xf32, #tpu.memory_space<vmem>>, vector<1x1x128xf32>,
    return
  }
  func.func @transform_0(%arg0: i32) -> (i32, i32, i32) {
    %c0_i32 = arith.constant 0 : i32
    %c0_i32_0 = arith.constant 0 : i32
    %c0_i32_1 = arith.constant 0 : i32
    return %arg0, %c0_i32, %c0_i32_0 : i32, i32, i32
  }
  func.func @transform_1(%arg0: i32) -> (i32, i32, i32) {
    %c0_i32 = arith.constant 0 : i32
    %c0_i32_0 = arith.constant 0 : i32
    %c0_i32_1 = arith.constant 0 : i32
    return %arg0, %c0_i32, %c0_i32_0 : i32, i32, i32
  }
  func.func @transform_2(%arg0: i32) -> (i32, i32, i32) {
    %c0_i32 = arith.constant 0 : i32
    %c0_i32_0 = arith.constant 0 : i32
    %c0_i32_1 = arith.constant 0 : i32
    return %arg0, %c0_i32, %c0_i32_0 : i32, i32, i32
  }
  func.func @transform_3(%arg0: i32) -> (i32, i32, i32) {
    %c0_i32 = arith.constant 0 : i32
    %c0_i32_0 = arith.constant 0 : i32
    %c0_i32_1 = arith.constant 0 : i32
    return %arg0, %c0_i32, %c0_i32_0 : i32, i32, i32
  }
  func.func @transform_4(%arg0: i32) -> (i32, i32, i32) {
    %c0_i32 = arith.constant 0 : i32
    %c0_i32_0 = arith.constant 0 : i32
    %c0_i32_1 = arith.constant 0 : i32
    return %arg0, %c0_i32, %c0_i32_0 : i32, i32, i32
  }
}

module attributes {stable_mosaic.version = 11 : i64} {
  func.func @_scale_shift_relu_kernel(%arg0: i32, %arg1: memref<1024x128xf32, #tpu.memory_space<vmem>>, %arg2: memref<1x128xf32, #tpu.memory_space<vmem>>, %arg3: memref<1x128xf32, #tpu.memory_space<vmem>>, %arg4: memref<1024x128xbf16, #tpu.memory_space<vmem>>) attributes {dimension_semantics = [#tpu.dimension_semantics<parallel>], iteration_bounds = array<i64: 2>, scalar_prefetch = 0 : i64, scratch_operands = 0 : i64, tpu.core_type = #tpu.core_type<tc>, window_params = [{transform_indices = @transform_0, window_bounds = array<i64: 1024, 128>}, {pipeline_mode = #tpu.pipeline_mode<synchronous>, transform_indices = @transform_1, window_bounds = array<i64: 1, 128>}, {pipeline_mode = #tpu.pipeline_mode<synchronous>, transform_indices = @transform_2, window_bounds = array<i64: 1, 128>}, {transform_indices = @transform_3, window_bounds = array<i64: 1024, 128>}]} {
    %c0 = arith.constant 0 : index
    %c0_0 = arith.constant 0 : index
    %0 = vector.load %arg1[%c0, %c0_0] : memref<1024x128xf32, #tpu.memory_space<vmem>>, vector<1024x128xf32>
    %c0_1 = arith.constant 0 : index
    %c0_2 = arith.constant 0 : index
    %1 = vector.load %arg2[%c0_1, %c0_2] : memref<1x128xf32, #tpu.memory_space<vmem>>, vector<1x128xf32>
    %2 = vector.broadcast %1 : vector<1x128xf32> to vector<1024x128xf32>
    %3 = arith.mulf %0, %2 : vector<1024x128xf32>
    %c0_3 = arith.constant 0 : index
    %c0_4 = arith.constant 0 : index
    %4 = vector.load %arg3[%c0_3, %c0_4] : memref<1x128xf32, #tpu.memory_space<vmem>>, vector<1x128xf32>
    %5 = vector.broadcast %4 : vector<1x128xf32> to vector<1024x128xf32>
    %6 = arith.addf %3, %5 : vector<1024x128xf32>
    %cst = arith.constant 0.000000e+00 : f32
    %7 = vector.broadcast %cst : f32 to vector<1024x128xf32>
    %8 = arith.maximumf %6, %7 : vector<1024x128xf32>
    %9 = arith.truncf %8 : vector<1024x128xf32> to vector<1024x128xbf16>
    %c0_5 = arith.constant 0 : index
    %c0_6 = arith.constant 0 : index
    %10 = vector.load %arg4[%c0_5, %c0_6] : memref<1024x128xbf16, #tpu.memory_space<vmem>>, vector<1024x128xbf16>
    tpu.vector_store %arg4[%c0_5, %c0_6], %9 {strides = array<i32>} : memref<1024x128xbf16, #tpu.memory_space<vmem>>, vector<1024x128xbf16>,
    return
  }
  func.func @transform_0(%arg0: i32) -> (i32, i32) {
    %c0_i32 = arith.constant 0 : i32
    %c0_i32_0 = arith.constant 0 : i32
    return %arg0, %c0_i32 : i32, i32
  }
  func.func @transform_1(%arg0: i32) -> (i32, i32) {
    %c0_i32 = arith.constant 0 : i32
    %c0_i32_0 = arith.constant 0 : i32
    %c0_i32_1 = arith.constant 0 : i32
    return %c0_i32, %c0_i32_0 : i32, i32
  }
  func.func @transform_2(%arg0: i32) -> (i32, i32) {
    %c0_i32 = arith.constant 0 : i32
    %c0_i32_0 = arith.constant 0 : i32
    %c0_i32_1 = arith.constant 0 : i32
    return %c0_i32, %c0_i32_0 : i32, i32
  }
  func.func @transform_3(%arg0: i32) -> (i32, i32) {
    %c0_i32 = arith.constant 0 : i32
    %c0_i32_0 = arith.constant 0 : i32
    return %arg0, %c0_i32 : i32, i32
  }
}

module attributes {stable_mosaic.version = 11 : i64} {
  func.func @_phase_gemm_tanh_kernel(%arg0: i32, %arg1: memref<1x2048x256xbf16, #tpu.memory_space<vmem>>, %arg2: memref<1x256x128xbf16, #tpu.memory_space<vmem>>, %arg3: memref<1x2048x128xbf16, #tpu.memory_space<vmem>>) attributes {dimension_semantics = [#tpu.dimension_semantics<parallel>], iteration_bounds = array<i64: 4>, scalar_prefetch = 0 : i64, scratch_operands = 0 : i64, tpu.core_type = #tpu.core_type<tc>, window_params = [{transform_indices = @transform_0, window_bounds = array<i64: 1, 2048, 256>}, {transform_indices = @transform_1, window_bounds = array<i64: 1, 256, 128>}, {transform_indices = @transform_2, window_bounds = array<i64: 1, 2048, 128>}]} {
    %c0 = arith.constant 0 : index
    %c0_0 = arith.constant 0 : index
    %c0_1 = arith.constant 0 : index
    %0 = vector.load %arg1[%c0, %c0_0, %c0_1] : memref<1x2048x256xbf16, #tpu.memory_space<vmem>>, vector<1x2048x256xbf16>
    %1 = vector.shape_cast %0 : vector<1x2048x256xbf16> to vector<2048x256xbf16>
    %c0_2 = arith.constant 0 : index
    %c0_3 = arith.constant 0 : index
    %c0_4 = arith.constant 0 : index
    %2 = vector.load %arg2[%c0_2, %c0_3, %c0_4] : memref<1x256x128xbf16, #tpu.memory_space<vmem>>, vector<1x256x128xbf16>
    %3 = vector.shape_cast %2 : vector<1x256x128xbf16> to vector<256x128xbf16>
    %cst = arith.constant dense<0.000000e+00> : vector<2048x128xf32>
    %4 = tpu.matmul %1, %3, %cst {dimension_numbers = #tpu.dot_dimension_numbers<[1], [0], [0], [1], [0, 0, 1, 1], [], []>} : vector<2048x256xbf16>, vector<256x128xbf16>, vector<2048x128xf32> -> vector<2048x128xf32>
    %5 = math.tanh %4 : vector<2048x128xf32>
    %6 = arith.truncf %5 : vector<2048x128xf32> to vector<2048x128xbf16>
    %c0_5 = arith.constant 0 : index
    %c0_6 = arith.constant 0 : index
    %c0_7 = arith.constant 0 : index
    %7 = vector.load %arg3[%c0_5, %c0_6, %c0_7] : memref<1x2048x128xbf16, #tpu.memory_space<vmem>>, vector<1x2048x128xbf16>
    %8 = vector.shape_cast %7 : vector<1x2048x128xbf16> to vector<2048x128xbf16>
    %9 = vector.shape_cast %6 : vector<2048x128xbf16> to vector<1x2048x128xbf16>
    tpu.vector_store %arg3[%c0_5, %c0_6, %c0_7], %9 {strides = array<i32>} : memref<1x2048x128xbf16, #tpu.memory_space<vmem>>, vector<1x2048x128xbf16>,
    return
  }
  func.func @transform_0(%arg0: i32) -> (i32, i32, i32) {
    %c0_i32 = arith.constant 0 : i32
    %c0_i32_0 = arith.constant 0 : i32
    %c0_i32_1 = arith.constant 0 : i32
    return %arg0, %c0_i32, %c0_i32_0 : i32, i32, i32
  }
  func.func @transform_1(%arg0: i32) -> (i32, i32, i32) {
    %c0_i32 = arith.constant 0 : i32
    %c0_i32_0 = arith.constant 0 : i32
    %c0_i32_1 = arith.constant 0 : i32
    return %arg0, %c0_i32, %c0_i32_0 : i32, i32, i32
  }
  func.func @transform_2(%arg0: i32) -> (i32, i32, i32) {
    %c0_i32 = arith.constant 0 : i32
    %c0_i32_0 = arith.constant 0 : i32
    %c0_i32_1 = arith.constant 0 : i32
    return %arg0, %c0_i32, %c0_i32_0 : i32, i32, i32
  }
}

</mosaic_0001>

<bundles_post_ra>
// kernel: generator_forward.8
= control target key start
LH: loop header
LB: loop body
LE: loop exit
PB: predicated region body
PF: predicated region fallthrough
CT: control target
= control target key end

     0   :  { %8 = vsyncpa [#allocation3], 0  ;;  %s2436_s0 = inlined_call_operand.vmem [shape: bf16[2,32], index: 0, kind: input, shape index: {}]   ;;  %s2437_s1 = inlined_call_operand.hbm [shape: bf16[32,8192], index: 1, kind: input, shape index: {}]   ;;  %s2438_s2 = inlined_call_operand.hbm [shape: f32[1,8192], index: 2, kind: input, shape index: {}]   ;;  %s2439_s3 = inlined_call_operand.vmem [shape: bf16[2,8192], index: 3, kind: output, shape index: {}]  }
   0x1   :  { %10 = vsyncpa [#allocation3 + $0x1], 0 }
   0x2   :  { %11 = vsyncpa [#allocation5], 0 }
   0x3   :  { %13 = vsyncpa [#allocation5 + $0x1], 0  ;;  %s2086_s12 = smov 0   ;;  %s2088_s13 = smov 0  }
   0x4   :  { %s2090_s14 = smov 0   ;;  %s2092_s15 = smov 0  }
   0x5 LB: > { %s1796_s16 = sadd.s32 4294967295, %s2057_s15   ;;  %s2106_s17 = sadd.s32 1, %s2057_s15   ;;  %s2057_s15 = sphi %s2092_s15, %s2449_s15   ;;  %s2053_s14 = sphi %s2090_s14, %s2448_s14   ;;  %s2049_s13 = sphi %s2088_s13, %s2447_s13   ;;  %s2045_s12 = sphi %s2086_s12, %s2446_s12  }
   0x6   : > { %s44_s18 = ssub.s32 %s2057_s15, %s2106_s17  ;;  %s47_s19 = sadd.s32 1, %s2053_s14 }
   0x7   : > { %p45_p0 = scmp.eq.s32.totalorder %s44_s18, 0  ;;  %p54_p1 = scmp.ne.s32.totalorder %s2053_s14, %s2049_s13 }
   0x8   : > { %p55_p2 = scmp.eq.s32.totalorder %s2057_s15, 0  ;;  %p60_p3 = scmp.ne.s32.totalorder %s2049_s13, %s2045_s12 }
   0x9   : > { %s2116_s20 = scalar_select %p45_p0, %s2053_s14, %s47_s19  }
   0xa   : > { %p56_p4 = por %p55_p2, %p54_p1  ;;  %p61_p5 = scmp.eq.s32.totalorder %s1796_s16, 0 }
   0xb   : > { %p1921_p6 = scmp.lt.s32.totalorder %s2057_s15, 2  ;;  %s2126_s22 = sand.u32 1, %s2053_s14  }
   0xc   : > { %p2121_p7 = por %p61_p5, %p60_p3  ;;  %s1800_s23 = sshll.u32 %s2126_s22, 9 }
   0xd   : > { %s1908_s24 = sshll.u32 %s2057_s15, 11  ;;  %s143_s28 = scalar_lea.vmem [#allocation2], %s1800_s23 }
   0xe   : > { %s2441_s21 = scalar_select %p2121_p7, 1, 0 }
   0xf   : > { %s2133_s27 = scalar_lea.hbm %s2437_s1, %s1908_s24  ;;  %s150_s29 = sshll.u32 %s143_s28, 4  ;;  %s2135_s29 = int_to_ptr.vmem [resolvable:$true] %s150_s29 }
  0x10   : > { %p2137_p8 = pnand %p1921_p6, %p56_p4  ;;  %s140_s4 = scalar_lea.sflag [#allocation3], %s2126_s22 }
  0x11   : > { %s1959_s5 = scalar_lea.hbm %s2133_s27, 8192  ;;  %s1964_s8 = scalar_lea.hbm %s2437_s1, 16384 }
  0x12   : > { %p1960_p9 = scmp.ne.s32.totalorder %s2133_s27, %s1959_s5  ;;  %p1961_p10 = pneg %p2137_p8 }
  0x13   : > { %p1965_p13 = scmp.lt.u32.totalorder %s2133_s27, %s2437_s1  ;;  %p1966_p0 = scmp.lt.u32.totalorder %s1964_s8, %s1959_s5 }
  0x14   : > { %p1962_p11 = pnand %p1961_p10, %p1960_p9  ;;  %p1968_p2 = scmp.lt.u32.totalorder %s1959_s5, %s2133_s27 }
  0x15   : > { %p1967_p1 = por %p1966_p0, %p1965_p13 }
  0x16   : > { %p1963_p12 = pneg %p1962_p11 }
  0x17   : > { %p1969_p3 = por %p1968_p2, %p1967_p1 }
  0x19   : > { %p1970_p4 = pnand %p1969_p3, %p1963_p12 }
  0x1b   : > { %1973 = shalt.err (!%p1970_p4)
}
  0x1c   : > { %s1974_s11 = scalar_lea.vmem %s2135_s29, 8192  ;;  %s2059_s12 = smov [#allocation2]  }
  0x1d   : > { %p1975_p5 = scmp.ne.s32.totalorder %s2135_s29, %s1974_s11  ;;  %s1979_s18 = sshll.u32 %s2059_s12, 4  ;;  %s1980_s18 = int_to_ptr.vmem [resolvable:$false] %s1979_s18 }
  0x1e   : > { %s1981_s19 = scalar_lea.vmem %s1980_s18, 16384  ;;  %p1982_p11 = scmp.lt.s32.totalorder %s2135_s29, %s1980_s18 }
  0x1f   : > { %p1977_p6 = pnand %p1975_p5, %p1961_p10  ;;  %p1983_p13 = scmp.lt.s32.totalorder %s1981_s19, %s1974_s11 }
  0x21   : > { %p1978_p9 = pneg %p1977_p6  ;;  %p1984_p0 = por %p1983_p13, %p1982_p11 }
  0x23   : > { %p1985_p1 = pnand %p1984_p0, %p1978_p9 }
  0x25   : > { %1988 = shalt.err (!%p1985_p1)
}
  0x26   : > { %s2060_s23 = smov 4096   ;;  %s2061_s24 = smov 2048  }
  0x27   : > { %s2062_s25 = smov 128   ;;  %p1806_p12 = scmp.ge.s32.totalorder %s2057_s15, 1 }
  0x28   : > { %1917 = dma.hbm_to_vmem [thread:$0]  (!%p2137_p8), %s2133_s27, 8192, %s2135_s29, %s140_s4, %s2060_s23, %s2061_s24, %s2062_s25  }
  0x29   : > { %p177_p2 = scmp.lt.s32.totalorder %s2057_s15, 3  ;;  %s1803_s26 = sshll.u32 %s2126_s22, 5 }
  0x2a   : > { %s1909_s5 = sshll.u32 %s2057_s15, 9  ;;  %s164_s6 = scalar_lea.vmem [#allocation4], %s1803_s26 }
  0x2b   : > { %p2172_p3 = pnand %p1806_p12, %p177_p2  ;;  %s172_s7 = sshll.u32 %s164_s6, 4  ;;  %s173_s7 = int_to_ptr.vmem [resolvable:$true] %s172_s7 }
  0x2c   : > { %s2180_s10 = scalar_lea.hbm %s2438_s2, %s1909_s5  ;;  %s161_s27 = scalar_lea.sflag [#allocation5], %s2126_s22 }
  0x2d   : > { %s2443_s28 = scalar_select %p2172_p3, 1, 0 }
  0x2e   : > { %s1989_s29 = scalar_lea.hbm %s2180_s10, 512  ;;  %s1994_s12 = scalar_lea.hbm %s2438_s2, 1024 }
  0x2f   : > { %p1990_p4 = scmp.ne.s32.totalorder %s2180_s10, %s1989_s29  ;;  %p1995_p9 = scmp.lt.u32.totalorder %s2180_s10, %s2438_s2 }
  0x30   : > { %p1996_p11 = scmp.lt.u32.totalorder %s1994_s12, %s1989_s29  ;;  %p1998_p0 = scmp.lt.u32.totalorder %s1989_s29, %s2180_s10 }
  0x31   : > { %p1992_p5 = pnand %p1990_p4, %p1961_p10 }
  0x32   : > { %p1997_p13 = por %p1996_p11, %p1995_p9 }
  0x33   : > { %p1993_p6 = pneg %p1992_p5 }
  0x34   : > { %p1999_p1 = por %p1998_p0, %p1997_p13 }
  0x36   : > { %p2000_p12 = pnand %p1999_p1, %p1993_p6 }
  0x38   : > { %2003 = shalt.err (!%p2000_p12)
}
  0x39   : > { %s2004_s22 = scalar_lea.vmem %s173_s7, 512  ;;  %s2063_s23 = smov [#allocation4]  }
  0x3a   : > { %p2005_p2 = scmp.ne.s32.totalorder %s173_s7, %s2004_s22  ;;  %s2009_s24 = sshll.u32 %s2063_s23, 4  ;;  %s2010_s24 = int_to_ptr.vmem [resolvable:$false] %s2009_s24 }
  0x3b   : > { %s2011_s25 = scalar_lea.vmem %s2010_s24, 1024  ;;  %p2012_p7 = scmp.lt.s32.totalorder %s173_s7, %s2010_s24 }
  0x3c   : > { %p2007_p4 = pnand %p2005_p2, %p1961_p10  ;;  %p2013_p3 = scmp.lt.s32.totalorder %s2011_s25, %s2004_s22 }
  0x3e   : > { %p2008_p5 = pneg %p2007_p4  ;;  %p2014_p9 = por %p2013_p3, %p2012_p7 }
  0x40   : > { %p2015_p11 = pnand %p2014_p9, %p2008_p5 }
  0x42   : > { %2018 = shalt.err (!%p2015_p11)
}
  0x43   : > { %1920 = dma.hbm_to_vmem [thread:$0]  (!%p2137_p8), %s2180_s10, 512, %s173_s7, %s161_s27  }
  0x44   : > { %p2444_p6 = scmp.ne.s32.totalorder %s2443_s28, 0 }
  0x45   : > { %s183_s26 = sand.u32 (!%p2444_p6), 1, %s2049_s13   ;;  %p2445_p10 = scmp.ne.s32.totalorder (!%p2444_p6), %s2441_s21, 0 }
  0x46   : > { %181 = sbr.rel (%p2444_p6) target bundleno = 375 (0x177), region = 32  ;;  %s1807_s5 = sshll.u32 (!%p2444_p6), %s183_s26, 9 }
  0x47   : > { %s184_s6 = scalar_lea.sflag (!%p2444_p6), [#allocation3], %s183_s26  ;;  %s2205_s8 = scalar_lea.vmem (!%p2444_p6), [#allocation2], %s1807_s5 }
  0x4d   : > { %2036 = dma.done.wait (%p2445_p10), %s184_s6, 8192  }
  0x4e   : > { %2038 = vsyncadd (%p2445_p10), %s184_s6, 4294959104  ;;  %s1808_s9 = sshll.u32 %s183_s26, 5  ;;  %s193_s30 = scalar_lea.sflag [#allocation5], %s183_s26 }
  0x4f   : > { %s2211_s29 = scalar_lea.vmem [#allocation4], %s1808_s9 }
  0x50   : > { %2040 = dma.done.wait (%p2445_p10), %s193_s30, 512  }
  0x51   : > { %2042 = vsyncadd (%p2445_p10), %s193_s30, 4294966784  ;;  %v2064_v0 = vmov 0   ;;  %v232_v1 = vld [vmem:[%s2205_s8] sm:$0xff]  ;;  %v233_v3 = vld [vmem:[%s2205_s8 + $0x8] sm:$0xff]  ;;  %vm784_vm0 = vcmask 261120   ;;  %s1809_s7 = sshll.u32 %s1796_s16, 5 }
  0x52   : > { %820 = vmatprep.mubr.bf16.mxu0 %v2064_v0  ;;  %861 = vmatprep.mubr.bf16.mxu1 %v2064_v0  ;;  %v248_v2 = vld [vmem:[%s2205_s8 + $0x80] sm:$0xff]  ;;  %v249_v5 = vld [vmem:[%s2205_s8 + $0x88] sm:$0xff]  ;;  %v234_v15 = vld [vmem:[%s2205_s8 + $0x10] sm:$0xff]  ;;  %p226_p7 = scmp.lt.s32.totalorder %s1809_s7, 63 }
  0x53   : > { %v1811_v4 = vcombine.high %v232_v1, %v248_v2  ;;  %v1810_v6 = vcombine.low %v232_v1, %v248_v2  ;;  %v264_v7 = vld [vmem:[%s2205_s8 + $0x100] sm:$0xff]  ;;  %v1813_v9 = vcombine.high %v233_v3, %v249_v5  ;;  %v1812_v10 = vcombine.low %v233_v3, %v249_v5  ;;  %v265_v12 = vld [vmem:[%s2205_s8 + $0x108] sm:$0xff]  ;;  %v250_v16 = vld [vmem:[%s2205_s8 + $0x90] sm:$0xff] }
  0x54   : > { %v280_v8 = vld [vmem:[%s2205_s8 + $0x180] sm:$0xff]  ;;  %v281_v13 = vld [vmem:[%s2205_s8 + $0x188] sm:$0xff]  ;;  %v235_v17 = vld [vmem:[%s2205_s8 + $0x18] sm:$0xff]  ;;  %v1815_v21 = vcombine.high %v234_v15, %v250_v16  ;;  %v1814_v28 = vcombine.low %v234_v15, %v250_v16  ;;  %s2451_s7 = smov (!%p226_p7, %s1809_s7), 63 }
  0x55   : > { %v1843_v11 = vcombine.high %v264_v7, %v280_v8  ;;  %788 = vmatprep.subr.bf16.mxu0 %v1811_v4  ;;  %v1845_v14 = vcombine.high %v265_v12, %v281_v13  ;;  %829 = vmatprep.subr.bf16.mxu1 %v1813_v9  ;;  %v1842_v18 = vcombine.low %v264_v7, %v280_v8  ;;  %v251_v19 = vld [vmem:[%s2205_s8 + $0x98] sm:$0xff]  ;;  %v266_v23 = vld [vmem:[%s2205_s8 + $0x110] sm:$0xff]  ;;  %v2238_v27 = vld [vmem:[%s2436_s0] sm:$0x1]  ;;  %s2377_s10 = scalar_lea.vmem %s2439_s3, %s2451_s7 }
  0x56   : > { %789 = vmatpush1.bf16.msra.mxu0 %v1810_v6  ;;  %830 = vmatpush1.bf16.msra.mxu1 %v1812_v10  ;;  %v1844_v20 = vcombine.low %v265_v12, %v281_v13  ;;  %v1817_v22 = vcombine.high %v235_v17, %v251_v19  ;;  %v282_v24 = vld [vmem:[%s2205_s8 + $0x190] sm:$0xff]  ;;  %v267_v25 = vld [vmem:[%s2205_s8 + $0x118] sm:$0xff]  ;;  %v1816_v29 = vcombine.low %v235_v17, %v251_v19  ;;  %v236_v32 = vld [vmem:[%s2205_s8 + $0x20] sm:$0xff] }
  0x57   : > { %790 = vmatprep.subr.bf16.mxu0 %v1843_v11  ;;  %831 = vmatprep.subr.bf16.mxu1 %v1845_v14  ;;  %v283_v26 = vld [vmem:[%s2205_s8 + $0x198] sm:$0xff]  ;;  %v1847_v30 = vcombine.high %v266_v23, %v282_v24  ;;  %v252_v33 = vld [vmem:[%s2205_s8 + $0xa0] sm:$0xff]  ;;  %v237_v34 = vld [vmem:[%s2205_s8 + $0x28] sm:$0xff]  ;;  %v1846_v36 = vcombine.low %v266_v23, %v282_v24 }
  0x58   : > { %v1849_v31 = vcombine.high %v267_v25, %v283_v26  ;;  %v253_v35 = vld [vmem:[%s2205_s8 + $0xa8] sm:$0xff]  ;;  %v1848_v37 = vcombine.low %v267_v25, %v283_v26  ;;  %v1819_v38 = vcombine.high %v236_v32, %v252_v33  ;;  %v268_v40 = vld [vmem:[%s2205_s8 + $0x120] sm:$0xff]  ;;  %v1818_v44 = vcombine.low %v236_v32, %v252_v33  ;;  %v238_v48 = vld [vmem:[%s2205_s8 + $0x30] sm:$0xff] }
  0x59   : > { %v1821_v39 = vcombine.high %v237_v34, %v253_v35  ;;  %v284_v41 = vld [vmem:[%s2205_s8 + $0x1a0] sm:$0xff]  ;;  %v269_v42 = vld [vmem:[%s2205_s8 + $0x128] sm:$0xff]  ;;  %v1820_v45 = vcombine.low %v237_v34, %v253_v35  ;;  %v254_v49 = vld [vmem:[%s2205_s8 + $0xb0] sm:$0xff] }
  0x5a   : > { %791 = vmatpush1.bf16.msra.mxu0 %v1842_v18  ;;  %832 = vmatpush1.bf16.msra.mxu1 %v1844_v20  ;;  %v285_v43 = vld [vmem:[%s2205_s8 + $0x1a8] sm:$0xff]  ;;  %v1851_v46 = vcombine.high %v268_v40, %v284_v41  ;;  %v239_v50 = vld [vmem:[%s2205_s8 + $0x38] sm:$0xff]  ;;  %v1850_v52 = vcombine.low %v268_v40, %v284_v41  ;;  %v1823_v54 = vcombine.high %v238_v48, %v254_v49  ;;  %v270_v56 = vld [vmem:[%s2205_s8 + $0x130] sm:$0xff] }
  0x5b   : > { %870 = vmatprep.subr.bf16.mxu0 %v1815_v21  ;;  %911 = vmatprep.subr.bf16.mxu1 %v1817_v22  ;;  %v1853_v47 = vcombine.high %v269_v42, %v285_v43  ;;  %v255_v51 = vld [vmem:[%s2205_s8 + $0xb8] sm:$0xff]  ;;  %v1852_v53 = vcombine.low %v269_v42, %v285_v43  ;;  %v286_v57 = vld [vmem:[%s2205_s8 + $0x1b0] sm:$0xff]  ;;  %v1822_v60 = vcombine.low %v238_v48, %v254_v49  ;;  %v240_v1 = vld [vmem:[%s2205_s8 + $0x40] sm:$0xff] }
  0x5c   : > { %v1825_v55 = vcombine.high %v239_v50, %v255_v51  ;;  %v271_v58 = vld [vmem:[%s2205_s8 + $0x138] sm:$0xff]  ;;  %v1824_v61 = vcombine.low %v239_v50, %v255_v51  ;;  %v1855_v62 = vcombine.high %v270_v56, %v286_v57  ;;  %v256_v2 = vld [vmem:[%s2205_s8 + $0xc0] sm:$0xff]  ;;  %v241_v3 = vld [vmem:[%s2205_s8 + $0x48] sm:$0xff]  ;;  %v1854_v5 = vcombine.low %v270_v56, %v286_v57 }
  0x5d   : > { %1874 = vmatmul.mubr.msk.bf16.vlgmr.msra.gmra.mrb[0].mxu0 %vm784_vm0, %v2238_v27  ;;  %1875 = vmatmul.mubr.msk.bf16.vlgmr.msra.gmra.mrb[0].mxu1 %vm784_vm0, %v2238_v27  ;;  %v287_v59 = vld [vmem:[%s2205_s8 + $0x1b8] sm:$0xff]  ;;  %v257_v4 = vld [vmem:[%s2205_s8 + $0xc8] sm:$0xff]  ;;  %v1827_v7 = vcombine.high %v240_v1, %v256_v2  ;;  %v272_v9 = vld [vmem:[%s2205_s8 + $0x140] sm:$0xff]  ;;  %v1826_v13 = vcombine.low %v240_v1, %v256_v2 }
  0x5e   : > { %871 = vmatpush1.bf16.msra.mxu0 %v1814_v28  ;;  %912 = vmatpush1.bf16.msra.mxu1 %v1816_v29  ;;  %v1857_v63 = vcombine.high %v271_v58, %v287_v59  ;;  %v1856_v6 = vcombine.low %v271_v58, %v287_v59  ;;  %v1829_v8 = vcombine.high %v241_v3, %v257_v4  ;;  %v288_v10 = vld [vmem:[%s2205_s8 + $0x1c0] sm:$0xff]  ;;  %v273_v11 = vld [vmem:[%s2205_s8 + $0x148] sm:$0xff]  ;;  %v242_v17 = vld [vmem:[%s2205_s8 + $0x50] sm:$0xff] }
  0x5f   : > { %872 = vmatprep.subr.bf16.mxu0 %v1847_v30  ;;  %913 = vmatprep.subr.bf16.mxu1 %v1849_v31  ;;  %v289_v12 = vld [vmem:[%s2205_s8 + $0x1c8] sm:$0xff]  ;;  %v1828_v14 = vcombine.low %v241_v3, %v257_v4  ;;  %v1859_v15 = vcombine.high %v272_v9, %v288_v10  ;;  %v258_v18 = vld [vmem:[%s2205_s8 + $0xd0] sm:$0xff]  ;;  %v243_v19 = vld [vmem:[%s2205_s8 + $0x58] sm:$0xff]  ;;  %v1858_v21 = vcombine.low %v272_v9, %v288_v10 }
  0x60   : > { %902 = vmatprep.mubr.bf16.mxu0 %v2064_v0  ;;  %943 = vmatprep.mubr.bf16.mxu1 %v2064_v0  ;;  %v1861_v16 = vcombine.high %v273_v11, %v289_v12  ;;  %v259_v20 = vld [vmem:[%s2205_s8 + $0xd8] sm:$0xff]  ;;  %v1860_v22 = vcombine.low %v273_v11, %v289_v12  ;;  %v1831_v23 = vcombine.high %v242_v17, %v258_v18  ;;  %v274_v25 = vld [vmem:[%s2205_s8 + $0x150] sm:$0xff]  ;;  %v244_v34 = vld [vmem:[%s2205_s8 + $0x60] sm:$0xff] }
  0x61   : > { %v1833_v24 = vcombine.high %v243_v19, %v259_v20  ;;  %v290_v26 = vld [vmem:[%s2205_s8 + $0x1d0] sm:$0xff]  ;;  %v275_v28 = vld [vmem:[%s2205_s8 + $0x158] sm:$0xff]  ;;  %v1830_v30 = vcombine.low %v242_v17, %v258_v18  ;;  %v1832_v31 = vcombine.low %v243_v19, %v259_v20  ;;  %v260_v35 = vld [vmem:[%s2205_s8 + $0xe0] sm:$0xff] }
  0x62   : > { %873 = vmatpush1.bf16.msra.mxu0 %v1846_v36  ;;  %914 = vmatpush1.bf16.msra.mxu1 %v1848_v37  ;;  %v291_v29 = vld [vmem:[%s2205_s8 + $0x1d8] sm:$0xff]  ;;  %v1863_v32 = vcombine.high %v274_v25, %v290_v26  ;;  %v245_v36 = vld [vmem:[%s2205_s8 + $0x68] sm:$0xff]  ;;  %v1835_v40 = vcombine.high %v244_v34, %v260_v35  ;;  %v276_v42 = vld [vmem:[%s2205_s8 + $0x160] sm:$0xff] }
  0x63   : > { %952 = vmatprep.subr.bf16.mxu0 %v1819_v38  ;;  %993 = vmatprep.subr.bf16.mxu1 %v1821_v39  ;;  %v1865_v33 = vcombine.high %v275_v28, %v291_v29  ;;  %v261_v37 = vld [vmem:[%s2205_s8 + $0xe8] sm:$0xff]  ;;  %v1862_v38 = vcombine.low %v274_v25, %v290_v26  ;;  %v1864_v39 = vcombine.low %v275_v28, %v291_v29  ;;  %v292_v43 = vld [vmem:[%s2205_s8 + $0x1e0] sm:$0xff]  ;;  %v246_v50 = vld [vmem:[%s2205_s8 + $0x70] sm:$0xff] }
  0x64   : > { %v1837_v41 = vcombine.high %v245_v36, %v261_v37  ;;  %v1867_v48 = vcombine.high %v276_v42, %v292_v43  ;;  %v262_v51 = vld [vmem:[%s2205_s8 + $0xf0] sm:$0xff]  ;;  %v296_v10 = vld [vmem:[%s2211_s29] sm:$0xff] }
  0x65   : > { %1876 = vmatmul.mubr.msk.bf16.vlgmr.msra.gmra.mrb[4].mxu0 %vm784_vm0, %v2238_v27  ;;  %1877 = vmatmul.mubr.msk.bf16.vlgmr.msra.gmra.mrb[4].mxu1 %vm784_vm0, %v2238_v27  ;;  %v1839_v56 = vcombine.high %v246_v50, %v262_v51  ;;  %v278_v58 = vld [vmem:[%s2205_s8 + $0x170] sm:$0xff] }
  0x66   : > { %953 = vmatpush1.bf16.msra.mxu0 %v1818_v44  ;;  %994 = vmatpush1.bf16.msra.mxu1 %v1820_v45  ;;  %v277_v44 = vld [vmem:[%s2205_s8 + $0x168] sm:$0xff]  ;;  %v294_v59 = vld [vmem:[%s2205_s8 + $0x1f0] sm:$0xff] }
  0x67   : > { %954 = vmatprep.subr.bf16.mxu0 %v1851_v46  ;;  %995 = vmatprep.subr.bf16.mxu1 %v1853_v47  ;;  %v293_v45 = vld [vmem:[%s2205_s8 + $0x1e8] sm:$0xff]  ;;  %v1834_v46 = vcombine.low %v244_v34, %v260_v35  ;;  %v1836_v47 = vcombine.low %v245_v36, %v261_v37  ;;  %v1871_v1 = vcombine.high %v278_v58, %v294_v59 }
  0x68   : > { %984 = vmatprep.mubr.bf16.mxu0 %v2064_v0  ;;  %1025 = vmatprep.mubr.bf16.mxu1 %v2064_v0  ;;  %v1869_v49 = vcombine.high %v277_v44, %v293_v45  ;;  %v1870_v3 = vcombine.low %v278_v58, %v294_v59 }
  0x6a   : > { %955 = vmatpush1.bf16.msra.mxu0 %v1850_v52  ;;  %996 = vmatpush1.bf16.msra.mxu1 %v1852_v53  ;;  %v247_v52 = vld [vmem:[%s2205_s8 + $0x78] sm:$0xff] }
  0x6b   : > { %1034 = vmatprep.subr.bf16.mxu0 %v1823_v54  ;;  %1075 = vmatprep.subr.bf16.mxu1 %v1825_v55  ;;  %v263_v53 = vld [vmem:[%s2205_s8 + $0xf8] sm:$0xff]  ;;  %v1866_v54 = vcombine.low %v276_v42, %v292_v43  ;;  %v1868_v55 = vcombine.low %v277_v44, %v293_v45 }
  0x6c   : > { %v1841_v57 = vcombine.high %v247_v52, %v263_v53 }
  0x6d   : > { %1878 = vmatmul.mubr.msk.bf16.vlgmr.msra.gmra.mrb[8].mxu0 %vm784_vm0, %v2238_v27  ;;  %1879 = vmatmul.mubr.msk.bf16.vlgmr.msra.gmra.mrb[8].mxu1 %vm784_vm0, %v2238_v27 }
  0x6e   : > { %1035 = vmatpush1.bf16.msra.mxu0 %v1822_v60  ;;  %1076 = vmatpush1.bf16.msra.mxu1 %v1824_v61  ;;  %v279_v60 = vld [vmem:[%s2205_s8 + $0x178] sm:$0xff] }
  0x6f   : > { %1036 = vmatprep.subr.bf16.mxu0 %v1855_v62  ;;  %1077 = vmatprep.subr.bf16.mxu1 %v1857_v63  ;;  %v295_v61 = vld [vmem:[%s2205_s8 + $0x1f8] sm:$0xff]  ;;  %v1838_v62 = vcombine.low %v246_v50, %v262_v51  ;;  %v1840_v63 = vcombine.low %v247_v52, %v263_v53  ;;  %v297_v52 = vld [vmem:[%s2211_s29 + $0x8] sm:$0xff] }
  0x70   : > { %1066 = vmatprep.mubr.bf16.mxu0 %v2064_v0  ;;  %1107 = vmatprep.mubr.bf16.mxu1 %v2064_v0  ;;  %v1873_v2 = vcombine.high %v279_v60, %v295_v61  ;;  %v1872_v4 = vcombine.low %v279_v60, %v295_v61 }
  0x72   : > { %1037 = vmatpush1.bf16.msra.mxu0 %v1854_v5  ;;  %1078 = vmatpush1.bf16.msra.mxu1 %v1856_v6  ;;  %v304_v5 = vlaneseq }
  0x73   : > { %1116 = vmatprep.subr.bf16.mxu0 %v1827_v7  ;;  %1157 = vmatprep.subr.bf16.mxu1 %v1829_v8  ;;  %v2065_v8 = vmov 1966171168  }
  0x74   : > { %v305_v6 = vshrl.u32 %v304_v5, 7  ;;  %v1513_v9 = vunpack.c.l.s4 %v2065_v8 }
  0x75   : > { %1880 = vmatmul.mubr.msk.bf16.vlgmr.msra.gmra.mrb[12].mxu0 %vm784_vm0, %v2238_v27  ;;  %1881 = vmatmul.mubr.msk.bf16.vlgmr.msra.gmra.mrb[12].mxu1 %vm784_vm0, %v2238_v27 }
  0x76   : > { %1117 = vmatpush1.bf16.msra.mxu0 %v1826_v13  ;;  %1158 = vmatpush1.bf16.msra.mxu1 %v1828_v14  ;;  %v2334_v7 = vsub.s32 0, %v305_v6  ;;  %v2337_v11 = vsub.s32 2, %v305_v6  ;;  %v2339_v12 = vsub.s32 1, %v305_v6  ;;  %v1514_v14 = vunpack.c.0.s8 %v1513_v9 }
  0x77   : > { %1118 = vmatprep.subr.bf16.mxu0 %v1859_v15  ;;  %1159 = vmatprep.subr.bf16.mxu1 %v1861_v16  ;;  %v2351_v28 = vsub.s32 6, %v305_v6  ;;  %v2353_v29 = vsub.s32 5, %v305_v6 }
  0x78   : > { %1148 = vmatprep.mubr.bf16.mxu0 %v2064_v0  ;;  %1189 = vmatprep.mubr.bf16.mxu1 %v2064_v0  ;;  %v307_v13 = vrot.slane %v296_v10, %v2334_v7  ;;  %v315_v15 = vrot.slane %v296_v10, %v2337_v11  ;;  %v339_v59 = vrot.slane %v297_v52, %v2334_v7 }
  0x79   : > { %v347_v61 = vrot.slane %v297_v52, %v2337_v11 }
  0x7a   : > { %1119 = vmatpush1.bf16.msra.mxu0 %v1858_v21  ;;  %1160 = vmatpush1.bf16.msra.mxu1 %v1860_v22  ;;  %v2347_v21 = vsub.s32 %v1514_v14, %v305_v6  ;;  %v2349_v22 = vsub.s32 4, %v305_v6 }
  0x7b   : > { %1198 = vmatprep.subr.bf16.mxu0 %v1831_v23  ;;  %1239 = vmatprep.subr.bf16.mxu1 %v1833_v24 }
  0x7c   : > { %v323_v37 = vrot.slane %v296_v10, %v2349_v22 }
  0x7d   : > { %1882 = vmatmul.mubr.msk.bf16.vlgmr.msra.gmra.mrb[16].mxu0 %vm784_vm0, %v2238_v27  ;;  %1883 = vmatmul.mubr.msk.bf16.vlgmr.msra.gmra.mrb[16].mxu1 %vm784_vm0, %v2238_v27 }
  0x7e   : > { %1199 = vmatpush1.bf16.msra.mxu0 %v1830_v30  ;;  %1240 = vmatpush1.bf16.msra.mxu1 %v1832_v31 }
  0x7f   : > { %1200 = vmatprep.subr.bf16.mxu0 %v1863_v32  ;;  %1241 = vmatprep.subr.bf16.mxu1 %v1865_v33  ;;  %v2355_v33 = vsub.s32 7, %v305_v6 }
  0x80   : > { %1230 = vmatprep.mubr.bf16.mxu0 %v2064_v0  ;;  %1271 = vmatprep.mubr.bf16.mxu1 %v2064_v0 }
  0x81   : > { %v335_v42 = vrot.slane %v296_v10, %v2355_v33 }
  0x82   : > { %1201 = vmatpush1.bf16.msra.mxu0 %v1862_v38  ;;  %1242 = vmatpush1.bf16.msra.mxu1 %v1864_v39  ;;  %v331_v39 = vrot.slane %v296_v10, %v2351_v28 }
  0x83   : > { %1280 = vmatprep.subr.bf16.mxu0 %v1835_v40  ;;  %1321 = vmatprep.subr.bf16.mxu1 %v1837_v41  ;;  %v327_v40 = vrot.slane %v296_v10, %v2353_v29 }
  0x85   : > { %1884 = vmatmul.mubr.msk.bf16.vlgmr.msra.gmra.mrb[20].mxu0 %vm784_vm0, %v2238_v27  ;;  %1885 = vmatmul.mubr.msk.bf16.vlgmr.msra.gmra.mrb[20].mxu1 %vm784_vm0, %v2238_v27 }
  0x86   : > { %1281 = vmatpush1.bf16.msra.mxu0 %v1834_v46  ;;  %1322 = vmatpush1.bf16.msra.mxu1 %v1836_v47 }
  0x87   : > { %1282 = vmatprep.subr.bf16.mxu0 %v1867_v48  ;;  %1323 = vmatprep.subr.bf16.mxu1 %v1869_v49 }
  0x88   : > { %1312 = vmatprep.mubr.bf16.mxu0 %v2064_v0  ;;  %1353 = vmatprep.mubr.bf16.mxu1 %v2064_v0 }
  0x8a   : > { %1283 = vmatpush1.bf16.msra.mxu0 %v1866_v54  ;;  %1324 = vmatpush1.bf16.msra.mxu1 %v1868_v55 }
  0x8b   : > { %1362 = vmatprep.subr.bf16.mxu0 %v1839_v56  ;;  %1403 = vmatprep.subr.bf16.mxu1 %v1841_v57 }
  0x8d   : > { %1886 = vmatmul.mubr.msk.bf16.vlgmr.msra.gmra.mrb[24].mxu0 %vm784_vm0, %v2238_v27  ;;  %1887 = vmatmul.mubr.msk.bf16.vlgmr.msra.gmra.mrb[24].mxu1 %vm784_vm0, %v2238_v27 }
  0x8e   : > { %1363 = vmatpush1.bf16.msra.mxu0 %v1838_v62  ;;  %1404 = vmatpush1.bf16.msra.mxu1 %v1840_v63  ;;  %v343_v62 = vrot.slane %v297_v52, %v2339_v12 }
  0x8f   : > { %1364 = vmatprep.subr.bf16.mxu0 %v1871_v1  ;;  %1405 = vmatprep.subr.bf16.mxu1 %v1873_v2 }
  0x90   : > { %1394 = vmatprep.mubr.bf16.mxu0 %v2064_v0  ;;  %1435 = vmatprep.mubr.bf16.mxu1 %v2064_v0  ;;  %v2341_v0 = vsub.s32 3, %v305_v6 }
  0x92   : > { %1365 = vmatpush1.bf16.msra.mxu0 %v1870_v3  ;;  %1406 = vmatpush1.bf16.msra.mxu1 %v1872_v4  ;;  %v319_v16 = vrot.slane %v296_v10, %v2341_v0  ;;  %v351_v1 = vrot.slane %v297_v52, %v2341_v0 }
  0x95   : > { %1888 = vmatmul.mubr.msk.bf16.vlgmr.msra.gmra.mrb[28].mxu0 %vm784_vm0, %v2238_v27  ;;  %1889 = vmatmul.mubr.msk.bf16.vlgmr.msra.gmra.mrb[28].mxu1 %vm784_vm0, %v2238_v27  ;;  %v311_v27 = vrot.slane %v296_v10, %v2339_v12 }
 0x130   : > { %v822_v17 = vpop.f32.mrb[0].mxu0  ;;  %v863_v19 = vpop.f32.mrb[0].mxu1 }
 0x131   : > { %v823_v18 = vadd.f32 %v822_v17, %v307_v13  ;;  %v824_v20 = vpop.f32.mrb[1].mxu0  ;;  %v864_v23 = vadd.f32 %v863_v19, %v315_v15  ;;  %v865_v25 = vpop.f32.mrb[1].mxu1 }
 0x132   : > { %v825_v24 = vadd.f32 %v824_v20, %v311_v27  ;;  %v826_v26 = vpop.f32.mrb[2].mxu0  ;;  %v866_v30 = vadd.f32 %v865_v25, %v319_v16  ;;  %v867_v31 = vpop.f32.mrb[2].mxu1 }
 0x133   : > { %v827_v32 = vpop.f32.mrb[3].mxu0  ;;  %v868_v35 = vpop.f32.mrb[3].mxu1  ;;  %v363_v26 = vrot.slane %v297_v52, %v2351_v28 }
 0x134   : > { %v1890_v34 = vpack.c.bf16 %v825_v24, %v823_v18  ;;  %v1891_v36 = vpack.c.bf16 %v866_v30, %v864_v23  ;;  %v355_v24 = vrot.slane %v297_v52, %v2349_v22  ;;  %v359_v30 = vrot.slane %v297_v52, %v2353_v29 }
 0x135   : > { %v367_v32 = vrot.slane %v297_v52, %v2355_v33 }
 0x136   : > { %v1518_v38 = vrot.slane %v1890_v34, %v2347_v21  ;;  %v1525_v41 = vrot.slane %v1891_v36, %v2347_v21 }
 0x138   : > { %v904_v43 = vpop.f32.mrb[4].mxu0  ;;  %v1540_v44 = vcombine.low %v1518_v38, %v1525_v41  ;;  %v945_v46 = vpop.f32.mrb[4].mxu1 }
 0x139   : > { %v905_v45 = vadd.f32 %v904_v43, %v323_v37  ;;  %v906_v47 = vpop.f32.mrb[5].mxu0  ;;  %v946_v48 = vadd.f32 %v945_v46, %v331_v39  ;;  %v947_v50 = vpop.f32.mrb[5].mxu1  ;;  %v298_v43 = vld [vmem:[%s2211_s29 + $0x10] sm:$0xff] }
 0x13a   : > { %v907_v49 = vadd.f32 %v906_v47, %v327_v40  ;;  %v908_v51 = vpop.f32.mrb[6].mxu0  ;;  %v948_v53 = vadd.f32 %v947_v50, %v335_v42  ;;  %v949_v54 = vpop.f32.mrb[6].mxu1  ;;  %v1548_v14 = vrot.slane %v1540_v44, %v2347_v21  ;;  %v371_v50 = vrot.slane %v298_v43, %v2334_v7 }
 0x13b   : > { %v909_v55 = vpop.f32.mrb[7].mxu0  ;;  %v950_v57 = vpop.f32.mrb[7].mxu1  ;;  %v379_v52 = vrot.slane %v298_v43, %v2337_v11 }
 0x13c   : > { %v1892_v56 = vpack.c.bf16 %v907_v49, %v905_v45  ;;  %v1893_v58 = vpack.c.bf16 %v948_v53, %v946_v48  ;;  %v375_v53 = vrot.slane %v298_v43, %v2339_v12  ;;  %v383_v55 = vrot.slane %v298_v43, %v2341_v0 }
 0x13e   : > { %v1532_v60 = vrot.slane %v1892_v56, %v2347_v21  ;;  %v1539_v63 = vrot.slane %v1893_v58, %v2347_v21 }
 0x140   : > { %v986_v2 = vpop.f32.mrb[8].mxu0  ;;  %v1541_v3 = vcombine.low %v1532_v60, %v1539_v63  ;;  %v1027_v5 = vpop.f32.mrb[8].mxu1 }
 0x141   : > { %v987_v4 = vadd.f32 %v986_v2, %v339_v59  ;;  %v988_v6 = vpop.f32.mrb[9].mxu0  ;;  %v1028_v8 = vadd.f32 %v1027_v5, %v347_v61  ;;  %v1029_v10 = vpop.f32.mrb[9].mxu1 }
 0x142   : > { %v989_v9 = vadd.f32 %v988_v6, %v343_v62  ;;  %v990_v13 = vpop.f32.mrb[10].mxu0  ;;  %v1555_v15 = vrot.slane %v1541_v3, %v2347_v21  ;;  %v1030_v27 = vadd.f32 %v1029_v10, %v351_v1  ;;  %v1031_v16 = vpop.f32.mrb[10].mxu1 }
 0x143   : > { %v991_v17 = vpop.f32.mrb[11].mxu0  ;;  %v1032_v19 = vpop.f32.mrb[11].mxu1  ;;  %v391_v16 = vrot.slane %v298_v43, %v2353_v29 }
 0x144   : > { %v1894_v18 = vpack.c.bf16 %v989_v9, %v987_v4  ;;  %v1556_v20 = vcombine.low %v1548_v14, %v1555_v15  ;;  %v1895_v23 = vpack.c.bf16 %v1030_v27, %v1028_v8  ;;  %v387_v14 = vrot.slane %v298_v43, %v2349_v22 }
 0x145   : > { %v395_v27 = vrot.slane %v298_v43, %v2351_v28 }
 0x146   : > { %v1567_v25 = vrot.slane %v1894_v18, %v2347_v21  ;;  %1708 = vst [vmem:[%s2377_s10] sm:$0xff] %v1556_v20  ;;  %v1574_v31 = vrot.slane %v1895_v23, %v2347_v21  ;;  %v399_v18 = vrot.slane %v298_v43, %v2355_v33 }
 0x148   : > { %v1068_v34 = vpop.f32.mrb[12].mxu0  ;;  %v1589_v35 = vcombine.low %v1567_v25, %v1574_v31  ;;  %v1109_v37 = vpop.f32.mrb[12].mxu1 }
 0x149   : > { %v1069_v36 = vadd.f32 %v1068_v34, %v355_v24  ;;  %v1070_v38 = vpop.f32.mrb[13].mxu0  ;;  %v1110_v39 = vadd.f32 %v1109_v37, %v363_v26  ;;  %v1111_v41 = vpop.f32.mrb[13].mxu1  ;;  %v299_v34 = vld [vmem:[%s2211_s29 + $0x18] sm:$0xff] }
 0x14a   : > { %v1071_v40 = vadd.f32 %v1070_v38, %v359_v30  ;;  %v1072_v42 = vpop.f32.mrb[14].mxu0  ;;  %v1112_v44 = vadd.f32 %v1111_v41, %v367_v32  ;;  %v1113_v45 = vpop.f32.mrb[14].mxu1  ;;  %v1597_v2 = vrot.slane %v1589_v35, %v2347_v21  ;;  %v403_v41 = vrot.slane %v299_v34, %v2334_v7 }
 0x14b   : > { %v1073_v46 = vpop.f32.mrb[15].mxu0  ;;  %v1114_v48 = vpop.f32.mrb[15].mxu1  ;;  %v411_v43 = vrot.slane %v299_v34, %v2337_v11 }
 0x14c   : > { %v1896_v47 = vpack.c.bf16 %v1071_v40, %v1069_v36  ;;  %v1897_v49 = vpack.c.bf16 %v1112_v44, %v1110_v39  ;;  %v407_v44 = vrot.slane %v299_v34, %v2339_v12  ;;  %v415_v46 = vrot.slane %v299_v34, %v2341_v0 }
 0x14e   : > { %v1581_v51 = vrot.slane %v1896_v47, %v2347_v21  ;;  %v1588_v54 = vrot.slane %v1897_v49, %v2347_v21 }
 0x150   : > { %v1150_v56 = vpop.f32.mrb[16].mxu0  ;;  %v1590_v57 = vcombine.low %v1581_v51, %v1588_v54  ;;  %v1191_v59 = vpop.f32.mrb[16].mxu1 }
 0x151   : > { %v1151_v58 = vadd.f32 %v1150_v56, %v371_v50  ;;  %v1152_v60 = vpop.f32.mrb[17].mxu0  ;;  %v1192_v61 = vadd.f32 %v1191_v59, %v379_v52  ;;  %v1193_v63 = vpop.f32.mrb[17].mxu1 }
 0x152   : > { %v1153_v62 = vadd.f32 %v1152_v60, %v375_v53  ;;  %v1154_v1 = vpop.f32.mrb[18].mxu0  ;;  %v1604_v3 = vrot.slane %v1590_v57, %v2347_v21  ;;  %v1194_v4 = vadd.f32 %v1193_v63, %v383_v55  ;;  %v1195_v5 = vpop.f32.mrb[18].mxu1  ;;  %v427_v63 = vrot.slane %v299_v34, %v2351_v28 }
 0x153   : > { %v1155_v6 = vpop.f32.mrb[19].mxu0  ;;  %v1196_v9 = vpop.f32.mrb[19].mxu1  ;;  %v423_v1 = vrot.slane %v299_v34, %v2353_v29 }
 0x154   : > { %v1898_v8 = vpack.c.bf16 %v1153_v62, %v1151_v58  ;;  %v1605_v10 = vcombine.low %v1597_v2, %v1604_v3  ;;  %v1899_v13 = vpack.c.bf16 %v1194_v4, %v1192_v61  ;;  %v419_v61 = vrot.slane %v299_v34, %v2349_v22 }
 0x155   : > { %v431_v3 = vrot.slane %v299_v34, %v2355_v33 }
 0x156   : > { %v1616_v15 = vrot.slane %v1898_v8, %v2347_v21  ;;  %1709 = vst [vmem:[%s2377_s10 + $0x8] sm:$0xff] %v1605_v10  ;;  %v1623_v17 = vrot.slane %v1899_v13, %v2347_v21 }
 0x158   : > { %v1232_v19 = vpop.f32.mrb[20].mxu0  ;;  %v1638_v20 = vcombine.low %v1616_v15, %v1623_v17  ;;  %v1273_v24 = vpop.f32.mrb[20].mxu1 }
 0x159   : > { %v1233_v23 = vadd.f32 %v1232_v19, %v387_v14  ;;  %v1234_v25 = vpop.f32.mrb[21].mxu0  ;;  %v1274_v26 = vadd.f32 %v1273_v24, %v395_v27  ;;  %v1275_v31 = vpop.f32.mrb[21].mxu1 }
 0x15a   : > { %v1235_v30 = vadd.f32 %v1234_v25, %v391_v16  ;;  %v1236_v32 = vpop.f32.mrb[22].mxu0  ;;  %v1276_v35 = vadd.f32 %v1275_v31, %v399_v18  ;;  %v1277_v36 = vpop.f32.mrb[22].mxu1  ;;  %v1646_v55 = vrot.slane %v1638_v20, %v2347_v21 }
 0x15b   : > { %v1237_v37 = vpop.f32.mrb[23].mxu0  ;;  %v1278_v39 = vpop.f32.mrb[23].mxu1 }
 0x15c   : > { %v1900_v38 = vpack.c.bf16 %v1235_v30, %v1233_v23  ;;  %v1901_v40 = vpack.c.bf16 %v1276_v35, %v1274_v26 }
 0x15e   : > { %v1630_v42 = vrot.slane %v1900_v38, %v2347_v21  ;;  %v1637_v45 = vrot.slane %v1901_v40, %v2347_v21 }
 0x160   : > { %v1314_v47 = vpop.f32.mrb[24].mxu0  ;;  %v1639_v48 = vcombine.low %v1630_v42, %v1637_v45  ;;  %v1355_v50 = vpop.f32.mrb[24].mxu1 }
 0x161   : > { %v1315_v49 = vadd.f32 %v1314_v47, %v403_v41  ;;  %v1316_v51 = vpop.f32.mrb[25].mxu0  ;;  %v1356_v52 = vadd.f32 %v1355_v50, %v411_v43  ;;  %v1357_v54 = vpop.f32.mrb[25].mxu1 }
 0x162   : > { %v1317_v53 = vadd.f32 %v1316_v51, %v407_v44  ;;  %v1318_v7 = vpop.f32.mrb[26].mxu0  ;;  %v1653_v11 = vrot.slane %v1639_v48, %v2347_v21  ;;  %v1358_v56 = vadd.f32 %v1357_v54, %v415_v46  ;;  %v1359_v12 = vpop.f32.mrb[26].mxu1 }
 0x163   : > { %v1319_v57 = vpop.f32.mrb[27].mxu0  ;;  %v1360_v59 = vpop.f32.mrb[27].mxu1 }
 0x164   : > { %v1902_v58 = vpack.c.bf16 %v1317_v53, %v1315_v49  ;;  %v1654_v0 = vcombine.low %v1646_v55, %v1653_v11  ;;  %v1903_v60 = vpack.c.bf16 %v1358_v56, %v1356_v52 }
 0x166   : > { %v1665_v62 = vrot.slane %v1902_v58, %v2347_v21  ;;  %1710 = vst [vmem:[%s2377_s10 + $0x10] sm:$0xff] %v1654_v0  ;;  %v1672_v2 = vrot.slane %v1903_v60, %v2347_v21 }
 0x168   : > { %v1396_v4 = vpop.f32.mrb[28].mxu0  ;;  %v1687_v5 = vcombine.low %v1665_v62, %v1672_v2  ;;  %v1437_v8 = vpop.f32.mrb[28].mxu1 }
 0x169   : > { %v1397_v6 = vadd.f32 %v1396_v4, %v419_v61  ;;  %v1398_v9 = vpop.f32.mrb[29].mxu0  ;;  %v1438_v10 = vadd.f32 %v1437_v8, %v427_v63  ;;  %v1439_v22 = vpop.f32.mrb[29].mxu1 }
 0x16a   : > { %v1399_v13 = vadd.f32 %v1398_v9, %v423_v1  ;;  %v1400_v14 = vpop.f32.mrb[30].mxu0  ;;  %v1440_v15 = vadd.f32 %v1439_v22, %v431_v3  ;;  %v1441_v27 = vpop.f32.mrb[30].mxu1  ;;  %v1695_v20 = vrot.slane %v1687_v5, %v2347_v21 }
 0x16b   : > { %v1401_v28 = vpop.f32.mrb[31].mxu0  ;;  %v1442_v29 = vpop.f32.mrb[31].mxu1 }
 0x16c   : > { %v1904_v16 = vpack.c.bf16 %v1399_v13, %v1397_v6  ;;  %v1905_v17 = vpack.c.bf16 %v1440_v15, %v1438_v10 }
 0x16e   : > { %v1679_v18 = vrot.slane %v1904_v16, %v2347_v21  ;;  %v1686_v33 = vrot.slane %v1905_v17, %v2347_v21 }
 0x170   : > { %v1688_v19 = vcombine.low %v1679_v18, %v1686_v33 }
 0x172   : > { %v1702_v23 = vrot.slane %v1688_v19, %v2347_v21 }
 0x174   : > { %v1703_v24 = vcombine.low %v1695_v20, %v1702_v23 }
 0x176   : > { %1711 = vst [vmem:[%s2377_s10 + $0x18] sm:$0xff] %v1703_v24 }
 0x177 PF: > { %p16_p8 = scmp.ge.s32.totalorder %s2106_s17, 4   ;;  %s2446_s12 = smov %s2049_s13 }
 0x178   : > { %s2447_s13 = smov %s2053_s14  ;;  %s2448_s14 = smov %s2116_s20 }
 0x179   : > { %s2449_s15 = smov %s2106_s17  ;;  %18 = sbr.rel (!%p16_p8) target bundleno = 5 (0x5), region = 85 }
 0x180   :  { %1732 = vsyncpa [#allocation3], 1 }
 0x181   :  { %1734 = vsyncpa [#allocation3 + $0x1], 1 }
 0x182   :  { %1735 = vsyncpa [#allocation5], 1 }
 0x183   :  { %1737 = vsyncpa [#allocation5 + $0x1], 1 }

// kernel: generator_forward.10
= control target key start
LH: loop header
LB: loop body
LE: loop exit
PB: predicated region body
PF: predicated region fallthrough
CT: control target
= control target key end

     0   :  { %s448_s12 = smov 0   ;;  %s533_s0 = inlined_call_operand.vmem [shape: f32[128,256], index: 0, kind: input, shape index: {}]   ;;  %s534_s1 = inlined_call_operand.vmem [shape: f32[1,256], index: 1, kind: input, shape index: {}]   ;;  %s535_s2 = inlined_call_operand.vmem [shape: f32[1,256], index: 2, kind: input, shape index: {}]   ;;  %s536_s3 = inlined_call_operand.vmem [shape: bf16[128,256], index: 3, kind: output, shape index: {}]  }
   0x1 LB: > { %s381_s13 = sadd.s32 4294967295, %s426_s12   ;;  %p385_p0 = scmp.ge.s32.totalorder %s426_s12, 1  ;;  %s426_s12 = sphi %s448_s12, %s13_s12  }
   0x2   : > { %p139_p1 = scmp.lt.s32.totalorder %s426_s12, 3 }
   0x4   : > { %p140_p2 = pnand %p385_p0, %p139_p1 }
   0x5   : > { %s386_s14 = sshll.u32 (!%p140_p2), %s381_s13, 3  ;;  %v197_v0 = vlaneseq (!%p140_p2)  ;;  %v195_v2 = vld [vmem:[%s534_s1] sm:$0x3] (!%p140_p2) }
   0x6   : > { %143 = sbr.rel (%p140_p2) target bundleno = 37 (0x25), region = 32  ;;  %p166_p3 = scmp.lt.s32.totalorder (!%p140_p2), %s386_s14, 15  ;;  %v223_v3 = vld [vmem:[%s535_s2] sm:$0x3] (!%p140_p2) }
   0x7   : > { %v198_v1 = vshrl.u32 (!%p140_p2), %v197_v0, 7 }
   0x9   : > { %v199_v4 = vsub.s32 (!%p140_p2), 0, %v198_v1  ;;  %v203_v5 = vsub.s32 (!%p140_p2), 1, %v198_v1 }
   0xb   : > { %v200_v6 = vrot.slane (!%p140_p2), %v195_v2, %v199_v4  ;;  %v470_v7 = vrot.slane (!%p140_p2), %v195_v2, %v203_v5  ;;  %v472_v8 = vrot.slane (!%p140_p2), %v223_v3, %v199_v4  ;;  %v474_v9 = vrot.slane (!%p140_p2), %v223_v3, %v203_v5 }
   0xd   : > { %s538_s14 = smov (!%p166_p3, %s386_s14), 15 }
   0xe   : > { %s402_s19 = sshll.u32 %s538_s14, 4  ;;  %s403_s23 = sshll.u32 %s538_s14, 3 }
   0xf   : > { %s468_s22 = scalar_lea.vmem %s533_s0, %s402_s19  ;;  %s502_s26 = scalar_lea.vmem %s536_s3, %s403_s23 }
  0x10   : > { %v179_v10 = vld [vmem:[%s468_s22] sm:$0xff]  ;;  %v180_v11 = vld [vmem:[%s468_s22 + $0x8] sm:$0xff]  ;;  %v181_v12 = vld [vmem:[%s468_s22 + $0x10] sm:$0xff] }
  0x11   : > { %v207_v13 = vmul.f32 %v200_v6, %v179_v10  ;;  %v208_v14 = vmul.f32 %v470_v7, %v180_v11  ;;  %v182_v15 = vld [vmem:[%s468_s22 + $0x18] sm:$0xff]  ;;  %v209_v16 = vmul.f32 %v200_v6, %v181_v12  ;;  %v183_v17 = vld [vmem:[%s468_s22 + $0x20] sm:$0xff]  ;;  %v184_v18 = vld [vmem:[%s468_s22 + $0x28] sm:$0xff] }
  0x12   : > { %v210_v19 = vmul.f32 %v470_v7, %v182_v15  ;;  %v211_v20 = vmul.f32 %v200_v6, %v183_v17  ;;  %v212_v21 = vmul.f32 %v470_v7, %v184_v18  ;;  %v185_v22 = vld [vmem:[%s468_s22 + $0x30] sm:$0xff]  ;;  %v186_v23 = vld [vmem:[%s468_s22 + $0x38] sm:$0xff]  ;;  %v187_v32 = vld [vmem:[%s468_s22 + $0x40] sm:$0xff] }
  0x13   : > { %v235_v24 = vadd.f32 %v472_v8, %v207_v13  ;;  %v236_v25 = vadd.f32 %v474_v9, %v208_v14  ;;  %v237_v26 = vadd.f32 %v472_v8, %v209_v16  ;;  %v213_v27 = vmul.f32 %v200_v6, %v185_v22  ;;  %v188_v33 = vld [vmem:[%s468_s22 + $0x48] sm:$0xff]  ;;  %v189_v38 = vld [vmem:[%s468_s22 + $0x50] sm:$0xff]  ;;  %v190_v43 = vld [vmem:[%s468_s22 + $0x58] sm:$0xff] }
  0x14   : > { %v238_v28 = vadd.f32 %v474_v9, %v210_v19  ;;  %v239_v29 = vadd.f32 %v472_v8, %v211_v20  ;;  %v240_v30 = vadd.f32 %v474_v9, %v212_v21  ;;  %v214_v31 = vmul.f32 %v470_v7, %v186_v23  ;;  %v191_v44 = vld [vmem:[%s468_s22 + $0x60] sm:$0xff]  ;;  %v192_v49 = vld [vmem:[%s468_s22 + $0x68] sm:$0xff]  ;;  %v193_v50 = vld [vmem:[%s468_s22 + $0x70] sm:$0xff] }
  0x15   : > { %v251_v34 = vmax.f32 %v235_v24, 0.0  ;;  %v252_v35 = vmax.f32 %v236_v25, 0.0  ;;  %v253_v36 = vmax.f32 %v237_v26, 0.0  ;;  %v241_v37 = vadd.f32 %v472_v8, %v213_v27  ;;  %v194_v59 = vld [vmem:[%s468_s22 + $0x78] sm:$0xff] }
  0x16   : > { %v254_v39 = vmax.f32 %v238_v28, 0.0  ;;  %v255_v40 = vmax.f32 %v239_v29, 0.0  ;;  %v256_v41 = vmax.f32 %v240_v30, 0.0  ;;  %v242_v42 = vadd.f32 %v474_v9, %v214_v31 }
  0x17   : > { %v404_v45 = vpack.c.bf16 %v252_v35, %v251_v34  ;;  %v257_v46 = vmax.f32 %v241_v37, 0.0  ;;  %v215_v47 = vmul.f32 %v200_v6, %v187_v32  ;;  %v216_v48 = vmul.f32 %v470_v7, %v188_v33 }
  0x18   : > { %v405_v51 = vpack.c.bf16 %v254_v39, %v253_v36  ;;  %v406_v52 = vpack.c.bf16 %v256_v41, %v255_v40  ;;  %v258_v53 = vmax.f32 %v242_v42, 0.0  ;;  %v217_v54 = vmul.f32 %v200_v6, %v189_v38 }
  0x19   : > { %315 = vst [vmem:[%s502_s26] sm:$0xff] %v404_v45  ;;  %v243_v55 = vadd.f32 %v472_v8, %v215_v47  ;;  %v244_v56 = vadd.f32 %v474_v9, %v216_v48  ;;  %v218_v57 = vmul.f32 %v470_v7, %v190_v43  ;;  %v219_v58 = vmul.f32 %v200_v6, %v191_v44 }
  0x1a   : > { %316 = vst [vmem:[%s502_s26 + $0x8] sm:$0xff] %v405_v51  ;;  %317 = vst [vmem:[%s502_s26 + $0x10] sm:$0xff] %v406_v52  ;;  %v407_v60 = vpack.c.bf16 %v258_v53, %v257_v46  ;;  %v245_v61 = vadd.f32 %v472_v8, %v217_v54  ;;  %v220_v62 = vmul.f32 %v470_v7, %v192_v49 }
  0x1b   : > { %v221_v63 = vmul.f32 %v200_v6, %v193_v50  ;;  %v259_v0 = vmax.f32 %v243_v55, 0.0  ;;  %v260_v1 = vmax.f32 %v244_v56, 0.0  ;;  %v246_v2 = vadd.f32 %v474_v9, %v218_v57 }
  0x1c   : > { %v247_v3 = vadd.f32 %v472_v8, %v219_v58  ;;  %318 = vst [vmem:[%s502_s26 + $0x18] sm:$0xff] %v407_v60  ;;  %v261_v4 = vmax.f32 %v245_v61, 0.0  ;;  %v248_v5 = vadd.f32 %v474_v9, %v220_v62  ;;  %v222_v10 = vmul.f32 %v470_v7, %v194_v59 }
  0x1d   : > { %v249_v11 = vadd.f32 %v472_v8, %v221_v63  ;;  %v408_v12 = vpack.c.bf16 %v260_v1, %v259_v0  ;;  %v262_v6 = vmax.f32 %v246_v2, 0.0 }
  0x1e   : > { %v263_v13 = vmax.f32 %v247_v3, 0.0  ;;  %v264_v14 = vmax.f32 %v248_v5, 0.0  ;;  %v250_v15 = vadd.f32 %v474_v9, %v222_v10 }
  0x1f   : > { %v265_v16 = vmax.f32 %v249_v11, 0.0  ;;  %319 = vst [vmem:[%s502_s26 + $0x20] sm:$0xff] %v408_v12  ;;  %v409_v17 = vpack.c.bf16 %v262_v6, %v261_v4 }
  0x20   : > { %v410_v18 = vpack.c.bf16 %v264_v14, %v263_v13  ;;  %v266_v19 = vmax.f32 %v250_v15, 0.0 }
  0x21   : > { %320 = vst [vmem:[%s502_s26 + $0x28] sm:$0xff] %v409_v17 }
  0x22   : > { %321 = vst [vmem:[%s502_s26 + $0x30] sm:$0xff] %v410_v18  ;;  %v411_v20 = vpack.c.bf16 %v266_v19, %v265_v16 }
  0x24   : > { %322 = vst [vmem:[%s502_s26 + $0x38] sm:$0xff] %v411_v20 }
  0x25 PF: > { %s13_s12 = sadd.s32 1, %s426_s12  }
  0x26   : > { %p10_p4 = scmp.ge.s32.totalorder %s13_s12, 4  }
  0x28   :  { %12 = sbr.rel (!%p10_p4) target bundleno = 1 (0x1), region = 62 }

// kernel: generator_forward.9
= control target key start
LH: loop header
LB: loop body
LE: loop exit
PB: predicated region body
PF: predicated region fallthrough
CT: control target
= control target key end

     0   :  { %s3403_s15 = smov 0   ;;  %s3785_s0 = inlined_call_operand.vmem [shape: bf16[4,32,2048], index: 0, kind: input, shape index: {}]   ;;  %s3786_s1 = inlined_call_operand.vmem [shape: bf16[4,2048,256], index: 1, kind: input, shape index: {}]   ;;  %s3787_s2 = inlined_call_operand.vmem [shape: f32[4,32,256], index: 2, kind: output, shape index: {0}]   ;;  %s3788_s3 = inlined_call_operand.vmem [shape: f32[4,1,256], index: 3, kind: output, shape index: {1}]   ;;  %s3789_s4 = inlined_call_operand.vmem [shape: f32[4,1,256], index: 4, kind: output, shape index: {2}]  }
   0x1 LB: > { %s2614_s16 = sadd.s32 4294967295, %s3375_s15   ;;  %p2618_p0 = scmp.ge.s32.totalorder %s3375_s15, 1  ;;  %s3375_s15 = sphi %s3403_s15, %s15_s15  }
   0x2   : > { %p177_p1 = scmp.lt.s32.totalorder %s3375_s15, 5 }
   0x4   : > { %p178_p2 = pnand %p2618_p0, %p177_p1 }
   0x5   : > { %p216_p3 = scmp.lt.s32.totalorder (!%p178_p2), %s2614_s16, 3 }
   0x6   : > { %181 = sbr.rel (%p178_p2) target bundleno = 522 (0x20a), region = 28 }
   0xd   : > { %s3791_s16 = smov (!%p216_p3, %s2614_s16), 3 }
   0xe   : > { %s2918_s17 = sshll.u32 %s3791_s16, 11  ;;  %s2917_s21 = sshll.u32 %s3791_s16, 8 }
   0xf   : > { %s3417_s20 = scalar_lea.vmem %s3786_s1, %s2918_s17  ;;  %s3467_s24 = scalar_lea.vmem %s3785_s0, %s2917_s21 }
  0x10   : > { %v2985_v0 = vld [vmem:[%s3417_s20 + $0x4] ss:$8 sps:$4 sm:$0xff]   ;;  %v2989_v2 = vld [vmem:[%s3417_s20] ss:$8 sps:$4 sm:$0xff]   ;;  %v2991_v4 = vld [vmem:[%s3417_s20 + $0x14] ss:$8 sps:$4 sm:$0xff]  }
  0x11   : > { %v2987_v1 = vld [vmem:[%s3417_s20 + $0x404] ss:$8 sps:$4 sm:$0xff]   ;;  %1967 = vmatprep.subr.bf16.mxu1 %v2985_v0  ;;  %v2990_v3 = vld [vmem:[%s3417_s20 + $0x400] ss:$8 sps:$4 sm:$0xff]   ;;  %v2993_v5 = vld [vmem:[%s3417_s20 + $0x414] ss:$8 sps:$4 sm:$0xff]  }
  0x12   : > { %2179 = vmatprep.subr.bf16.mxu0 %v2987_v1  ;;  %1968 = vmatpush1.bf16.msra.mxu1 %v2989_v2  ;;  %v2995_v6 = vld [vmem:[%s3417_s20 + $0x10] ss:$8 sps:$4 sm:$0xff]   ;;  %v2997_v8 = vld [vmem:[%s3417_s20 + $0x24] ss:$8 sps:$4 sm:$0xff]   ;;  %v3001_v10 = vld [vmem:[%s3417_s20 + $0x20] ss:$8 sps:$4 sm:$0xff]  }
  0x13   : > { %2180 = vmatpush1.bf16.msra.mxu0 %v2990_v3  ;;  %1969 = vmatprep.subr.bf16.mxu1 %v2991_v4  ;;  %v2996_v7 = vld [vmem:[%s3417_s20 + $0x410] ss:$8 sps:$4 sm:$0xff]   ;;  %v2999_v9 = vld [vmem:[%s3417_s20 + $0x424] ss:$8 sps:$4 sm:$0xff]   ;;  %v3002_v11 = vld [vmem:[%s3417_s20 + $0x420] ss:$8 sps:$4 sm:$0xff]  }
  0x14   : > { %2181 = vmatprep.subr.bf16.mxu0 %v2993_v5  ;;  %v3003_v12 = vld [vmem:[%s3417_s20 + $0x34] ss:$8 sps:$4 sm:$0xff]   ;;  %v3007_v14 = vld [vmem:[%s3417_s20 + $0x30] ss:$8 sps:$4 sm:$0xff]   ;;  %v3009_v16 = vld [vmem:[%s3417_s20 + $0x44] ss:$8 sps:$4 sm:$0xff]  }
  0x15   : > { %v3005_v13 = vld [vmem:[%s3417_s20 + $0x434] ss:$8 sps:$4 sm:$0xff]   ;;  %v3008_v15 = vld [vmem:[%s3417_s20 + $0x430] ss:$8 sps:$4 sm:$0xff]   ;;  %v3011_v17 = vld [vmem:[%s3417_s20 + $0x444] ss:$8 sps:$4 sm:$0xff]  }
  0x16   : > { %1970 = vmatpush1.bf16.msra.mxu1 %v2995_v6  ;;  %v3013_v18 = vld [vmem:[%s3417_s20 + $0x40] ss:$8 sps:$4 sm:$0xff]   ;;  %v3015_v20 = vld [vmem:[%s3417_s20 + $0x54] ss:$8 sps:$4 sm:$0xff]   ;;  %v3019_v22 = vld [vmem:[%s3417_s20 + $0x50] ss:$8 sps:$4 sm:$0xff]  }
  0x17   : > { %2182 = vmatpush1.bf16.msra.mxu0 %v2996_v7  ;;  %1971 = vmatprep.subr.bf16.mxu1 %v2997_v8  ;;  %v3014_v19 = vld [vmem:[%s3417_s20 + $0x440] ss:$8 sps:$4 sm:$0xff]   ;;  %v3017_v21 = vld [vmem:[%s3417_s20 + $0x454] ss:$8 sps:$4 sm:$0xff]   ;;  %v3020_v23 = vld [vmem:[%s3417_s20 + $0x450] ss:$8 sps:$4 sm:$0xff]  }
  0x18   : > { %2183 = vmatprep.subr.bf16.mxu0 %v2999_v9  ;;  %v3021_v24 = vld [vmem:[%s3417_s20 + $0x64] ss:$8 sps:$4 sm:$0xff]   ;;  %v3025_v26 = vld [vmem:[%s3417_s20 + $0x60] ss:$8 sps:$4 sm:$0xff]   ;;  %v3027_v28 = vld [vmem:[%s3417_s20 + $0x74] ss:$8 sps:$4 sm:$0xff]  }
  0x19   : > { %v3023_v25 = vld [vmem:[%s3417_s20 + $0x464] ss:$8 sps:$4 sm:$0xff]   ;;  %v3026_v27 = vld [vmem:[%s3417_s20 + $0x460] ss:$8 sps:$4 sm:$0xff]   ;;  %v3029_v29 = vld [vmem:[%s3417_s20 + $0x474] ss:$8 sps:$4 sm:$0xff]  }
  0x1a   : > { %1972 = vmatpush1.bf16.msra.mxu1 %v3001_v10  ;;  %v3031_v30 = vld [vmem:[%s3417_s20 + $0x70] ss:$8 sps:$4 sm:$0xff]   ;;  %v3033_v32 = vld [vmem:[%s3417_s20 + $0x84] ss:$8 sps:$4 sm:$0xff]   ;;  %v3037_v34 = vld [vmem:[%s3417_s20 + $0x80] ss:$8 sps:$4 sm:$0xff]  }
  0x1b   : > { %2184 = vmatpush1.bf16.msra.mxu0 %v3002_v11  ;;  %1973 = vmatprep.subr.bf16.mxu1 %v3003_v12  ;;  %v3032_v31 = vld [vmem:[%s3417_s20 + $0x470] ss:$8 sps:$4 sm:$0xff]   ;;  %v3035_v33 = vld [vmem:[%s3417_s20 + $0x484] ss:$8 sps:$4 sm:$0xff]   ;;  %v3038_v35 = vld [vmem:[%s3417_s20 + $0x480] ss:$8 sps:$4 sm:$0xff]  }
  0x1c   : > { %2185 = vmatprep.subr.bf16.mxu0 %v3005_v13  ;;  %v3039_v36 = vld [vmem:[%s3417_s20 + $0x94] ss:$8 sps:$4 sm:$0xff]   ;;  %v3043_v38 = vld [vmem:[%s3417_s20 + $0x90] ss:$8 sps:$4 sm:$0xff]   ;;  %v3045_v40 = vld [vmem:[%s3417_s20 + $0xa4] ss:$8 sps:$4 sm:$0xff]  }
  0x1d   : > { %v3041_v37 = vld [vmem:[%s3417_s20 + $0x494] ss:$8 sps:$4 sm:$0xff]   ;;  %v3044_v39 = vld [vmem:[%s3417_s20 + $0x490] ss:$8 sps:$4 sm:$0xff]   ;;  %v3047_v41 = vld [vmem:[%s3417_s20 + $0x4a4] ss:$8 sps:$4 sm:$0xff]  }
  0x1e   : > { %1974 = vmatpush1.bf16.msra.mxu1 %v3007_v14  ;;  %v3049_v42 = vld [vmem:[%s3417_s20 + $0xa0] ss:$8 sps:$4 sm:$0xff]   ;;  %v3051_v44 = vld [vmem:[%s3417_s20 + $0xb4] ss:$8 sps:$4 sm:$0xff]   ;;  %v3055_v46 = vld [vmem:[%s3417_s20 + $0xb0] ss:$8 sps:$4 sm:$0xff]  }
  0x1f   : > { %2186 = vmatpush1.bf16.msra.mxu0 %v3008_v15  ;;  %1975 = vmatprep.subr.bf16.mxu1 %v3009_v16  ;;  %v3050_v43 = vld [vmem:[%s3417_s20 + $0x4a0] ss:$8 sps:$4 sm:$0xff]   ;;  %v3053_v45 = vld [vmem:[%s3417_s20 + $0x4b4] ss:$8 sps:$4 sm:$0xff]   ;;  %v3056_v47 = vld [vmem:[%s3417_s20 + $0x4b0] ss:$8 sps:$4 sm:$0xff]  }
  0x20   : > { %2187 = vmatprep.subr.bf16.mxu0 %v3011_v17  ;;  %v239_v48 = vld [vmem:[%s3467_s24] sm:$0xff]  ;;  %v3063_v58 = vld [vmem:[%s3417_s20 + $0xd4] ss:$8 sps:$4 sm:$0xff]   ;;  %v3067_v60 = vld [vmem:[%s3417_s20 + $0xd0] ss:$8 sps:$4 sm:$0xff]   ;;  %s2919_s25 = sshll.u32 %s3791_s16, 6 }
  0x21   : > { %v247_v49 = vld [vmem:[%s3467_s24 + $0x40] sm:$0xff]  ;;  %v3065_v59 = vld [vmem:[%s3417_s20 + $0x4d4] ss:$8 sps:$4 sm:$0xff]   ;;  %v3068_v61 = vld [vmem:[%s3417_s20 + $0x4d0] ss:$8 sps:$4 sm:$0xff]   ;;  %s3765_s28 = scalar_lea.vmem %s3787_s2, %s2919_s25  ;;  %s2625_s29 = sshll.u32 %s3791_s16, 1 }
  0x22   : > { %1976 = vmatpush1.bf16.msra.mxu1 %v3013_v18  ;;  %v3057_v50 = vld [vmem:[%s3417_s20 + $0xc4] ss:$8 sps:$4 sm:$0xff]   ;;  %v2628_v52 = vcombine.high %v239_v48, %v247_v49  ;;  %v3061_v56 = vld [vmem:[%s3417_s20 + $0xc0] ss:$8 sps:$4 sm:$0xff]   ;;  %v3075_v2 = vld [vmem:[%s3417_s20 + $0xf4] ss:$8 sps:$4 sm:$0xff]   ;;  %v2627_v8 = vcombine.low %v239_v48, %v247_v49  ;;  %s234_s6 = scalar_lea.vmem %s3788_s3, %s2625_s29  ;;  %s238_s9 = scalar_lea.vmem %s3789_s4, %s2625_s29 }
  0x23   : > { %2188 = vmatpush1.bf16.msra.mxu0 %v3014_v19  ;;  %1977 = vmatprep.subr.bf16.mxu1 %v3015_v20  ;;  %v3059_v51 = vld [vmem:[%s3417_s20 + $0x4c4] ss:$8 sps:$4 sm:$0xff]   ;;  %v3062_v57 = vld [vmem:[%s3417_s20 + $0x4c0] ss:$8 sps:$4 sm:$0xff]   ;;  %v3077_v3 = vld [vmem:[%s3417_s20 + $0x4f4] ss:$8 sps:$4 sm:$0xff]  }
  0x24   : > { %2189 = vmatprep.subr.bf16.mxu0 %v3017_v21  ;;  %v243_v53 = vld [vmem:[%s3467_s24 + $0x20] sm:$0xff]  ;;  %1999 = vmatprep.mubr.bf16.mxu1 %v2628_v52  ;;  %v3079_v4 = vld [vmem:[%s3417_s20 + $0xf0] ss:$8 sps:$4 sm:$0xff]   ;;  %v3089_v12 = vld [vmem:[%s3417_s20 + $0x114] ss:$8 sps:$4 sm:$0xff]  }
  0x25   : > { %v251_v54 = vld [vmem:[%s3467_s24 + $0x60] sm:$0xff]  ;;  %v3080_v5 = vld [vmem:[%s3417_s20 + $0x4f0] ss:$8 sps:$4 sm:$0xff]   ;;  %v3092_v13 = vld [vmem:[%s3417_s20 + $0x514] ss:$8 sps:$4 sm:$0xff]  }
  0x26   : > { %1978 = vmatpush1.bf16.msra.mxu1 %v3019_v22  ;;  %v2636_v55 = vcombine.high %v243_v53, %v251_v54  ;;  %v3069_v62 = vld [vmem:[%s3417_s20 + $0xe4] ss:$8 sps:$4 sm:$0xff]   ;;  %v3073_v0 = vld [vmem:[%s3417_s20 + $0xe0] ss:$8 sps:$4 sm:$0xff]   ;;  %v2635_v10 = vcombine.low %v243_v53, %v251_v54  ;;  %v3087_v14 = vld [vmem:[%s3417_s20 + $0x110] ss:$8 sps:$4 sm:$0xff]  }
  0x27   : > { %2190 = vmatpush1.bf16.msra.mxu0 %v3020_v23  ;;  %1979 = vmatprep.subr.bf16.mxu1 %v3021_v24  ;;  %v3071_v63 = vld [vmem:[%s3417_s20 + $0x4e4] ss:$8 sps:$4 sm:$0xff]   ;;  %v3074_v1 = vld [vmem:[%s3417_s20 + $0x4e0] ss:$8 sps:$4 sm:$0xff]   ;;  %v3090_v15 = vld [vmem:[%s3417_s20 + $0x510] ss:$8 sps:$4 sm:$0xff]  }
  0x28   : > { %2191 = vmatprep.subr.bf16.mxu0 %v3023_v25  ;;  %2211 = vmatprep.mubr.bf16.mxu0 %v2636_v55  ;;  %v3083_v6 = vld [vmem:[%s3417_s20 + $0x104] ss:$8 sps:$4 sm:$0xff]   ;;  %v3081_v9 = vld [vmem:[%s3417_s20 + $0x100] ss:$8 sps:$4 sm:$0xff]   ;;  %v3101_v20 = vld [vmem:[%s3417_s20 + $0x134] ss:$8 sps:$4 sm:$0xff]  }
  0x29   : > { %v3086_v7 = vld [vmem:[%s3417_s20 + $0x504] ss:$8 sps:$4 sm:$0xff]   ;;  %v3084_v11 = vld [vmem:[%s3417_s20 + $0x500] ss:$8 sps:$4 sm:$0xff]   ;;  %v3104_v21 = vld [vmem:[%s3417_s20 + $0x534] ss:$8 sps:$4 sm:$0xff]  }
  0x2a   : > { %1980 = vmatpush1.bf16.msra.mxu1 %v3025_v26  ;;  %v3095_v16 = vld [vmem:[%s3417_s20 + $0x124] ss:$8 sps:$4 sm:$0xff]   ;;  %v3093_v18 = vld [vmem:[%s3417_s20 + $0x120] ss:$8 sps:$4 sm:$0xff]   ;;  %v3099_v22 = vld [vmem:[%s3417_s20 + $0x130] ss:$8 sps:$4 sm:$0xff]  }
  0x2b   : > { %2192 = vmatpush1.bf16.msra.mxu0 %v3026_v27  ;;  %1981 = vmatprep.subr.bf16.mxu1 %v3027_v28  ;;  %v3098_v17 = vld [vmem:[%s3417_s20 + $0x524] ss:$8 sps:$4 sm:$0xff]   ;;  %v3096_v19 = vld [vmem:[%s3417_s20 + $0x520] ss:$8 sps:$4 sm:$0xff]   ;;  %v3102_v23 = vld [vmem:[%s3417_s20 + $0x530] ss:$8 sps:$4 sm:$0xff]  }
  0x2c   : > { %2193 = vmatprep.subr.bf16.mxu0 %v3029_v29  ;;  %v3107_v24 = vld [vmem:[%s3417_s20 + $0x144] ss:$8 sps:$4 sm:$0xff]   ;;  %v3105_v26 = vld [vmem:[%s3417_s20 + $0x140] ss:$8 sps:$4 sm:$0xff]   ;;  %v3113_v28 = vld [vmem:[%s3417_s20 + $0x154] ss:$8 sps:$4 sm:$0xff]  }
  0x2d   : > { %v3110_v25 = vld [vmem:[%s3417_s20 + $0x544] ss:$8 sps:$4 sm:$0xff]   ;;  %v3108_v27 = vld [vmem:[%s3417_s20 + $0x540] ss:$8 sps:$4 sm:$0xff]   ;;  %v3116_v29 = vld [vmem:[%s3417_s20 + $0x554] ss:$8 sps:$4 sm:$0xff]  }
  0x2e   : > { %1982 = vmatpush1.bf16.msra.mxu1 %v3031_v30  ;;  %v255_v30 = vld [vmem:[%s3467_s24 + $0x80] sm:$0xff]  ;;  %v3536_v49 = vld [vmem:[%s3467_s24 + $0x28] sm:$0xff]  ;;  %v3126_v52 = vld [vmem:[%s3417_s20 + $0x570] ss:$8 sps:$4 sm:$0xff]  }
  0x2f   : > { %2194 = vmatpush1.bf16.msra.mxu0 %v3032_v31  ;;  %1983 = vmatprep.subr.bf16.mxu1 %v3033_v32  ;;  %v263_v31 = vld [vmem:[%s3467_s24 + $0xc0] sm:$0xff]  ;;  %v3111_v32 = vld [vmem:[%s3417_s20 + $0x150] ss:$8 sps:$4 sm:$0xff]  }
  0x30   : > { %2195 = vmatprep.subr.bf16.mxu0 %v3035_v33  ;;  %v2644_v33 = vcombine.high %v255_v30, %v263_v31  ;;  %v3131_v54 = vld [vmem:[%s3417_s20 + $0x184] ss:$8 sps:$4 sm:$0xff]  }
  0x31   : > { %v3134_v55 = vld [vmem:[%s3417_s20 + $0x584] ss:$8 sps:$4 sm:$0xff]  }
  0x32   : > { %1984 = vmatpush1.bf16.msra.mxu1 %v3037_v34  ;;  %v3114_v34 = vld [vmem:[%s3417_s20 + $0x550] ss:$8 sps:$4 sm:$0xff]  }
  0x33   : > { %2196 = vmatpush1.bf16.msra.mxu0 %v3038_v35  ;;  %1985 = vmatprep.subr.bf16.mxu1 %v3039_v36  ;;  %v259_v35 = vld [vmem:[%s3467_s24 + $0xa0] sm:$0xff] }
  0x34   : > { %2197 = vmatprep.subr.bf16.mxu0 %v3041_v37  ;;  %v267_v36 = vld [vmem:[%s3467_s24 + $0xe0] sm:$0xff]  ;;  %v2643_v37 = vcombine.low %v255_v30, %v263_v31  ;;  %v3185_v30 = vld [vmem:[%s3417_s20 + $0x214] ss:$8 sps:$4 sm:$0xff]  }
  0x35   : > { %v3188_v31 = vld [vmem:[%s3417_s20 + $0x614] ss:$8 sps:$4 sm:$0xff]  }
  0x36   : > { %1986 = vmatpush1.bf16.msra.mxu1 %v3043_v38  ;;  %v3119_v38 = vld [vmem:[%s3417_s20 + $0x164] ss:$8 sps:$4 sm:$0xff]  }
  0x37   : > { %2198 = vmatpush1.bf16.msra.mxu0 %v3044_v39  ;;  %1987 = vmatprep.subr.bf16.mxu1 %v3045_v40  ;;  %v2652_v39 = vcombine.high %v259_v35, %v267_v36  ;;  %v2651_v40 = vcombine.low %v259_v35, %v267_v36  ;;  %v3183_v36 = vld [vmem:[%s3417_s20 + $0x210] ss:$8 sps:$4 sm:$0xff]  }
  0x38   : > { %2199 = vmatprep.subr.bf16.mxu0 %v3047_v41  ;;  %v3122_v41 = vld [vmem:[%s3417_s20 + $0x564] ss:$8 sps:$4 sm:$0xff]  }
  0x3a   : > { %1988 = vmatpush1.bf16.msra.mxu1 %v3049_v42  ;;  %v3117_v42 = vld [vmem:[%s3417_s20 + $0x160] ss:$8 sps:$4 sm:$0xff]  }
  0x3b   : > { %2200 = vmatpush1.bf16.msra.mxu0 %v3050_v43  ;;  %1989 = vmatprep.subr.bf16.mxu1 %v3051_v44  ;;  %v3120_v43 = vld [vmem:[%s3417_s20 + $0x560] ss:$8 sps:$4 sm:$0xff]  }
  0x3c   : > { %2201 = vmatprep.subr.bf16.mxu0 %v3053_v45  ;;  %v3526_v44 = vld [vmem:[%s3467_s24 + $0x8] sm:$0xff] }
  0x3d   : > { %v3529_v45 = vld [vmem:[%s3467_s24 + $0x48] sm:$0xff] }
  0x3e   : > { %1990 = vmatpush1.bf16.msra.mxu1 %v3055_v46  ;;  %v3125_v46 = vld [vmem:[%s3417_s20 + $0x174] ss:$8 sps:$4 sm:$0xff]   ;;  %v2630_v48 = vcombine.high %v3526_v44, %v3529_v45 }
  0x3f   : > { %2202 = vmatpush1.bf16.msra.mxu0 %v3056_v47  ;;  %1991 = vmatprep.subr.bf16.mxu1 %v3057_v50  ;;  %v3128_v47 = vld [vmem:[%s3417_s20 + $0x574] ss:$8 sps:$4 sm:$0xff]   ;;  %v3539_v50 = vld [vmem:[%s3467_s24 + $0x68] sm:$0xff] }
  0x40   : > { %2203 = vmatprep.subr.bf16.mxu0 %v3059_v51  ;;  %v3123_v51 = vld [vmem:[%s3417_s20 + $0x170] ss:$8 sps:$4 sm:$0xff]   ;;  %v2638_v53 = vcombine.high %v3536_v49, %v3539_v50 }
  0x42   : > { %1992 = vmatpush1.bf16.msra.mxu1 %v3061_v56  ;;  %v3129_v56 = vld [vmem:[%s3417_s20 + $0x180] ss:$8 sps:$4 sm:$0xff]  }
  0x43   : > { %2204 = vmatpush1.bf16.msra.mxu0 %v3062_v57  ;;  %1993 = vmatprep.subr.bf16.mxu1 %v3063_v58  ;;  %v3132_v57 = vld [vmem:[%s3417_s20 + $0x580] ss:$8 sps:$4 sm:$0xff]   ;;  %v3137_v58 = vld [vmem:[%s3417_s20 + $0x194] ss:$8 sps:$4 sm:$0xff]  }
  0x44   : > { %2205 = vmatprep.subr.bf16.mxu0 %v3065_v59  ;;  %v3140_v59 = vld [vmem:[%s3417_s20 + $0x594] ss:$8 sps:$4 sm:$0xff]  }
  0x46   : > { %1994 = vmatpush1.bf16.msra.mxu1 %v3067_v60  ;;  %v3135_v60 = vld [vmem:[%s3417_s20 + $0x190] ss:$8 sps:$4 sm:$0xff]  }
  0x47   : > { %2206 = vmatpush1.bf16.msra.mxu0 %v3068_v61  ;;  %1995 = vmatprep.subr.bf16.mxu1 %v3069_v62  ;;  %v3138_v61 = vld [vmem:[%s3417_s20 + $0x590] ss:$8 sps:$4 sm:$0xff]   ;;  %v3143_v62 = vld [vmem:[%s3417_s20 + $0x1a4] ss:$8 sps:$4 sm:$0xff]  }
  0x48   : > { %2207 = vmatprep.subr.bf16.mxu0 %v3071_v63  ;;  %v3146_v63 = vld [vmem:[%s3417_s20 + $0x5a4] ss:$8 sps:$4 sm:$0xff]  }
  0x4a   : > { %1996 = vmatpush1.bf16.msra.mxu1 %v3073_v0  ;;  %v3141_v0 = vld [vmem:[%s3417_s20 + $0x1a0] ss:$8 sps:$4 sm:$0xff]  }
  0x4b   : > { %2208 = vmatpush1.bf16.msra.mxu0 %v3074_v1  ;;  %1997 = vmatprep.subr.bf16.mxu1 %v3075_v2  ;;  %v3144_v1 = vld [vmem:[%s3417_s20 + $0x5a0] ss:$8 sps:$4 sm:$0xff]   ;;  %v3149_v2 = vld [vmem:[%s3417_s20 + $0x1b4] ss:$8 sps:$4 sm:$0xff]  }
  0x4c   : > { %2209 = vmatprep.subr.bf16.mxu0 %v3077_v3  ;;  %v3152_v3 = vld [vmem:[%s3417_s20 + $0x5b4] ss:$8 sps:$4 sm:$0xff]  }
  0x4e   : > { %1998 = vmatpush1.bf16.msra.mxu1 %v3079_v4  ;;  %v3147_v4 = vld [vmem:[%s3417_s20 + $0x1b0] ss:$8 sps:$4 sm:$0xff]  }
  0x4f   : > { %2210 = vmatpush1.bf16.msra.mxu0 %v3080_v5  ;;  %2020 = vmatprep.subr.bf16.mxu1 %v3083_v6  ;;  %v3150_v5 = vld [vmem:[%s3417_s20 + $0x5b0] ss:$8 sps:$4 sm:$0xff]   ;;  %v3155_v6 = vld [vmem:[%s3417_s20 + $0x1c4] ss:$8 sps:$4 sm:$0xff]  }
  0x50   : > { %2232 = vmatprep.subr.bf16.mxu0 %v3086_v7  ;;  %v3158_v7 = vld [vmem:[%s3417_s20 + $0x5c4] ss:$8 sps:$4 sm:$0xff]  }
  0x51   : > { %2000 = vmatmul.mubr.bf16.vlgmr.msra.gmra.mrb[0].mxu1 %v2627_v8  ;;  %v3153_v8 = vld [vmem:[%s3417_s20 + $0x1c0] ss:$8 sps:$4 sm:$0xff]  }
  0x52   : > { %2212 = vmatmul.mubr.bf16.vlgmr.msra.gmra.mrb[0].mxu0 %v2635_v10  ;;  %2021 = vmatpush1.bf16.msra.mxu1 %v3081_v9  ;;  %v3156_v9 = vld [vmem:[%s3417_s20 + $0x5c0] ss:$8 sps:$4 sm:$0xff]   ;;  %v3161_v10 = vld [vmem:[%s3417_s20 + $0x1d4] ss:$8 sps:$4 sm:$0xff]  }
  0x53   : > { %2233 = vmatpush1.bf16.msra.mxu0 %v3084_v11  ;;  %2022 = vmatprep.subr.bf16.mxu1 %v3089_v12  ;;  %v3164_v11 = vld [vmem:[%s3417_s20 + $0x5d4] ss:$8 sps:$4 sm:$0xff]   ;;  %v3159_v12 = vld [vmem:[%s3417_s20 + $0x1d0] ss:$8 sps:$4 sm:$0xff]  }
  0x54   : > { %2234 = vmatprep.subr.bf16.mxu0 %v3092_v13  ;;  %2009 = vmatprep.mubr.bf16.mxu1 %v2644_v33  ;;  %v3162_v13 = vld [vmem:[%s3417_s20 + $0x5d0] ss:$8 sps:$4 sm:$0xff]   ;;  %v268_v33 = vld [vmem:[%s3467_s24 + $0xe8] sm:$0xff] }
  0x55   : > { %2221 = vmatprep.mubr.bf16.mxu0 %v2652_v39  ;;  %v3194_v39 = vld [vmem:[%s3417_s20 + $0x624] ss:$8 sps:$4 sm:$0xff]  }
  0x56   : > { %2023 = vmatpush1.bf16.msra.mxu1 %v3087_v14  ;;  %v3167_v14 = vld [vmem:[%s3417_s20 + $0x1e4] ss:$8 sps:$4 sm:$0xff]  }
  0x57   : > { %2235 = vmatpush1.bf16.msra.mxu0 %v3090_v15  ;;  %2024 = vmatprep.subr.bf16.mxu1 %v3095_v16  ;;  %v3170_v15 = vld [vmem:[%s3417_s20 + $0x5e4] ss:$8 sps:$4 sm:$0xff]   ;;  %v3165_v16 = vld [vmem:[%s3417_s20 + $0x1e0] ss:$8 sps:$4 sm:$0xff]  }
  0x58   : > { %2236 = vmatprep.subr.bf16.mxu0 %v3098_v17  ;;  %v3168_v17 = vld [vmem:[%s3417_s20 + $0x5e0] ss:$8 sps:$4 sm:$0xff]  }
  0x59   : > { %2010 = vmatmul.mubr.bf16.gmra.mrb[4].mxu1 %v2643_v37  ;;  %v3186_v37 = vld [vmem:[%s3417_s20 + $0x610] ss:$8 sps:$4 sm:$0xff]  }
  0x5a   : > { %2025 = vmatpush1.bf16.msra.mxu1 %v3093_v18  ;;  %2222 = vmatmul.mubr.bf16.gmra.mrb[4].mxu0 %v2651_v40  ;;  %v3173_v18 = vld [vmem:[%s3417_s20 + $0x1f4] ss:$8 sps:$4 sm:$0xff]   ;;  %v3189_v40 = vld [vmem:[%s3417_s20 + $0x220] ss:$8 sps:$4 sm:$0xff]  }
  0x5b   : > { %2237 = vmatpush1.bf16.msra.mxu0 %v3096_v19  ;;  %2026 = vmatprep.subr.bf16.mxu1 %v3101_v20  ;;  %v3176_v19 = vld [vmem:[%s3417_s20 + $0x5f4] ss:$8 sps:$4 sm:$0xff]   ;;  %v3171_v20 = vld [vmem:[%s3417_s20 + $0x1f0] ss:$8 sps:$4 sm:$0xff]  }
  0x5c   : > { %2238 = vmatprep.subr.bf16.mxu0 %v3104_v21  ;;  %2052 = vmatprep.mubr.bf16.mxu1 %v2630_v48  ;;  %v3174_v21 = vld [vmem:[%s3417_s20 + $0x5f0] ss:$8 sps:$4 sm:$0xff]   ;;  %v3197_v48 = vld [vmem:[%s3417_s20 + $0x234] ss:$8 sps:$4 sm:$0xff]  }
  0x5d   : > { %2264 = vmatprep.mubr.bf16.mxu0 %v2638_v53  ;;  %v3198_v53 = vld [vmem:[%s3417_s20 + $0x630] ss:$8 sps:$4 sm:$0xff]  }
  0x5e   : > { %2027 = vmatpush1.bf16.msra.mxu1 %v3099_v22  ;;  %v3179_v22 = vld [vmem:[%s3417_s20 + $0x204] ss:$8 sps:$4 sm:$0xff]  }
  0x5f   : > { %2239 = vmatpush1.bf16.msra.mxu0 %v3102_v23  ;;  %2028 = vmatprep.subr.bf16.mxu1 %v3107_v24  ;;  %v3182_v23 = vld [vmem:[%s3417_s20 + $0x604] ss:$8 sps:$4 sm:$0xff]   ;;  %v3177_v24 = vld [vmem:[%s3417_s20 + $0x200] ss:$8 sps:$4 sm:$0xff]  }
  0x60   : > { %2240 = vmatprep.subr.bf16.mxu0 %v3110_v25  ;;  %v3180_v25 = vld [vmem:[%s3417_s20 + $0x600] ss:$8 sps:$4 sm:$0xff]  }
  0x62   : > { %2029 = vmatpush1.bf16.msra.mxu1 %v3105_v26  ;;  %v256_v26 = vld [vmem:[%s3467_s24 + $0x88] sm:$0xff] }
  0x63   : > { %2241 = vmatpush1.bf16.msra.mxu0 %v3108_v27  ;;  %2030 = vmatprep.subr.bf16.mxu1 %v3113_v28  ;;  %v2629_v27 = vcombine.low %v3526_v44, %v3529_v45  ;;  %v2637_v28 = vcombine.low %v3536_v49, %v3539_v50  ;;  %v3601_v45 = vld [vmem:[%s3467_s24 + $0x50] sm:$0xff] }
  0x64   : > { %2242 = vmatprep.subr.bf16.mxu0 %v3116_v29  ;;  %v264_v29 = vld [vmem:[%s3467_s24 + $0xc8] sm:$0xff]  ;;  %v3200_v49 = vld [vmem:[%s3417_s20 + $0x634] ss:$8 sps:$4 sm:$0xff]  }
  0x66   : > { %2031 = vmatpush1.bf16.msra.mxu1 %v3111_v32  ;;  %v260_v32 = vld [vmem:[%s3467_s24 + $0xa8] sm:$0xff] }
  0x67   : > { %2243 = vmatpush1.bf16.msra.mxu0 %v3114_v34  ;;  %2032 = vmatprep.subr.bf16.mxu1 %v3119_v38  ;;  %v2646_v34 = vcombine.high %v256_v26, %v264_v29  ;;  %v2654_v35 = vcombine.high %v260_v32, %v268_v33  ;;  %v3191_v38 = vld [vmem:[%s3417_s20 + $0x224] ss:$8 sps:$4 sm:$0xff]   ;;  %v2653_v44 = vcombine.low %v260_v32, %v268_v33  ;;  %v3261_v32 = vld [vmem:[%s3417_s20 + $0x2e0] ss:$8 sps:$4 sm:$0xff]  }
  0x68   : > { %2244 = vmatprep.subr.bf16.mxu0 %v3122_v41  ;;  %v3192_v41 = vld [vmem:[%s3417_s20 + $0x620] ss:$8 sps:$4 sm:$0xff]  }
  0x69   : > { %v3264_v33 = vld [vmem:[%s3417_s20 + $0x6e0] ss:$8 sps:$4 sm:$0xff]  }
  0x6a   : > { %2033 = vmatpush1.bf16.msra.mxu1 %v3117_v42  ;;  %v3598_v42 = vld [vmem:[%s3467_s24 + $0x10] sm:$0xff] }
  0x6b   : > { %2245 = vmatpush1.bf16.msra.mxu0 %v3120_v43  ;;  %2034 = vmatprep.subr.bf16.mxu1 %v3125_v46  ;;  %v2645_v43 = vcombine.low %v256_v26, %v264_v29  ;;  %v3604_v46 = vld [vmem:[%s3467_s24 + $0x30] sm:$0xff]  ;;  %v2632_v50 = vcombine.high %v3598_v42, %v3601_v45 }
  0x6c   : > { %2246 = vmatprep.subr.bf16.mxu0 %v3128_v47  ;;  %v3607_v47 = vld [vmem:[%s3467_s24 + $0x70] sm:$0xff] }
  0x6d   : > { %v3257_v26 = vld [vmem:[%s3417_s20 + $0x2d4] ss:$8 sps:$4 sm:$0xff]   ;;  %v3258_v29 = vld [vmem:[%s3417_s20 + $0x6d0] ss:$8 sps:$4 sm:$0xff]  }
  0x6e   : > { %2035 = vmatpush1.bf16.msra.mxu1 %v3123_v51  ;;  %v2640_v51 = vcombine.high %v3604_v46, %v3607_v47 }
  0x6f   : > { %2247 = vmatpush1.bf16.msra.mxu0 %v3126_v52  ;;  %2036 = vmatprep.subr.bf16.mxu1 %v3131_v54  ;;  %v3195_v52 = vld [vmem:[%s3417_s20 + $0x230] ss:$8 sps:$4 sm:$0xff]   ;;  %v3203_v54 = vld [vmem:[%s3417_s20 + $0x244] ss:$8 sps:$4 sm:$0xff]  }
  0x70   : > { %2248 = vmatprep.subr.bf16.mxu0 %v3134_v55  ;;  %v3206_v55 = vld [vmem:[%s3417_s20 + $0x644] ss:$8 sps:$4 sm:$0xff]  }
  0x72   : > { %2037 = vmatpush1.bf16.msra.mxu1 %v3129_v56  ;;  %v3201_v56 = vld [vmem:[%s3417_s20 + $0x240] ss:$8 sps:$4 sm:$0xff]  }
  0x73   : > { %2249 = vmatpush1.bf16.msra.mxu0 %v3132_v57  ;;  %2038 = vmatprep.subr.bf16.mxu1 %v3137_v58  ;;  %v3204_v57 = vld [vmem:[%s3417_s20 + $0x640] ss:$8 sps:$4 sm:$0xff]   ;;  %v3209_v58 = vld [vmem:[%s3417_s20 + $0x254] ss:$8 sps:$4 sm:$0xff]  }
  0x74   : > { %2250 = vmatprep.subr.bf16.mxu0 %v3140_v59  ;;  %v3212_v59 = vld [vmem:[%s3417_s20 + $0x654] ss:$8 sps:$4 sm:$0xff]  }
  0x76   : > { %2039 = vmatpush1.bf16.msra.mxu1 %v3135_v60  ;;  %v3207_v60 = vld [vmem:[%s3417_s20 + $0x250] ss:$8 sps:$4 sm:$0xff]  }
  0x77   : > { %2251 = vmatpush1.bf16.msra.mxu0 %v3138_v61  ;;  %2040 = vmatprep.subr.bf16.mxu1 %v3143_v62  ;;  %v3210_v61 = vld [vmem:[%s3417_s20 + $0x650] ss:$8 sps:$4 sm:$0xff]   ;;  %v3215_v62 = vld [vmem:[%s3417_s20 + $0x264] ss:$8 sps:$4 sm:$0xff]  }
  0x78   : > { %2252 = vmatprep.subr.bf16.mxu0 %v3146_v63  ;;  %v3218_v63 = vld [vmem:[%s3417_s20 + $0x664] ss:$8 sps:$4 sm:$0xff]  }
  0x7a   : > { %2041 = vmatpush1.bf16.msra.mxu1 %v3141_v0  ;;  %v3213_v0 = vld [vmem:[%s3417_s20 + $0x260] ss:$8 sps:$4 sm:$0xff]  }
  0x7b   : > { %2253 = vmatpush1.bf16.msra.mxu0 %v3144_v1  ;;  %2042 = vmatprep.subr.bf16.mxu1 %v3149_v2  ;;  %v3216_v1 = vld [vmem:[%s3417_s20 + $0x660] ss:$8 sps:$4 sm:$0xff]   ;;  %v3221_v2 = vld [vmem:[%s3417_s20 + $0x274] ss:$8 sps:$4 sm:$0xff]  }
  0x7c   : > { %2254 = vmatprep.subr.bf16.mxu0 %v3152_v3  ;;  %v3224_v3 = vld [vmem:[%s3417_s20 + $0x674] ss:$8 sps:$4 sm:$0xff]  }
  0x7e   : > { %2043 = vmatpush1.bf16.msra.mxu1 %v3147_v4  ;;  %v3219_v4 = vld [vmem:[%s3417_s20 + $0x270] ss:$8 sps:$4 sm:$0xff]  }
  0x7f   : > { %2255 = vmatpush1.bf16.msra.mxu0 %v3150_v5  ;;  %2044 = vmatprep.subr.bf16.mxu1 %v3155_v6  ;;  %v3222_v5 = vld [vmem:[%s3417_s20 + $0x670] ss:$8 sps:$4 sm:$0xff]   ;;  %v3227_v6 = vld [vmem:[%s3417_s20 + $0x284] ss:$8 sps:$4 sm:$0xff]  }
  0x80   : > { %2256 = vmatprep.subr.bf16.mxu0 %v3158_v7  ;;  %v3230_v7 = vld [vmem:[%s3417_s20 + $0x684] ss:$8 sps:$4 sm:$0xff]  }
  0x82   : > { %2045 = vmatpush1.bf16.msra.mxu1 %v3153_v8  ;;  %v3225_v8 = vld [vmem:[%s3417_s20 + $0x280] ss:$8 sps:$4 sm:$0xff]  }
  0x83   : > { %2257 = vmatpush1.bf16.msra.mxu0 %v3156_v9  ;;  %2046 = vmatprep.subr.bf16.mxu1 %v3161_v10  ;;  %v3228_v9 = vld [vmem:[%s3417_s20 + $0x680] ss:$8 sps:$4 sm:$0xff]   ;;  %v3233_v10 = vld [vmem:[%s3417_s20 + $0x294] ss:$8 sps:$4 sm:$0xff]  }
  0x84   : > { %2258 = vmatprep.subr.bf16.mxu0 %v3164_v11  ;;  %v3236_v11 = vld [vmem:[%s3417_s20 + $0x694] ss:$8 sps:$4 sm:$0xff]  }
  0x86   : > { %2047 = vmatpush1.bf16.msra.mxu1 %v3159_v12  ;;  %v3231_v12 = vld [vmem:[%s3417_s20 + $0x290] ss:$8 sps:$4 sm:$0xff]  }
  0x87   : > { %2259 = vmatpush1.bf16.msra.mxu0 %v3162_v13  ;;  %2048 = vmatprep.subr.bf16.mxu1 %v3167_v14  ;;  %v3234_v13 = vld [vmem:[%s3417_s20 + $0x690] ss:$8 sps:$4 sm:$0xff]   ;;  %v3239_v14 = vld [vmem:[%s3417_s20 + $0x2a4] ss:$8 sps:$4 sm:$0xff]  }
  0x88   : > { %2260 = vmatprep.subr.bf16.mxu0 %v3170_v15  ;;  %v3242_v15 = vld [vmem:[%s3417_s20 + $0x6a4] ss:$8 sps:$4 sm:$0xff]  }
  0x8a   : > { %2049 = vmatpush1.bf16.msra.mxu1 %v3165_v16  ;;  %v3237_v16 = vld [vmem:[%s3417_s20 + $0x2a0] ss:$8 sps:$4 sm:$0xff]  }
  0x8b   : > { %2261 = vmatpush1.bf16.msra.mxu0 %v3168_v17  ;;  %2050 = vmatprep.subr.bf16.mxu1 %v3173_v18  ;;  %v3240_v17 = vld [vmem:[%s3417_s20 + $0x6a0] ss:$8 sps:$4 sm:$0xff]   ;;  %v3245_v18 = vld [vmem:[%s3417_s20 + $0x2b4] ss:$8 sps:$4 sm:$0xff]  }
  0x8c   : > { %2262 = vmatprep.subr.bf16.mxu0 %v3176_v19  ;;  %v3248_v19 = vld [vmem:[%s3417_s20 + $0x6b4] ss:$8 sps:$4 sm:$0xff]  }
  0x8e   : > { %2051 = vmatpush1.bf16.msra.mxu1 %v3171_v20  ;;  %v3243_v20 = vld [vmem:[%s3417_s20 + $0x2b0] ss:$8 sps:$4 sm:$0xff]  }
  0x8f   : > { %2263 = vmatpush1.bf16.msra.mxu0 %v3174_v21  ;;  %2073 = vmatprep.subr.bf16.mxu1 %v3179_v22  ;;  %v3246_v21 = vld [vmem:[%s3417_s20 + $0x6b0] ss:$8 sps:$4 sm:$0xff]   ;;  %v3251_v22 = vld [vmem:[%s3417_s20 + $0x2c4] ss:$8 sps:$4 sm:$0xff]  }
  0x90   : > { %2285 = vmatprep.subr.bf16.mxu0 %v3182_v23  ;;  %v3254_v23 = vld [vmem:[%s3417_s20 + $0x6c4] ss:$8 sps:$4 sm:$0xff]  }
  0x91   : > { %2053 = vmatmul.mubr.bf16.vlgmr.msra.gmra.mrb[0].mxu1 %v2629_v27  ;;  %v3260_v27 = vld [vmem:[%s3417_s20 + $0x6d4] ss:$8 sps:$4 sm:$0xff]  }
  0x92   : > { %2265 = vmatmul.mubr.bf16.vlgmr.msra.gmra.mrb[0].mxu0 %v2637_v28  ;;  %2074 = vmatpush1.bf16.msra.mxu1 %v3177_v24  ;;  %v3249_v24 = vld [vmem:[%s3417_s20 + $0x2c0] ss:$8 sps:$4 sm:$0xff]   ;;  %v3255_v28 = vld [vmem:[%s3417_s20 + $0x2d0] ss:$8 sps:$4 sm:$0xff]  }
  0x93   : > { %2286 = vmatpush1.bf16.msra.mxu0 %v3180_v25  ;;  %2075 = vmatprep.subr.bf16.mxu1 %v3185_v30  ;;  %v3252_v25 = vld [vmem:[%s3417_s20 + $0x6c0] ss:$8 sps:$4 sm:$0xff]   ;;  %v3263_v30 = vld [vmem:[%s3417_s20 + $0x2e4] ss:$8 sps:$4 sm:$0xff]  }
  0x94   : > { %2287 = vmatprep.subr.bf16.mxu0 %v3188_v31  ;;  %2062 = vmatprep.mubr.bf16.mxu1 %v2646_v34  ;;  %v3266_v31 = vld [vmem:[%s3417_s20 + $0x6e4] ss:$8 sps:$4 sm:$0xff]   ;;  %v3269_v34 = vld [vmem:[%s3417_s20 + $0x2f4] ss:$8 sps:$4 sm:$0xff]  }
  0x95   : > { %2274 = vmatprep.mubr.bf16.mxu0 %v2654_v35  ;;  %v3272_v35 = vld [vmem:[%s3417_s20 + $0x6f4] ss:$8 sps:$4 sm:$0xff]  }
  0x96   : > { %2076 = vmatpush1.bf16.msra.mxu1 %v3183_v36  ;;  %v3267_v36 = vld [vmem:[%s3417_s20 + $0x2f0] ss:$8 sps:$4 sm:$0xff]  }
  0x97   : > { %2288 = vmatpush1.bf16.msra.mxu0 %v3186_v37  ;;  %2077 = vmatprep.subr.bf16.mxu1 %v3191_v38  ;;  %v3270_v37 = vld [vmem:[%s3417_s20 + $0x6f0] ss:$8 sps:$4 sm:$0xff]   ;;  %v3275_v38 = vld [vmem:[%s3417_s20 + $0x304] ss:$8 sps:$4 sm:$0xff]  }
  0x98   : > { %2289 = vmatprep.subr.bf16.mxu0 %v3194_v39  ;;  %v3278_v39 = vld [vmem:[%s3417_s20 + $0x704] ss:$8 sps:$4 sm:$0xff]  }
  0x99   : > { %2063 = vmatmul.mubr.bf16.gmra.mrb[4].mxu1 %v2645_v43  ;;  %v2639_v43 = vcombine.low %v3604_v46, %v3607_v47  ;;  %v3279_v46 = vld [vmem:[%s3417_s20 + $0x310] ss:$8 sps:$4 sm:$0xff]  }
  0x9a   : > { %2275 = vmatmul.mubr.bf16.gmra.mrb[4].mxu0 %v2653_v44  ;;  %2078 = vmatpush1.bf16.msra.mxu1 %v3189_v40  ;;  %v257_v40 = vld [vmem:[%s3467_s24 + $0x90] sm:$0xff] }
  0x9b   : > { %2290 = vmatpush1.bf16.msra.mxu0 %v3192_v41  ;;  %2079 = vmatprep.subr.bf16.mxu1 %v3197_v48  ;;  %v2631_v41 = vcombine.low %v3598_v42, %v3601_v45  ;;  %v265_v44 = vld [vmem:[%s3467_s24 + $0xd0] sm:$0xff] }
  0x9c   : > { %2291 = vmatprep.subr.bf16.mxu0 %v3200_v49  ;;  %2105 = vmatprep.mubr.bf16.mxu1 %v2632_v50  ;;  %v261_v48 = vld [vmem:[%s3467_s24 + $0xb0] sm:$0xff]  ;;  %v3273_v50 = vld [vmem:[%s3417_s20 + $0x300] ss:$8 sps:$4 sm:$0xff]   ;;  %v2648_v42 = vcombine.high %v257_v40, %v265_v44 }
  0x9d   : > { %2317 = vmatprep.mubr.bf16.mxu0 %v2640_v51  ;;  %v269_v49 = vld [vmem:[%s3467_s24 + $0xf0] sm:$0xff]  ;;  %v3276_v51 = vld [vmem:[%s3417_s20 + $0x700] ss:$8 sps:$4 sm:$0xff]  }
  0x9e   : > { %2080 = vmatpush1.bf16.msra.mxu1 %v3195_v52  ;;  %v3281_v52 = vld [vmem:[%s3417_s20 + $0x314] ss:$8 sps:$4 sm:$0xff]   ;;  %v2656_v45 = vcombine.high %v261_v48, %v269_v49  ;;  %v3282_v47 = vld [vmem:[%s3417_s20 + $0x710] ss:$8 sps:$4 sm:$0xff]  }
  0x9f   : > { %2292 = vmatpush1.bf16.msra.mxu0 %v3198_v53  ;;  %2081 = vmatprep.subr.bf16.mxu1 %v3203_v54  ;;  %v3284_v53 = vld [vmem:[%s3417_s20 + $0x714] ss:$8 sps:$4 sm:$0xff]   ;;  %v3287_v54 = vld [vmem:[%s3417_s20 + $0x324] ss:$8 sps:$4 sm:$0xff]  }
  0xa0   : > { %2293 = vmatprep.subr.bf16.mxu0 %v3206_v55  ;;  %v3290_v55 = vld [vmem:[%s3417_s20 + $0x724] ss:$8 sps:$4 sm:$0xff]  }
  0xa2   : > { %2082 = vmatpush1.bf16.msra.mxu1 %v3201_v56  ;;  %v3684_v56 = vld [vmem:[%s3467_s24 + $0x18] sm:$0xff] }
  0xa3   : > { %2294 = vmatpush1.bf16.msra.mxu0 %v3204_v57  ;;  %2083 = vmatprep.subr.bf16.mxu1 %v3209_v58  ;;  %v2647_v57 = vcombine.low %v257_v40, %v265_v44  ;;  %v2655_v58 = vcombine.low %v261_v48, %v269_v49  ;;  %v3345_v40 = vld [vmem:[%s3417_s20 + $0x3c0] ss:$8 sps:$4 sm:$0xff]   ;;  %v3356_v44 = vld [vmem:[%s3417_s20 + $0x7d4] ss:$8 sps:$4 sm:$0xff]   ;;  %v3351_v48 = vld [vmem:[%s3417_s20 + $0x3d0] ss:$8 sps:$4 sm:$0xff]  }
  0xa4   : > { %2295 = vmatprep.subr.bf16.mxu0 %v3212_v59  ;;  %v3687_v59 = vld [vmem:[%s3467_s24 + $0x58] sm:$0xff] }
  0xa5   : > { %v3354_v49 = vld [vmem:[%s3417_s20 + $0x7d0] ss:$8 sps:$4 sm:$0xff]  }
  0xa6   : > { %2084 = vmatpush1.bf16.msra.mxu1 %v3207_v60  ;;  %v3690_v60 = vld [vmem:[%s3467_s24 + $0x38] sm:$0xff] }
  0xa7   : > { %2296 = vmatpush1.bf16.msra.mxu0 %v3210_v61  ;;  %2085 = vmatprep.subr.bf16.mxu1 %v3215_v62  ;;  %v3693_v61 = vld [vmem:[%s3467_s24 + $0x78] sm:$0xff]  ;;  %v3285_v62 = vld [vmem:[%s3417_s20 + $0x320] ss:$8 sps:$4 sm:$0xff]  }
  0xa8   : > { %2297 = vmatprep.subr.bf16.mxu0 %v3218_v63  ;;  %v3288_v63 = vld [vmem:[%s3417_s20 + $0x720] ss:$8 sps:$4 sm:$0xff]  }
  0xaa   : > { %2086 = vmatpush1.bf16.msra.mxu1 %v3213_v0  ;;  %v3293_v0 = vld [vmem:[%s3417_s20 + $0x334] ss:$8 sps:$4 sm:$0xff]  }
  0xab   : > { %2298 = vmatpush1.bf16.msra.mxu0 %v3216_v1  ;;  %2087 = vmatprep.subr.bf16.mxu1 %v3221_v2  ;;  %v3296_v1 = vld [vmem:[%s3417_s20 + $0x734] ss:$8 sps:$4 sm:$0xff]   ;;  %v2634_v2 = vcombine.high %v3684_v56, %v3687_v59 }
  0xac   : > { %2299 = vmatprep.subr.bf16.mxu0 %v3224_v3  ;;  %v2642_v3 = vcombine.high %v3690_v60, %v3693_v61 }
  0xae   : > { %2088 = vmatpush1.bf16.msra.mxu1 %v3219_v4  ;;  %v3291_v4 = vld [vmem:[%s3417_s20 + $0x330] ss:$8 sps:$4 sm:$0xff]  }
  0xaf   : > { %2300 = vmatpush1.bf16.msra.mxu0 %v3222_v5  ;;  %2089 = vmatprep.subr.bf16.mxu1 %v3227_v6  ;;  %v3294_v5 = vld [vmem:[%s3417_s20 + $0x730] ss:$8 sps:$4 sm:$0xff]   ;;  %v3299_v6 = vld [vmem:[%s3417_s20 + $0x344] ss:$8 sps:$4 sm:$0xff]  }
  0xb0   : > { %2301 = vmatprep.subr.bf16.mxu0 %v3230_v7  ;;  %v3302_v7 = vld [vmem:[%s3417_s20 + $0x744] ss:$8 sps:$4 sm:$0xff]  }
  0xb2   : > { %2090 = vmatpush1.bf16.msra.mxu1 %v3225_v8  ;;  %v3297_v8 = vld [vmem:[%s3417_s20 + $0x340] ss:$8 sps:$4 sm:$0xff]  }
  0xb3   : > { %2302 = vmatpush1.bf16.msra.mxu0 %v3228_v9  ;;  %2091 = vmatprep.subr.bf16.mxu1 %v3233_v10  ;;  %v3300_v9 = vld [vmem:[%s3417_s20 + $0x740] ss:$8 sps:$4 sm:$0xff]   ;;  %v3305_v10 = vld [vmem:[%s3417_s20 + $0x354] ss:$8 sps:$4 sm:$0xff]  }
  0xb4   : > { %2303 = vmatprep.subr.bf16.mxu0 %v3236_v11  ;;  %v3308_v11 = vld [vmem:[%s3417_s20 + $0x754] ss:$8 sps:$4 sm:$0xff]  }
  0xb6   : > { %2092 = vmatpush1.bf16.msra.mxu1 %v3231_v12  ;;  %v3303_v12 = vld [vmem:[%s3417_s20 + $0x350] ss:$8 sps:$4 sm:$0xff]  }
  0xb7   : > { %2304 = vmatpush1.bf16.msra.mxu0 %v3234_v13  ;;  %2093 = vmatprep.subr.bf16.mxu1 %v3239_v14  ;;  %v3306_v13 = vld [vmem:[%s3417_s20 + $0x750] ss:$8 sps:$4 sm:$0xff]   ;;  %v3311_v14 = vld [vmem:[%s3417_s20 + $0x364] ss:$8 sps:$4 sm:$0xff]  }
  0xb8   : > { %2305 = vmatprep.subr.bf16.mxu0 %v3242_v15  ;;  %v3314_v15 = vld [vmem:[%s3417_s20 + $0x764] ss:$8 sps:$4 sm:$0xff]  }
  0xba   : > { %2094 = vmatpush1.bf16.msra.mxu1 %v3237_v16  ;;  %v3309_v16 = vld [vmem:[%s3417_s20 + $0x360] ss:$8 sps:$4 sm:$0xff]  }
  0xbb   : > { %2306 = vmatpush1.bf16.msra.mxu0 %v3240_v17  ;;  %2095 = vmatprep.subr.bf16.mxu1 %v3245_v18  ;;  %v3312_v17 = vld [vmem:[%s3417_s20 + $0x760] ss:$8 sps:$4 sm:$0xff]   ;;  %v3317_v18 = vld [vmem:[%s3417_s20 + $0x374] ss:$8 sps:$4 sm:$0xff]  }
  0xbc   : > { %2307 = vmatprep.subr.bf16.mxu0 %v3248_v19  ;;  %v3320_v19 = vld [vmem:[%s3417_s20 + $0x774] ss:$8 sps:$4 sm:$0xff]  }
  0xbe   : > { %2096 = vmatpush1.bf16.msra.mxu1 %v3243_v20  ;;  %v3315_v20 = vld [vmem:[%s3417_s20 + $0x370] ss:$8 sps:$4 sm:$0xff]  }
  0xbf   : > { %2308 = vmatpush1.bf16.msra.mxu0 %v3246_v21  ;;  %2097 = vmatprep.subr.bf16.mxu1 %v3251_v22  ;;  %v3318_v21 = vld [vmem:[%s3417_s20 + $0x770] ss:$8 sps:$4 sm:$0xff]   ;;  %v3323_v22 = vld [vmem:[%s3417_s20 + $0x384] ss:$8 sps:$4 sm:$0xff]  }
  0xc0   : > { %2309 = vmatprep.subr.bf16.mxu0 %v3254_v23  ;;  %v3326_v23 = vld [vmem:[%s3417_s20 + $0x784] ss:$8 sps:$4 sm:$0xff]  }
  0xc2   : > { %2098 = vmatpush1.bf16.msra.mxu1 %v3249_v24  ;;  %v3321_v24 = vld [vmem:[%s3417_s20 + $0x380] ss:$8 sps:$4 sm:$0xff]  }
  0xc3   : > { %2310 = vmatpush1.bf16.msra.mxu0 %v3252_v25  ;;  %2099 = vmatprep.subr.bf16.mxu1 %v3257_v26  ;;  %v3324_v25 = vld [vmem:[%s3417_s20 + $0x780] ss:$8 sps:$4 sm:$0xff]   ;;  %v3329_v26 = vld [vmem:[%s3417_s20 + $0x394] ss:$8 sps:$4 sm:$0xff]  }
  0xc4   : > { %2311 = vmatprep.subr.bf16.mxu0 %v3260_v27  ;;  %v3332_v27 = vld [vmem:[%s3417_s20 + $0x794] ss:$8 sps:$4 sm:$0xff]  }
  0xc6   : > { %2100 = vmatpush1.bf16.msra.mxu1 %v3255_v28  ;;  %v3327_v28 = vld [vmem:[%s3417_s20 + $0x390] ss:$8 sps:$4 sm:$0xff]  }
  0xc7   : > { %2312 = vmatpush1.bf16.msra.mxu0 %v3258_v29  ;;  %2101 = vmatprep.subr.bf16.mxu1 %v3263_v30  ;;  %v3330_v29 = vld [vmem:[%s3417_s20 + $0x790] ss:$8 sps:$4 sm:$0xff]   ;;  %v3335_v30 = vld [vmem:[%s3417_s20 + $0x3a4] ss:$8 sps:$4 sm:$0xff]  }
  0xc8   : > { %2313 = vmatprep.subr.bf16.mxu0 %v3266_v31  ;;  %v3338_v31 = vld [vmem:[%s3417_s20 + $0x7a4] ss:$8 sps:$4 sm:$0xff]  }
  0xca   : > { %2102 = vmatpush1.bf16.msra.mxu1 %v3261_v32  ;;  %v3333_v32 = vld [vmem:[%s3417_s20 + $0x3a0] ss:$8 sps:$4 sm:$0xff]  }
  0xcb   : > { %2314 = vmatpush1.bf16.msra.mxu0 %v3264_v33  ;;  %2103 = vmatprep.subr.bf16.mxu1 %v3269_v34  ;;  %v3336_v33 = vld [vmem:[%s3417_s20 + $0x7a0] ss:$8 sps:$4 sm:$0xff]   ;;  %v3341_v34 = vld [vmem:[%s3417_s20 + $0x3b4] ss:$8 sps:$4 sm:$0xff]  }
  0xcc   : > { %2315 = vmatprep.subr.bf16.mxu0 %v3272_v35  ;;  %v3344_v35 = vld [vmem:[%s3417_s20 + $0x7b4] ss:$8 sps:$4 sm:$0xff]  }
  0xce   : > { %2104 = vmatpush1.bf16.msra.mxu1 %v3267_v36  ;;  %v3339_v36 = vld [vmem:[%s3417_s20 + $0x3b0] ss:$8 sps:$4 sm:$0xff]  }
  0xcf   : > { %2316 = vmatpush1.bf16.msra.mxu0 %v3270_v37  ;;  %2126 = vmatprep.subr.bf16.mxu1 %v3275_v38  ;;  %v3342_v37 = vld [vmem:[%s3417_s20 + $0x7b0] ss:$8 sps:$4 sm:$0xff]   ;;  %v3347_v38 = vld [vmem:[%s3417_s20 + $0x3c4] ss:$8 sps:$4 sm:$0xff]  }
  0xd0   : > { %2338 = vmatprep.subr.bf16.mxu0 %v3278_v39  ;;  %v3350_v39 = vld [vmem:[%s3417_s20 + $0x7c4] ss:$8 sps:$4 sm:$0xff]  }
  0xd1   : > { %2106 = vmatmul.mubr.bf16.vlgmr.msra.gmra.mrb[0].mxu1 %v2631_v41  ;;  %v3348_v41 = vld [vmem:[%s3417_s20 + $0x7c0] ss:$8 sps:$4 sm:$0xff]  }
  0xd2   : > { %2318 = vmatmul.mubr.bf16.vlgmr.msra.gmra.mrb[0].mxu0 %v2639_v43  ;;  %2127 = vmatpush1.bf16.msra.mxu1 %v3273_v50  ;;  %v3353_v43 = vld [vmem:[%s3417_s20 + $0x3d4] ss:$8 sps:$4 sm:$0xff]   ;;  %v3359_v50 = vld [vmem:[%s3417_s20 + $0x3e4] ss:$8 sps:$4 sm:$0xff]  }
  0xd3   : > { %2339 = vmatpush1.bf16.msra.mxu0 %v3276_v51  ;;  %2128 = vmatprep.subr.bf16.mxu1 %v3281_v52  ;;  %v3362_v51 = vld [vmem:[%s3417_s20 + $0x7e4] ss:$8 sps:$4 sm:$0xff]   ;;  %v3357_v52 = vld [vmem:[%s3417_s20 + $0x3e0] ss:$8 sps:$4 sm:$0xff]  }
  0xd4   : > { %2340 = vmatprep.subr.bf16.mxu0 %v3284_v53  ;;  %2115 = vmatprep.mubr.bf16.mxu1 %v2648_v42  ;;  %v3360_v53 = vld [vmem:[%s3417_s20 + $0x7e0] ss:$8 sps:$4 sm:$0xff]   ;;  %v3365_v42 = vld [vmem:[%s3417_s20 + $0x3f4] ss:$8 sps:$4 sm:$0xff]  }
  0xd5   : > { %2327 = vmatprep.mubr.bf16.mxu0 %v2656_v45  ;;  %v3368_v45 = vld [vmem:[%s3417_s20 + $0x7f4] ss:$8 sps:$4 sm:$0xff]  }
  0xd6   : > { %2129 = vmatpush1.bf16.msra.mxu1 %v3279_v46  ;;  %v3363_v46 = vld [vmem:[%s3417_s20 + $0x3f0] ss:$8 sps:$4 sm:$0xff]  }
  0xd7   : > { %2341 = vmatpush1.bf16.msra.mxu0 %v3282_v47  ;;  %2130 = vmatprep.subr.bf16.mxu1 %v3287_v54  ;;  %v3366_v47 = vld [vmem:[%s3417_s20 + $0x7f0] ss:$8 sps:$4 sm:$0xff]  }
  0xd8   : > { %2342 = vmatprep.subr.bf16.mxu0 %v3290_v55  ;;  %v258_v54 = vld [vmem:[%s3467_s24 + $0x98] sm:$0xff] }
  0xd9   : > { %2116 = vmatmul.mubr.bf16.gmra.mrb[4].mxu1 %v2647_v57  ;;  %v266_v55 = vld [vmem:[%s3467_s24 + $0xd8] sm:$0xff] }
  0xda   : > { %2328 = vmatmul.mubr.bf16.gmra.mrb[4].mxu0 %v2655_v58  ;;  %2131 = vmatpush1.bf16.msra.mxu1 %v3285_v62  ;;  %v262_v57 = vld [vmem:[%s3467_s24 + $0xb8] sm:$0xff]  ;;  %v2633_v62 = vcombine.low %v3684_v56, %v3687_v59 }
  0xdb   : > { %2343 = vmatpush1.bf16.msra.mxu0 %v3288_v63  ;;  %2132 = vmatprep.subr.bf16.mxu1 %v3293_v0  ;;  %v270_v58 = vld [vmem:[%s3467_s24 + $0xf8] sm:$0xff]  ;;  %v2641_v63 = vcombine.low %v3690_v60, %v3693_v61  ;;  %v2650_v0 = vcombine.high %v258_v54, %v266_v55 }
  0xdc   : > { %2344 = vmatprep.subr.bf16.mxu0 %v3296_v1  ;;  %2158 = vmatprep.mubr.bf16.mxu1 %v2634_v2  ;;  %v2658_v1 = vcombine.high %v262_v57, %v270_v58  ;;  %v2649_v2 = vcombine.low %v258_v54, %v266_v55 }
  0xdd   : > { %2370 = vmatprep.mubr.bf16.mxu0 %v2642_v3  ;;  %v2657_v3 = vcombine.low %v262_v57, %v270_v58 }
  0xde   : > { %2133 = vmatpush1.bf16.msra.mxu1 %v3291_v4 }
  0xdf   : > { %2345 = vmatpush1.bf16.msra.mxu0 %v3294_v5  ;;  %2134 = vmatprep.subr.bf16.mxu1 %v3299_v6 }
  0xe0   : > { %2346 = vmatprep.subr.bf16.mxu0 %v3302_v7 }
  0xe2   : > { %2135 = vmatpush1.bf16.msra.mxu1 %v3297_v8 }
  0xe3   : > { %2347 = vmatpush1.bf16.msra.mxu0 %v3300_v9  ;;  %2136 = vmatprep.subr.bf16.mxu1 %v3305_v10 }
  0xe4   : > { %2348 = vmatprep.subr.bf16.mxu0 %v3308_v11 }
  0xe6   : > { %2137 = vmatpush1.bf16.msra.mxu1 %v3303_v12 }
  0xe7   : > { %2349 = vmatpush1.bf16.msra.mxu0 %v3306_v13  ;;  %2138 = vmatprep.subr.bf16.mxu1 %v3311_v14 }
  0xe8   : > { %2350 = vmatprep.subr.bf16.mxu0 %v3314_v15 }
  0xea   : > { %2139 = vmatpush1.bf16.msra.mxu1 %v3309_v16 }
  0xeb   : > { %2351 = vmatpush1.bf16.msra.mxu0 %v3312_v17  ;;  %2140 = vmatprep.subr.bf16.mxu1 %v3317_v18 }
  0xec   : > { %2352 = vmatprep.subr.bf16.mxu0 %v3320_v19 }
  0xee   : > { %2141 = vmatpush1.bf16.msra.mxu1 %v3315_v20 }
  0xef   : > { %2353 = vmatpush1.bf16.msra.mxu0 %v3318_v21  ;;  %2142 = vmatprep.subr.bf16.mxu1 %v3323_v22 }
  0xf0   : > { %2354 = vmatprep.subr.bf16.mxu0 %v3326_v23 }
  0xf2   : > { %2143 = vmatpush1.bf16.msra.mxu1 %v3321_v24 }
  0xf3   : > { %2355 = vmatpush1.bf16.msra.mxu0 %v3324_v25  ;;  %2144 = vmatprep.subr.bf16.mxu1 %v3329_v26 }
  0xf4   : > { %2356 = vmatprep.subr.bf16.mxu0 %v3332_v27 }
  0xf6   : > { %2145 = vmatpush1.bf16.msra.mxu1 %v3327_v28 }
  0xf7   : > { %2357 = vmatpush1.bf16.msra.mxu0 %v3330_v29  ;;  %2146 = vmatprep.subr.bf16.mxu1 %v3335_v30 }
  0xf8   : > { %2358 = vmatprep.subr.bf16.mxu0 %v3338_v31 }
  0xfa   : > { %2147 = vmatpush1.bf16.msra.mxu1 %v3333_v32 }
  0xfb   : > { %2359 = vmatpush1.bf16.msra.mxu0 %v3336_v33  ;;  %2148 = vmatprep.subr.bf16.mxu1 %v3341_v34 }
  0xfc   : > { %2360 = vmatprep.subr.bf16.mxu0 %v3344_v35 }
  0xfe   : > { %2149 = vmatpush1.bf16.msra.mxu1 %v3339_v36 }
  0xff   : > { %2361 = vmatpush1.bf16.msra.mxu0 %v3342_v37  ;;  %2150 = vmatprep.subr.bf16.mxu1 %v3347_v38 }
 0x100   : > { %2362 = vmatprep.subr.bf16.mxu0 %v3350_v39 }
 0x102   : > { %2151 = vmatpush1.bf16.msra.mxu1 %v3345_v40 }
 0x103   : > { %2363 = vmatpush1.bf16.msra.mxu0 %v3348_v41  ;;  %2152 = vmatprep.subr.bf16.mxu1 %v3353_v43 }
 0x104   : > { %2364 = vmatprep.subr.bf16.mxu0 %v3356_v44 }
 0x106   : > { %2153 = vmatpush1.bf16.msra.mxu1 %v3351_v48 }
 0x107   : > { %2365 = vmatpush1.bf16.msra.mxu0 %v3354_v49  ;;  %2154 = vmatprep.subr.bf16.mxu1 %v3359_v50 }
 0x108   : > { %2366 = vmatprep.subr.bf16.mxu0 %v3362_v51 }
 0x10a   : > { %2155 = vmatpush1.bf16.msra.mxu1 %v3357_v52 }
 0x10b   : > { %2367 = vmatpush1.bf16.msra.mxu0 %v3360_v53  ;;  %2156 = vmatprep.subr.bf16.mxu1 %v3365_v42  ;;  %v3377_v53 = vmov 1966171168  }
 0x10c   : > { %2368 = vmatprep.subr.bf16.mxu0 %v3368_v45  ;;  %v2421_v42 = vunpack.c.l.s4 %v3377_v53  ;;  %v2423_v45 = vlaneseq }
 0x10e   : > { %2157 = vmatpush1.bf16.msra.mxu1 %v3363_v46  ;;  %vm2437_vm0 = vcmp.lt.s32.totalorder %v2423_v45, 256 }
 0x10f   : > { %2369 = vmatpush1.bf16.msra.mxu0 %v3366_v47 }
 0x111   : > { %2159 = vmatmul.mubr.bf16.vlgmr.msra.gmra.mrb[0].mxu1 %v2633_v62 }
 0x112   : > { %2371 = vmatmul.mubr.bf16.vlgmr.msra.gmra.mrb[0].mxu0 %v2641_v63  ;;  %2168 = vmatprep.mubr.bf16.mxu1 %v2650_v0  ;;  %v2422_v0 = vunpack.c.0.s8 %v2421_v42 }
 0x113   : > { %2380 = vmatprep.mubr.bf16.mxu0 %v2658_v1  ;;  %v2424_v1 = vshrl.u32 %v2423_v45, 7 }
 0x119   : > { %2169 = vmatmul.mubr.bf16.gmra.mrb[4].mxu1 %v2649_v2 }
 0x11a   : > { %2381 = vmatmul.mubr.bf16.gmra.mrb[4].mxu0 %v2657_v3 }
 0x1e4   : > { %v2160_v4 = vpop.f32.mrb[0].mxu1 }
 0x1e5   : > { %v2372_v56 = vpop.f32.mrb[0].mxu0  ;;  %v2162_v60 = vpop.f32.mrb[1].mxu1 }
 0x1e6   : > { %v2920_v59 = vadd.f32 %v2372_v56, %v2160_v4  ;;  %v2374_v61 = vpop.f32.mrb[1].mxu0  ;;  %v2164_v6 = vpop.f32.mrb[2].mxu1 }
 0x1e7   : > { %v2921_v5 = vadd.f32 %v2374_v61, %v2162_v60  ;;  %v2376_v7 = vpop.f32.mrb[2].mxu0  ;;  %v2166_v9 = vpop.f32.mrb[3].mxu1 }
 0x1e8   : > { %2391 = vst [vmem:[%s3765_s28] sm:$0xff] %v2920_v59  ;;  %v2922_v8 = vadd.f32 %v2376_v7, %v2164_v6  ;;  %v2378_v10 = vpop.f32.mrb[3].mxu0  ;;  %v2440_v12 = vmul.f32 %v2920_v59, %v2920_v59  ;;  %v2425_v6 = vsub.s32 %v2422_v0, %v2424_v1 }
 0x1e9   : > { %2392 = vst [vmem:[%s3765_s28 + $0x8] sm:$0xff] %v2921_v5  ;;  %v2923_v11 = vadd.f32 %v2378_v10, %v2166_v9  ;;  %v2441_v15 = vmul.f32 %v2921_v5, %v2921_v5 }
 0x1ea   : > { %2393 = vst [vmem:[%s3765_s28 + $0x10] sm:$0xff] %v2922_v8  ;;  %v2399_v13 = vadd.f32 %v2922_v8, %v2920_v59  ;;  %v2442_v14 = vmul.f32 %v2922_v8, %v2922_v8 }
 0x1eb   : > { %2394 = vst [vmem:[%s3765_s28 + $0x18] sm:$0xff] %v2923_v11  ;;  %v2408_v16 = vadd.f32 %v2923_v11, %v2921_v5  ;;  %v2443_v17 = vmul.f32 %v2923_v11, %v2923_v11 }
 0x1ec   : > { %v2448_v18 = vadd.f32 %v2442_v14, %v2440_v12  ;;  %v2170_v20 = vpop.f32.mrb[4].mxu1 }
 0x1ed   : > { %v2457_v19 = vadd.f32 %v2443_v17, %v2441_v15  ;;  %v2382_v21 = vpop.f32.mrb[4].mxu0  ;;  %v2172_v23 = vpop.f32.mrb[5].mxu1 }
 0x1ee   : > { %v2924_v22 = vadd.f32 %v2382_v21, %v2170_v20  ;;  %v2384_v24 = vpop.f32.mrb[5].mxu0  ;;  %v2174_v26 = vpop.f32.mrb[6].mxu1 }
 0x1ef   : > { %v2925_v25 = vadd.f32 %v2384_v24, %v2172_v23  ;;  %v2386_v27 = vpop.f32.mrb[6].mxu0  ;;  %v2176_v31 = vpop.f32.mrb[7].mxu1 }
 0x1f0   : > { %2395 = vst [vmem:[%s3765_s28 + $0x20] sm:$0xff] %v2924_v22  ;;  %v2400_v28 = vadd.f32 %v2924_v22, %v2399_v13  ;;  %v2444_v29 = vmul.f32 %v2924_v22, %v2924_v22  ;;  %v2926_v30 = vadd.f32 %v2386_v27, %v2174_v26  ;;  %v2388_v32 = vpop.f32.mrb[7].mxu0 }
 0x1f1   : > { %2396 = vst [vmem:[%s3765_s28 + $0x28] sm:$0xff] %v2925_v25  ;;  %v2409_v33 = vadd.f32 %v2925_v25, %v2408_v16  ;;  %v2445_v34 = vmul.f32 %v2925_v25, %v2925_v25  ;;  %v2927_v35 = vadd.f32 %v2388_v32, %v2176_v31 }
 0x1f2   : > { %v2449_v36 = vadd.f32 %v2448_v18, %v2444_v29  ;;  %2397 = vst [vmem:[%s3765_s28 + $0x30] sm:$0xff] %v2926_v30  ;;  %v2401_v37 = vadd.f32 %v2926_v30, %v2400_v28  ;;  %v2446_v38 = vmul.f32 %v2926_v30, %v2926_v30 }
 0x1f3   : > { %v2458_v39 = vadd.f32 %v2457_v19, %v2445_v34  ;;  %2398 = vst [vmem:[%s3765_s28 + $0x38] sm:$0xff] %v2927_v35  ;;  %v2410_v40 = vadd.f32 %v2927_v35, %v2409_v33  ;;  %v2447_v41 = vmul.f32 %v2927_v35, %v2927_v35 }
 0x1f4   : > { %v2402_v43 = vrot.slane %v2401_v37, 4  ;;  %v2450_v44 = vadd.f32 %v2449_v36, %v2446_v38 }
 0x1f5   : > { %v2411_v48 = vrot.slane %v2410_v40, 4  ;;  %v2459_v49 = vadd.f32 %v2458_v39, %v2447_v41 }
 0x1f6   : > { %v2403_v50 = vadd.f32 %v2402_v43, %v2401_v37  ;;  %v2451_v51 = vrot.slane %v2450_v44, 4 }
 0x1f7   : > { %v2412_v52 = vadd.f32 %v2411_v48, %v2410_v40  ;;  %v2460_v46 = vrot.slane %v2459_v49, 4 }
 0x1f8   : > { %v2404_v47 = vrot.slane %v2403_v50, 2  ;;  %v2452_v54 = vadd.f32 %v2451_v51, %v2450_v44 }
 0x1f9   : > { %v2413_v55 = vrot.slane %v2412_v52, 2  ;;  %v2461_v57 = vadd.f32 %v2460_v46, %v2459_v49 }
 0x1fa   : > { %v2405_v58 = vadd.f32 %v2404_v47, %v2403_v50  ;;  %v2453_v62 = vrot.slane %v2452_v54, 2 }
 0x1fb   : > { %v2414_v63 = vadd.f32 %v2413_v55, %v2412_v52  ;;  %v2462_v2 = vrot.slane %v2461_v57, 2 }
 0x1fc   : > { %v2406_v3 = vrot.slane %v2405_v58, 1  ;;  %v2454_v4 = vadd.f32 %v2453_v62, %v2452_v54 }
 0x1fd   : > { %v2415_v56 = vrot.slane %v2414_v63, 1  ;;  %v2463_v59 = vadd.f32 %v2462_v2, %v2461_v57 }
 0x1fe   : > { %v2407_v60 = vadd.f32 %v2406_v3, %v2405_v58  ;;  %v2455_v61 = vrot.slane %v2454_v4, 1 }
 0x1ff   : > { %v2416_v5 = vadd.f32 %v2415_v56, %v2414_v63  ;;  %v2464_v7 = vrot.slane %v2463_v59, 1 }
 0x200   : > { %v2456_v8 = vadd.f32 %v2455_v61, %v2454_v4 }
 0x201   : > { %v2419_v9 = vcombine.low %v2407_v60, %v2416_v5  ;;  %v2465_v10 = vadd.f32 %v2464_v7, %v2463_v59 }
 0x203   : > { %v2426_v11 = vrot.slane %v2419_v9, %v2425_v6  ;;  %v2468_v12 = vcombine.low %v2456_v8, %v2465_v10 }
 0x205   : > { %v2433_v13 = vrot.slane %v2426_v11, %v2425_v6  ;;  %v2475_v14 = vrot.slane %v2468_v12, %v2425_v6 }
 0x207   : > { %2439 = vst.msk [vmem:[%s234_s6] sm:$0x3] %vm2437_vm0, %v2433_v13  ;;  %v2482_v15 = vrot.slane %v2475_v14, %v2425_v6 }
 0x209   : > { %2484 = vst.msk [vmem:[%s238_s9] sm:$0x3] %vm2437_vm0, %v2482_v15 }
 0x20a PF: > { %s15_s15 = sadd.s32 1, %s3375_s15  }
 0x20b   : > { %p12_p4 = scmp.ge.s32.totalorder %s15_s15, 6  }
 0x20d   :  { %14 = sbr.rel (!%p12_p4) target bundleno = 1 (0x1), region = 85 }

// kernel: generator_forward.11
= control target key start
LH: loop header
LB: loop body
LE: loop exit
PB: predicated region body
PF: predicated region fallthrough
CT: control target
= control target key end

     0   :  { %s2218_s15 = smov 0   ;;  %s2452_s0 = inlined_call_operand.vmem [shape: bf16[4,128,1024], index: 0, kind: input, shape index: {}]   ;;  %s2453_s1 = inlined_call_operand.vmem [shape: bf16[4,1024,128], index: 1, kind: input, shape index: {}]   ;;  %s2454_s2 = inlined_call_operand.vmem [shape: f32[4,128,128], index: 2, kind: output, shape index: {0}]   ;;  %s2455_s3 = inlined_call_operand.vmem [shape: f32[4,1,128], index: 3, kind: output, shape index: {1}]   ;;  %s2456_s4 = inlined_call_operand.vmem [shape: f32[4,1,128], index: 4, kind: output, shape index: {2}]  }
   0x1 LB: > { %s1713_s16 = sadd.s32 4294967295, %s2191_s15   ;;  %p1717_p0 = scmp.ge.s32.totalorder %s2191_s15, 1  ;;  %s2191_s15 = sphi %s2218_s15, %s15_s15  }
   0x2   : > { %p177_p1 = scmp.lt.s32.totalorder %s2191_s15, 5 }
   0x4   : > { %p178_p2 = pnand %p1717_p0, %p177_p1 }
   0x5   : > { %p214_p3 = scmp.lt.s32.totalorder (!%p178_p2), %s1713_s16, 3 }
   0x6   : > { %181 = sbr.rel (%p178_p2) target bundleno = 408 (0x198), region = 28 }
   0xd   : > { %s2458_s16 = smov (!%p214_p3, %s1713_s16), 3 }
   0xe   : > { %s1854_s17 = sshll.u32 %s2458_s16, 9  ;;  %s1856_s24 = sshll.u32 %s2458_s16, 7 }
   0xf   : > { %s2234_s20 = scalar_lea.vmem %s2453_s1, %s1854_s17  ;;  %s2271_s23 = scalar_lea.vmem %s2452_s0, %s1854_s17 }
  0x10   : > { %v2121_v0 = vld [vmem:[%s2234_s20 + $0x40] sm:$0xff]   ;;  %v2125_v4 = vld [vmem:[%s2234_s20 + $0x48] sm:$0xff]   ;;  %v2129_v8 = vld [vmem:[%s2234_s20 + $0x50] sm:$0xff]   ;;  %s2408_s27 = scalar_lea.vmem %s2454_s2, %s1856_s24  ;;  %s231_s30 = scalar_lea.vmem %s2455_s3, %s2458_s16 }
  0x11   : > { %v2122_v1 = vld [vmem:[%s2234_s20 + $0xc0] sm:$0xff]   ;;  %1857 = vmatprep.subr.bf16.mxu0 %v2121_v0  ;;  %v2126_v5 = vld [vmem:[%s2234_s20 + $0xc8] sm:$0xff]   ;;  %v2130_v9 = vld [vmem:[%s2234_s20 + $0xd0] sm:$0xff]   ;;  %s234_s7 = scalar_lea.vmem %s2456_s4, %s2458_s16 }
  0x12   : > { %v2123_v2 = vld [vmem:[%s2234_s20] sm:$0xff]   ;;  %1921 = vmatprep.subr.bf16.mxu1 %v2122_v1  ;;  %v2127_v6 = vld [vmem:[%s2234_s20 + $0x8] sm:$0xff]   ;;  %v2131_v10 = vld [vmem:[%s2234_s20 + $0x10] sm:$0xff]  }
  0x13   : > { %v2124_v3 = vld [vmem:[%s2234_s20 + $0x80] sm:$0xff]   ;;  %1858 = vmatpush3.bf16.msra.mxu0 %v2123_v2  ;;  %v2128_v7 = vld [vmem:[%s2234_s20 + $0x88] sm:$0xff]   ;;  %v2132_v11 = vld [vmem:[%s2234_s20 + $0x90] sm:$0xff]  }
  0x14   : > { %1922 = vmatpush3.bf16.msra.mxu1 %v2124_v3  ;;  %1859 = vmatprep.subr.bf16.mxu0 %v2125_v4  ;;  %v2133_v12 = vld [vmem:[%s2234_s20 + $0x58] sm:$0xff]   ;;  %v2137_v16 = vld [vmem:[%s2234_s20 + $0x60] sm:$0xff]   ;;  %v2141_v20 = vld [vmem:[%s2234_s20 + $0x68] sm:$0xff]  }
  0x15   : > { %1923 = vmatprep.subr.bf16.mxu1 %v2126_v5  ;;  %v2134_v13 = vld [vmem:[%s2234_s20 + $0xd8] sm:$0xff]   ;;  %v2138_v17 = vld [vmem:[%s2234_s20 + $0xe0] sm:$0xff]   ;;  %v2142_v21 = vld [vmem:[%s2234_s20 + $0xe8] sm:$0xff]  }
  0x16   : > { %v2135_v14 = vld [vmem:[%s2234_s20 + $0x18] sm:$0xff]   ;;  %v2139_v18 = vld [vmem:[%s2234_s20 + $0x20] sm:$0xff]   ;;  %v2143_v22 = vld [vmem:[%s2234_s20 + $0x28] sm:$0xff]  }
  0x17   : > { %1860 = vmatpush3.bf16.msra.mxu0 %v2127_v6  ;;  %v2136_v15 = vld [vmem:[%s2234_s20 + $0x98] sm:$0xff]   ;;  %v2140_v19 = vld [vmem:[%s2234_s20 + $0xa0] sm:$0xff]   ;;  %v2144_v23 = vld [vmem:[%s2234_s20 + $0xa8] sm:$0xff]  }
  0x18   : > { %1924 = vmatpush3.bf16.msra.mxu1 %v2128_v7  ;;  %1861 = vmatprep.subr.bf16.mxu0 %v2129_v8  ;;  %v2145_v24 = vld [vmem:[%s2234_s20 + $0x70] sm:$0xff]   ;;  %v2149_v28 = vld [vmem:[%s2234_s20 + $0x78] sm:$0xff]   ;;  %v236_v32 = vld [vmem:[%s2271_s23] sm:$0xff] }
  0x19   : > { %1925 = vmatprep.subr.bf16.mxu1 %v2130_v9  ;;  %v2146_v25 = vld [vmem:[%s2234_s20 + $0xf0] sm:$0xff]   ;;  %v2150_v29 = vld [vmem:[%s2234_s20 + $0xf8] sm:$0xff]   ;;  %v240_v33 = vld [vmem:[%s2271_s23 + $0x20] sm:$0xff] }
  0x1a   : > { %v2147_v26 = vld [vmem:[%s2234_s20 + $0x30] sm:$0xff]   ;;  %v2151_v30 = vld [vmem:[%s2234_s20 + $0x38] sm:$0xff]   ;;  %v237_v34 = vld [vmem:[%s2271_s23 + $0x8] sm:$0xff]  ;;  %v1724_v35 = vcombine.low %v236_v32, %v240_v33  ;;  %v1725_v36 = vcombine.high %v236_v32, %v240_v33 }
  0x1b   : > { %1862 = vmatpush3.bf16.msra.mxu0 %v2131_v10  ;;  %v2148_v27 = vld [vmem:[%s2234_s20 + $0xb0] sm:$0xff]   ;;  %v2152_v31 = vld [vmem:[%s2234_s20 + $0xb8] sm:$0xff]   ;;  %v241_v37 = vld [vmem:[%s2271_s23 + $0x28] sm:$0xff] }
  0x1c   : > { %1926 = vmatpush3.bf16.msra.mxu1 %v2132_v11  ;;  %1863 = vmatprep.subr.bf16.mxu0 %v2133_v12  ;;  %v1726_v38 = vcombine.low %v237_v34, %v241_v37  ;;  %v1727_v39 = vcombine.high %v237_v34, %v241_v37  ;;  %v2153_v40 = vld [vmem:[%s2234_s20 + $0x140] sm:$0xff]   ;;  %v245_v47 = vld [vmem:[%s2271_s23 + $0x48] sm:$0xff]  ;;  %v2161_v62 = vld [vmem:[%s2234_s20 + $0x150] sm:$0xff]  }
  0x1d   : > { %1927 = vmatprep.subr.bf16.mxu1 %v2134_v13  ;;  %1164 = vmatprep.mubr.bf16.mxu0 %v1725_v36  ;;  %v2154_v41 = vld [vmem:[%s2234_s20 + $0x100] sm:$0xff]   ;;  %v249_v48 = vld [vmem:[%s2271_s23 + $0x68] sm:$0xff]  ;;  %v2162_v63 = vld [vmem:[%s2234_s20 + $0x110] sm:$0xff]  }
  0x1e   : > { %1261 = vmatprep.mubr.bf16.mxu1 %v1727_v39  ;;  %v2155_v42 = vld [vmem:[%s2234_s20 + $0x1c0] sm:$0xff]   ;;  %v1735_v49 = vcombine.high %v245_v47, %v249_v48  ;;  %v2157_v50 = vld [vmem:[%s2234_s20 + $0x148] sm:$0xff]   ;;  %v1734_v53 = vcombine.low %v245_v47, %v249_v48  ;;  %v2163_v0 = vld [vmem:[%s2234_s20 + $0x1d0] sm:$0xff]  }
  0x1f   : > { %1864 = vmatpush3.bf16.msra.mxu0 %v2135_v14  ;;  %v2156_v43 = vld [vmem:[%s2234_s20 + $0x180] sm:$0xff]   ;;  %v2158_v52 = vld [vmem:[%s2234_s20 + $0x108] sm:$0xff]   ;;  %v2164_v1 = vld [vmem:[%s2234_s20 + $0x190] sm:$0xff]  }
  0x20   : > { %1928 = vmatpush3.bf16.msra.mxu1 %v2136_v15  ;;  %1865 = vmatprep.subr.bf16.mxu0 %v2137_v16  ;;  %v244_v44 = vld [vmem:[%s2271_s23 + $0x40] sm:$0xff]  ;;  %v2159_v54 = vld [vmem:[%s2234_s20 + $0x1c8] sm:$0xff]   ;;  %v2165_v10 = vld [vmem:[%s2234_s20 + $0x158] sm:$0xff]  }
  0x21   : > { %1929 = vmatprep.subr.bf16.mxu1 %v2138_v17  ;;  %v248_v45 = vld [vmem:[%s2271_s23 + $0x60] sm:$0xff]  ;;  %v2160_v55 = vld [vmem:[%s2234_s20 + $0x188] sm:$0xff]   ;;  %v2166_v11 = vld [vmem:[%s2234_s20 + $0x118] sm:$0xff]  }
  0x22   : > { %v1733_v46 = vcombine.high %v244_v44, %v248_v45  ;;  %v1732_v51 = vcombine.low %v244_v44, %v248_v45  ;;  %v252_v56 = vld [vmem:[%s2271_s23 + $0x80] sm:$0xff]  ;;  %v253_v58 = vld [vmem:[%s2271_s23 + $0x88] sm:$0xff]  ;;  %v2167_v12 = vld [vmem:[%s2234_s20 + $0x1d8] sm:$0xff]  }
  0x23   : > { %1866 = vmatpush3.bf16.msra.mxu0 %v2139_v18  ;;  %v256_v57 = vld [vmem:[%s2271_s23 + $0xa0] sm:$0xff]  ;;  %v257_v59 = vld [vmem:[%s2271_s23 + $0xa8] sm:$0xff]  ;;  %v2168_v13 = vld [vmem:[%s2234_s20 + $0x198] sm:$0xff]  }
  0x24   : > { %1930 = vmatpush3.bf16.msra.mxu1 %v2140_v19  ;;  %1867 = vmatprep.subr.bf16.mxu0 %v2141_v20  ;;  %v1741_v60 = vcombine.high %v252_v56, %v256_v57  ;;  %v1743_v61 = vcombine.high %v253_v58, %v257_v59  ;;  %v1740_v2 = vcombine.low %v252_v56, %v256_v57  ;;  %v260_v3 = vld [vmem:[%s2271_s23 + $0xc0] sm:$0xff]  ;;  %v261_v5 = vld [vmem:[%s2271_s23 + $0xc8] sm:$0xff]  ;;  %v2178_v39 = vld [vmem:[%s2234_s20 + $0x130] sm:$0xff]  }
  0x25   : > { %1931 = vmatprep.subr.bf16.mxu1 %v2142_v21  ;;  %v264_v4 = vld [vmem:[%s2271_s23 + $0xe0] sm:$0xff]  ;;  %v1742_v6 = vcombine.low %v253_v58, %v257_v59  ;;  %v265_v8 = vld [vmem:[%s2271_s23 + $0xe8] sm:$0xff]  ;;  %v2182_v48 = vld [vmem:[%s2234_s20 + $0x138] sm:$0xff]  }
  0x26   : > { %v1749_v7 = vcombine.high %v260_v3, %v264_v4  ;;  %v1751_v9 = vcombine.high %v261_v5, %v265_v8  ;;  %v268_v14 = vld [vmem:[%s2271_s23 + $0x100] sm:$0xff]  ;;  %v269_v16 = vld [vmem:[%s2271_s23 + $0x108] sm:$0xff]  ;;  %v1748_v19 = vcombine.low %v260_v3, %v264_v4  ;;  %v1750_v21 = vcombine.low %v261_v5, %v265_v8  ;;  %v247_v8 = vld [vmem:[%s2271_s23 + $0x58] sm:$0xff] }
  0x27   : > { %1868 = vmatpush3.bf16.msra.mxu0 %v2143_v22  ;;  %v272_v15 = vld [vmem:[%s2271_s23 + $0x120] sm:$0xff]  ;;  %v273_v17 = vld [vmem:[%s2271_s23 + $0x128] sm:$0xff] }
  0x28   : > { %1932 = vmatpush3.bf16.msra.mxu1 %v2144_v23  ;;  %1869 = vmatprep.subr.bf16.mxu0 %v2145_v24  ;;  %v2169_v18 = vld [vmem:[%s2234_s20 + $0x160] sm:$0xff]   ;;  %v1757_v22 = vcombine.high %v268_v14, %v272_v15  ;;  %v1759_v24 = vcombine.high %v269_v16, %v273_v17  ;;  %v2175_v32 = vld [vmem:[%s2234_s20 + $0x1e8] sm:$0xff]   ;;  %v1756_v34 = vcombine.low %v268_v14, %v272_v15  ;;  %v254_v14 = vld [vmem:[%s2271_s23 + $0x90] sm:$0xff] }
  0x29   : > { %1933 = vmatprep.subr.bf16.mxu1 %v2146_v25  ;;  %v2170_v20 = vld [vmem:[%s2234_s20 + $0x120] sm:$0xff]   ;;  %v2176_v33 = vld [vmem:[%s2234_s20 + $0x1a8] sm:$0xff]   ;;  %v258_v15 = vld [vmem:[%s2271_s23 + $0xb0] sm:$0xff] }
  0x2a   : > { %v2171_v23 = vld [vmem:[%s2234_s20 + $0x1e0] sm:$0xff]   ;;  %v285_v44 = vld [vmem:[%s2271_s23 + $0x188] sm:$0xff] }
  0x2b   : > { %1870 = vmatpush3.bf16.msra.mxu0 %v2147_v26  ;;  %v2172_v25 = vld [vmem:[%s2234_s20 + $0x1a0] sm:$0xff]   ;;  %v289_v45 = vld [vmem:[%s2271_s23 + $0x1a8] sm:$0xff] }
  0x2c   : > { %1934 = vmatpush3.bf16.msra.mxu1 %v2148_v27  ;;  %1871 = vmatprep.subr.bf16.mxu0 %v2149_v28  ;;  %v276_v26 = vld [vmem:[%s2271_s23 + $0x140] sm:$0xff]  ;;  %v2173_v28 = vld [vmem:[%s2234_s20 + $0x168] sm:$0xff]   ;;  %v1774_v59 = vcombine.low %v285_v44, %v289_v45 }
  0x2d   : > { %1935 = vmatprep.subr.bf16.mxu1 %v2150_v29  ;;  %v280_v27 = vld [vmem:[%s2271_s23 + $0x160] sm:$0xff]  ;;  %v277_v29 = vld [vmem:[%s2271_s23 + $0x148] sm:$0xff] }
  0x2e   : > { %v1765_v36 = vcombine.high %v276_v26, %v280_v27  ;;  %v1764_v47 = vcombine.low %v276_v26, %v280_v27  ;;  %v293_v56 = vld [vmem:[%s2271_s23 + $0x1c8] sm:$0xff]  ;;  %v1744_v26 = vcombine.low %v254_v14, %v258_v15 }
  0x2f   : > { %1872 = vmatpush3.bf16.msra.mxu0 %v2151_v30  ;;  %v281_v30 = vld [vmem:[%s2271_s23 + $0x168] sm:$0xff] }
  0x30   : > { %1936 = vmatpush3.bf16.msra.mxu1 %v2152_v31  ;;  %1985 = vmatprep.subr.bf16.mxu0 %v2153_v40  ;;  %v2174_v31 = vld [vmem:[%s2234_s20 + $0x128] sm:$0xff]   ;;  %v1767_v37 = vcombine.high %v277_v29, %v281_v30  ;;  %v2179_v40 = vld [vmem:[%s2234_s20 + $0x1f0] sm:$0xff]  }
  0x31   : > { %2049 = vmatprep.subr.bf16.mxu1 %v2155_v42  ;;  %v288_v42 = vld [vmem:[%s2271_s23 + $0x1a0] sm:$0xff]  ;;  %v297_v57 = vld [vmem:[%s2271_s23 + $0x1e8] sm:$0xff] }
  0x32   : > { %1165 = vmatmul.mubr.bf16.vlgmr.msra.gmra.mrb[0].mxu0 %v1724_v35  ;;  %v1758_v35 = vcombine.low %v269_v16, %v273_v17  ;;  %v1782_v3 = vcombine.low %v293_v56, %v297_v57  ;;  %v255_v16 = vld [vmem:[%s2271_s23 + $0x98] sm:$0xff] }
  0x33   : > { %1262 = vmatmul.mubr.bf16.vlgmr.msra.gmra.mrb[0].mxu1 %v1726_v38  ;;  %1986 = vmatpush3.bf16.msra.mxu0 %v2154_v41  ;;  %v2177_v38 = vld [vmem:[%s2234_s20 + $0x170] sm:$0xff]   ;;  %v284_v41 = vld [vmem:[%s2271_s23 + $0x180] sm:$0xff]  ;;  %v259_v17 = vld [vmem:[%s2271_s23 + $0xb8] sm:$0xff] }
  0x34   : > { %2050 = vmatpush3.bf16.msra.mxu1 %v2156_v43  ;;  %1172 = vmatprep.mubr.bf16.mxu0 %v1733_v46  ;;  %v2180_v43 = vld [vmem:[%s2234_s20 + $0x1b0] sm:$0xff]   ;;  %v2181_v46 = vld [vmem:[%s2234_s20 + $0x178] sm:$0xff]   ;;  %v1772_v58 = vcombine.low %v284_v41, %v288_v42  ;;  %v1746_v27 = vcombine.low %v255_v16, %v259_v17 }
  0x35   : > { %1269 = vmatprep.mubr.bf16.mxu1 %v1735_v49  ;;  %1987 = vmatprep.subr.bf16.mxu0 %v2157_v50  ;;  %v1766_v49 = vcombine.low %v277_v29, %v281_v30  ;;  %v1773_v50 = vcombine.high %v284_v41, %v288_v42  ;;  %v270_v30 = vld [vmem:[%s2271_s23 + $0x110] sm:$0xff]  ;;  %v283_v41 = vld [vmem:[%s2271_s23 + $0x178] sm:$0xff] }
  0x36   : > { %2051 = vmatprep.subr.bf16.mxu1 %v2159_v54  ;;  %v292_v54 = vld [vmem:[%s2271_s23 + $0x1c0] sm:$0xff] }
  0x37   : > { %1988 = vmatpush3.bf16.msra.mxu0 %v2158_v52  ;;  %v1775_v52 = vcombine.high %v285_v44, %v289_v45 }
  0x38   : > { %2052 = vmatpush3.bf16.msra.mxu1 %v2160_v55  ;;  %1989 = vmatprep.subr.bf16.mxu0 %v2161_v62  ;;  %v296_v55 = vld [vmem:[%s2271_s23 + $0x1e0] sm:$0xff]  ;;  %v238_v62 = vld [vmem:[%s2271_s23 + $0x10] sm:$0xff] }
  0x39   : > { %2053 = vmatprep.subr.bf16.mxu1 %v2163_v0  ;;  %v239_v0 = vld [vmem:[%s2271_s23 + $0x18] sm:$0xff] }
  0x3a   : > { %1173 = vmatmul.mubr.bf16.gmra.mrb[4].mxu0 %v1732_v51  ;;  %v2183_v51 = vld [vmem:[%s2234_s20 + $0x1f8] sm:$0xff]  }
  0x3b   : > { %1270 = vmatmul.mubr.bf16.gmra.mrb[4].mxu1 %v1734_v53  ;;  %1180 = vmatprep.mubr.bf16.mxu0 %v1741_v60  ;;  %v2184_v53 = vld [vmem:[%s2234_s20 + $0x1b8] sm:$0xff]   ;;  %v1781_v60 = vcombine.high %v292_v54, %v296_v55 }
  0x3c   : > { %1277 = vmatprep.mubr.bf16.mxu1 %v1743_v61  ;;  %1990 = vmatpush3.bf16.msra.mxu0 %v2162_v63  ;;  %v1783_v61 = vcombine.high %v293_v56, %v297_v57  ;;  %v242_v63 = vld [vmem:[%s2271_s23 + $0x30] sm:$0xff]  ;;  %v295_v56 = vld [vmem:[%s2271_s23 + $0x1d8] sm:$0xff] }
  0x3d   : > { %2054 = vmatpush3.bf16.msra.mxu1 %v2164_v1  ;;  %1991 = vmatprep.subr.bf16.mxu0 %v2165_v10  ;;  %v243_v1 = vld [vmem:[%s2271_s23 + $0x38] sm:$0xff]  ;;  %v1729_v4 = vcombine.high %v238_v62, %v242_v63  ;;  %v1728_v10 = vcombine.low %v238_v62, %v242_v63 }
  0x3e   : > { %2055 = vmatprep.subr.bf16.mxu1 %v2167_v12  ;;  %v1731_v5 = vcombine.high %v239_v0, %v243_v1  ;;  %v299_v57 = vld [vmem:[%s2271_s23 + $0x1f8] sm:$0xff] }
  0x3f   : > { %v1786_v63 = vcombine.low %v295_v56, %v299_v57 }
  0x40   : > { %1992 = vmatpush3.bf16.msra.mxu0 %v2166_v11  ;;  %v1730_v11 = vcombine.low %v239_v0, %v243_v1 }
  0x41   : > { %2056 = vmatpush3.bf16.msra.mxu1 %v2168_v13  ;;  %1993 = vmatprep.subr.bf16.mxu0 %v2169_v18 }
  0x42   : > { %1181 = vmatmul.mubr.bf16.gmra.mrb[8].mxu0 %v1740_v2  ;;  %2057 = vmatprep.subr.bf16.mxu1 %v2171_v23  ;;  %v1780_v2 = vcombine.low %v292_v54, %v296_v55  ;;  %v266_v23 = vld [vmem:[%s2271_s23 + $0xf0] sm:$0xff] }
  0x43   : > { %1278 = vmatmul.mubr.bf16.gmra.mrb[8].mxu1 %v1742_v6  ;;  %1188 = vmatprep.mubr.bf16.mxu0 %v1749_v7  ;;  %v246_v6 = vld [vmem:[%s2271_s23 + $0x50] sm:$0xff] }
  0x44   : > { %1285 = vmatprep.mubr.bf16.mxu1 %v1751_v9  ;;  %1994 = vmatpush3.bf16.msra.mxu0 %v2170_v20  ;;  %v250_v7 = vld [vmem:[%s2271_s23 + $0x70] sm:$0xff]  ;;  %v251_v9 = vld [vmem:[%s2271_s23 + $0x78] sm:$0xff]  ;;  %v1745_v20 = vcombine.high %v254_v14, %v258_v15 }
  0x45   : > { %2058 = vmatpush3.bf16.msra.mxu1 %v2172_v25  ;;  %1995 = vmatprep.subr.bf16.mxu0 %v2173_v28  ;;  %v1737_v12 = vcombine.high %v246_v6, %v250_v7  ;;  %v1739_v13 = vcombine.high %v247_v8, %v251_v9  ;;  %v1736_v18 = vcombine.low %v246_v6, %v250_v7  ;;  %v267_v25 = vld [vmem:[%s2271_s23 + $0xf8] sm:$0xff]  ;;  %v294_v54 = vld [vmem:[%s2271_s23 + $0x1d0] sm:$0xff] }
  0x46   : > { %2059 = vmatprep.subr.bf16.mxu1 %v2175_v32  ;;  %v271_v32 = vld [vmem:[%s2271_s23 + $0x118] sm:$0xff]  ;;  %v298_v55 = vld [vmem:[%s2271_s23 + $0x1f0] sm:$0xff] }
  0x47   : > { %v1784_v62 = vcombine.low %v294_v54, %v298_v55 }
  0x48   : > { %1996 = vmatpush3.bf16.msra.mxu0 %v2174_v31  ;;  %v274_v31 = vld [vmem:[%s2271_s23 + $0x130] sm:$0xff] }
  0x49   : > { %2060 = vmatpush3.bf16.msra.mxu1 %v2176_v33  ;;  %1997 = vmatprep.subr.bf16.mxu0 %v2177_v38  ;;  %v275_v33 = vld [vmem:[%s2271_s23 + $0x138] sm:$0xff]  ;;  %v278_v38 = vld [vmem:[%s2271_s23 + $0x150] sm:$0xff]  ;;  %v1760_v42 = vcombine.low %v270_v30, %v274_v31 }
  0x4a   : > { %1189 = vmatmul.mubr.bf16.gmra.mrb[12].mxu0 %v1748_v19  ;;  %2061 = vmatprep.subr.bf16.mxu1 %v2179_v40  ;;  %v1738_v19 = vcombine.low %v247_v8, %v251_v9  ;;  %v279_v40 = vld [vmem:[%s2271_s23 + $0x158] sm:$0xff] }
  0x4b   : > { %1286 = vmatmul.mubr.bf16.gmra.mrb[12].mxu1 %v1750_v21  ;;  %1196 = vmatprep.mubr.bf16.mxu0 %v1757_v22  ;;  %v1747_v21 = vcombine.high %v255_v16, %v259_v17  ;;  %v262_v22 = vld [vmem:[%s2271_s23 + $0xd0] sm:$0xff]  ;;  %v1771_v45 = vcombine.high %v279_v40, %v283_v41 }
  0x4c   : > { %1293 = vmatprep.mubr.bf16.mxu1 %v1759_v24  ;;  %1998 = vmatpush3.bf16.msra.mxu0 %v2178_v39  ;;  %v263_v24 = vld [vmem:[%s2271_s23 + $0xd8] sm:$0xff]  ;;  %v1753_v28 = vcombine.high %v262_v22, %v266_v23  ;;  %v282_v39 = vld [vmem:[%s2271_s23 + $0x170] sm:$0xff] }
  0x4d   : > { %2062 = vmatpush3.bf16.msra.mxu1 %v2180_v43  ;;  %1999 = vmatprep.subr.bf16.mxu0 %v2181_v46  ;;  %v1755_v29 = vcombine.high %v263_v24, %v267_v25  ;;  %v1762_v43 = vcombine.low %v271_v32, %v275_v33  ;;  %v1769_v44 = vcombine.high %v278_v38, %v282_v39  ;;  %v286_v46 = vld [vmem:[%s2271_s23 + $0x190] sm:$0xff] }
  0x4e   : > { %2063 = vmatprep.subr.bf16.mxu1 %v2183_v51  ;;  %v1770_v51 = vcombine.low %v279_v40, %v283_v41 }
  0x50   : > { %2000 = vmatpush3.bf16.msra.mxu0 %v2182_v48  ;;  %v287_v48 = vld [vmem:[%s2271_s23 + $0x198] sm:$0xff] }
  0x51   : > { %2064 = vmatpush3.bf16.msra.mxu1 %v2184_v53 }
  0x52   : > { %1197 = vmatmul.mubr.bf16.gmra.mrb[16].mxu0 %v1756_v34  ;;  %v1752_v34 = vcombine.low %v262_v22, %v266_v23 }
  0x53   : > { %1294 = vmatmul.mubr.bf16.gmra.mrb[16].mxu1 %v1758_v35  ;;  %1204 = vmatprep.mubr.bf16.mxu0 %v1765_v36  ;;  %v1754_v35 = vcombine.low %v263_v24, %v267_v25  ;;  %v1761_v36 = vcombine.high %v270_v30, %v274_v31 }
  0x54   : > { %1301 = vmatprep.mubr.bf16.mxu1 %v1767_v37  ;;  %v1763_v37 = vcombine.high %v271_v32, %v275_v33 }
  0x5a   : > { %1205 = vmatmul.mubr.bf16.gmra.mrb[20].mxu0 %v1764_v47  ;;  %v290_v47 = vld [vmem:[%s2271_s23 + $0x1b0] sm:$0xff] }
  0x5b   : > { %1302 = vmatmul.mubr.bf16.gmra.mrb[20].mxu1 %v1766_v49  ;;  %1212 = vmatprep.mubr.bf16.mxu0 %v1773_v50  ;;  %v291_v49 = vld [vmem:[%s2271_s23 + $0x1b8] sm:$0xff]  ;;  %v1768_v50 = vcombine.low %v278_v38, %v282_v39 }
  0x5c   : > { %1309 = vmatprep.mubr.bf16.mxu1 %v1775_v52  ;;  %v1777_v52 = vcombine.high %v286_v46, %v290_v47  ;;  %v1779_v53 = vcombine.high %v287_v48, %v291_v49 }
  0x62   : > { %1213 = vmatmul.mubr.bf16.gmra.mrb[24].mxu0 %v1772_v58  ;;  %v1776_v58 = vcombine.low %v286_v46, %v290_v47 }
  0x63   : > { %1310 = vmatmul.mubr.bf16.gmra.mrb[24].mxu1 %v1774_v59  ;;  %1220 = vmatprep.mubr.bf16.mxu0 %v1781_v60  ;;  %v1778_v59 = vcombine.low %v287_v48, %v291_v49  ;;  %v1785_v60 = vcombine.high %v294_v54, %v298_v55 }
  0x64   : > { %1317 = vmatprep.mubr.bf16.mxu1 %v1783_v61  ;;  %v1787_v61 = vcombine.high %v295_v56, %v299_v57 }
  0x6a   : > { %1221 = vmatmul.mubr.bf16.gmra.mrb[28].mxu0 %v1780_v2 }
  0x6b   : > { %1318 = vmatmul.mubr.bf16.gmra.mrb[28].mxu1 %v1782_v3  ;;  %1358 = vmatprep.mubr.bf16.mxu0 %v1729_v4 }
  0x6c   : > { %1455 = vmatprep.mubr.bf16.mxu1 %v1731_v5 }
  0x72   : > { %1359 = vmatmul.mubr.bf16.vlgmr.msra.gmra.mrb[32].mxu0 %v1728_v10 }
  0x73   : > { %1456 = vmatmul.mubr.bf16.vlgmr.msra.gmra.mrb[32].mxu1 %v1730_v11  ;;  %1366 = vmatprep.mubr.bf16.mxu0 %v1737_v12 }
  0x74   : > { %1463 = vmatprep.mubr.bf16.mxu1 %v1739_v13 }
  0x7a   : > { %1367 = vmatmul.mubr.bf16.gmra.mrb[36].mxu0 %v1736_v18 }
  0x7b   : > { %1464 = vmatmul.mubr.bf16.gmra.mrb[36].mxu1 %v1738_v19  ;;  %1374 = vmatprep.mubr.bf16.mxu0 %v1745_v20 }
  0x7c   : > { %1471 = vmatprep.mubr.bf16.mxu1 %v1747_v21 }
  0x82   : > { %1375 = vmatmul.mubr.bf16.gmra.mrb[40].mxu0 %v1744_v26 }
  0x83   : > { %1472 = vmatmul.mubr.bf16.gmra.mrb[40].mxu1 %v1746_v27  ;;  %1382 = vmatprep.mubr.bf16.mxu0 %v1753_v28 }
  0x84   : > { %1479 = vmatprep.mubr.bf16.mxu1 %v1755_v29 }
  0x8a   : > { %1383 = vmatmul.mubr.bf16.gmra.mrb[44].mxu0 %v1752_v34 }
  0x8b   : > { %1480 = vmatmul.mubr.bf16.gmra.mrb[44].mxu1 %v1754_v35  ;;  %1390 = vmatprep.mubr.bf16.mxu0 %v1761_v36 }
  0x8c   : > { %1487 = vmatprep.mubr.bf16.mxu1 %v1763_v37 }
  0x92   : > { %1391 = vmatmul.mubr.bf16.gmra.mrb[48].mxu0 %v1760_v42 }
  0x93   : > { %1488 = vmatmul.mubr.bf16.gmra.mrb[48].mxu1 %v1762_v43  ;;  %1398 = vmatprep.mubr.bf16.mxu0 %v1769_v44 }
  0x94   : > { %1495 = vmatprep.mubr.bf16.mxu1 %v1771_v45 }
  0x9a   : > { %1399 = vmatmul.mubr.bf16.gmra.mrb[52].mxu0 %v1768_v50 }
  0x9b   : > { %1496 = vmatmul.mubr.bf16.gmra.mrb[52].mxu1 %v1770_v51  ;;  %1406 = vmatprep.mubr.bf16.mxu0 %v1777_v52 }
  0x9c   : > { %1503 = vmatprep.mubr.bf16.mxu1 %v1779_v53 }
  0xa2   : > { %1407 = vmatmul.mubr.bf16.gmra.mrb[56].mxu0 %v1776_v58 }
  0xa3   : > { %1504 = vmatmul.mubr.bf16.gmra.mrb[56].mxu1 %v1778_v59  ;;  %1414 = vmatprep.mubr.bf16.mxu0 %v1785_v60 }
  0xa4   : > { %1511 = vmatprep.mubr.bf16.mxu1 %v1787_v61 }
  0xaa   : > { %1415 = vmatmul.mubr.bf16.gmra.mrb[60].mxu0 %v1784_v62 }
  0xab   : > { %1512 = vmatmul.mubr.bf16.gmra.mrb[60].mxu1 %v1786_v63 }
 0x105   : > { %v1873_v0 = vpop.f32.mrb[0].mxu0 }
 0x106   : > { %v1937_v1 = vpop.f32.mrb[0].mxu1  ;;  %v1874_v2 = vpop.f32.mrb[1].mxu0 }
 0x107   : > { %v1875_v3 = vadd.f32 %v1874_v2, %v1873_v0  ;;  %v1938_v4 = vpop.f32.mrb[1].mxu1  ;;  %v1876_v5 = vpop.f32.mrb[2].mxu0 }
 0x108   : > { %v1939_v6 = vadd.f32 %v1938_v4, %v1937_v1  ;;  %v1940_v7 = vpop.f32.mrb[2].mxu1  ;;  %v1877_v8 = vpop.f32.mrb[3].mxu0 }
 0x109   : > { %v1878_v9 = vadd.f32 %v1877_v8, %v1876_v5  ;;  %v1941_v10 = vpop.f32.mrb[3].mxu1 }
 0x10a   : > { %v2371_v11 = vadd.f32 %v1939_v6, %v1875_v3  ;;  %v1942_v12 = vadd.f32 %v1941_v10, %v1940_v7 }
 0x10c   : > { %v2373_v13 = vadd.f32 %v1942_v12, %v1878_v9 }
 0x10d   : > { %v1879_v14 = vpop.f32.mrb[4].mxu0 }
 0x10e   : > { %v1943_v15 = vpop.f32.mrb[4].mxu1  ;;  %v1880_v16 = vpop.f32.mrb[5].mxu0 }
 0x10f   : > { %v1881_v17 = vadd.f32 %v1880_v16, %v1879_v14  ;;  %v1944_v18 = vpop.f32.mrb[5].mxu1  ;;  %v1882_v19 = vpop.f32.mrb[6].mxu0 }
 0x110   : > { %v1945_v20 = vadd.f32 %v1944_v18, %v1943_v15  ;;  %v1946_v21 = vpop.f32.mrb[6].mxu1  ;;  %v1883_v22 = vpop.f32.mrb[7].mxu0 }
 0x111   : > { %v1884_v23 = vadd.f32 %v1883_v22, %v1882_v19  ;;  %v1947_v24 = vpop.f32.mrb[7].mxu1 }
 0x112   : > { %v2375_v25 = vadd.f32 %v1945_v20, %v1881_v17  ;;  %v1948_v26 = vadd.f32 %v1947_v24, %v1946_v21 }
 0x114   : > { %v2377_v27 = vadd.f32 %v1948_v26, %v1884_v23 }
 0x115   : > { %v1885_v28 = vpop.f32.mrb[8].mxu0 }
 0x116   : > { %v1949_v29 = vpop.f32.mrb[8].mxu1  ;;  %v1886_v30 = vpop.f32.mrb[9].mxu0 }
 0x117   : > { %v1887_v31 = vadd.f32 %v1886_v30, %v1885_v28  ;;  %v1950_v32 = vpop.f32.mrb[9].mxu1  ;;  %v1888_v33 = vpop.f32.mrb[10].mxu0 }
 0x118   : > { %v1951_v34 = vadd.f32 %v1950_v32, %v1949_v29  ;;  %v1952_v35 = vpop.f32.mrb[10].mxu1  ;;  %v1889_v36 = vpop.f32.mrb[11].mxu0 }
 0x119   : > { %v1890_v37 = vadd.f32 %v1889_v36, %v1888_v33  ;;  %v1953_v38 = vpop.f32.mrb[11].mxu1 }
 0x11a   : > { %v2379_v39 = vadd.f32 %v1951_v34, %v1887_v31  ;;  %v1954_v40 = vadd.f32 %v1953_v38, %v1952_v35 }
 0x11c   : > { %v2381_v41 = vadd.f32 %v1954_v40, %v1890_v37 }
 0x11d   : > { %v1891_v42 = vpop.f32.mrb[12].mxu0 }
 0x11e   : > { %v1955_v43 = vpop.f32.mrb[12].mxu1  ;;  %v1892_v44 = vpop.f32.mrb[13].mxu0 }
 0x11f   : > { %v1893_v45 = vadd.f32 %v1892_v44, %v1891_v42  ;;  %v1956_v46 = vpop.f32.mrb[13].mxu1  ;;  %v1894_v47 = vpop.f32.mrb[14].mxu0 }
 0x120   : > { %v1957_v48 = vadd.f32 %v1956_v46, %v1955_v43  ;;  %v1958_v49 = vpop.f32.mrb[14].mxu1  ;;  %v1895_v50 = vpop.f32.mrb[15].mxu0 }
 0x121   : > { %v1896_v51 = vadd.f32 %v1895_v50, %v1894_v47  ;;  %v1959_v52 = vpop.f32.mrb[15].mxu1 }
 0x122   : > { %v2383_v53 = vadd.f32 %v1957_v48, %v1893_v45  ;;  %v1960_v54 = vadd.f32 %v1959_v52, %v1958_v49 }
 0x124   : > { %v2385_v55 = vadd.f32 %v1960_v54, %v1896_v51 }
 0x125   : > { %v1897_v56 = vpop.f32.mrb[16].mxu0 }
 0x126   : > { %v1961_v57 = vpop.f32.mrb[16].mxu1  ;;  %v1898_v58 = vpop.f32.mrb[17].mxu0 }
 0x127   : > { %v1899_v59 = vadd.f32 %v1898_v58, %v1897_v56  ;;  %v1962_v60 = vpop.f32.mrb[17].mxu1  ;;  %v1900_v61 = vpop.f32.mrb[18].mxu0 }
 0x128   : > { %v1963_v62 = vadd.f32 %v1962_v60, %v1961_v57  ;;  %v1964_v63 = vpop.f32.mrb[18].mxu1  ;;  %v1901_v0 = vpop.f32.mrb[19].mxu0 }
 0x129   : > { %v1902_v1 = vadd.f32 %v1901_v0, %v1900_v61  ;;  %v1965_v2 = vpop.f32.mrb[19].mxu1 }
 0x12a   : > { %v2387_v3 = vadd.f32 %v1963_v62, %v1899_v59  ;;  %v1966_v4 = vadd.f32 %v1965_v2, %v1964_v63 }
 0x12c   : > { %v2389_v5 = vadd.f32 %v1966_v4, %v1902_v1 }
 0x12d   : > { %v1903_v6 = vpop.f32.mrb[20].mxu0 }
 0x12e   : > { %v1967_v7 = vpop.f32.mrb[20].mxu1  ;;  %v1904_v8 = vpop.f32.mrb[21].mxu0 }
 0x12f   : > { %v1905_v9 = vadd.f32 %v1904_v8, %v1903_v6  ;;  %v1968_v10 = vpop.f32.mrb[21].mxu1  ;;  %v1906_v12 = vpop.f32.mrb[22].mxu0 }
 0x130   : > { %v1969_v14 = vadd.f32 %v1968_v10, %v1967_v7  ;;  %v1970_v15 = vpop.f32.mrb[22].mxu1  ;;  %v1907_v16 = vpop.f32.mrb[23].mxu0 }
 0x131   : > { %v1908_v17 = vadd.f32 %v1907_v16, %v1906_v12  ;;  %v1971_v18 = vpop.f32.mrb[23].mxu1 }
 0x132   : > { %v2391_v19 = vadd.f32 %v1969_v14, %v1905_v9  ;;  %v1972_v20 = vadd.f32 %v1971_v18, %v1970_v15 }
 0x134   : > { %v2393_v21 = vadd.f32 %v1972_v20, %v1908_v17 }
 0x135   : > { %v1909_v22 = vpop.f32.mrb[24].mxu0 }
 0x136   : > { %v1973_v23 = vpop.f32.mrb[24].mxu1  ;;  %v1910_v24 = vpop.f32.mrb[25].mxu0 }
 0x137   : > { %v1911_v26 = vadd.f32 %v1910_v24, %v1909_v22  ;;  %v1974_v28 = vpop.f32.mrb[25].mxu1  ;;  %v1912_v29 = vpop.f32.mrb[26].mxu0 }
 0x138   : > { %v1975_v30 = vadd.f32 %v1974_v28, %v1973_v23  ;;  %v1976_v31 = vpop.f32.mrb[26].mxu1  ;;  %v1913_v32 = vpop.f32.mrb[27].mxu0 }
 0x139   : > { %v1914_v33 = vadd.f32 %v1913_v32, %v1912_v29  ;;  %v1977_v34 = vpop.f32.mrb[27].mxu1 }
 0x13a   : > { %v2395_v35 = vadd.f32 %v1975_v30, %v1911_v26  ;;  %v1978_v36 = vadd.f32 %v1977_v34, %v1976_v31 }
 0x13c   : > { %v2397_v37 = vadd.f32 %v1978_v36, %v1914_v33 }
 0x13d   : > { %v1915_v38 = vpop.f32.mrb[28].mxu0 }
 0x13e   : > { %v1979_v40 = vpop.f32.mrb[28].mxu1  ;;  %v1916_v42 = vpop.f32.mrb[29].mxu0 }
 0x13f   : > { %v1917_v43 = vadd.f32 %v1916_v42, %v1915_v38  ;;  %v1980_v44 = vpop.f32.mrb[29].mxu1  ;;  %v1918_v45 = vpop.f32.mrb[30].mxu0 }
 0x140   : > { %v1981_v46 = vadd.f32 %v1980_v44, %v1979_v40  ;;  %v1982_v47 = vpop.f32.mrb[30].mxu1  ;;  %v1919_v48 = vpop.f32.mrb[31].mxu0 }
 0x141   : > { %v1920_v49 = vadd.f32 %v1919_v48, %v1918_v45  ;;  %v1983_v50 = vpop.f32.mrb[31].mxu1 }
 0x142   : > { %v2399_v51 = vadd.f32 %v1981_v46, %v1917_v43  ;;  %v1984_v52 = vadd.f32 %v1983_v50, %v1982_v47 }
 0x144   : > { %v2401_v54 = vadd.f32 %v1984_v52, %v1920_v49 }
 0x145   : > { %v2001_v56 = vpop.f32.mrb[32].mxu0 }
 0x146   : > { %v2065_v57 = vpop.f32.mrb[32].mxu1  ;;  %v2002_v58 = vpop.f32.mrb[33].mxu0 }
 0x147   : > { %v2003_v59 = vadd.f32 %v2002_v58, %v2001_v56  ;;  %v2066_v60 = vpop.f32.mrb[33].mxu1  ;;  %v2004_v61 = vpop.f32.mrb[34].mxu0 }
 0x148   : > { %v2067_v62 = vadd.f32 %v2066_v60, %v2065_v57  ;;  %v2068_v63 = vpop.f32.mrb[34].mxu1  ;;  %v2005_v0 = vpop.f32.mrb[35].mxu0 }
 0x149   : > { %v1361_v1 = vadd.f32 %v2003_v59, %v2371_v11  ;;  %v2006_v2 = vadd.f32 %v2005_v0, %v2004_v61  ;;  %v2069_v4 = vpop.f32.mrb[35].mxu1 }
 0x14a   : > { %v2070_v6 = vadd.f32 %v2069_v4, %v2068_v63 }
 0x14b   : > { %v1458_v7 = vadd.f32 %v2067_v62, %v1361_v1  ;;  %v1364_v8 = vadd.f32 %v2006_v2, %v2373_v13 }
 0x14d   : > { %1520 = vst [vmem:[%s2408_s27] sm:$0xff] %v1458_v7  ;;  %v1461_v9 = vadd.f32 %v2070_v6, %v1364_v8  ;;  %v2007_v10 = vpop.f32.mrb[36].mxu0  ;;  %v1558_v15 = vmul.f32 %v1458_v7, %v1458_v7 }
 0x14e   : > { %v2071_v12 = vpop.f32.mrb[36].mxu1  ;;  %v2008_v14 = vpop.f32.mrb[37].mxu0 }
 0x14f   : > { %1521 = vst [vmem:[%s2408_s27 + $0x8] sm:$0xff] %v1461_v9  ;;  %v1536_v11 = vadd.f32 %v1461_v9, %v1458_v7  ;;  %v1559_v16 = vmul.f32 %v1461_v9, %v1461_v9  ;;  %v2009_v17 = vadd.f32 %v2008_v14, %v2007_v10  ;;  %v2072_v18 = vpop.f32.mrb[37].mxu1  ;;  %v2010_v20 = vpop.f32.mrb[38].mxu0 }
 0x150   : > { %v2073_v22 = vadd.f32 %v2072_v18, %v2071_v12  ;;  %v2074_v23 = vpop.f32.mrb[38].mxu1  ;;  %v2011_v24 = vpop.f32.mrb[39].mxu0 }
 0x151   : > { %v1574_v26 = vadd.f32 %v1559_v16, %v1558_v15  ;;  %v1369_v13 = vadd.f32 %v2009_v17, %v2375_v25  ;;  %v2012_v28 = vadd.f32 %v2011_v24, %v2010_v20  ;;  %v2075_v29 = vpop.f32.mrb[39].mxu1 }
 0x152   : > { %v2076_v30 = vadd.f32 %v2075_v29, %v2074_v23 }
 0x153   : > { %v1466_v31 = vadd.f32 %v2073_v22, %v1369_v13  ;;  %v1372_v32 = vadd.f32 %v2012_v28, %v2377_v27 }
 0x155   : > { %1522 = vst [vmem:[%s2408_s27 + $0x10] sm:$0xff] %v1466_v31  ;;  %v1537_v33 = vadd.f32 %v1536_v11, %v1466_v31  ;;  %v1560_v34 = vmul.f32 %v1466_v31, %v1466_v31  ;;  %v1469_v36 = vadd.f32 %v2076_v30, %v1372_v32  ;;  %v2013_v38 = vpop.f32.mrb[40].mxu0 }
 0x156   : > { %v2077_v40 = vpop.f32.mrb[40].mxu1  ;;  %v2014_v42 = vpop.f32.mrb[41].mxu0 }
 0x157   : > { %v1575_v43 = vadd.f32 %v1574_v26, %v1560_v34  ;;  %1523 = vst [vmem:[%s2408_s27 + $0x18] sm:$0xff] %v1469_v36  ;;  %v1538_v44 = vadd.f32 %v1537_v33, %v1469_v36  ;;  %v1561_v45 = vmul.f32 %v1469_v36, %v1469_v36  ;;  %v2015_v46 = vadd.f32 %v2014_v42, %v2013_v38  ;;  %v2078_v25 = vpop.f32.mrb[41].mxu1  ;;  %v2016_v47 = vpop.f32.mrb[42].mxu0 }
 0x158   : > { %v2079_v48 = vadd.f32 %v2078_v25, %v2077_v40  ;;  %v2080_v49 = vpop.f32.mrb[42].mxu1  ;;  %v2017_v50 = vpop.f32.mrb[43].mxu0 }
 0x159   : > { %v1576_v27 = vadd.f32 %v1575_v43, %v1561_v45  ;;  %v1377_v52 = vadd.f32 %v2015_v46, %v2379_v39  ;;  %v2018_v56 = vadd.f32 %v2017_v50, %v2016_v47  ;;  %v2081_v57 = vpop.f32.mrb[43].mxu1 }
 0x15a   : > { %v2082_v58 = vadd.f32 %v2081_v57, %v2080_v49 }
 0x15b   : > { %v1474_v59 = vadd.f32 %v2079_v48, %v1377_v52  ;;  %v1380_v60 = vadd.f32 %v2018_v56, %v2381_v41 }
 0x15d   : > { %1524 = vst [vmem:[%s2408_s27 + $0x20] sm:$0xff] %v1474_v59  ;;  %v1539_v61 = vadd.f32 %v1538_v44, %v1474_v59  ;;  %v1562_v62 = vmul.f32 %v1474_v59, %v1474_v59  ;;  %v1477_v63 = vadd.f32 %v2082_v58, %v1380_v60  ;;  %v2019_v0 = vpop.f32.mrb[44].mxu0 }
 0x15e   : > { %v2083_v1 = vpop.f32.mrb[44].mxu1  ;;  %v2020_v2 = vpop.f32.mrb[45].mxu0 }
 0x15f   : > { %v1577_v4 = vadd.f32 %v1576_v27, %v1562_v62  ;;  %1525 = vst [vmem:[%s2408_s27 + $0x28] sm:$0xff] %v1477_v63  ;;  %v1540_v6 = vadd.f32 %v1539_v61, %v1477_v63  ;;  %v1563_v7 = vmul.f32 %v1477_v63, %v1477_v63  ;;  %v2021_v8 = vadd.f32 %v2020_v2, %v2019_v0  ;;  %v2084_v39 = vpop.f32.mrb[45].mxu1  ;;  %v2022_v9 = vpop.f32.mrb[46].mxu0 }
 0x160   : > { %v2085_v10 = vadd.f32 %v2084_v39, %v2083_v1  ;;  %v2086_v12 = vpop.f32.mrb[46].mxu1  ;;  %v2023_v14 = vpop.f32.mrb[47].mxu0 }
 0x161   : > { %v1578_v41 = vadd.f32 %v1577_v4, %v1563_v7  ;;  %v1385_v15 = vadd.f32 %v2021_v8, %v2383_v53  ;;  %v2024_v11 = vadd.f32 %v2023_v14, %v2022_v9  ;;  %v2087_v16 = vpop.f32.mrb[47].mxu1 }
 0x162   : > { %v2088_v17 = vadd.f32 %v2087_v16, %v2086_v12 }
 0x163   : > { %v1482_v18 = vadd.f32 %v2085_v10, %v1385_v15  ;;  %v1388_v20 = vadd.f32 %v2024_v11, %v2385_v55 }
 0x165   : > { %1526 = vst [vmem:[%s2408_s27 + $0x30] sm:$0xff] %v1482_v18  ;;  %v1541_v22 = vadd.f32 %v1540_v6, %v1482_v18  ;;  %v1564_v23 = vmul.f32 %v1482_v18, %v1482_v18  ;;  %v1485_v24 = vadd.f32 %v2088_v17, %v1388_v20  ;;  %v2025_v26 = vpop.f32.mrb[48].mxu0 }
 0x166   : > { %v2089_v13 = vpop.f32.mrb[48].mxu1  ;;  %v2026_v28 = vpop.f32.mrb[49].mxu0 }
 0x167   : > { %v1579_v29 = vadd.f32 %v1578_v41, %v1564_v23  ;;  %1527 = vst [vmem:[%s2408_s27 + $0x38] sm:$0xff] %v1485_v24  ;;  %v1542_v30 = vadd.f32 %v1541_v22, %v1485_v24  ;;  %v1565_v31 = vmul.f32 %v1485_v24, %v1485_v24  ;;  %v2027_v32 = vadd.f32 %v2026_v28, %v2025_v26  ;;  %v2090_v53 = vpop.f32.mrb[49].mxu1  ;;  %v2028_v33 = vpop.f32.mrb[50].mxu0 }
 0x168   : > { %v2091_v34 = vadd.f32 %v2090_v53, %v2089_v13  ;;  %v2092_v36 = vpop.f32.mrb[50].mxu1  ;;  %v2029_v38 = vpop.f32.mrb[51].mxu0 }
 0x169   : > { %v1580_v55 = vadd.f32 %v1579_v29, %v1565_v31  ;;  %v1393_v40 = vadd.f32 %v2027_v32, %v2387_v3  ;;  %v2030_v42 = vadd.f32 %v2029_v38, %v2028_v33  ;;  %v2093_v43 = vpop.f32.mrb[51].mxu1 }
 0x16a   : > { %v2094_v44 = vadd.f32 %v2093_v43, %v2092_v36 }
 0x16b   : > { %v1490_v45 = vadd.f32 %v2091_v34, %v1393_v40  ;;  %v1396_v46 = vadd.f32 %v2030_v42, %v2389_v5 }
 0x16d   : > { %1528 = vst [vmem:[%s2408_s27 + $0x40] sm:$0xff] %v1490_v45  ;;  %v1543_v25 = vadd.f32 %v1542_v30, %v1490_v45  ;;  %v1566_v47 = vmul.f32 %v1490_v45, %v1490_v45  ;;  %v1493_v48 = vadd.f32 %v2094_v44, %v1396_v46  ;;  %v2031_v49 = vpop.f32.mrb[52].mxu0 }
 0x16e   : > { %v2095_v50 = vpop.f32.mrb[52].mxu1  ;;  %v2032_v27 = vpop.f32.mrb[53].mxu0 }
 0x16f   : > { %v1581_v52 = vadd.f32 %v1580_v55, %v1566_v47  ;;  %1529 = vst [vmem:[%s2408_s27 + $0x48] sm:$0xff] %v1493_v48  ;;  %v1544_v56 = vadd.f32 %v1543_v25, %v1493_v48  ;;  %v1567_v57 = vmul.f32 %v1493_v48, %v1493_v48  ;;  %v2033_v58 = vadd.f32 %v2032_v27, %v2031_v49  ;;  %v2096_v3 = vpop.f32.mrb[53].mxu1  ;;  %v2034_v59 = vpop.f32.mrb[54].mxu0 }
 0x170   : > { %v2097_v60 = vadd.f32 %v2096_v3, %v2095_v50  ;;  %v2098_v61 = vpop.f32.mrb[54].mxu1  ;;  %v2035_v62 = vpop.f32.mrb[55].mxu0 }
 0x171   : > { %v1582_v5 = vadd.f32 %v1581_v52, %v1567_v57  ;;  %v1401_v63 = vadd.f32 %v2033_v58, %v2391_v19  ;;  %v2036_v0 = vadd.f32 %v2035_v62, %v2034_v59  ;;  %v2099_v1 = vpop.f32.mrb[55].mxu1 }
 0x172   : > { %v2100_v2 = vadd.f32 %v2099_v1, %v2098_v61 }
 0x173   : > { %v1498_v4 = vadd.f32 %v2097_v60, %v1401_v63  ;;  %v1404_v6 = vadd.f32 %v2036_v0, %v2393_v21 }
 0x175   : > { %1530 = vst [vmem:[%s2408_s27 + $0x50] sm:$0xff] %v1498_v4  ;;  %v1545_v7 = vadd.f32 %v1544_v56, %v1498_v4  ;;  %v1568_v8 = vmul.f32 %v1498_v4, %v1498_v4  ;;  %v1501_v39 = vadd.f32 %v2100_v2, %v1404_v6  ;;  %v2037_v9 = vpop.f32.mrb[56].mxu0 }
 0x176   : > { %v2101_v10 = vpop.f32.mrb[56].mxu1  ;;  %v2038_v12 = vpop.f32.mrb[57].mxu0 }
 0x177   : > { %v1583_v14 = vadd.f32 %v1582_v5, %v1568_v8  ;;  %1531 = vst [vmem:[%s2408_s27 + $0x58] sm:$0xff] %v1501_v39  ;;  %v1546_v41 = vadd.f32 %v1545_v7, %v1501_v39  ;;  %v1569_v15 = vmul.f32 %v1501_v39, %v1501_v39  ;;  %v2039_v11 = vadd.f32 %v2038_v12, %v2037_v9  ;;  %v2102_v19 = vpop.f32.mrb[57].mxu1  ;;  %v2040_v16 = vpop.f32.mrb[58].mxu0 }
 0x178   : > { %v2103_v17 = vadd.f32 %v2102_v19, %v2101_v10  ;;  %v2104_v18 = vpop.f32.mrb[58].mxu1  ;;  %v2041_v20 = vpop.f32.mrb[59].mxu0 }
 0x179   : > { %v1584_v21 = vadd.f32 %v1583_v14, %v1569_v15  ;;  %v1409_v22 = vadd.f32 %v2039_v11, %v2395_v35  ;;  %v2042_v23 = vadd.f32 %v2041_v20, %v2040_v16  ;;  %v2105_v24 = vpop.f32.mrb[59].mxu1 }
 0x17a   : > { %v2106_v26 = vadd.f32 %v2105_v24, %v2104_v18 }
 0x17b   : > { %v1506_v13 = vadd.f32 %v2103_v17, %v1409_v22  ;;  %v1412_v28 = vadd.f32 %v2042_v23, %v2397_v37 }
 0x17d   : > { %1532 = vst [vmem:[%s2408_s27 + $0x60] sm:$0xff] %v1506_v13  ;;  %v1547_v29 = vadd.f32 %v1546_v41, %v1506_v13  ;;  %v1570_v30 = vmul.f32 %v1506_v13, %v1506_v13  ;;  %v1509_v31 = vadd.f32 %v2106_v26, %v1412_v28  ;;  %v2043_v32 = vpop.f32.mrb[60].mxu0 }
 0x17e   : > { %v2107_v53 = vpop.f32.mrb[60].mxu1  ;;  %v2044_v33 = vpop.f32.mrb[61].mxu0 }
 0x17f   : > { %v1585_v34 = vadd.f32 %v1584_v21, %v1570_v30  ;;  %1533 = vst [vmem:[%s2408_s27 + $0x68] sm:$0xff] %v1509_v31  ;;  %v1548_v36 = vadd.f32 %v1547_v29, %v1509_v31  ;;  %v1571_v38 = vmul.f32 %v1509_v31, %v1509_v31  ;;  %v2045_v55 = vadd.f32 %v2044_v33, %v2043_v32  ;;  %v2108_v35 = vpop.f32.mrb[61].mxu1  ;;  %v2046_v40 = vpop.f32.mrb[62].mxu0 }
 0x180   : > { %v2109_v42 = vadd.f32 %v2108_v35, %v2107_v53  ;;  %v2110_v43 = vpop.f32.mrb[62].mxu1  ;;  %v2047_v44 = vpop.f32.mrb[63].mxu0 }
 0x181   : > { %v1586_v37 = vadd.f32 %v1585_v34, %v1571_v38  ;;  %v1417_v45 = vadd.f32 %v2045_v55, %v2399_v51  ;;  %v2048_v46 = vadd.f32 %v2047_v44, %v2046_v40  ;;  %v2111_v25 = vpop.f32.mrb[63].mxu1 }
 0x182   : > { %v2112_v47 = vadd.f32 %v2111_v25, %v2110_v43 }
 0x183   : > { %v1514_v48 = vadd.f32 %v2109_v42, %v1417_v45  ;;  %v1420_v49 = vadd.f32 %v2048_v46, %v2401_v54 }
 0x185   : > { %1534 = vst [vmem:[%s2408_s27 + $0x70] sm:$0xff] %v1514_v48  ;;  %v1549_v50 = vadd.f32 %v1548_v36, %v1514_v48  ;;  %v1572_v27 = vmul.f32 %v1514_v48, %v1514_v48  ;;  %v1517_v52 = vadd.f32 %v2112_v47, %v1420_v49 }
 0x187   : > { %v1587_v56 = vadd.f32 %v1586_v37, %v1572_v27  ;;  %1535 = vst [vmem:[%s2408_s27 + $0x78] sm:$0xff] %v1517_v52  ;;  %v1550_v57 = vadd.f32 %v1549_v50, %v1517_v52  ;;  %v1573_v58 = vmul.f32 %v1517_v52, %v1517_v52 }
 0x189   : > { %v1551_v3 = vrot.slane %v1550_v57, 4  ;;  %v1588_v59 = vadd.f32 %v1587_v56, %v1573_v58 }
 0x18b   : > { %v1552_v60 = vadd.f32 %v1551_v3, %v1550_v57  ;;  %v1589_v51 = vrot.slane %v1588_v59, 4 }
 0x18d   : > { %v1553_v61 = vrot.slane %v1552_v60, 2  ;;  %v1590_v62 = vadd.f32 %v1589_v51, %v1588_v59 }
 0x18f   : > { %v1554_v5 = vadd.f32 %v1553_v61, %v1552_v60  ;;  %v1591_v63 = vrot.slane %v1590_v62, 2 }
 0x191   : > { %v1555_v0 = vrot.slane %v1554_v5, 1  ;;  %v1592_v54 = vadd.f32 %v1591_v63, %v1590_v62 }
 0x193   : > { %v1556_v1 = vadd.f32 %v1555_v0, %v1554_v5  ;;  %v1593_v2 = vrot.slane %v1592_v54, 1 }
 0x195   : > { %1557 = vst [vmem:[%s231_s30] sm:$0x1] %v1556_v1  ;;  %v1594_v4 = vadd.f32 %v1593_v2, %v1592_v54 }
 0x197   : > { %1595 = vst [vmem:[%s234_s7] sm:$0x1] %v1594_v4 }
 0x198 PF: > { %s15_s15 = sadd.s32 1, %s2191_s15  }
 0x199   : > { %p12_p4 = scmp.ge.s32.totalorder %s15_s15, 6  }
 0x19b   :  { %14 = sbr.rel (!%p12_p4) target bundleno = 1 (0x1), region = 85 }

// kernel: generator_forward.12
= control target key start
LH: loop header
LB: loop body
LE: loop exit
PB: predicated region body
PF: predicated region fallthrough
CT: control target
= control target key end

     0   :  { %s740_s12 = smov 0   ;;  %s887_s0 = inlined_call_operand.vmem [shape: f32[512,128], index: 0, kind: input, shape index: {}]   ;;  %s888_s1 = inlined_call_operand.vmem [shape: f32[1,128], index: 1, kind: input, shape index: {}]   ;;  %s889_s2 = inlined_call_operand.vmem [shape: f32[1,128], index: 2, kind: input, shape index: {}]   ;;  %s890_s3 = inlined_call_operand.vmem [shape: bf16[512,128], index: 3, kind: output, shape index: {}]  }
   0x1 LB: > { %s532_s13 = sadd.s32 4294967295, %s718_s12   ;;  %p536_p0 = scmp.ge.s32.totalorder %s718_s12, 1  ;;  %s718_s12 = sphi %s740_s12, %s13_s12  }
   0x2   : > { %p138_p1 = scmp.lt.s32.totalorder %s718_s12, 3 }
   0x4   : > { %p139_p2 = pnand %p536_p0, %p138_p1 }
   0x5   : > { %s537_s14 = sshll.u32 (!%p139_p2), %s532_s13, 5  ;;  %v754_v0 = vld [vmem:[%s888_s1] ss:$0 sm:$0xff] (!%p139_p2) }
   0x6   : > { %142 = sbr.rel (%p139_p2) target bundleno = 51 (0x33), region = 32  ;;  %p163_p3 = scmp.lt.s32.totalorder (!%p139_p2), %s537_s14, 63  ;;  %v764_v1 = vld [vmem:[%s889_s2] ss:$0 sm:$0xff] (!%p139_p2) }
   0xd   : > { %s892_s14 = smov (!%p163_p3, %s537_s14), 63 }
   0xe   : > { %s538_s15 = sshll.u32 %s892_s14, 3  ;;  %s540_s23 = sshll.u32 %s892_s14, 2 }
   0xf   : > { %s759_s20 = scalar_lea.vmem %s887_s0, %s538_s15  ;;  %s796_s26 = scalar_lea.vmem %s890_s3, %s540_s23 }
  0x10   : > { %v174_v2 = vld [vmem:[%s759_s20] sm:$0xff]  ;;  %v175_v3 = vld [vmem:[%s759_s20 + $0x8] sm:$0xff]  ;;  %v176_v4 = vld [vmem:[%s759_s20 + $0x10] sm:$0xff] }
  0x11   : > { %v213_v5 = vmul.f32 %v754_v0, %v174_v2  ;;  %v214_v6 = vmul.f32 %v754_v0, %v175_v3  ;;  %v177_v7 = vld [vmem:[%s759_s20 + $0x18] sm:$0xff]  ;;  %v215_v8 = vmul.f32 %v754_v0, %v176_v4  ;;  %v178_v9 = vld [vmem:[%s759_s20 + $0x20] sm:$0xff]  ;;  %v179_v10 = vld [vmem:[%s759_s20 + $0x28] sm:$0xff] }
  0x12   : > { %v216_v11 = vmul.f32 %v754_v0, %v177_v7  ;;  %v217_v12 = vmul.f32 %v754_v0, %v178_v9  ;;  %v218_v13 = vmul.f32 %v754_v0, %v179_v10  ;;  %v180_v14 = vld [vmem:[%s759_s20 + $0x30] sm:$0xff]  ;;  %v181_v15 = vld [vmem:[%s759_s20 + $0x38] sm:$0xff]  ;;  %v182_v24 = vld [vmem:[%s759_s20 + $0x40] sm:$0xff] }
  0x13   : > { %v252_v16 = vadd.f32 %v764_v1, %v213_v5  ;;  %v253_v17 = vadd.f32 %v764_v1, %v214_v6  ;;  %v254_v18 = vadd.f32 %v764_v1, %v215_v8  ;;  %v219_v19 = vmul.f32 %v754_v0, %v180_v14  ;;  %v183_v25 = vld [vmem:[%s759_s20 + $0x48] sm:$0xff]  ;;  %v184_v30 = vld [vmem:[%s759_s20 + $0x50] sm:$0xff]  ;;  %v185_v35 = vld [vmem:[%s759_s20 + $0x58] sm:$0xff] }
  0x14   : > { %v255_v20 = vadd.f32 %v764_v1, %v216_v11  ;;  %v256_v21 = vadd.f32 %v764_v1, %v217_v12  ;;  %v257_v22 = vadd.f32 %v764_v1, %v218_v13  ;;  %v220_v23 = vmul.f32 %v754_v0, %v181_v15  ;;  %v186_v36 = vld [vmem:[%s759_s20 + $0x60] sm:$0xff]  ;;  %v187_v41 = vld [vmem:[%s759_s20 + $0x68] sm:$0xff]  ;;  %v188_v42 = vld [vmem:[%s759_s20 + $0x70] sm:$0xff] }
  0x15   : > { %v284_v26 = vmax.f32 %v252_v16, 0.0  ;;  %v285_v27 = vmax.f32 %v253_v17, 0.0  ;;  %v286_v28 = vmax.f32 %v254_v18, 0.0  ;;  %v258_v29 = vadd.f32 %v764_v1, %v219_v19  ;;  %v189_v51 = vld [vmem:[%s759_s20 + $0x78] sm:$0xff]  ;;  %v190_v56 = vld [vmem:[%s759_s20 + $0x80] sm:$0xff]  ;;  %v191_v61 = vld [vmem:[%s759_s20 + $0x88] sm:$0xff] }
  0x16   : > { %v287_v31 = vmax.f32 %v255_v20, 0.0  ;;  %v288_v32 = vmax.f32 %v256_v21, 0.0  ;;  %v289_v33 = vmax.f32 %v257_v22, 0.0  ;;  %v259_v34 = vadd.f32 %v764_v1, %v220_v23  ;;  %v192_v4 = vld [vmem:[%s759_s20 + $0x90] sm:$0xff]  ;;  %v193_v5 = vld [vmem:[%s759_s20 + $0x98] sm:$0xff]  ;;  %v194_v10 = vld [vmem:[%s759_s20 + $0xa0] sm:$0xff] }
  0x17   : > { %v612_v37 = vpack.c.bf16 %v285_v27, %v284_v26  ;;  %v290_v38 = vmax.f32 %v258_v29, 0.0  ;;  %v221_v39 = vmul.f32 %v754_v0, %v182_v24  ;;  %v222_v40 = vmul.f32 %v754_v0, %v183_v25  ;;  %v195_v15 = vld [vmem:[%s759_s20 + $0xa8] sm:$0xff]  ;;  %v196_v20 = vld [vmem:[%s759_s20 + $0xb0] sm:$0xff]  ;;  %v197_v25 = vld [vmem:[%s759_s20 + $0xb8] sm:$0xff] }
  0x18   : > { %v617_v43 = vpack.c.bf16 %v287_v31, %v286_v28  ;;  %v622_v44 = vpack.c.bf16 %v289_v33, %v288_v32  ;;  %v291_v45 = vmax.f32 %v259_v34, 0.0  ;;  %v223_v46 = vmul.f32 %v754_v0, %v184_v30  ;;  %v198_v30 = vld [vmem:[%s759_s20 + $0xc0] sm:$0xff] }
  0x19   : > { %613 = vst [vmem:[%s796_s26] sm:$0xff] %v612_v37   ;;  %v260_v47 = vadd.f32 %v764_v1, %v221_v39  ;;  %v261_v48 = vadd.f32 %v764_v1, %v222_v40  ;;  %v224_v49 = vmul.f32 %v754_v0, %v185_v35  ;;  %v225_v50 = vmul.f32 %v754_v0, %v186_v36  ;;  %v199_v35 = vld [vmem:[%s759_s20 + $0xc8] sm:$0xff]  ;;  %v200_v40 = vld [vmem:[%s759_s20 + $0xd0] sm:$0xff] }
  0x1a   : > { %689 = vst [vmem:[%s796_s26 + $0x8] sm:$0xff] %v617_v43   ;;  %690 = vst [vmem:[%s796_s26 + $0x10] sm:$0xff] %v622_v44   ;;  %v627_v52 = vpack.c.bf16 %v291_v45, %v290_v38  ;;  %v262_v53 = vadd.f32 %v764_v1, %v223_v46  ;;  %v226_v54 = vmul.f32 %v754_v0, %v187_v41  ;;  %v201_v41 = vld [vmem:[%s759_s20 + $0xd8] sm:$0xff]  ;;  %v202_v46 = vld [vmem:[%s759_s20 + $0xe0] sm:$0xff] }
  0x1b   : > { %v227_v55 = vmul.f32 %v754_v0, %v188_v42  ;;  %v292_v57 = vmax.f32 %v260_v47, 0.0  ;;  %v293_v58 = vmax.f32 %v261_v48, 0.0  ;;  %v263_v59 = vadd.f32 %v764_v1, %v224_v49 }
  0x1c   : > { %v264_v60 = vadd.f32 %v764_v1, %v225_v50  ;;  %691 = vst [vmem:[%s796_s26 + $0x18] sm:$0xff] %v627_v52   ;;  %v294_v62 = vmax.f32 %v262_v53, 0.0  ;;  %v265_v63 = vadd.f32 %v764_v1, %v226_v54  ;;  %v228_v2 = vmul.f32 %v754_v0, %v189_v51  ;;  %v203_v51 = vld [vmem:[%s759_s20 + $0xe8] sm:$0xff] }
  0x1d   : > { %v266_v3 = vadd.f32 %v764_v1, %v227_v55  ;;  %v632_v6 = vpack.c.bf16 %v293_v58, %v292_v57  ;;  %v295_v7 = vmax.f32 %v263_v59, 0.0  ;;  %v229_v9 = vmul.f32 %v754_v0, %v190_v56  ;;  %v204_v56 = vld [vmem:[%s759_s20 + $0xf0] sm:$0xff] }
  0x1e   : > { %v296_v8 = vmax.f32 %v264_v60, 0.0  ;;  %v297_v11 = vmax.f32 %v265_v63, 0.0  ;;  %v267_v12 = vadd.f32 %v764_v1, %v228_v2  ;;  %v230_v14 = vmul.f32 %v754_v0, %v191_v61  ;;  %v205_v61 = vld [vmem:[%s759_s20 + $0xf8] sm:$0xff] }
  0x1f   : > { %v298_v13 = vmax.f32 %v266_v3, 0.0  ;;  %692 = vst [vmem:[%s796_s26 + $0x20] sm:$0xff] %v632_v6   ;;  %v637_v16 = vpack.c.bf16 %v295_v7, %v294_v62  ;;  %v268_v17 = vadd.f32 %v764_v1, %v229_v9  ;;  %v231_v18 = vmul.f32 %v754_v0, %v192_v4 }
  0x20   : > { %v232_v19 = vmul.f32 %v754_v0, %v193_v5  ;;  %v642_v21 = vpack.c.bf16 %v297_v11, %v296_v8  ;;  %v299_v22 = vmax.f32 %v267_v12, 0.0  ;;  %v269_v23 = vadd.f32 %v764_v1, %v230_v14 }
  0x21   : > { %v233_v24 = vmul.f32 %v754_v0, %v194_v10  ;;  %693 = vst [vmem:[%s796_s26 + $0x28] sm:$0xff] %v637_v16   ;;  %v300_v26 = vmax.f32 %v268_v17, 0.0  ;;  %v270_v27 = vadd.f32 %v764_v1, %v231_v18  ;;  %v234_v29 = vmul.f32 %v754_v0, %v195_v15 }
  0x22   : > { %v271_v28 = vadd.f32 %v764_v1, %v232_v19  ;;  %694 = vst [vmem:[%s796_s26 + $0x30] sm:$0xff] %v642_v21   ;;  %v647_v31 = vpack.c.bf16 %v299_v22, %v298_v13  ;;  %v301_v32 = vmax.f32 %v269_v23, 0.0  ;;  %v235_v34 = vmul.f32 %v754_v0, %v196_v20 }
  0x23   : > { %v272_v33 = vadd.f32 %v764_v1, %v233_v24  ;;  %v302_v36 = vmax.f32 %v270_v27, 0.0  ;;  %v273_v38 = vadd.f32 %v764_v1, %v234_v29  ;;  %v236_v39 = vmul.f32 %v754_v0, %v197_v25 }
  0x24   : > { %v303_v37 = vmax.f32 %v271_v28, 0.0  ;;  %695 = vst [vmem:[%s796_s26 + $0x38] sm:$0xff] %v647_v31   ;;  %v652_v42 = vpack.c.bf16 %v301_v32, %v300_v26  ;;  %v274_v44 = vadd.f32 %v764_v1, %v235_v34  ;;  %v237_v45 = vmul.f32 %v754_v0, %v198_v30 }
  0x25   : > { %v304_v43 = vmax.f32 %v272_v33, 0.0  ;;  %v305_v48 = vmax.f32 %v273_v38, 0.0  ;;  %v275_v49 = vadd.f32 %v764_v1, %v236_v39  ;;  %v238_v50 = vmul.f32 %v754_v0, %v199_v35 }
  0x26   : > { %v657_v47 = vpack.c.bf16 %v303_v37, %v302_v36  ;;  %696 = vst [vmem:[%s796_s26 + $0x40] sm:$0xff] %v652_v42   ;;  %v306_v52 = vmax.f32 %v274_v44, 0.0  ;;  %v276_v53 = vadd.f32 %v764_v1, %v237_v45  ;;  %v239_v54 = vmul.f32 %v754_v0, %v200_v40 }
  0x27   : > { %v240_v55 = vmul.f32 %v754_v0, %v201_v41  ;;  %v662_v57 = vpack.c.bf16 %v305_v48, %v304_v43  ;;  %v307_v58 = vmax.f32 %v275_v49, 0.0  ;;  %v277_v59 = vadd.f32 %v764_v1, %v238_v50 }
  0x28   : > { %697 = vst [vmem:[%s796_s26 + $0x48] sm:$0xff] %v657_v47   ;;  %v241_v60 = vmul.f32 %v754_v0, %v202_v46  ;;  %v308_v62 = vmax.f32 %v276_v53, 0.0  ;;  %v278_v63 = vadd.f32 %v764_v1, %v239_v54  ;;  %v242_v3 = vmul.f32 %v754_v0, %v203_v51 }
  0x29   : > { %v279_v2 = vadd.f32 %v764_v1, %v240_v55  ;;  %698 = vst [vmem:[%s796_s26 + $0x50] sm:$0xff] %v662_v57   ;;  %v667_v4 = vpack.c.bf16 %v307_v58, %v306_v52  ;;  %v309_v5 = vmax.f32 %v277_v59, 0.0  ;;  %v243_v7 = vmul.f32 %v754_v0, %v204_v56 }
  0x2a   : > { %v280_v6 = vadd.f32 %v764_v1, %v241_v60  ;;  %v310_v8 = vmax.f32 %v278_v63, 0.0  ;;  %v281_v10 = vadd.f32 %v764_v1, %v242_v3  ;;  %v244_v11 = vmul.f32 %v754_v0, %v205_v61 }
  0x2b   : > { %v311_v9 = vmax.f32 %v279_v2, 0.0  ;;  %699 = vst [vmem:[%s796_s26 + $0x58] sm:$0xff] %v667_v4   ;;  %v672_v12 = vpack.c.bf16 %v309_v5, %v308_v62  ;;  %v282_v14 = vadd.f32 %v764_v1, %v243_v7 }
  0x2c   : > { %v312_v13 = vmax.f32 %v280_v6, 0.0  ;;  %v313_v16 = vmax.f32 %v281_v10, 0.0  ;;  %v283_v17 = vadd.f32 %v764_v1, %v244_v11 }
  0x2d   : > { %v677_v15 = vpack.c.bf16 %v311_v9, %v310_v8  ;;  %700 = vst [vmem:[%s796_s26 + $0x60] sm:$0xff] %v672_v12   ;;  %v314_v18 = vmax.f32 %v282_v14, 0.0 }
  0x2e   : > { %v682_v19 = vpack.c.bf16 %v313_v16, %v312_v13  ;;  %v315_v20 = vmax.f32 %v283_v17, 0.0 }
  0x2f   : > { %701 = vst [vmem:[%s796_s26 + $0x68] sm:$0xff] %v677_v15  }
  0x30   : > { %702 = vst [vmem:[%s796_s26 + $0x70] sm:$0xff] %v682_v19   ;;  %v687_v21 = vpack.c.bf16 %v315_v20, %v314_v18 }
  0x32   : > { %703 = vst [vmem:[%s796_s26 + $0x78] sm:$0xff] %v687_v21  }
  0x33 PF: > { %s13_s12 = sadd.s32 1, %s718_s12  }
  0x34   : > { %p10_p4 = scmp.ge.s32.totalorder %s13_s12, 4  }
  0x36   :  { %12 = sbr.rel (!%p10_p4) target bundleno = 1 (0x1), region = 62 }

// kernel: generator_forward.13
= control target key start
LH: loop header
LB: loop body
LE: loop exit
PB: predicated region body
PF: predicated region fallthrough
CT: control target
= control target key end

     0   :  { %s2730_s15 = smov 0   ;;  %s3025_s0 = inlined_call_operand.vmem [shape: bf16[4,512,512], index: 0, kind: input, shape index: {}]   ;;  %s3026_s1 = inlined_call_operand.vmem [shape: bf16[4,512,128], index: 1, kind: input, shape index: {}]   ;;  %s3027_s2 = inlined_call_operand.vmem [shape: f32[4,512,128], index: 2, kind: output, shape index: {0}]   ;;  %s3028_s3 = inlined_call_operand.vmem [shape: f32[4,1,128], index: 3, kind: output, shape index: {1}]   ;;  %s3029_s4 = inlined_call_operand.vmem [shape: f32[4,1,128], index: 4, kind: output, shape index: {2}]  }
   0x1 LB: > { %s2223_s16 = sadd.s32 4294967295, %s2702_s15   ;;  %p2227_p0 = scmp.ge.s32.totalorder %s2702_s15, 1  ;;  %s2702_s15 = sphi %s2730_s15, %s15_s15  }
   0x2   : > { %p177_p1 = scmp.lt.s32.totalorder %s2702_s15, 5 }
   0x4   : > { %p178_p2 = pnand %p2227_p0, %p177_p1 }
   0x5   : > { %p214_p3 = scmp.lt.s32.totalorder (!%p178_p2), %s2223_s16, 3  ;;  %v2704_v0 = vmov (!%p178_p2), 0  }
   0x6   : > { %181 = sbr.rel (%p178_p2) target bundleno = 562 (0x232), region = 28  ;;  %1260 = vmatprep.subr.bf16.mxu1 (!%p178_p2), %v2704_v0  ;;  %1549 = vmatprep.subr.bf16.mxu0 (!%p178_p2), %v2704_v0 }
   0xd   : > { %s3031_s16 = smov (!%p214_p3, %s2223_s16), 3 }
   0xe   : > { %s2397_s17 = sshll.u32 %s3031_s16, 8  ;;  %s2396_s21 = sshll.u32 %s3031_s16, 10 }
   0xf   : > { %s2746_s20 = scalar_lea.vmem %s3026_s1, %s2397_s17  ;;  %s2783_s24 = scalar_lea.vmem %s3025_s0, %s2396_s21 }
  0x10   : > { %v2472_v1 = vld [vmem:[%s2746_s20] sm:$0xff]   ;;  %v2474_v3 = vld [vmem:[%s2746_s20 + $0x8] sm:$0xff]   ;;  %v2476_v5 = vld [vmem:[%s2746_s20 + $0x10] sm:$0xff]   ;;  %s2398_s25 = sshll.u32 %s3031_s16, 9  ;;  %s231_s5 = scalar_lea.vmem %s3028_s3, %s3031_s16 }
  0x11   : > { %v2473_v2 = vld [vmem:[%s2746_s20 + $0x80] sm:$0xff]   ;;  %1261 = vmatpush1.bf16.msra.mxu1 %v2472_v1  ;;  %v2475_v4 = vld [vmem:[%s2746_s20 + $0x88] sm:$0xff]   ;;  %v2477_v6 = vld [vmem:[%s2746_s20 + $0x90] sm:$0xff]   ;;  %s2930_s28 = scalar_lea.vmem %s3027_s2, %s2398_s25  ;;  %s234_s8 = scalar_lea.vmem %s3029_s4, %s3031_s16 }
  0x12   : > { %1550 = vmatpush1.bf16.msra.mxu0 %v2473_v2  ;;  %1262 = vmatprep.subr.bf16.mxu1 %v2704_v0  ;;  %v2478_v7 = vld [vmem:[%s2746_s20 + $0x18] sm:$0xff]   ;;  %v2480_v9 = vld [vmem:[%s2746_s20 + $0x20] sm:$0xff]   ;;  %v2482_v11 = vld [vmem:[%s2746_s20 + $0x28] sm:$0xff]  }
  0x13   : > { %1551 = vmatprep.subr.bf16.mxu0 %v2704_v0  ;;  %v2479_v8 = vld [vmem:[%s2746_s20 + $0x98] sm:$0xff]   ;;  %v2481_v10 = vld [vmem:[%s2746_s20 + $0xa0] sm:$0xff]   ;;  %v2483_v12 = vld [vmem:[%s2746_s20 + $0xa8] sm:$0xff]  }
  0x14   : > { %v2484_v13 = vld [vmem:[%s2746_s20 + $0x30] sm:$0xff]   ;;  %v2486_v15 = vld [vmem:[%s2746_s20 + $0x38] sm:$0xff]   ;;  %v2488_v17 = vld [vmem:[%s2746_s20 + $0x40] sm:$0xff]  }
  0x15   : > { %1263 = vmatpush1.bf16.msra.mxu1 %v2474_v3  ;;  %v2485_v14 = vld [vmem:[%s2746_s20 + $0xb0] sm:$0xff]   ;;  %v2487_v16 = vld [vmem:[%s2746_s20 + $0xb8] sm:$0xff]   ;;  %v2489_v18 = vld [vmem:[%s2746_s20 + $0xc0] sm:$0xff]  }
  0x16   : > { %1552 = vmatpush1.bf16.msra.mxu0 %v2475_v4  ;;  %1264 = vmatprep.subr.bf16.mxu1 %v2704_v0  ;;  %v2506_v19 = vld [vmem:[%s2783_s24 + $0x4] ss:$16 sps:$4 sm:$0xff]   ;;  %v2490_v20 = vld [vmem:[%s2746_s20 + $0x48] sm:$0xff]   ;;  %v2494_v25 = vld [vmem:[%s2746_s20 + $0x58] sm:$0xff]  }
  0x17   : > { %1553 = vmatprep.subr.bf16.mxu0 %v2704_v0  ;;  %v2509_v21 = vld [vmem:[%s2783_s24 + $0xc] ss:$16 sps:$4 sm:$0xff]   ;;  %1292 = vmatprep.mubr.bf16.mxu1 %v2506_v19  ;;  %v2492_v23 = vld [vmem:[%s2746_s20 + $0x50] sm:$0xff]   ;;  %v2496_v27 = vld [vmem:[%s2746_s20 + $0x60] sm:$0xff]  }
  0x18   : > { %v2491_v22 = vld [vmem:[%s2746_s20 + $0xc8] sm:$0xff]   ;;  %1581 = vmatprep.mubr.bf16.mxu0 %v2509_v21  ;;  %v2493_v24 = vld [vmem:[%s2746_s20 + $0xd0] sm:$0xff]   ;;  %v2495_v26 = vld [vmem:[%s2746_s20 + $0xd8] sm:$0xff]  }
  0x19   : > { %1265 = vmatpush1.bf16.msra.mxu1 %v2476_v5  ;;  %v2497_v28 = vld [vmem:[%s2746_s20 + $0xe0] sm:$0xff]   ;;  %v2498_v29 = vld [vmem:[%s2746_s20 + $0x68] sm:$0xff]   ;;  %v2500_v31 = vld [vmem:[%s2746_s20 + $0x70] sm:$0xff]  }
  0x1a   : > { %1554 = vmatpush1.bf16.msra.mxu0 %v2477_v6  ;;  %1266 = vmatprep.subr.bf16.mxu1 %v2704_v0  ;;  %v2499_v30 = vld [vmem:[%s2746_s20 + $0xe8] sm:$0xff]   ;;  %v2501_v32 = vld [vmem:[%s2746_s20 + $0xf0] sm:$0xff]   ;;  %v2502_v33 = vld [vmem:[%s2746_s20 + $0x78] sm:$0xff]  }
  0x1b   : > { %1555 = vmatprep.subr.bf16.mxu0 %v2704_v0  ;;  %v2503_v34 = vld [vmem:[%s2746_s20 + $0xf8] sm:$0xff]   ;;  %v2504_v35 = vld [vmem:[%s2783_s24] ss:$16 sps:$4 sm:$0xff]   ;;  %v2510_v37 = vld [vmem:[%s2783_s24 + $0x24] ss:$16 sps:$4 sm:$0xff]  }
  0x1c   : > { %v2507_v36 = vld [vmem:[%s2783_s24 + $0x8] ss:$16 sps:$4 sm:$0xff]   ;;  %v2512_v38 = vld [vmem:[%s2783_s24 + $0x2c] ss:$16 sps:$4 sm:$0xff]   ;;  %v2514_v39 = vld [vmem:[%s2783_s24 + $0x20] ss:$16 sps:$4 sm:$0xff]  }
  0x1d   : > { %1267 = vmatpush1.bf16.msra.mxu1 %v2478_v7  ;;  %v2515_v40 = vld [vmem:[%s2783_s24 + $0x28] ss:$16 sps:$4 sm:$0xff]   ;;  %v2516_v41 = vld [vmem:[%s2783_s24 + $0x44] ss:$16 sps:$4 sm:$0xff]   ;;  %v2518_v42 = vld [vmem:[%s2783_s24 + $0x4c] ss:$16 sps:$4 sm:$0xff]  }
  0x1e   : > { %1556 = vmatpush1.bf16.msra.mxu0 %v2479_v8  ;;  %1268 = vmatprep.subr.bf16.mxu1 %v2704_v0  ;;  %v2520_v43 = vld [vmem:[%s2783_s24 + $0x40] ss:$16 sps:$4 sm:$0xff]   ;;  %v2521_v44 = vld [vmem:[%s2783_s24 + $0x48] ss:$16 sps:$4 sm:$0xff]   ;;  %v2522_v45 = vld [vmem:[%s2783_s24 + $0x64] ss:$16 sps:$4 sm:$0xff]  }
  0x1f   : > { %1557 = vmatprep.subr.bf16.mxu0 %v2704_v0  ;;  %v2524_v46 = vld [vmem:[%s2783_s24 + $0x6c] ss:$16 sps:$4 sm:$0xff]   ;;  %v2526_v47 = vld [vmem:[%s2783_s24 + $0x60] ss:$16 sps:$4 sm:$0xff]   ;;  %v2527_v48 = vld [vmem:[%s2783_s24 + $0x68] ss:$16 sps:$4 sm:$0xff]  }
  0x20   : > { %v2528_v49 = vld [vmem:[%s2783_s24 + $0x84] ss:$16 sps:$4 sm:$0xff]   ;;  %v2530_v50 = vld [vmem:[%s2783_s24 + $0x8c] ss:$16 sps:$4 sm:$0xff]   ;;  %v2532_v51 = vld [vmem:[%s2783_s24 + $0x80] ss:$16 sps:$4 sm:$0xff]  }
  0x21   : > { %1269 = vmatpush1.bf16.msra.mxu1 %v2480_v9  ;;  %v2533_v52 = vld [vmem:[%s2783_s24 + $0x88] ss:$16 sps:$4 sm:$0xff]   ;;  %v2534_v53 = vld [vmem:[%s2783_s24 + $0xa4] ss:$16 sps:$4 sm:$0xff]   ;;  %v2536_v54 = vld [vmem:[%s2783_s24 + $0xac] ss:$16 sps:$4 sm:$0xff]  }
  0x22   : > { %1558 = vmatpush1.bf16.msra.mxu0 %v2481_v10  ;;  %1270 = vmatprep.subr.bf16.mxu1 %v2704_v0  ;;  %v2538_v55 = vld [vmem:[%s2783_s24 + $0xa0] ss:$16 sps:$4 sm:$0xff]   ;;  %v2539_v56 = vld [vmem:[%s2783_s24 + $0xa8] ss:$16 sps:$4 sm:$0xff]   ;;  %v2540_v57 = vld [vmem:[%s2783_s24 + $0xc4] ss:$16 sps:$4 sm:$0xff]  }
  0x23   : > { %1559 = vmatprep.subr.bf16.mxu0 %v2704_v0  ;;  %v2542_v58 = vld [vmem:[%s2783_s24 + $0xcc] ss:$16 sps:$4 sm:$0xff]   ;;  %v2544_v59 = vld [vmem:[%s2783_s24 + $0xc0] ss:$16 sps:$4 sm:$0xff]   ;;  %v2545_v60 = vld [vmem:[%s2783_s24 + $0xc8] ss:$16 sps:$4 sm:$0xff]  }
  0x24   : > { %v2546_v61 = vld [vmem:[%s2783_s24 + $0xe4] ss:$16 sps:$4 sm:$0xff]   ;;  %v2548_v62 = vld [vmem:[%s2783_s24 + $0xec] ss:$16 sps:$4 sm:$0xff]   ;;  %v2550_v63 = vld [vmem:[%s2783_s24 + $0xe0] ss:$16 sps:$4 sm:$0xff]  }
  0x25   : > { %1271 = vmatpush1.bf16.msra.mxu1 %v2482_v11  ;;  %v2552_v1 = vld [vmem:[%s2783_s24 + $0x104] ss:$16 sps:$4 sm:$0xff]   ;;  %v2554_v2 = vld [vmem:[%s2783_s24 + $0x10c] ss:$16 sps:$4 sm:$0xff]   ;;  %v2556_v3 = vld [vmem:[%s2783_s24 + $0x100] ss:$16 sps:$4 sm:$0xff]  }
  0x26   : > { %1560 = vmatpush1.bf16.msra.mxu0 %v2483_v12  ;;  %1272 = vmatprep.subr.bf16.mxu1 %v2704_v0  ;;  %v2557_v4 = vld [vmem:[%s2783_s24 + $0x108] ss:$16 sps:$4 sm:$0xff]   ;;  %v2558_v5 = vld [vmem:[%s2783_s24 + $0x124] ss:$16 sps:$4 sm:$0xff]   ;;  %v2560_v6 = vld [vmem:[%s2783_s24 + $0x12c] ss:$16 sps:$4 sm:$0xff]  }
  0x27   : > { %1561 = vmatprep.subr.bf16.mxu0 %v2704_v0  ;;  %v2562_v7 = vld [vmem:[%s2783_s24 + $0x120] ss:$16 sps:$4 sm:$0xff]   ;;  %v2563_v8 = vld [vmem:[%s2783_s24 + $0x128] ss:$16 sps:$4 sm:$0xff]   ;;  %v2564_v9 = vld [vmem:[%s2783_s24 + $0x144] ss:$16 sps:$4 sm:$0xff]  }
  0x28   : > { %v2566_v10 = vld [vmem:[%s2783_s24 + $0x14c] ss:$16 sps:$4 sm:$0xff]   ;;  %v2568_v11 = vld [vmem:[%s2783_s24 + $0x140] ss:$16 sps:$4 sm:$0xff]   ;;  %v2569_v12 = vld [vmem:[%s2783_s24 + $0x148] ss:$16 sps:$4 sm:$0xff]  }
  0x29   : > { %1273 = vmatpush1.bf16.msra.mxu1 %v2484_v13  ;;  %v2570_v13 = vld [vmem:[%s2783_s24 + $0x164] ss:$16 sps:$4 sm:$0xff]   ;;  %v2580_v19 = vld [vmem:[%s2783_s24 + $0x180] ss:$16 sps:$4 sm:$0xff]  }
  0x2a   : > { %1562 = vmatpush1.bf16.msra.mxu0 %v2485_v14  ;;  %1274 = vmatprep.subr.bf16.mxu1 %v2704_v0  ;;  %v2572_v14 = vld [vmem:[%s2783_s24 + $0x16c] ss:$16 sps:$4 sm:$0xff]   ;;  %v2582_v21 = vld [vmem:[%s2783_s24 + $0x1a4] ss:$16 sps:$4 sm:$0xff]  }
  0x2b   : > { %1563 = vmatprep.subr.bf16.mxu0 %v2704_v0 }
  0x2d   : > { %1275 = vmatpush1.bf16.msra.mxu1 %v2486_v15  ;;  %v2574_v15 = vld [vmem:[%s2783_s24 + $0x160] ss:$16 sps:$4 sm:$0xff]  }
  0x2e   : > { %1564 = vmatpush1.bf16.msra.mxu0 %v2487_v16  ;;  %1276 = vmatprep.subr.bf16.mxu1 %v2704_v0  ;;  %v2575_v16 = vld [vmem:[%s2783_s24 + $0x168] ss:$16 sps:$4 sm:$0xff]  }
  0x2f   : > { %1565 = vmatprep.subr.bf16.mxu0 %v2704_v0 }
  0x31   : > { %1277 = vmatpush1.bf16.msra.mxu1 %v2488_v17  ;;  %v2576_v17 = vld [vmem:[%s2783_s24 + $0x184] ss:$16 sps:$4 sm:$0xff]  }
  0x32   : > { %1566 = vmatpush1.bf16.msra.mxu0 %v2489_v18  ;;  %1278 = vmatprep.subr.bf16.mxu1 %v2704_v0  ;;  %v2578_v18 = vld [vmem:[%s2783_s24 + $0x18c] ss:$16 sps:$4 sm:$0xff]  }
  0x33   : > { %1567 = vmatprep.subr.bf16.mxu0 %v2704_v0 }
  0x35   : > { %1279 = vmatpush1.bf16.msra.mxu1 %v2490_v20  ;;  %v2581_v20 = vld [vmem:[%s2783_s24 + $0x188] ss:$16 sps:$4 sm:$0xff]  }
  0x36   : > { %1568 = vmatpush1.bf16.msra.mxu0 %v2491_v22  ;;  %1280 = vmatprep.subr.bf16.mxu1 %v2704_v0  ;;  %v2584_v22 = vld [vmem:[%s2783_s24 + $0x1ac] ss:$16 sps:$4 sm:$0xff]  }
  0x37   : > { %1569 = vmatprep.subr.bf16.mxu0 %v2704_v0 }
  0x39   : > { %1281 = vmatpush1.bf16.msra.mxu1 %v2492_v23  ;;  %v2586_v23 = vld [vmem:[%s2783_s24 + $0x1a0] ss:$16 sps:$4 sm:$0xff]  }
  0x3a   : > { %1570 = vmatpush1.bf16.msra.mxu0 %v2493_v24  ;;  %1282 = vmatprep.subr.bf16.mxu1 %v2704_v0  ;;  %v2587_v24 = vld [vmem:[%s2783_s24 + $0x1a8] ss:$16 sps:$4 sm:$0xff]  }
  0x3b   : > { %1571 = vmatprep.subr.bf16.mxu0 %v2704_v0 }
  0x3d   : > { %1283 = vmatpush1.bf16.msra.mxu1 %v2494_v25  ;;  %v2588_v25 = vld [vmem:[%s2783_s24 + $0x1c4] ss:$16 sps:$4 sm:$0xff]  }
  0x3e   : > { %1572 = vmatpush1.bf16.msra.mxu0 %v2495_v26  ;;  %1284 = vmatprep.subr.bf16.mxu1 %v2704_v0  ;;  %v2590_v26 = vld [vmem:[%s2783_s24 + $0x1cc] ss:$16 sps:$4 sm:$0xff]  }
  0x3f   : > { %1573 = vmatprep.subr.bf16.mxu0 %v2704_v0 }
  0x41   : > { %1285 = vmatpush1.bf16.msra.mxu1 %v2496_v27  ;;  %v2592_v27 = vld [vmem:[%s2783_s24 + $0x1c0] ss:$16 sps:$4 sm:$0xff]  }
  0x42   : > { %1574 = vmatpush1.bf16.msra.mxu0 %v2497_v28  ;;  %1286 = vmatprep.subr.bf16.mxu1 %v2704_v0  ;;  %v2593_v28 = vld [vmem:[%s2783_s24 + $0x1c8] ss:$16 sps:$4 sm:$0xff]  }
  0x43   : > { %1575 = vmatprep.subr.bf16.mxu0 %v2704_v0 }
  0x45   : > { %1287 = vmatpush1.bf16.msra.mxu1 %v2498_v29  ;;  %v2594_v29 = vld [vmem:[%s2783_s24 + $0x1e4] ss:$16 sps:$4 sm:$0xff]  }
  0x46   : > { %1576 = vmatpush1.bf16.msra.mxu0 %v2499_v30  ;;  %1288 = vmatprep.subr.bf16.mxu1 %v2704_v0  ;;  %v2596_v30 = vld [vmem:[%s2783_s24 + $0x1ec] ss:$16 sps:$4 sm:$0xff]  }
  0x47   : > { %1577 = vmatprep.subr.bf16.mxu0 %v2704_v0 }
  0x49   : > { %1289 = vmatpush1.bf16.msra.mxu1 %v2500_v31  ;;  %v2598_v31 = vld [vmem:[%s2783_s24 + $0x1e0] ss:$16 sps:$4 sm:$0xff]  }
  0x4a   : > { %1578 = vmatpush1.bf16.msra.mxu0 %v2501_v32  ;;  %1290 = vmatprep.subr.bf16.mxu1 %v2704_v0  ;;  %v2599_v32 = vld [vmem:[%s2783_s24 + $0x1e8] ss:$16 sps:$4 sm:$0xff]  }
  0x4b   : > { %1579 = vmatprep.subr.bf16.mxu0 %v2704_v0  ;;  %v2551_v0 = vld [vmem:[%s2783_s24 + $0xe8] ss:$16 sps:$4 sm:$0xff]  }
  0x4d   : > { %1291 = vmatpush1.bf16.msra.mxu1 %v2502_v33  ;;  %v2600_v33 = vld [vmem:[%s2783_s24 + $0x204] ss:$16 sps:$4 sm:$0xff]  }
  0x4e   : > { %1580 = vmatpush1.bf16.msra.mxu0 %v2503_v34  ;;  %v2602_v34 = vld [vmem:[%s2783_s24 + $0x20c] ss:$16 sps:$4 sm:$0xff]  }
  0x50   : > { %1293 = vmatmul.mubr.bf16.vlgmr.msra.gmra.mrb[0].mxu1 %v2504_v35  ;;  %v2604_v35 = vld [vmem:[%s2783_s24 + $0x200] ss:$16 sps:$4 sm:$0xff]  }
  0x51   : > { %1582 = vmatmul.mubr.bf16.vlgmr.msra.gmra.mrb[0].mxu0 %v2507_v36  ;;  %1300 = vmatprep.mubr.bf16.mxu1 %v2510_v37  ;;  %v2605_v36 = vld [vmem:[%s2783_s24 + $0x208] ss:$16 sps:$4 sm:$0xff]   ;;  %v2606_v37 = vld [vmem:[%s2783_s24 + $0x224] ss:$16 sps:$4 sm:$0xff]  }
  0x52   : > { %1589 = vmatprep.mubr.bf16.mxu0 %v2512_v38  ;;  %v2608_v38 = vld [vmem:[%s2783_s24 + $0x22c] ss:$16 sps:$4 sm:$0xff]  }
  0x58   : > { %1301 = vmatmul.mubr.bf16.gmra.mrb[4].mxu1 %v2514_v39  ;;  %v2610_v39 = vld [vmem:[%s2783_s24 + $0x220] ss:$16 sps:$4 sm:$0xff]  }
  0x59   : > { %1590 = vmatmul.mubr.bf16.gmra.mrb[4].mxu0 %v2515_v40  ;;  %1308 = vmatprep.mubr.bf16.mxu1 %v2516_v41  ;;  %v2611_v40 = vld [vmem:[%s2783_s24 + $0x228] ss:$16 sps:$4 sm:$0xff]   ;;  %v2612_v41 = vld [vmem:[%s2783_s24 + $0x244] ss:$16 sps:$4 sm:$0xff]  }
  0x5a   : > { %1597 = vmatprep.mubr.bf16.mxu0 %v2518_v42  ;;  %v2614_v42 = vld [vmem:[%s2783_s24 + $0x24c] ss:$16 sps:$4 sm:$0xff]  }
  0x60   : > { %1309 = vmatmul.mubr.bf16.gmra.mrb[8].mxu1 %v2520_v43  ;;  %v2616_v43 = vld [vmem:[%s2783_s24 + $0x240] ss:$16 sps:$4 sm:$0xff]  }
  0x61   : > { %1598 = vmatmul.mubr.bf16.gmra.mrb[8].mxu0 %v2521_v44  ;;  %1316 = vmatprep.mubr.bf16.mxu1 %v2522_v45  ;;  %v2617_v44 = vld [vmem:[%s2783_s24 + $0x248] ss:$16 sps:$4 sm:$0xff]   ;;  %v2618_v45 = vld [vmem:[%s2783_s24 + $0x264] ss:$16 sps:$4 sm:$0xff]  }
  0x62   : > { %1605 = vmatprep.mubr.bf16.mxu0 %v2524_v46  ;;  %v2620_v46 = vld [vmem:[%s2783_s24 + $0x26c] ss:$16 sps:$4 sm:$0xff]  }
  0x68   : > { %1317 = vmatmul.mubr.bf16.gmra.mrb[12].mxu1 %v2526_v47  ;;  %v2622_v47 = vld [vmem:[%s2783_s24 + $0x260] ss:$16 sps:$4 sm:$0xff]  }
  0x69   : > { %1606 = vmatmul.mubr.bf16.gmra.mrb[12].mxu0 %v2527_v48  ;;  %1324 = vmatprep.mubr.bf16.mxu1 %v2528_v49  ;;  %v2623_v48 = vld [vmem:[%s2783_s24 + $0x268] ss:$16 sps:$4 sm:$0xff]   ;;  %v2624_v49 = vld [vmem:[%s2783_s24 + $0x284] ss:$16 sps:$4 sm:$0xff]  }
  0x6a   : > { %1613 = vmatprep.mubr.bf16.mxu0 %v2530_v50  ;;  %v2626_v50 = vld [vmem:[%s2783_s24 + $0x28c] ss:$16 sps:$4 sm:$0xff]  }
  0x70   : > { %1325 = vmatmul.mubr.bf16.gmra.mrb[16].mxu1 %v2532_v51  ;;  %v2628_v51 = vld [vmem:[%s2783_s24 + $0x280] ss:$16 sps:$4 sm:$0xff]  }
  0x71   : > { %1614 = vmatmul.mubr.bf16.gmra.mrb[16].mxu0 %v2533_v52  ;;  %1332 = vmatprep.mubr.bf16.mxu1 %v2534_v53  ;;  %v2629_v52 = vld [vmem:[%s2783_s24 + $0x288] ss:$16 sps:$4 sm:$0xff]   ;;  %v2630_v53 = vld [vmem:[%s2783_s24 + $0x2a4] ss:$16 sps:$4 sm:$0xff]  }
  0x72   : > { %1621 = vmatprep.mubr.bf16.mxu0 %v2536_v54  ;;  %v2632_v54 = vld [vmem:[%s2783_s24 + $0x2ac] ss:$16 sps:$4 sm:$0xff]  }
  0x78   : > { %1333 = vmatmul.mubr.bf16.gmra.mrb[20].mxu1 %v2538_v55  ;;  %v2634_v55 = vld [vmem:[%s2783_s24 + $0x2a0] ss:$16 sps:$4 sm:$0xff]  }
  0x79   : > { %1622 = vmatmul.mubr.bf16.gmra.mrb[20].mxu0 %v2539_v56  ;;  %1340 = vmatprep.mubr.bf16.mxu1 %v2540_v57  ;;  %v2635_v56 = vld [vmem:[%s2783_s24 + $0x2a8] ss:$16 sps:$4 sm:$0xff]   ;;  %v2636_v57 = vld [vmem:[%s2783_s24 + $0x2c4] ss:$16 sps:$4 sm:$0xff]  }
  0x7a   : > { %1629 = vmatprep.mubr.bf16.mxu0 %v2542_v58  ;;  %v2638_v58 = vld [vmem:[%s2783_s24 + $0x2cc] ss:$16 sps:$4 sm:$0xff]  }
  0x80   : > { %1341 = vmatmul.mubr.bf16.gmra.mrb[24].mxu1 %v2544_v59  ;;  %v2640_v59 = vld [vmem:[%s2783_s24 + $0x2c0] ss:$16 sps:$4 sm:$0xff]  }
  0x81   : > { %1630 = vmatmul.mubr.bf16.gmra.mrb[24].mxu0 %v2545_v60  ;;  %1348 = vmatprep.mubr.bf16.mxu1 %v2546_v61  ;;  %v2641_v60 = vld [vmem:[%s2783_s24 + $0x2c8] ss:$16 sps:$4 sm:$0xff]   ;;  %v2642_v61 = vld [vmem:[%s2783_s24 + $0x2e4] ss:$16 sps:$4 sm:$0xff]  }
  0x82   : > { %1637 = vmatprep.mubr.bf16.mxu0 %v2548_v62  ;;  %v2644_v62 = vld [vmem:[%s2783_s24 + $0x2ec] ss:$16 sps:$4 sm:$0xff]  }
  0x88   : > { %1349 = vmatmul.mubr.bf16.gmra.mrb[28].mxu1 %v2550_v63  ;;  %v2646_v63 = vld [vmem:[%s2783_s24 + $0x2e0] ss:$16 sps:$4 sm:$0xff]  }
  0x89   : > { %1638 = vmatmul.mubr.bf16.gmra.mrb[28].mxu0 %v2551_v0  ;;  %1356 = vmatprep.mubr.bf16.mxu1 %v2552_v1  ;;  %v2647_v0 = vld [vmem:[%s2783_s24 + $0x2e8] ss:$16 sps:$4 sm:$0xff]   ;;  %v2648_v1 = vld [vmem:[%s2783_s24 + $0x304] ss:$16 sps:$4 sm:$0xff]  }
  0x8a   : > { %1645 = vmatprep.mubr.bf16.mxu0 %v2554_v2  ;;  %v2650_v2 = vld [vmem:[%s2783_s24 + $0x30c] ss:$16 sps:$4 sm:$0xff]  }
  0x90   : > { %1357 = vmatmul.mubr.bf16.gmra.mrb[32].mxu1 %v2556_v3  ;;  %v2652_v3 = vld [vmem:[%s2783_s24 + $0x300] ss:$16 sps:$4 sm:$0xff]  }
  0x91   : > { %1646 = vmatmul.mubr.bf16.gmra.mrb[32].mxu0 %v2557_v4  ;;  %1364 = vmatprep.mubr.bf16.mxu1 %v2558_v5  ;;  %v2653_v4 = vld [vmem:[%s2783_s24 + $0x308] ss:$16 sps:$4 sm:$0xff]   ;;  %v2654_v5 = vld [vmem:[%s2783_s24 + $0x324] ss:$16 sps:$4 sm:$0xff]  }
  0x92   : > { %1653 = vmatprep.mubr.bf16.mxu0 %v2560_v6  ;;  %v2656_v6 = vld [vmem:[%s2783_s24 + $0x32c] ss:$16 sps:$4 sm:$0xff]  }
  0x98   : > { %1365 = vmatmul.mubr.bf16.gmra.mrb[36].mxu1 %v2562_v7  ;;  %v2658_v7 = vld [vmem:[%s2783_s24 + $0x320] ss:$16 sps:$4 sm:$0xff]  }
  0x99   : > { %1654 = vmatmul.mubr.bf16.gmra.mrb[36].mxu0 %v2563_v8  ;;  %1372 = vmatprep.mubr.bf16.mxu1 %v2564_v9  ;;  %v2659_v8 = vld [vmem:[%s2783_s24 + $0x328] ss:$16 sps:$4 sm:$0xff]   ;;  %v2660_v9 = vld [vmem:[%s2783_s24 + $0x344] ss:$16 sps:$4 sm:$0xff]  }
  0x9a   : > { %1661 = vmatprep.mubr.bf16.mxu0 %v2566_v10  ;;  %v2662_v10 = vld [vmem:[%s2783_s24 + $0x34c] ss:$16 sps:$4 sm:$0xff]  }
  0xa0   : > { %1373 = vmatmul.mubr.bf16.gmra.mrb[40].mxu1 %v2568_v11  ;;  %v2664_v11 = vld [vmem:[%s2783_s24 + $0x340] ss:$16 sps:$4 sm:$0xff]  }
  0xa1   : > { %1662 = vmatmul.mubr.bf16.gmra.mrb[40].mxu0 %v2569_v12  ;;  %1380 = vmatprep.mubr.bf16.mxu1 %v2570_v13  ;;  %v2665_v12 = vld [vmem:[%s2783_s24 + $0x348] ss:$16 sps:$4 sm:$0xff]   ;;  %v2666_v13 = vld [vmem:[%s2783_s24 + $0x364] ss:$16 sps:$4 sm:$0xff]  }
  0xa2   : > { %1669 = vmatprep.mubr.bf16.mxu0 %v2572_v14  ;;  %v2668_v14 = vld [vmem:[%s2783_s24 + $0x36c] ss:$16 sps:$4 sm:$0xff]  }
  0xa8   : > { %1381 = vmatmul.mubr.bf16.gmra.mrb[44].mxu1 %v2574_v15 }
  0xa9   : > { %1670 = vmatmul.mubr.bf16.gmra.mrb[44].mxu0 %v2575_v16  ;;  %1388 = vmatprep.mubr.bf16.mxu1 %v2576_v17 }
  0xaa   : > { %1677 = vmatprep.mubr.bf16.mxu0 %v2578_v18  ;;  %v2670_v18 = vld [vmem:[%s2783_s24 + $0x360] ss:$16 sps:$4 sm:$0xff]  }
  0xb0   : > { %1389 = vmatmul.mubr.bf16.gmra.mrb[48].mxu1 %v2580_v19 }
  0xb1   : > { %1678 = vmatmul.mubr.bf16.gmra.mrb[48].mxu0 %v2581_v20  ;;  %1396 = vmatprep.mubr.bf16.mxu1 %v2582_v21 }
  0xb2   : > { %1685 = vmatprep.mubr.bf16.mxu0 %v2584_v22  ;;  %v2671_v22 = vld [vmem:[%s2783_s24 + $0x368] ss:$16 sps:$4 sm:$0xff]  }
  0xb8   : > { %1397 = vmatmul.mubr.bf16.gmra.mrb[52].mxu1 %v2586_v23  ;;  %v2672_v23 = vld [vmem:[%s2783_s24 + $0x384] ss:$16 sps:$4 sm:$0xff]  }
  0xb9   : > { %1686 = vmatmul.mubr.bf16.gmra.mrb[52].mxu0 %v2587_v24  ;;  %1404 = vmatprep.mubr.bf16.mxu1 %v2588_v25 }
  0xba   : > { %1693 = vmatprep.mubr.bf16.mxu0 %v2590_v26  ;;  %v2674_v26 = vld [vmem:[%s2783_s24 + $0x38c] ss:$16 sps:$4 sm:$0xff]  }
  0xc0   : > { %1405 = vmatmul.mubr.bf16.gmra.mrb[56].mxu1 %v2592_v27 }
  0xc1   : > { %1694 = vmatmul.mubr.bf16.gmra.mrb[56].mxu0 %v2593_v28  ;;  %1412 = vmatprep.mubr.bf16.mxu1 %v2594_v29 }
  0xc2   : > { %1701 = vmatprep.mubr.bf16.mxu0 %v2596_v30 }
  0xc8   : > { %1413 = vmatmul.mubr.bf16.gmra.mrb[60].mxu1 %v2598_v31 }
  0xc9   : > { %1702 = vmatmul.mubr.bf16.gmra.mrb[60].mxu0 %v2599_v32  ;;  %1420 = vmatprep.mubr.bf16.mxu1 %v2600_v33 }
  0xca   : > { %1709 = vmatprep.mubr.bf16.mxu0 %v2602_v34 }
  0xd0   : > { %1421 = vmatmul.mubr.bf16.gmra.mrb[64].mxu1 %v2604_v35 }
  0xd1   : > { %1710 = vmatmul.mubr.bf16.gmra.mrb[64].mxu0 %v2605_v36  ;;  %1428 = vmatprep.mubr.bf16.mxu1 %v2606_v37  ;;  %v2676_v36 = vld [vmem:[%s2783_s24 + $0x380] ss:$16 sps:$4 sm:$0xff]  }
  0xd2   : > { %1717 = vmatprep.mubr.bf16.mxu0 %v2608_v38 }
  0xd8   : > { %1429 = vmatmul.mubr.bf16.gmra.mrb[68].mxu1 %v2610_v39 }
  0xd9   : > { %1718 = vmatmul.mubr.bf16.gmra.mrb[68].mxu0 %v2611_v40  ;;  %1436 = vmatprep.mubr.bf16.mxu1 %v2612_v41  ;;  %v2677_v40 = vld [vmem:[%s2783_s24 + $0x388] ss:$16 sps:$4 sm:$0xff]   ;;  %v2678_v41 = vld [vmem:[%s2783_s24 + $0x3a4] ss:$16 sps:$4 sm:$0xff]  }
  0xda   : > { %1725 = vmatprep.mubr.bf16.mxu0 %v2614_v42 }
  0xe0   : > { %1437 = vmatmul.mubr.bf16.gmra.mrb[72].mxu1 %v2616_v43 }
  0xe1   : > { %1726 = vmatmul.mubr.bf16.gmra.mrb[72].mxu0 %v2617_v44  ;;  %1444 = vmatprep.mubr.bf16.mxu1 %v2618_v45  ;;  %v2680_v44 = vld [vmem:[%s2783_s24 + $0x3ac] ss:$16 sps:$4 sm:$0xff]  }
  0xe2   : > { %1733 = vmatprep.mubr.bf16.mxu0 %v2620_v46 }
  0xe8   : > { %1445 = vmatmul.mubr.bf16.gmra.mrb[76].mxu1 %v2622_v47 }
  0xe9   : > { %1734 = vmatmul.mubr.bf16.gmra.mrb[76].mxu0 %v2623_v48  ;;  %1452 = vmatprep.mubr.bf16.mxu1 %v2624_v49 }
  0xea   : > { %1741 = vmatprep.mubr.bf16.mxu0 %v2626_v50 }
  0xf0   : > { %1453 = vmatmul.mubr.bf16.gmra.mrb[80].mxu1 %v2628_v51 }
  0xf1   : > { %1742 = vmatmul.mubr.bf16.gmra.mrb[80].mxu0 %v2629_v52  ;;  %1460 = vmatprep.mubr.bf16.mxu1 %v2630_v53 }
  0xf2   : > { %1749 = vmatprep.mubr.bf16.mxu0 %v2632_v54 }
  0xf8   : > { %1461 = vmatmul.mubr.bf16.gmra.mrb[84].mxu1 %v2634_v55 }
  0xf9   : > { %1750 = vmatmul.mubr.bf16.gmra.mrb[84].mxu0 %v2635_v56  ;;  %1468 = vmatprep.mubr.bf16.mxu1 %v2636_v57  ;;  %v2682_v56 = vld [vmem:[%s2783_s24 + $0x3a0] ss:$16 sps:$4 sm:$0xff]  }
  0xfa   : > { %1757 = vmatprep.mubr.bf16.mxu0 %v2638_v58 }
 0x100   : > { %1469 = vmatmul.mubr.bf16.gmra.mrb[88].mxu1 %v2640_v59 }
 0x101   : > { %1758 = vmatmul.mubr.bf16.gmra.mrb[88].mxu0 %v2641_v60  ;;  %1476 = vmatprep.mubr.bf16.mxu1 %v2642_v61  ;;  %v2683_v60 = vld [vmem:[%s2783_s24 + $0x3a8] ss:$16 sps:$4 sm:$0xff]   ;;  %v2684_v61 = vld [vmem:[%s2783_s24 + $0x3c4] ss:$16 sps:$4 sm:$0xff]  }
 0x102   : > { %1765 = vmatprep.mubr.bf16.mxu0 %v2644_v62 }
 0x108   : > { %1477 = vmatmul.mubr.bf16.gmra.mrb[92].mxu1 %v2646_v63 }
 0x109   : > { %1766 = vmatmul.mubr.bf16.gmra.mrb[92].mxu0 %v2647_v0  ;;  %1484 = vmatprep.mubr.bf16.mxu1 %v2648_v1  ;;  %v2686_v0 = vld [vmem:[%s2783_s24 + $0x3cc] ss:$16 sps:$4 sm:$0xff]  }
 0x10a   : > { %1773 = vmatprep.mubr.bf16.mxu0 %v2650_v2 }
 0x110   : > { %1485 = vmatmul.mubr.bf16.gmra.mrb[96].mxu1 %v2652_v3 }
 0x111   : > { %1774 = vmatmul.mubr.bf16.gmra.mrb[96].mxu0 %v2653_v4  ;;  %1492 = vmatprep.mubr.bf16.mxu1 %v2654_v5 }
 0x112   : > { %1781 = vmatprep.mubr.bf16.mxu0 %v2656_v6 }
 0x118   : > { %1493 = vmatmul.mubr.bf16.gmra.mrb[100].mxu1 %v2658_v7 }
 0x119   : > { %1782 = vmatmul.mubr.bf16.gmra.mrb[100].mxu0 %v2659_v8  ;;  %1500 = vmatprep.mubr.bf16.mxu1 %v2660_v9 }
 0x11a   : > { %1789 = vmatprep.mubr.bf16.mxu0 %v2662_v10 }
 0x120   : > { %1501 = vmatmul.mubr.bf16.gmra.mrb[104].mxu1 %v2664_v11 }
 0x121   : > { %1790 = vmatmul.mubr.bf16.gmra.mrb[104].mxu0 %v2665_v12  ;;  %1508 = vmatprep.mubr.bf16.mxu1 %v2666_v13  ;;  %v2688_v12 = vld [vmem:[%s2783_s24 + $0x3c0] ss:$16 sps:$4 sm:$0xff]  }
 0x122   : > { %1797 = vmatprep.mubr.bf16.mxu0 %v2668_v14 }
 0x123   : > { %v1294_v15 = vpop.f32.mrb[0].mxu1 }
 0x124   : > { %v1583_v16 = vpop.f32.mrb[0].mxu0  ;;  %v1296_v17 = vpop.f32.mrb[1].mxu1 }
 0x125   : > { %v1584_v19 = vadd.f32 %v1583_v16, %v1294_v15  ;;  %v1585_v20 = vpop.f32.mrb[1].mxu0  ;;  %v1297_v21 = vpop.f32.mrb[2].mxu1  ;;  %v2689_v16 = vld [vmem:[%s2783_s24 + $0x3c8] ss:$16 sps:$4 sm:$0xff]   ;;  %v2690_v17 = vld [vmem:[%s2783_s24 + $0x3e4] ss:$16 sps:$4 sm:$0xff]  }
 0x126   : > { %v1586_v24 = vpop.f32.mrb[2].mxu0  ;;  %v1299_v25 = vpop.f32.mrb[3].mxu1  ;;  %v2692_v20 = vld [vmem:[%s2783_s24 + $0x3ec] ss:$16 sps:$4 sm:$0xff]  }
 0x127   : > { %1838 = vst [vmem:[%s2930_s28] sm:$0xff] %v1584_v19  ;;  %v1587_v27 = vadd.f32 %v1586_v24, %v1297_v21  ;;  %v1588_v28 = vpop.f32.mrb[3].mxu0  ;;  %v1972_v29 = vmul.f32 %v1584_v19, %v1584_v19 }
 0x128   : > { %1509 = vmatmul.mubr.bf16.gmra.mrb[108].mxu1 %v2670_v18 }
 0x129   : > { %1839 = vst [vmem:[%s2930_s28 + $0x8] sm:$0xff] %v1587_v27  ;;  %v1902_v30 = vadd.f32 %v1587_v27, %v1584_v19  ;;  %v1973_v31 = vmul.f32 %v1587_v27, %v1587_v27  ;;  %1798 = vmatmul.mubr.bf16.gmra.mrb[108].mxu0 %v2671_v22  ;;  %1516 = vmatprep.mubr.bf16.mxu1 %v2672_v23 }
 0x12a   : > { %1805 = vmatprep.mubr.bf16.mxu0 %v2674_v26 }
 0x12b   : > { %v2036_v32 = vadd.f32 %v1973_v31, %v1972_v29  ;;  %v1302_v33 = vpop.f32.mrb[4].mxu1 }
 0x12c   : > { %v1591_v34 = vpop.f32.mrb[4].mxu0  ;;  %v1304_v35 = vpop.f32.mrb[5].mxu1 }
 0x12d   : > { %v1592_v37 = vadd.f32 %v1591_v34, %v1302_v33  ;;  %v1593_v38 = vpop.f32.mrb[5].mxu0  ;;  %v1305_v39 = vpop.f32.mrb[6].mxu1 }
 0x12e   : > { %v1594_v42 = vpop.f32.mrb[6].mxu0  ;;  %v1307_v43 = vpop.f32.mrb[7].mxu1 }
 0x12f   : > { %1840 = vst [vmem:[%s2930_s28 + $0x10] sm:$0xff] %v1592_v37  ;;  %v1903_v45 = vadd.f32 %v1902_v30, %v1592_v37  ;;  %v1974_v46 = vmul.f32 %v1592_v37, %v1592_v37  ;;  %v1595_v47 = vadd.f32 %v1594_v42, %v1305_v39  ;;  %v1596_v48 = vpop.f32.mrb[7].mxu0 }
 0x130   : > { %1517 = vmatmul.mubr.bf16.gmra.mrb[112].mxu1 %v2676_v36  ;;  %v2695_v36 = vld [vmem:[%s2783_s24 + $0x3e8] ss:$16 sps:$4 sm:$0xff]  }
 0x131   : > { %v2037_v49 = vadd.f32 %v2036_v32, %v1974_v46  ;;  %1841 = vst [vmem:[%s2930_s28 + $0x18] sm:$0xff] %v1595_v47  ;;  %v1904_v50 = vadd.f32 %v1903_v45, %v1595_v47  ;;  %v1975_v51 = vmul.f32 %v1595_v47, %v1595_v47  ;;  %1806 = vmatmul.mubr.bf16.gmra.mrb[112].mxu0 %v2677_v40  ;;  %v2694_v32 = vld [vmem:[%s2783_s24 + $0x3e0] ss:$16 sps:$4 sm:$0xff]  }
 0x132   : > { %1524 = vmatprep.mubr.bf16.mxu1 %v2678_v41  ;;  %1813 = vmatprep.mubr.bf16.mxu0 %v2680_v44 }
 0x133   : > { %v2038_v52 = vadd.f32 %v2037_v49, %v1975_v51  ;;  %v1310_v53 = vpop.f32.mrb[8].mxu1 }
 0x134   : > { %v1599_v54 = vpop.f32.mrb[8].mxu0  ;;  %v1312_v55 = vpop.f32.mrb[9].mxu1 }
 0x135   : > { %v1600_v57 = vadd.f32 %v1599_v54, %v1310_v53  ;;  %v1601_v58 = vpop.f32.mrb[9].mxu0  ;;  %v1313_v59 = vpop.f32.mrb[10].mxu1 }
 0x136   : > { %v1602_v62 = vpop.f32.mrb[10].mxu0  ;;  %v1315_v63 = vpop.f32.mrb[11].mxu1 }
 0x137   : > { %1842 = vst [vmem:[%s2930_s28 + $0x20] sm:$0xff] %v1600_v57  ;;  %v1905_v1 = vadd.f32 %v1904_v50, %v1600_v57  ;;  %v1976_v2 = vmul.f32 %v1600_v57, %v1600_v57  ;;  %v1603_v3 = vadd.f32 %v1602_v62, %v1313_v59  ;;  %v1604_v4 = vpop.f32.mrb[11].mxu0 }
 0x138   : > { %1525 = vmatmul.mubr.bf16.gmra.mrb[116].mxu1 %v2682_v56 }
 0x139   : > { %v2039_v5 = vadd.f32 %v2038_v52, %v1976_v2  ;;  %1843 = vst [vmem:[%s2930_s28 + $0x28] sm:$0xff] %v1603_v3  ;;  %v1906_v6 = vadd.f32 %v1905_v1, %v1603_v3  ;;  %v1977_v7 = vmul.f32 %v1603_v3, %v1603_v3  ;;  %1814 = vmatmul.mubr.bf16.gmra.mrb[116].mxu0 %v2683_v60 }
 0x13a   : > { %1532 = vmatprep.mubr.bf16.mxu1 %v2684_v61  ;;  %1821 = vmatprep.mubr.bf16.mxu0 %v2686_v0 }
 0x13b   : > { %v2040_v8 = vadd.f32 %v2039_v5, %v1977_v7  ;;  %v1318_v9 = vpop.f32.mrb[12].mxu1 }
 0x13c   : > { %v1607_v10 = vpop.f32.mrb[12].mxu0  ;;  %v1320_v11 = vpop.f32.mrb[13].mxu1 }
 0x13d   : > { %v1608_v13 = vadd.f32 %v1607_v10, %v1318_v9  ;;  %v1609_v14 = vpop.f32.mrb[13].mxu0  ;;  %v1321_v15 = vpop.f32.mrb[14].mxu1 }
 0x13e   : > { %v1610_v18 = vpop.f32.mrb[14].mxu0  ;;  %v1323_v19 = vpop.f32.mrb[15].mxu1 }
 0x13f   : > { %1844 = vst [vmem:[%s2930_s28 + $0x30] sm:$0xff] %v1608_v13  ;;  %v1907_v21 = vadd.f32 %v1906_v6, %v1608_v13  ;;  %v1978_v22 = vmul.f32 %v1608_v13, %v1608_v13  ;;  %v1611_v23 = vadd.f32 %v1610_v18, %v1321_v15  ;;  %v1612_v24 = vpop.f32.mrb[15].mxu0 }
 0x140   : > { %1533 = vmatmul.mubr.bf16.gmra.mrb[120].mxu1 %v2688_v12 }
 0x141   : > { %v2041_v25 = vadd.f32 %v2040_v8, %v1978_v22  ;;  %1845 = vst [vmem:[%s2930_s28 + $0x38] sm:$0xff] %v1611_v23  ;;  %v1908_v26 = vadd.f32 %v1907_v21, %v1611_v23  ;;  %v1979_v27 = vmul.f32 %v1611_v23, %v1611_v23  ;;  %1822 = vmatmul.mubr.bf16.gmra.mrb[120].mxu0 %v2689_v16 }
 0x142   : > { %1540 = vmatprep.mubr.bf16.mxu1 %v2690_v17  ;;  %1829 = vmatprep.mubr.bf16.mxu0 %v2692_v20 }
 0x143   : > { %v2042_v28 = vadd.f32 %v2041_v25, %v1979_v27  ;;  %v1326_v29 = vpop.f32.mrb[16].mxu1 }
 0x144   : > { %v1615_v30 = vpop.f32.mrb[16].mxu0  ;;  %v1328_v31 = vpop.f32.mrb[17].mxu1 }
 0x145   : > { %v1616_v33 = vadd.f32 %v1615_v30, %v1326_v29  ;;  %v1617_v34 = vpop.f32.mrb[17].mxu0  ;;  %v1329_v35 = vpop.f32.mrb[18].mxu1 }
 0x146   : > { %v1618_v37 = vpop.f32.mrb[18].mxu0  ;;  %v1331_v38 = vpop.f32.mrb[19].mxu1 }
 0x147   : > { %1846 = vst [vmem:[%s2930_s28 + $0x40] sm:$0xff] %v1616_v33  ;;  %v1909_v39 = vadd.f32 %v1908_v26, %v1616_v33  ;;  %v1980_v40 = vmul.f32 %v1616_v33, %v1616_v33  ;;  %v1619_v41 = vadd.f32 %v1618_v37, %v1329_v35  ;;  %v1620_v42 = vpop.f32.mrb[19].mxu0 }
 0x148   : > { %1541 = vmatmul.mubr.bf16.gmra.mrb[124].mxu1 %v2694_v32 }
 0x149   : > { %v2043_v43 = vadd.f32 %v2042_v28, %v1980_v40  ;;  %1847 = vst [vmem:[%s2930_s28 + $0x48] sm:$0xff] %v1619_v41  ;;  %v1910_v44 = vadd.f32 %v1909_v39, %v1619_v41  ;;  %v1981_v45 = vmul.f32 %v1619_v41, %v1619_v41  ;;  %1830 = vmatmul.mubr.bf16.gmra.mrb[124].mxu0 %v2695_v36 }
 0x14b   : > { %v2044_v46 = vadd.f32 %v2043_v43, %v1981_v45  ;;  %v1334_v47 = vpop.f32.mrb[20].mxu1 }
 0x14c   : > { %v1623_v48 = vpop.f32.mrb[20].mxu0  ;;  %v1336_v49 = vpop.f32.mrb[21].mxu1 }
 0x14d   : > { %v1624_v50 = vadd.f32 %v1623_v48, %v1334_v47  ;;  %v1625_v51 = vpop.f32.mrb[21].mxu0  ;;  %v1337_v52 = vpop.f32.mrb[22].mxu1 }
 0x14e   : > { %v1626_v53 = vpop.f32.mrb[22].mxu0  ;;  %v1339_v54 = vpop.f32.mrb[23].mxu1 }
 0x14f   : > { %1848 = vst [vmem:[%s2930_s28 + $0x50] sm:$0xff] %v1624_v50  ;;  %v1911_v55 = vadd.f32 %v1910_v44, %v1624_v50  ;;  %v1982_v56 = vmul.f32 %v1624_v50, %v1624_v50  ;;  %v1627_v57 = vadd.f32 %v1626_v53, %v1337_v52  ;;  %v1628_v58 = vpop.f32.mrb[23].mxu0 }
 0x151   : > { %v2045_v59 = vadd.f32 %v2044_v46, %v1982_v56  ;;  %1849 = vst [vmem:[%s2930_s28 + $0x58] sm:$0xff] %v1627_v57  ;;  %v1912_v60 = vadd.f32 %v1911_v55, %v1627_v57  ;;  %v1983_v61 = vmul.f32 %v1627_v57, %v1627_v57 }
 0x153   : > { %v2046_v62 = vadd.f32 %v2045_v59, %v1983_v61  ;;  %v1342_v63 = vpop.f32.mrb[24].mxu1 }
 0x154   : > { %v1631_v0 = vpop.f32.mrb[24].mxu0  ;;  %v1344_v1 = vpop.f32.mrb[25].mxu1 }
 0x155   : > { %v1632_v2 = vadd.f32 %v1631_v0, %v1342_v63  ;;  %v1633_v3 = vpop.f32.mrb[25].mxu0  ;;  %v1345_v4 = vpop.f32.mrb[26].mxu1 }
 0x156   : > { %v1634_v5 = vpop.f32.mrb[26].mxu0  ;;  %v1347_v6 = vpop.f32.mrb[27].mxu1 }
 0x157   : > { %1850 = vst [vmem:[%s2930_s28 + $0x60] sm:$0xff] %v1632_v2  ;;  %v1913_v7 = vadd.f32 %v1912_v60, %v1632_v2  ;;  %v1984_v8 = vmul.f32 %v1632_v2, %v1632_v2  ;;  %v1635_v9 = vadd.f32 %v1634_v5, %v1345_v4  ;;  %v1636_v10 = vpop.f32.mrb[27].mxu0 }
 0x159   : > { %v2047_v11 = vadd.f32 %v2046_v62, %v1984_v8  ;;  %1851 = vst [vmem:[%s2930_s28 + $0x68] sm:$0xff] %v1635_v9  ;;  %v1914_v12 = vadd.f32 %v1913_v7, %v1635_v9  ;;  %v1985_v13 = vmul.f32 %v1635_v9, %v1635_v9 }
 0x15b   : > { %v2048_v14 = vadd.f32 %v2047_v11, %v1985_v13  ;;  %v1350_v15 = vpop.f32.mrb[28].mxu1 }
 0x15c   : > { %v1639_v16 = vpop.f32.mrb[28].mxu0  ;;  %v1352_v17 = vpop.f32.mrb[29].mxu1 }
 0x15d   : > { %v1640_v18 = vadd.f32 %v1639_v16, %v1350_v15  ;;  %v1641_v19 = vpop.f32.mrb[29].mxu0  ;;  %v1353_v20 = vpop.f32.mrb[30].mxu1 }
 0x15e   : > { %v1642_v21 = vpop.f32.mrb[30].mxu0  ;;  %v1355_v22 = vpop.f32.mrb[31].mxu1 }
 0x15f   : > { %1852 = vst [vmem:[%s2930_s28 + $0x70] sm:$0xff] %v1640_v18  ;;  %v1915_v23 = vadd.f32 %v1914_v12, %v1640_v18  ;;  %v1986_v24 = vmul.f32 %v1640_v18, %v1640_v18  ;;  %v1643_v25 = vadd.f32 %v1642_v21, %v1353_v20  ;;  %v1644_v26 = vpop.f32.mrb[31].mxu0 }
 0x161   : > { %v2049_v27 = vadd.f32 %v2048_v14, %v1986_v24  ;;  %1853 = vst [vmem:[%s2930_s28 + $0x78] sm:$0xff] %v1643_v25  ;;  %v1916_v28 = vadd.f32 %v1915_v23, %v1643_v25  ;;  %v1987_v29 = vmul.f32 %v1643_v25, %v1643_v25 }
 0x163   : > { %v2050_v30 = vadd.f32 %v2049_v27, %v1987_v29  ;;  %v1358_v31 = vpop.f32.mrb[32].mxu1 }
 0x164   : > { %v1647_v32 = vpop.f32.mrb[32].mxu0  ;;  %v1360_v33 = vpop.f32.mrb[33].mxu1 }
 0x165   : > { %v1648_v34 = vadd.f32 %v1647_v32, %v1358_v31  ;;  %v1649_v35 = vpop.f32.mrb[33].mxu0  ;;  %v1361_v36 = vpop.f32.mrb[34].mxu1 }
 0x166   : > { %v1650_v37 = vpop.f32.mrb[34].mxu0  ;;  %v1363_v38 = vpop.f32.mrb[35].mxu1 }
 0x167   : > { %1854 = vst [vmem:[%s2930_s28 + $0x80] sm:$0xff] %v1648_v34  ;;  %v1917_v39 = vadd.f32 %v1916_v28, %v1648_v34  ;;  %v1988_v40 = vmul.f32 %v1648_v34, %v1648_v34  ;;  %v1651_v41 = vadd.f32 %v1650_v37, %v1361_v36  ;;  %v1652_v42 = vpop.f32.mrb[35].mxu0 }
 0x169   : > { %v2051_v43 = vadd.f32 %v2050_v30, %v1988_v40  ;;  %1855 = vst [vmem:[%s2930_s28 + $0x88] sm:$0xff] %v1651_v41  ;;  %v1918_v44 = vadd.f32 %v1917_v39, %v1651_v41  ;;  %v1989_v45 = vmul.f32 %v1651_v41, %v1651_v41 }
 0x16b   : > { %v2052_v46 = vadd.f32 %v2051_v43, %v1989_v45  ;;  %v1366_v47 = vpop.f32.mrb[36].mxu1 }
 0x16c   : > { %v1655_v48 = vpop.f32.mrb[36].mxu0  ;;  %v1368_v49 = vpop.f32.mrb[37].mxu1 }
 0x16d   : > { %v1656_v50 = vadd.f32 %v1655_v48, %v1366_v47  ;;  %v1657_v51 = vpop.f32.mrb[37].mxu0  ;;  %v1369_v52 = vpop.f32.mrb[38].mxu1 }
 0x16e   : > { %v1658_v53 = vpop.f32.mrb[38].mxu0  ;;  %v1371_v54 = vpop.f32.mrb[39].mxu1 }
 0x16f   : > { %1856 = vst [vmem:[%s2930_s28 + $0x90] sm:$0xff] %v1656_v50  ;;  %v1919_v55 = vadd.f32 %v1918_v44, %v1656_v50  ;;  %v1990_v56 = vmul.f32 %v1656_v50, %v1656_v50  ;;  %v1659_v57 = vadd.f32 %v1658_v53, %v1369_v52  ;;  %v1660_v58 = vpop.f32.mrb[39].mxu0 }
 0x171   : > { %v2053_v59 = vadd.f32 %v2052_v46, %v1990_v56  ;;  %1857 = vst [vmem:[%s2930_s28 + $0x98] sm:$0xff] %v1659_v57  ;;  %v1920_v60 = vadd.f32 %v1919_v55, %v1659_v57  ;;  %v1991_v61 = vmul.f32 %v1659_v57, %v1659_v57 }
 0x173   : > { %v2054_v62 = vadd.f32 %v2053_v59, %v1991_v61  ;;  %v1374_v63 = vpop.f32.mrb[40].mxu1 }
 0x174   : > { %v1663_v0 = vpop.f32.mrb[40].mxu0  ;;  %v1376_v1 = vpop.f32.mrb[41].mxu1 }
 0x175   : > { %v1664_v2 = vadd.f32 %v1663_v0, %v1374_v63  ;;  %v1665_v3 = vpop.f32.mrb[41].mxu0  ;;  %v1377_v4 = vpop.f32.mrb[42].mxu1 }
 0x176   : > { %v1666_v5 = vpop.f32.mrb[42].mxu0  ;;  %v1379_v6 = vpop.f32.mrb[43].mxu1 }
 0x177   : > { %1858 = vst [vmem:[%s2930_s28 + $0xa0] sm:$0xff] %v1664_v2  ;;  %v1921_v7 = vadd.f32 %v1920_v60, %v1664_v2  ;;  %v1992_v8 = vmul.f32 %v1664_v2, %v1664_v2  ;;  %v1667_v9 = vadd.f32 %v1666_v5, %v1377_v4  ;;  %v1668_v10 = vpop.f32.mrb[43].mxu0 }
 0x179   : > { %v2055_v11 = vadd.f32 %v2054_v62, %v1992_v8  ;;  %1859 = vst [vmem:[%s2930_s28 + $0xa8] sm:$0xff] %v1667_v9  ;;  %v1922_v12 = vadd.f32 %v1921_v7, %v1667_v9  ;;  %v1993_v13 = vmul.f32 %v1667_v9, %v1667_v9 }
 0x17b   : > { %v2056_v14 = vadd.f32 %v2055_v11, %v1993_v13  ;;  %v1382_v15 = vpop.f32.mrb[44].mxu1 }
 0x17c   : > { %v1671_v16 = vpop.f32.mrb[44].mxu0  ;;  %v1384_v17 = vpop.f32.mrb[45].mxu1 }
 0x17d   : > { %v1672_v18 = vadd.f32 %v1671_v16, %v1382_v15  ;;  %v1673_v19 = vpop.f32.mrb[45].mxu0  ;;  %v1385_v20 = vpop.f32.mrb[46].mxu1 }
 0x17e   : > { %v1674_v21 = vpop.f32.mrb[46].mxu0  ;;  %v1387_v22 = vpop.f32.mrb[47].mxu1 }
 0x17f   : > { %1860 = vst [vmem:[%s2930_s28 + $0xb0] sm:$0xff] %v1672_v18  ;;  %v1923_v23 = vadd.f32 %v1922_v12, %v1672_v18  ;;  %v1994_v24 = vmul.f32 %v1672_v18, %v1672_v18  ;;  %v1675_v25 = vadd.f32 %v1674_v21, %v1385_v20  ;;  %v1676_v26 = vpop.f32.mrb[47].mxu0 }
 0x181   : > { %v2057_v27 = vadd.f32 %v2056_v14, %v1994_v24  ;;  %1861 = vst [vmem:[%s2930_s28 + $0xb8] sm:$0xff] %v1675_v25  ;;  %v1924_v28 = vadd.f32 %v1923_v23, %v1675_v25  ;;  %v1995_v29 = vmul.f32 %v1675_v25, %v1675_v25 }
 0x183   : > { %v2058_v30 = vadd.f32 %v2057_v27, %v1995_v29  ;;  %v1390_v31 = vpop.f32.mrb[48].mxu1 }
 0x184   : > { %v1679_v32 = vpop.f32.mrb[48].mxu0  ;;  %v1392_v33 = vpop.f32.mrb[49].mxu1 }
 0x185   : > { %v1680_v34 = vadd.f32 %v1679_v32, %v1390_v31  ;;  %v1681_v35 = vpop.f32.mrb[49].mxu0  ;;  %v1393_v36 = vpop.f32.mrb[50].mxu1 }
 0x186   : > { %v1682_v37 = vpop.f32.mrb[50].mxu0  ;;  %v1395_v38 = vpop.f32.mrb[51].mxu1 }
 0x187   : > { %1862 = vst [vmem:[%s2930_s28 + $0xc0] sm:$0xff] %v1680_v34  ;;  %v1925_v39 = vadd.f32 %v1924_v28, %v1680_v34  ;;  %v1996_v40 = vmul.f32 %v1680_v34, %v1680_v34  ;;  %v1683_v41 = vadd.f32 %v1682_v37, %v1393_v36  ;;  %v1684_v42 = vpop.f32.mrb[51].mxu0 }
 0x189   : > { %v2059_v43 = vadd.f32 %v2058_v30, %v1996_v40  ;;  %1863 = vst [vmem:[%s2930_s28 + $0xc8] sm:$0xff] %v1683_v41  ;;  %v1926_v44 = vadd.f32 %v1925_v39, %v1683_v41  ;;  %v1997_v45 = vmul.f32 %v1683_v41, %v1683_v41 }
 0x18b   : > { %v2060_v46 = vadd.f32 %v2059_v43, %v1997_v45  ;;  %v1398_v47 = vpop.f32.mrb[52].mxu1 }
 0x18c   : > { %v1687_v48 = vpop.f32.mrb[52].mxu0  ;;  %v1400_v49 = vpop.f32.mrb[53].mxu1 }
 0x18d   : > { %v1688_v50 = vadd.f32 %v1687_v48, %v1398_v47  ;;  %v1689_v51 = vpop.f32.mrb[53].mxu0  ;;  %v1401_v52 = vpop.f32.mrb[54].mxu1 }
 0x18e   : > { %v1690_v53 = vpop.f32.mrb[54].mxu0  ;;  %v1403_v54 = vpop.f32.mrb[55].mxu1 }
 0x18f   : > { %1864 = vst [vmem:[%s2930_s28 + $0xd0] sm:$0xff] %v1688_v50  ;;  %v1927_v55 = vadd.f32 %v1926_v44, %v1688_v50  ;;  %v1998_v56 = vmul.f32 %v1688_v50, %v1688_v50  ;;  %v1691_v57 = vadd.f32 %v1690_v53, %v1401_v52  ;;  %v1692_v58 = vpop.f32.mrb[55].mxu0 }
 0x191   : > { %v2061_v59 = vadd.f32 %v2060_v46, %v1998_v56  ;;  %1865 = vst [vmem:[%s2930_s28 + $0xd8] sm:$0xff] %v1691_v57  ;;  %v1928_v60 = vadd.f32 %v1927_v55, %v1691_v57  ;;  %v1999_v61 = vmul.f32 %v1691_v57, %v1691_v57 }
 0x193   : > { %v2062_v62 = vadd.f32 %v2061_v59, %v1999_v61  ;;  %v1406_v63 = vpop.f32.mrb[56].mxu1 }
 0x194   : > { %v1695_v0 = vpop.f32.mrb[56].mxu0  ;;  %v1408_v1 = vpop.f32.mrb[57].mxu1 }
 0x195   : > { %v1696_v2 = vadd.f32 %v1695_v0, %v1406_v63  ;;  %v1697_v3 = vpop.f32.mrb[57].mxu0  ;;  %v1409_v4 = vpop.f32.mrb[58].mxu1 }
 0x196   : > { %v1698_v5 = vpop.f32.mrb[58].mxu0  ;;  %v1411_v6 = vpop.f32.mrb[59].mxu1 }
 0x197   : > { %1866 = vst [vmem:[%s2930_s28 + $0xe0] sm:$0xff] %v1696_v2  ;;  %v1929_v7 = vadd.f32 %v1928_v60, %v1696_v2  ;;  %v2000_v8 = vmul.f32 %v1696_v2, %v1696_v2  ;;  %v1699_v9 = vadd.f32 %v1698_v5, %v1409_v4  ;;  %v1700_v10 = vpop.f32.mrb[59].mxu0 }
 0x199   : > { %v2063_v11 = vadd.f32 %v2062_v62, %v2000_v8  ;;  %1867 = vst [vmem:[%s2930_s28 + $0xe8] sm:$0xff] %v1699_v9  ;;  %v1930_v12 = vadd.f32 %v1929_v7, %v1699_v9  ;;  %v2001_v13 = vmul.f32 %v1699_v9, %v1699_v9 }
 0x19b   : > { %v2064_v14 = vadd.f32 %v2063_v11, %v2001_v13  ;;  %v1414_v15 = vpop.f32.mrb[60].mxu1 }
 0x19c   : > { %v1703_v16 = vpop.f32.mrb[60].mxu0  ;;  %v1416_v17 = vpop.f32.mrb[61].mxu1 }
 0x19d   : > { %v1704_v18 = vadd.f32 %v1703_v16, %v1414_v15  ;;  %v1705_v19 = vpop.f32.mrb[61].mxu0  ;;  %v1417_v20 = vpop.f32.mrb[62].mxu1 }
 0x19e   : > { %v1706_v21 = vpop.f32.mrb[62].mxu0  ;;  %v1419_v22 = vpop.f32.mrb[63].mxu1 }
 0x19f   : > { %1868 = vst [vmem:[%s2930_s28 + $0xf0] sm:$0xff] %v1704_v18  ;;  %v1931_v23 = vadd.f32 %v1930_v12, %v1704_v18  ;;  %v2002_v24 = vmul.f32 %v1704_v18, %v1704_v18  ;;  %v1707_v25 = vadd.f32 %v1706_v21, %v1417_v20  ;;  %v1708_v26 = vpop.f32.mrb[63].mxu0 }
 0x1a1   : > { %v2065_v27 = vadd.f32 %v2064_v14, %v2002_v24  ;;  %1869 = vst [vmem:[%s2930_s28 + $0xf8] sm:$0xff] %v1707_v25  ;;  %v1932_v28 = vadd.f32 %v1931_v23, %v1707_v25  ;;  %v2003_v29 = vmul.f32 %v1707_v25, %v1707_v25 }
 0x1a3   : > { %v2066_v30 = vadd.f32 %v2065_v27, %v2003_v29  ;;  %v1422_v31 = vpop.f32.mrb[64].mxu1 }
 0x1a4   : > { %v1711_v32 = vpop.f32.mrb[64].mxu0  ;;  %v1424_v33 = vpop.f32.mrb[65].mxu1 }
 0x1a5   : > { %v1712_v34 = vadd.f32 %v1711_v32, %v1422_v31  ;;  %v1713_v35 = vpop.f32.mrb[65].mxu0  ;;  %v1425_v36 = vpop.f32.mrb[66].mxu1 }
 0x1a6   : > { %v1714_v37 = vpop.f32.mrb[66].mxu0  ;;  %v1427_v38 = vpop.f32.mrb[67].mxu1 }
 0x1a7   : > { %1870 = vst [vmem:[%s2930_s28 + $0x100] sm:$0xff] %v1712_v34  ;;  %v1933_v39 = vadd.f32 %v1932_v28, %v1712_v34  ;;  %v2004_v40 = vmul.f32 %v1712_v34, %v1712_v34  ;;  %v1715_v41 = vadd.f32 %v1714_v37, %v1425_v36  ;;  %v1716_v42 = vpop.f32.mrb[67].mxu0 }
 0x1a9   : > { %v2067_v43 = vadd.f32 %v2066_v30, %v2004_v40  ;;  %1871 = vst [vmem:[%s2930_s28 + $0x108] sm:$0xff] %v1715_v41  ;;  %v1934_v44 = vadd.f32 %v1933_v39, %v1715_v41  ;;  %v2005_v45 = vmul.f32 %v1715_v41, %v1715_v41 }
 0x1ab   : > { %v2068_v46 = vadd.f32 %v2067_v43, %v2005_v45  ;;  %v1430_v47 = vpop.f32.mrb[68].mxu1 }
 0x1ac   : > { %v1719_v48 = vpop.f32.mrb[68].mxu0  ;;  %v1432_v49 = vpop.f32.mrb[69].mxu1 }
 0x1ad   : > { %v1720_v50 = vadd.f32 %v1719_v48, %v1430_v47  ;;  %v1721_v51 = vpop.f32.mrb[69].mxu0  ;;  %v1433_v52 = vpop.f32.mrb[70].mxu1 }
 0x1ae   : > { %v1722_v53 = vpop.f32.mrb[70].mxu0  ;;  %v1435_v54 = vpop.f32.mrb[71].mxu1 }
 0x1af   : > { %1872 = vst [vmem:[%s2930_s28 + $0x110] sm:$0xff] %v1720_v50  ;;  %v1935_v55 = vadd.f32 %v1934_v44, %v1720_v50  ;;  %v2006_v56 = vmul.f32 %v1720_v50, %v1720_v50  ;;  %v1723_v57 = vadd.f32 %v1722_v53, %v1433_v52  ;;  %v1724_v58 = vpop.f32.mrb[71].mxu0 }
 0x1b1   : > { %v2069_v59 = vadd.f32 %v2068_v46, %v2006_v56  ;;  %1873 = vst [vmem:[%s2930_s28 + $0x118] sm:$0xff] %v1723_v57  ;;  %v1936_v60 = vadd.f32 %v1935_v55, %v1723_v57  ;;  %v2007_v61 = vmul.f32 %v1723_v57, %v1723_v57 }
 0x1b3   : > { %v2070_v62 = vadd.f32 %v2069_v59, %v2007_v61  ;;  %v1438_v63 = vpop.f32.mrb[72].mxu1 }
 0x1b4   : > { %v1727_v0 = vpop.f32.mrb[72].mxu0  ;;  %v1440_v1 = vpop.f32.mrb[73].mxu1 }
 0x1b5   : > { %v1728_v2 = vadd.f32 %v1727_v0, %v1438_v63  ;;  %v1729_v3 = vpop.f32.mrb[73].mxu0  ;;  %v1441_v4 = vpop.f32.mrb[74].mxu1 }
 0x1b6   : > { %v1730_v5 = vpop.f32.mrb[74].mxu0  ;;  %v1443_v6 = vpop.f32.mrb[75].mxu1 }
 0x1b7   : > { %1874 = vst [vmem:[%s2930_s28 + $0x120] sm:$0xff] %v1728_v2  ;;  %v1937_v7 = vadd.f32 %v1936_v60, %v1728_v2  ;;  %v2008_v8 = vmul.f32 %v1728_v2, %v1728_v2  ;;  %v1731_v9 = vadd.f32 %v1730_v5, %v1441_v4  ;;  %v1732_v10 = vpop.f32.mrb[75].mxu0 }
 0x1b9   : > { %v2071_v11 = vadd.f32 %v2070_v62, %v2008_v8  ;;  %1875 = vst [vmem:[%s2930_s28 + $0x128] sm:$0xff] %v1731_v9  ;;  %v1938_v12 = vadd.f32 %v1937_v7, %v1731_v9  ;;  %v2009_v13 = vmul.f32 %v1731_v9, %v1731_v9 }
 0x1bb   : > { %v2072_v14 = vadd.f32 %v2071_v11, %v2009_v13  ;;  %v1446_v15 = vpop.f32.mrb[76].mxu1 }
 0x1bc   : > { %v1735_v16 = vpop.f32.mrb[76].mxu0  ;;  %v1448_v17 = vpop.f32.mrb[77].mxu1 }
 0x1bd   : > { %v1736_v18 = vadd.f32 %v1735_v16, %v1446_v15  ;;  %v1737_v19 = vpop.f32.mrb[77].mxu0  ;;  %v1449_v20 = vpop.f32.mrb[78].mxu1 }
 0x1be   : > { %v1738_v21 = vpop.f32.mrb[78].mxu0  ;;  %v1451_v22 = vpop.f32.mrb[79].mxu1 }
 0x1bf   : > { %1876 = vst [vmem:[%s2930_s28 + $0x130] sm:$0xff] %v1736_v18  ;;  %v1939_v23 = vadd.f32 %v1938_v12, %v1736_v18  ;;  %v2010_v24 = vmul.f32 %v1736_v18, %v1736_v18  ;;  %v1739_v25 = vadd.f32 %v1738_v21, %v1449_v20  ;;  %v1740_v26 = vpop.f32.mrb[79].mxu0 }
 0x1c1   : > { %v2073_v27 = vadd.f32 %v2072_v14, %v2010_v24  ;;  %1877 = vst [vmem:[%s2930_s28 + $0x138] sm:$0xff] %v1739_v25  ;;  %v1940_v28 = vadd.f32 %v1939_v23, %v1739_v25  ;;  %v2011_v29 = vmul.f32 %v1739_v25, %v1739_v25 }
 0x1c3   : > { %v2074_v30 = vadd.f32 %v2073_v27, %v2011_v29  ;;  %v1454_v31 = vpop.f32.mrb[80].mxu1 }
 0x1c4   : > { %v1743_v32 = vpop.f32.mrb[80].mxu0  ;;  %v1456_v33 = vpop.f32.mrb[81].mxu1 }
 0x1c5   : > { %v1744_v34 = vadd.f32 %v1743_v32, %v1454_v31  ;;  %v1745_v35 = vpop.f32.mrb[81].mxu0  ;;  %v1457_v36 = vpop.f32.mrb[82].mxu1 }
 0x1c6   : > { %v1746_v37 = vpop.f32.mrb[82].mxu0  ;;  %v1459_v38 = vpop.f32.mrb[83].mxu1 }
 0x1c7   : > { %1878 = vst [vmem:[%s2930_s28 + $0x140] sm:$0xff] %v1744_v34  ;;  %v1941_v39 = vadd.f32 %v1940_v28, %v1744_v34  ;;  %v2012_v40 = vmul.f32 %v1744_v34, %v1744_v34  ;;  %v1747_v41 = vadd.f32 %v1746_v37, %v1457_v36  ;;  %v1748_v42 = vpop.f32.mrb[83].mxu0 }
 0x1c9   : > { %v2075_v43 = vadd.f32 %v2074_v30, %v2012_v40  ;;  %1879 = vst [vmem:[%s2930_s28 + $0x148] sm:$0xff] %v1747_v41  ;;  %v1942_v44 = vadd.f32 %v1941_v39, %v1747_v41  ;;  %v2013_v45 = vmul.f32 %v1747_v41, %v1747_v41 }
 0x1cb   : > { %v2076_v46 = vadd.f32 %v2075_v43, %v2013_v45  ;;  %v1462_v47 = vpop.f32.mrb[84].mxu1 }
 0x1cc   : > { %v1751_v48 = vpop.f32.mrb[84].mxu0  ;;  %v1464_v49 = vpop.f32.mrb[85].mxu1 }
 0x1cd   : > { %v1752_v50 = vadd.f32 %v1751_v48, %v1462_v47  ;;  %v1753_v51 = vpop.f32.mrb[85].mxu0  ;;  %v1465_v52 = vpop.f32.mrb[86].mxu1 }
 0x1ce   : > { %v1754_v53 = vpop.f32.mrb[86].mxu0  ;;  %v1467_v54 = vpop.f32.mrb[87].mxu1 }
 0x1cf   : > { %1880 = vst [vmem:[%s2930_s28 + $0x150] sm:$0xff] %v1752_v50  ;;  %v1943_v55 = vadd.f32 %v1942_v44, %v1752_v50  ;;  %v2014_v56 = vmul.f32 %v1752_v50, %v1752_v50  ;;  %v1755_v57 = vadd.f32 %v1754_v53, %v1465_v52  ;;  %v1756_v58 = vpop.f32.mrb[87].mxu0 }
 0x1d1   : > { %v2077_v59 = vadd.f32 %v2076_v46, %v2014_v56  ;;  %1881 = vst [vmem:[%s2930_s28 + $0x158] sm:$0xff] %v1755_v57  ;;  %v1944_v60 = vadd.f32 %v1943_v55, %v1755_v57  ;;  %v2015_v61 = vmul.f32 %v1755_v57, %v1755_v57 }
 0x1d3   : > { %v2078_v62 = vadd.f32 %v2077_v59, %v2015_v61  ;;  %v1470_v63 = vpop.f32.mrb[88].mxu1 }
 0x1d4   : > { %v1759_v0 = vpop.f32.mrb[88].mxu0  ;;  %v1472_v1 = vpop.f32.mrb[89].mxu1 }
 0x1d5   : > { %v1760_v2 = vadd.f32 %v1759_v0, %v1470_v63  ;;  %v1761_v3 = vpop.f32.mrb[89].mxu0  ;;  %v1473_v4 = vpop.f32.mrb[90].mxu1 }
 0x1d6   : > { %v1762_v5 = vpop.f32.mrb[90].mxu0  ;;  %v1475_v6 = vpop.f32.mrb[91].mxu1 }
 0x1d7   : > { %1882 = vst [vmem:[%s2930_s28 + $0x160] sm:$0xff] %v1760_v2  ;;  %v1945_v7 = vadd.f32 %v1944_v60, %v1760_v2  ;;  %v2016_v8 = vmul.f32 %v1760_v2, %v1760_v2  ;;  %v1763_v9 = vadd.f32 %v1762_v5, %v1473_v4  ;;  %v1764_v10 = vpop.f32.mrb[91].mxu0 }
 0x1d9   : > { %v2079_v11 = vadd.f32 %v2078_v62, %v2016_v8  ;;  %1883 = vst [vmem:[%s2930_s28 + $0x168] sm:$0xff] %v1763_v9  ;;  %v1946_v12 = vadd.f32 %v1945_v7, %v1763_v9  ;;  %v2017_v13 = vmul.f32 %v1763_v9, %v1763_v9 }
 0x1db   : > { %v2080_v14 = vadd.f32 %v2079_v11, %v2017_v13  ;;  %v1478_v15 = vpop.f32.mrb[92].mxu1 }
 0x1dc   : > { %v1767_v16 = vpop.f32.mrb[92].mxu0  ;;  %v1480_v17 = vpop.f32.mrb[93].mxu1 }
 0x1dd   : > { %v1768_v18 = vadd.f32 %v1767_v16, %v1478_v15  ;;  %v1769_v19 = vpop.f32.mrb[93].mxu0  ;;  %v1481_v20 = vpop.f32.mrb[94].mxu1 }
 0x1de   : > { %v1770_v21 = vpop.f32.mrb[94].mxu0  ;;  %v1483_v22 = vpop.f32.mrb[95].mxu1 }
 0x1df   : > { %1884 = vst [vmem:[%s2930_s28 + $0x170] sm:$0xff] %v1768_v18  ;;  %v1947_v23 = vadd.f32 %v1946_v12, %v1768_v18  ;;  %v2018_v24 = vmul.f32 %v1768_v18, %v1768_v18  ;;  %v1771_v25 = vadd.f32 %v1770_v21, %v1481_v20  ;;  %v1772_v26 = vpop.f32.mrb[95].mxu0 }
 0x1e1   : > { %v2081_v27 = vadd.f32 %v2080_v14, %v2018_v24  ;;  %1885 = vst [vmem:[%s2930_s28 + $0x178] sm:$0xff] %v1771_v25  ;;  %v1948_v28 = vadd.f32 %v1947_v23, %v1771_v25  ;;  %v2019_v29 = vmul.f32 %v1771_v25, %v1771_v25 }
 0x1e3   : > { %v2082_v30 = vadd.f32 %v2081_v27, %v2019_v29  ;;  %v1486_v31 = vpop.f32.mrb[96].mxu1 }
 0x1e4   : > { %v1775_v32 = vpop.f32.mrb[96].mxu0  ;;  %v1488_v33 = vpop.f32.mrb[97].mxu1 }
 0x1e5   : > { %v1776_v34 = vadd.f32 %v1775_v32, %v1486_v31  ;;  %v1777_v35 = vpop.f32.mrb[97].mxu0  ;;  %v1489_v36 = vpop.f32.mrb[98].mxu1 }
 0x1e6   : > { %v1778_v37 = vpop.f32.mrb[98].mxu0  ;;  %v1491_v38 = vpop.f32.mrb[99].mxu1 }
 0x1e7   : > { %1886 = vst [vmem:[%s2930_s28 + $0x180] sm:$0xff] %v1776_v34  ;;  %v1949_v39 = vadd.f32 %v1948_v28, %v1776_v34  ;;  %v2020_v40 = vmul.f32 %v1776_v34, %v1776_v34  ;;  %v1779_v41 = vadd.f32 %v1778_v37, %v1489_v36  ;;  %v1780_v42 = vpop.f32.mrb[99].mxu0 }
 0x1e9   : > { %v2083_v43 = vadd.f32 %v2082_v30, %v2020_v40  ;;  %1887 = vst [vmem:[%s2930_s28 + $0x188] sm:$0xff] %v1779_v41  ;;  %v1950_v44 = vadd.f32 %v1949_v39, %v1779_v41  ;;  %v2021_v45 = vmul.f32 %v1779_v41, %v1779_v41 }
 0x1eb   : > { %v2084_v46 = vadd.f32 %v2083_v43, %v2021_v45  ;;  %v1494_v47 = vpop.f32.mrb[100].mxu1 }
 0x1ec   : > { %v1783_v48 = vpop.f32.mrb[100].mxu0  ;;  %v1496_v49 = vpop.f32.mrb[101].mxu1 }
 0x1ed   : > { %v1784_v50 = vadd.f32 %v1783_v48, %v1494_v47  ;;  %v1785_v51 = vpop.f32.mrb[101].mxu0  ;;  %v1497_v52 = vpop.f32.mrb[102].mxu1 }
 0x1ee   : > { %v1786_v53 = vpop.f32.mrb[102].mxu0  ;;  %v1499_v54 = vpop.f32.mrb[103].mxu1 }
 0x1ef   : > { %1888 = vst [vmem:[%s2930_s28 + $0x190] sm:$0xff] %v1784_v50  ;;  %v1951_v55 = vadd.f32 %v1950_v44, %v1784_v50  ;;  %v2022_v56 = vmul.f32 %v1784_v50, %v1784_v50  ;;  %v1787_v57 = vadd.f32 %v1786_v53, %v1497_v52  ;;  %v1788_v58 = vpop.f32.mrb[103].mxu0 }
 0x1f1   : > { %v2085_v59 = vadd.f32 %v2084_v46, %v2022_v56  ;;  %1889 = vst [vmem:[%s2930_s28 + $0x198] sm:$0xff] %v1787_v57  ;;  %v1952_v60 = vadd.f32 %v1951_v55, %v1787_v57  ;;  %v2023_v61 = vmul.f32 %v1787_v57, %v1787_v57 }
 0x1f3   : > { %v2086_v62 = vadd.f32 %v2085_v59, %v2023_v61  ;;  %v1502_v63 = vpop.f32.mrb[104].mxu1 }
 0x1f4   : > { %v1791_v0 = vpop.f32.mrb[104].mxu0  ;;  %v1504_v1 = vpop.f32.mrb[105].mxu1 }
 0x1f5   : > { %v1792_v2 = vadd.f32 %v1791_v0, %v1502_v63  ;;  %v1793_v3 = vpop.f32.mrb[105].mxu0  ;;  %v1505_v4 = vpop.f32.mrb[106].mxu1 }
 0x1f6   : > { %v1794_v5 = vpop.f32.mrb[106].mxu0  ;;  %v1507_v6 = vpop.f32.mrb[107].mxu1 }
 0x1f7   : > { %1890 = vst [vmem:[%s2930_s28 + $0x1a0] sm:$0xff] %v1792_v2  ;;  %v1953_v7 = vadd.f32 %v1952_v60, %v1792_v2  ;;  %v2024_v8 = vmul.f32 %v1792_v2, %v1792_v2  ;;  %v1795_v9 = vadd.f32 %v1794_v5, %v1505_v4  ;;  %v1796_v10 = vpop.f32.mrb[107].mxu0 }
 0x1f9   : > { %v2087_v11 = vadd.f32 %v2086_v62, %v2024_v8  ;;  %1891 = vst [vmem:[%s2930_s28 + $0x1a8] sm:$0xff] %v1795_v9  ;;  %v1954_v12 = vadd.f32 %v1953_v7, %v1795_v9  ;;  %v2025_v13 = vmul.f32 %v1795_v9, %v1795_v9 }
 0x1fb   : > { %v2088_v14 = vadd.f32 %v2087_v11, %v2025_v13  ;;  %v1510_v15 = vpop.f32.mrb[108].mxu1 }
 0x1fc   : > { %v1799_v16 = vpop.f32.mrb[108].mxu0  ;;  %v1512_v17 = vpop.f32.mrb[109].mxu1 }
 0x1fd   : > { %v1800_v18 = vadd.f32 %v1799_v16, %v1510_v15  ;;  %v1801_v19 = vpop.f32.mrb[109].mxu0  ;;  %v1513_v20 = vpop.f32.mrb[110].mxu1 }
 0x1fe   : > { %v1802_v21 = vpop.f32.mrb[110].mxu0  ;;  %v1515_v22 = vpop.f32.mrb[111].mxu1 }
 0x1ff   : > { %1892 = vst [vmem:[%s2930_s28 + $0x1b0] sm:$0xff] %v1800_v18  ;;  %v1955_v23 = vadd.f32 %v1954_v12, %v1800_v18  ;;  %v2026_v24 = vmul.f32 %v1800_v18, %v1800_v18  ;;  %v1803_v25 = vadd.f32 %v1802_v21, %v1513_v20  ;;  %v1804_v26 = vpop.f32.mrb[111].mxu0 }
 0x201   : > { %v2089_v27 = vadd.f32 %v2088_v14, %v2026_v24  ;;  %1893 = vst [vmem:[%s2930_s28 + $0x1b8] sm:$0xff] %v1803_v25  ;;  %v1956_v28 = vadd.f32 %v1955_v23, %v1803_v25  ;;  %v2027_v29 = vmul.f32 %v1803_v25, %v1803_v25 }
 0x203   : > { %v2090_v30 = vadd.f32 %v2089_v27, %v2027_v29  ;;  %v1518_v31 = vpop.f32.mrb[112].mxu1 }
 0x204   : > { %v1807_v32 = vpop.f32.mrb[112].mxu0  ;;  %v1520_v33 = vpop.f32.mrb[113].mxu1 }
 0x205   : > { %v1808_v34 = vadd.f32 %v1807_v32, %v1518_v31  ;;  %v1809_v35 = vpop.f32.mrb[113].mxu0  ;;  %v1521_v36 = vpop.f32.mrb[114].mxu1 }
 0x206   : > { %v1810_v37 = vpop.f32.mrb[114].mxu0  ;;  %v1523_v38 = vpop.f32.mrb[115].mxu1 }
 0x207   : > { %1894 = vst [vmem:[%s2930_s28 + $0x1c0] sm:$0xff] %v1808_v34  ;;  %v1957_v39 = vadd.f32 %v1956_v28, %v1808_v34  ;;  %v2028_v40 = vmul.f32 %v1808_v34, %v1808_v34  ;;  %v1811_v41 = vadd.f32 %v1810_v37, %v1521_v36  ;;  %v1812_v42 = vpop.f32.mrb[115].mxu0 }
 0x209   : > { %v2091_v43 = vadd.f32 %v2090_v30, %v2028_v40  ;;  %1895 = vst [vmem:[%s2930_s28 + $0x1c8] sm:$0xff] %v1811_v41  ;;  %v1958_v44 = vadd.f32 %v1957_v39, %v1811_v41  ;;  %v2029_v45 = vmul.f32 %v1811_v41, %v1811_v41 }
 0x20b   : > { %v2092_v46 = vadd.f32 %v2091_v43, %v2029_v45  ;;  %v1526_v47 = vpop.f32.mrb[116].mxu1 }
 0x20c   : > { %v1815_v48 = vpop.f32.mrb[116].mxu0  ;;  %v1528_v49 = vpop.f32.mrb[117].mxu1 }
 0x20d   : > { %v1816_v50 = vadd.f32 %v1815_v48, %v1526_v47  ;;  %v1817_v51 = vpop.f32.mrb[117].mxu0  ;;  %v1529_v52 = vpop.f32.mrb[118].mxu1 }
 0x20e   : > { %v1818_v53 = vpop.f32.mrb[118].mxu0  ;;  %v1531_v54 = vpop.f32.mrb[119].mxu1 }
 0x20f   : > { %1896 = vst [vmem:[%s2930_s28 + $0x1d0] sm:$0xff] %v1816_v50  ;;  %v1959_v55 = vadd.f32 %v1958_v44, %v1816_v50  ;;  %v2030_v56 = vmul.f32 %v1816_v50, %v1816_v50  ;;  %v1819_v57 = vadd.f32 %v1818_v53, %v1529_v52  ;;  %v1820_v58 = vpop.f32.mrb[119].mxu0 }
 0x211   : > { %v2093_v59 = vadd.f32 %v2092_v46, %v2030_v56  ;;  %1897 = vst [vmem:[%s2930_s28 + $0x1d8] sm:$0xff] %v1819_v57  ;;  %v1960_v60 = vadd.f32 %v1959_v55, %v1819_v57  ;;  %v2031_v61 = vmul.f32 %v1819_v57, %v1819_v57 }
 0x213   : > { %v2094_v62 = vadd.f32 %v2093_v59, %v2031_v61  ;;  %v1534_v63 = vpop.f32.mrb[120].mxu1 }
 0x214   : > { %v1823_v0 = vpop.f32.mrb[120].mxu0  ;;  %v1536_v1 = vpop.f32.mrb[121].mxu1 }
 0x215   : > { %v1824_v2 = vadd.f32 %v1823_v0, %v1534_v63  ;;  %v1825_v3 = vpop.f32.mrb[121].mxu0  ;;  %v1537_v4 = vpop.f32.mrb[122].mxu1 }
 0x216   : > { %v1826_v5 = vpop.f32.mrb[122].mxu0  ;;  %v1539_v6 = vpop.f32.mrb[123].mxu1 }
 0x217   : > { %1898 = vst [vmem:[%s2930_s28 + $0x1e0] sm:$0xff] %v1824_v2  ;;  %v1961_v7 = vadd.f32 %v1960_v60, %v1824_v2  ;;  %v2032_v8 = vmul.f32 %v1824_v2, %v1824_v2  ;;  %v1827_v9 = vadd.f32 %v1826_v5, %v1537_v4  ;;  %v1828_v10 = vpop.f32.mrb[123].mxu0 }
 0x219   : > { %v2095_v11 = vadd.f32 %v2094_v62, %v2032_v8  ;;  %1899 = vst [vmem:[%s2930_s28 + $0x1e8] sm:$0xff] %v1827_v9  ;;  %v1962_v12 = vadd.f32 %v1961_v7, %v1827_v9  ;;  %v2033_v13 = vmul.f32 %v1827_v9, %v1827_v9 }
 0x21b   : > { %v2096_v14 = vadd.f32 %v2095_v11, %v2033_v13  ;;  %v1542_v15 = vpop.f32.mrb[124].mxu1 }
 0x21c   : > { %v1831_v16 = vpop.f32.mrb[124].mxu0  ;;  %v1544_v17 = vpop.f32.mrb[125].mxu1 }
 0x21d   : > { %v1832_v18 = vadd.f32 %v1831_v16, %v1542_v15  ;;  %v1833_v19 = vpop.f32.mrb[125].mxu0  ;;  %v1545_v20 = vpop.f32.mrb[126].mxu1 }
 0x21e   : > { %v1834_v21 = vpop.f32.mrb[126].mxu0  ;;  %v1547_v22 = vpop.f32.mrb[127].mxu1 }
 0x21f   : > { %1900 = vst [vmem:[%s2930_s28 + $0x1f0] sm:$0xff] %v1832_v18  ;;  %v1963_v23 = vadd.f32 %v1962_v12, %v1832_v18  ;;  %v2034_v24 = vmul.f32 %v1832_v18, %v1832_v18  ;;  %v1835_v25 = vadd.f32 %v1834_v21, %v1545_v20  ;;  %v1836_v26 = vpop.f32.mrb[127].mxu0 }
 0x221   : > { %v2097_v27 = vadd.f32 %v2096_v14, %v2034_v24  ;;  %1901 = vst [vmem:[%s2930_s28 + $0x1f8] sm:$0xff] %v1835_v25  ;;  %v1964_v28 = vadd.f32 %v1963_v23, %v1835_v25  ;;  %v2035_v29 = vmul.f32 %v1835_v25, %v1835_v25 }
 0x223   : > { %v1965_v30 = vrot.slane %v1964_v28, 4  ;;  %v2098_v31 = vadd.f32 %v2097_v27, %v2035_v29 }
 0x225   : > { %v1966_v32 = vadd.f32 %v1965_v30, %v1964_v28  ;;  %v2099_v33 = vrot.slane %v2098_v31, 4 }
 0x227   : > { %v1967_v34 = vrot.slane %v1966_v32, 2  ;;  %v2100_v35 = vadd.f32 %v2099_v33, %v2098_v31 }
 0x229   : > { %v1968_v36 = vadd.f32 %v1967_v34, %v1966_v32  ;;  %v2101_v37 = vrot.slane %v2100_v35, 2 }
 0x22b   : > { %v1969_v38 = vrot.slane %v1968_v36, 1  ;;  %v2102_v39 = vadd.f32 %v2101_v37, %v2100_v35 }
 0x22d   : > { %v1970_v40 = vadd.f32 %v1969_v38, %v1968_v36  ;;  %v2103_v41 = vrot.slane %v2102_v39, 1 }
 0x22f   : > { %1971 = vst [vmem:[%s231_s5] sm:$0x1] %v1970_v40  ;;  %v2104_v42 = vadd.f32 %v2103_v41, %v2102_v39 }
 0x231   : > { %2105 = vst [vmem:[%s234_s8] sm:$0x1] %v2104_v42 }
 0x232 PF: > { %s15_s15 = sadd.s32 1, %s2702_s15  }
 0x233   : > { %p12_p4 = scmp.ge.s32.totalorder %s15_s15, 6  }
 0x235   :  { %14 = sbr.rel (!%p12_p4) target bundleno = 1 (0x1), region = 85 }

// kernel: generator_forward.14
= control target key start
LH: loop header
LB: loop body
LE: loop exit
PB: predicated region body
PF: predicated region fallthrough
CT: control target
= control target key end

     0   :  { %s2086_s12 = smov 0   ;;  %s2579_s0 = inlined_call_operand.vmem [shape: f32[2048,128], index: 0, kind: input, shape index: {}]   ;;  %s2580_s1 = inlined_call_operand.vmem [shape: f32[1,128], index: 1, kind: input, shape index: {}]   ;;  %s2581_s2 = inlined_call_operand.vmem [shape: f32[1,128], index: 2, kind: input, shape index: {}]   ;;  %s2582_s3 = inlined_call_operand.vmem [shape: bf16[2048,128], index: 3, kind: output, shape index: {}]  }
   0x1 LB: > { %s1396_s13 = sadd.s32 4294967295, %s2064_s12   ;;  %p1400_p0 = scmp.ge.s32.totalorder %s2064_s12, 1  ;;  %s2064_s12 = sphi %s2086_s12, %s13_s12  }
   0x2   : > { %p138_p1 = scmp.lt.s32.totalorder %s2064_s12, 3 }
   0x4   : > { %p139_p2 = pnand %p1400_p0, %p138_p1 }
   0x5   : > { %s1401_s14 = sshll.u32 (!%p139_p2), %s1396_s13, 7  ;;  %v2100_v0 = vld [vmem:[%s2580_s1] ss:$0 sm:$0xff] (!%p139_p2) }
   0x6   : > { %142 = sbr.rel (%p139_p2) target bundleno = 135 (0x87), region = 32  ;;  %p163_p3 = scmp.lt.s32.totalorder (!%p139_p2), %s1401_s14, 255  ;;  %v2110_v1 = vld [vmem:[%s2581_s2] ss:$0 sm:$0xff] (!%p139_p2) }
   0xd   : > { %s2584_s14 = smov (!%p163_p3, %s1401_s14), 255 }
   0xe   : > { %s1402_s15 = sshll.u32 %s2584_s14, 3  ;;  %s1404_s23 = sshll.u32 %s2584_s14, 2 }
   0xf   : > { %s2105_s20 = scalar_lea.vmem %s2579_s0, %s1402_s15  ;;  %s2142_s26 = scalar_lea.vmem %s2582_s3, %s1404_s23 }
  0x10   : > { %v174_v2 = vld [vmem:[%s2105_s20] sm:$0xff]  ;;  %v175_v3 = vld [vmem:[%s2105_s20 + $0x8] sm:$0xff]  ;;  %v176_v4 = vld [vmem:[%s2105_s20 + $0x10] sm:$0xff] }
  0x11   : > { %v309_v5 = vmul.f32 %v2100_v0, %v174_v2  ;;  %v310_v6 = vmul.f32 %v2100_v0, %v175_v3  ;;  %v177_v7 = vld [vmem:[%s2105_s20 + $0x18] sm:$0xff]  ;;  %v311_v8 = vmul.f32 %v2100_v0, %v176_v4  ;;  %v178_v9 = vld [vmem:[%s2105_s20 + $0x20] sm:$0xff]  ;;  %v179_v10 = vld [vmem:[%s2105_s20 + $0x28] sm:$0xff] }
  0x12   : > { %v312_v11 = vmul.f32 %v2100_v0, %v177_v7  ;;  %v313_v12 = vmul.f32 %v2100_v0, %v178_v9  ;;  %v314_v13 = vmul.f32 %v2100_v0, %v179_v10  ;;  %v180_v14 = vld [vmem:[%s2105_s20 + $0x30] sm:$0xff]  ;;  %v181_v15 = vld [vmem:[%s2105_s20 + $0x38] sm:$0xff]  ;;  %v182_v24 = vld [vmem:[%s2105_s20 + $0x40] sm:$0xff] }
  0x13   : > { %v444_v16 = vadd.f32 %v2110_v1, %v309_v5  ;;  %v445_v17 = vadd.f32 %v2110_v1, %v310_v6  ;;  %v446_v18 = vadd.f32 %v2110_v1, %v311_v8  ;;  %v315_v19 = vmul.f32 %v2100_v0, %v180_v14  ;;  %v183_v25 = vld [vmem:[%s2105_s20 + $0x48] sm:$0xff]  ;;  %v184_v30 = vld [vmem:[%s2105_s20 + $0x50] sm:$0xff]  ;;  %v185_v35 = vld [vmem:[%s2105_s20 + $0x58] sm:$0xff] }
  0x14   : > { %v447_v20 = vadd.f32 %v2110_v1, %v312_v11  ;;  %v448_v21 = vadd.f32 %v2110_v1, %v313_v12  ;;  %v449_v22 = vadd.f32 %v2110_v1, %v314_v13  ;;  %v316_v23 = vmul.f32 %v2100_v0, %v181_v15  ;;  %v186_v36 = vld [vmem:[%s2105_s20 + $0x60] sm:$0xff]  ;;  %v187_v41 = vld [vmem:[%s2105_s20 + $0x68] sm:$0xff]  ;;  %v188_v42 = vld [vmem:[%s2105_s20 + $0x70] sm:$0xff] }
  0x15   : > { %v572_v26 = vmax.f32 %v444_v16, 0.0  ;;  %v573_v27 = vmax.f32 %v445_v17, 0.0  ;;  %v574_v28 = vmax.f32 %v446_v18, 0.0  ;;  %v450_v29 = vadd.f32 %v2110_v1, %v315_v19  ;;  %v189_v51 = vld [vmem:[%s2105_s20 + $0x78] sm:$0xff]  ;;  %v190_v56 = vld [vmem:[%s2105_s20 + $0x80] sm:$0xff]  ;;  %v191_v61 = vld [vmem:[%s2105_s20 + $0x88] sm:$0xff] }
  0x16   : > { %v575_v31 = vmax.f32 %v447_v20, 0.0  ;;  %v576_v32 = vmax.f32 %v448_v21, 0.0  ;;  %v577_v33 = vmax.f32 %v449_v22, 0.0  ;;  %v451_v34 = vadd.f32 %v2110_v1, %v316_v23  ;;  %v192_v4 = vld [vmem:[%s2105_s20 + $0x90] sm:$0xff]  ;;  %v193_v5 = vld [vmem:[%s2105_s20 + $0x98] sm:$0xff]  ;;  %v194_v10 = vld [vmem:[%s2105_s20 + $0xa0] sm:$0xff] }
  0x17   : > { %v1668_v37 = vpack.c.bf16 %v573_v27, %v572_v26  ;;  %v578_v38 = vmax.f32 %v450_v29, 0.0  ;;  %v317_v39 = vmul.f32 %v2100_v0, %v182_v24  ;;  %v318_v40 = vmul.f32 %v2100_v0, %v183_v25  ;;  %v195_v15 = vld [vmem:[%s2105_s20 + $0xa8] sm:$0xff]  ;;  %v196_v20 = vld [vmem:[%s2105_s20 + $0xb0] sm:$0xff]  ;;  %v197_v25 = vld [vmem:[%s2105_s20 + $0xb8] sm:$0xff] }
  0x18   : > { %v1673_v43 = vpack.c.bf16 %v575_v31, %v574_v28  ;;  %v1678_v44 = vpack.c.bf16 %v577_v33, %v576_v32  ;;  %v579_v45 = vmax.f32 %v451_v34, 0.0  ;;  %v319_v46 = vmul.f32 %v2100_v0, %v184_v30  ;;  %v198_v30 = vld [vmem:[%s2105_s20 + $0xc0] sm:$0xff] }
  0x19   : > { %1669 = vst [vmem:[%s2142_s26] sm:$0xff] %v1668_v37   ;;  %v452_v47 = vadd.f32 %v2110_v1, %v317_v39  ;;  %v453_v48 = vadd.f32 %v2110_v1, %v318_v40  ;;  %v320_v49 = vmul.f32 %v2100_v0, %v185_v35  ;;  %v321_v50 = vmul.f32 %v2100_v0, %v186_v36  ;;  %v199_v35 = vld [vmem:[%s2105_s20 + $0xc8] sm:$0xff]  ;;  %v200_v40 = vld [vmem:[%s2105_s20 + $0xd0] sm:$0xff] }
  0x1a   : > { %1985 = vst [vmem:[%s2142_s26 + $0x8] sm:$0xff] %v1673_v43   ;;  %1986 = vst [vmem:[%s2142_s26 + $0x10] sm:$0xff] %v1678_v44   ;;  %v1683_v52 = vpack.c.bf16 %v579_v45, %v578_v38  ;;  %v454_v53 = vadd.f32 %v2110_v1, %v319_v46  ;;  %v322_v54 = vmul.f32 %v2100_v0, %v187_v41  ;;  %v201_v41 = vld [vmem:[%s2105_s20 + $0xd8] sm:$0xff]  ;;  %v202_v46 = vld [vmem:[%s2105_s20 + $0xe0] sm:$0xff] }
  0x1b   : > { %v323_v55 = vmul.f32 %v2100_v0, %v188_v42  ;;  %v580_v57 = vmax.f32 %v452_v47, 0.0  ;;  %v581_v58 = vmax.f32 %v453_v48, 0.0  ;;  %v455_v59 = vadd.f32 %v2110_v1, %v320_v49 }
  0x1c   : > { %v456_v60 = vadd.f32 %v2110_v1, %v321_v50  ;;  %1987 = vst [vmem:[%s2142_s26 + $0x18] sm:$0xff] %v1683_v52   ;;  %v582_v62 = vmax.f32 %v454_v53, 0.0  ;;  %v457_v63 = vadd.f32 %v2110_v1, %v322_v54  ;;  %v324_v2 = vmul.f32 %v2100_v0, %v189_v51  ;;  %v203_v51 = vld [vmem:[%s2105_s20 + $0xe8] sm:$0xff] }
  0x1d   : > { %v458_v3 = vadd.f32 %v2110_v1, %v323_v55  ;;  %v1688_v6 = vpack.c.bf16 %v581_v58, %v580_v57  ;;  %v583_v7 = vmax.f32 %v455_v59, 0.0  ;;  %v325_v9 = vmul.f32 %v2100_v0, %v190_v56  ;;  %v204_v56 = vld [vmem:[%s2105_s20 + $0xf0] sm:$0xff] }
  0x1e   : > { %v584_v8 = vmax.f32 %v456_v60, 0.0  ;;  %v585_v11 = vmax.f32 %v457_v63, 0.0  ;;  %v459_v12 = vadd.f32 %v2110_v1, %v324_v2  ;;  %v326_v14 = vmul.f32 %v2100_v0, %v191_v61  ;;  %v205_v61 = vld [vmem:[%s2105_s20 + $0xf8] sm:$0xff] }
  0x1f   : > { %v586_v13 = vmax.f32 %v458_v3, 0.0  ;;  %1988 = vst [vmem:[%s2142_s26 + $0x20] sm:$0xff] %v1688_v6   ;;  %v1693_v16 = vpack.c.bf16 %v583_v7, %v582_v62  ;;  %v460_v17 = vadd.f32 %v2110_v1, %v325_v9  ;;  %v327_v18 = vmul.f32 %v2100_v0, %v192_v4  ;;  %v206_v4 = vld [vmem:[%s2105_s20 + $0x100] sm:$0xff]  ;;  %v207_v9 = vld [vmem:[%s2105_s20 + $0x108] sm:$0xff] }
  0x20   : > { %v328_v19 = vmul.f32 %v2100_v0, %v193_v5  ;;  %v1698_v21 = vpack.c.bf16 %v585_v11, %v584_v8  ;;  %v587_v22 = vmax.f32 %v459_v12, 0.0  ;;  %v461_v23 = vadd.f32 %v2110_v1, %v326_v14  ;;  %v208_v14 = vld [vmem:[%s2105_s20 + $0x110] sm:$0xff] }
  0x21   : > { %v329_v24 = vmul.f32 %v2100_v0, %v194_v10  ;;  %1989 = vst [vmem:[%s2142_s26 + $0x28] sm:$0xff] %v1693_v16   ;;  %v588_v26 = vmax.f32 %v460_v17, 0.0  ;;  %v462_v27 = vadd.f32 %v2110_v1, %v327_v18  ;;  %v330_v29 = vmul.f32 %v2100_v0, %v195_v15  ;;  %v209_v15 = vld [vmem:[%s2105_s20 + $0x118] sm:$0xff] }
  0x22   : > { %v463_v28 = vadd.f32 %v2110_v1, %v328_v19  ;;  %1990 = vst [vmem:[%s2142_s26 + $0x30] sm:$0xff] %v1698_v21   ;;  %v1703_v31 = vpack.c.bf16 %v587_v22, %v586_v13  ;;  %v589_v32 = vmax.f32 %v461_v23, 0.0  ;;  %v331_v34 = vmul.f32 %v2100_v0, %v196_v20  ;;  %v210_v20 = vld [vmem:[%s2105_s20 + $0x120] sm:$0xff] }
  0x23   : > { %v464_v33 = vadd.f32 %v2110_v1, %v329_v24  ;;  %v590_v36 = vmax.f32 %v462_v27, 0.0  ;;  %v465_v38 = vadd.f32 %v2110_v1, %v330_v29  ;;  %v332_v39 = vmul.f32 %v2100_v0, %v197_v25  ;;  %v211_v25 = vld [vmem:[%s2105_s20 + $0x128] sm:$0xff] }
  0x24   : > { %v591_v37 = vmax.f32 %v463_v28, 0.0  ;;  %1991 = vst [vmem:[%s2142_s26 + $0x38] sm:$0xff] %v1703_v31   ;;  %v1708_v42 = vpack.c.bf16 %v589_v32, %v588_v26  ;;  %v466_v44 = vadd.f32 %v2110_v1, %v331_v34  ;;  %v333_v45 = vmul.f32 %v2100_v0, %v198_v30  ;;  %v212_v30 = vld [vmem:[%s2105_s20 + $0x130] sm:$0xff] }
  0x25   : > { %v592_v43 = vmax.f32 %v464_v33, 0.0  ;;  %v593_v48 = vmax.f32 %v465_v38, 0.0  ;;  %v467_v49 = vadd.f32 %v2110_v1, %v332_v39  ;;  %v334_v50 = vmul.f32 %v2100_v0, %v199_v35  ;;  %v213_v35 = vld [vmem:[%s2105_s20 + $0x138] sm:$0xff] }
  0x26   : > { %v1713_v47 = vpack.c.bf16 %v591_v37, %v590_v36  ;;  %1992 = vst [vmem:[%s2142_s26 + $0x40] sm:$0xff] %v1708_v42   ;;  %v594_v52 = vmax.f32 %v466_v44, 0.0  ;;  %v468_v53 = vadd.f32 %v2110_v1, %v333_v45  ;;  %v335_v54 = vmul.f32 %v2100_v0, %v200_v40  ;;  %v214_v40 = vld [vmem:[%s2105_s20 + $0x140] sm:$0xff]  ;;  %v215_v45 = vld [vmem:[%s2105_s20 + $0x148] sm:$0xff] }
  0x27   : > { %v336_v55 = vmul.f32 %v2100_v0, %v201_v41  ;;  %v1718_v57 = vpack.c.bf16 %v593_v48, %v592_v43  ;;  %v595_v58 = vmax.f32 %v467_v49, 0.0  ;;  %v469_v59 = vadd.f32 %v2110_v1, %v334_v50  ;;  %v216_v50 = vld [vmem:[%s2105_s20 + $0x150] sm:$0xff] }
  0x28   : > { %1993 = vst [vmem:[%s2142_s26 + $0x48] sm:$0xff] %v1713_v47   ;;  %v337_v60 = vmul.f32 %v2100_v0, %v202_v46  ;;  %v596_v62 = vmax.f32 %v468_v53, 0.0  ;;  %v470_v63 = vadd.f32 %v2110_v1, %v335_v54  ;;  %v338_v3 = vmul.f32 %v2100_v0, %v203_v51  ;;  %v217_v51 = vld [vmem:[%s2105_s20 + $0x158] sm:$0xff] }
  0x29   : > { %v471_v2 = vadd.f32 %v2110_v1, %v336_v55  ;;  %1994 = vst [vmem:[%s2142_s26 + $0x50] sm:$0xff] %v1718_v57   ;;  %v1723_v5 = vpack.c.bf16 %v595_v58, %v594_v52  ;;  %v597_v6 = vmax.f32 %v469_v59, 0.0  ;;  %v339_v8 = vmul.f32 %v2100_v0, %v204_v56  ;;  %v218_v56 = vld [vmem:[%s2105_s20 + $0x160] sm:$0xff] }
  0x2a   : > { %v472_v7 = vadd.f32 %v2110_v1, %v337_v60  ;;  %v598_v10 = vmax.f32 %v470_v63, 0.0  ;;  %v473_v12 = vadd.f32 %v2110_v1, %v338_v3  ;;  %v340_v13 = vmul.f32 %v2100_v0, %v205_v61  ;;  %v219_v61 = vld [vmem:[%s2105_s20 + $0x168] sm:$0xff] }
  0x2b   : > { %v599_v11 = vmax.f32 %v471_v2, 0.0  ;;  %1995 = vst [vmem:[%s2142_s26 + $0x58] sm:$0xff] %v1723_v5   ;;  %v1728_v16 = vpack.c.bf16 %v597_v6, %v596_v62  ;;  %v474_v18 = vadd.f32 %v2110_v1, %v339_v8  ;;  %v341_v19 = vmul.f32 %v2100_v0, %v206_v4  ;;  %v220_v4 = vld [vmem:[%s2105_s20 + $0x170] sm:$0xff] }
  0x2c   : > { %v600_v17 = vmax.f32 %v472_v7, 0.0  ;;  %v601_v22 = vmax.f32 %v473_v12, 0.0  ;;  %v475_v23 = vadd.f32 %v2110_v1, %v340_v13  ;;  %v342_v24 = vmul.f32 %v2100_v0, %v207_v9  ;;  %v221_v9 = vld [vmem:[%s2105_s20 + $0x178] sm:$0xff] }
  0x2d   : > { %v1733_v21 = vpack.c.bf16 %v599_v11, %v598_v10  ;;  %1996 = vst [vmem:[%s2142_s26 + $0x60] sm:$0xff] %v1728_v16   ;;  %v602_v26 = vmax.f32 %v474_v18, 0.0  ;;  %v476_v27 = vadd.f32 %v2110_v1, %v341_v19  ;;  %v343_v28 = vmul.f32 %v2100_v0, %v208_v14  ;;  %v222_v14 = vld [vmem:[%s2105_s20 + $0x180] sm:$0xff]  ;;  %v223_v19 = vld [vmem:[%s2105_s20 + $0x188] sm:$0xff] }
  0x2e   : > { %v344_v29 = vmul.f32 %v2100_v0, %v209_v15  ;;  %v1738_v31 = vpack.c.bf16 %v601_v22, %v600_v17  ;;  %v603_v32 = vmax.f32 %v475_v23, 0.0  ;;  %v477_v33 = vadd.f32 %v2110_v1, %v342_v24  ;;  %v224_v24 = vld [vmem:[%s2105_s20 + $0x190] sm:$0xff] }
  0x2f   : > { %1997 = vst [vmem:[%s2142_s26 + $0x68] sm:$0xff] %v1733_v21   ;;  %v345_v34 = vmul.f32 %v2100_v0, %v210_v20  ;;  %v604_v36 = vmax.f32 %v476_v27, 0.0  ;;  %v478_v37 = vadd.f32 %v2110_v1, %v343_v28  ;;  %v346_v39 = vmul.f32 %v2100_v0, %v211_v25  ;;  %v225_v25 = vld [vmem:[%s2105_s20 + $0x198] sm:$0xff] }
  0x30   : > { %v479_v38 = vadd.f32 %v2110_v1, %v344_v29  ;;  %1998 = vst [vmem:[%s2142_s26 + $0x70] sm:$0xff] %v1738_v31   ;;  %v1743_v41 = vpack.c.bf16 %v603_v32, %v602_v26  ;;  %v605_v42 = vmax.f32 %v477_v33, 0.0  ;;  %v347_v44 = vmul.f32 %v2100_v0, %v212_v30  ;;  %v226_v30 = vld [vmem:[%s2105_s20 + $0x1a0] sm:$0xff] }
  0x31   : > { %v480_v43 = vadd.f32 %v2110_v1, %v345_v34  ;;  %v606_v46 = vmax.f32 %v478_v37, 0.0  ;;  %v481_v48 = vadd.f32 %v2110_v1, %v346_v39  ;;  %v348_v49 = vmul.f32 %v2100_v0, %v213_v35  ;;  %v227_v35 = vld [vmem:[%s2105_s20 + $0x1a8] sm:$0xff] }
  0x32   : > { %v607_v47 = vmax.f32 %v479_v38, 0.0  ;;  %1999 = vst [vmem:[%s2142_s26 + $0x78] sm:$0xff] %v1743_v41   ;;  %v1748_v52 = vpack.c.bf16 %v605_v42, %v604_v36  ;;  %v482_v54 = vadd.f32 %v2110_v1, %v347_v44  ;;  %v349_v55 = vmul.f32 %v2100_v0, %v214_v40  ;;  %v228_v40 = vld [vmem:[%s2105_s20 + $0x1b0] sm:$0xff] }
  0x33   : > { %v608_v53 = vmax.f32 %v480_v43, 0.0  ;;  %v609_v58 = vmax.f32 %v481_v48, 0.0  ;;  %v483_v59 = vadd.f32 %v2110_v1, %v348_v49  ;;  %v350_v60 = vmul.f32 %v2100_v0, %v215_v45  ;;  %v229_v45 = vld [vmem:[%s2105_s20 + $0x1b8] sm:$0xff] }
  0x34   : > { %v1753_v57 = vpack.c.bf16 %v607_v47, %v606_v46  ;;  %2000 = vst [vmem:[%s2142_s26 + $0x80] sm:$0xff] %v1748_v52   ;;  %v610_v62 = vmax.f32 %v482_v54, 0.0  ;;  %v484_v63 = vadd.f32 %v2110_v1, %v349_v55  ;;  %v351_v2 = vmul.f32 %v2100_v0, %v216_v50  ;;  %v230_v50 = vld [vmem:[%s2105_s20 + $0x1c0] sm:$0xff]  ;;  %v231_v55 = vld [vmem:[%s2105_s20 + $0x1c8] sm:$0xff] }
  0x35   : > { %v352_v3 = vmul.f32 %v2100_v0, %v217_v51  ;;  %v1758_v5 = vpack.c.bf16 %v609_v58, %v608_v53  ;;  %v611_v6 = vmax.f32 %v483_v59, 0.0  ;;  %v485_v7 = vadd.f32 %v2110_v1, %v350_v60  ;;  %v232_v60 = vld [vmem:[%s2105_s20 + $0x1d0] sm:$0xff] }
  0x36   : > { %2001 = vst [vmem:[%s2142_s26 + $0x88] sm:$0xff] %v1753_v57   ;;  %v353_v8 = vmul.f32 %v2100_v0, %v218_v56  ;;  %v612_v10 = vmax.f32 %v484_v63, 0.0  ;;  %v486_v11 = vadd.f32 %v2110_v1, %v351_v2  ;;  %v354_v13 = vmul.f32 %v2100_v0, %v219_v61  ;;  %v233_v61 = vld [vmem:[%s2105_s20 + $0x1d8] sm:$0xff] }
  0x37   : > { %v487_v12 = vadd.f32 %v2110_v1, %v352_v3  ;;  %2002 = vst [vmem:[%s2142_s26 + $0x90] sm:$0xff] %v1758_v5   ;;  %v1763_v15 = vpack.c.bf16 %v611_v6, %v610_v62  ;;  %v613_v16 = vmax.f32 %v485_v7, 0.0  ;;  %v355_v18 = vmul.f32 %v2100_v0, %v220_v4  ;;  %v234_v4 = vld [vmem:[%s2105_s20 + $0x1e0] sm:$0xff] }
  0x38   : > { %v488_v17 = vadd.f32 %v2110_v1, %v353_v8  ;;  %v614_v20 = vmax.f32 %v486_v11, 0.0  ;;  %v489_v22 = vadd.f32 %v2110_v1, %v354_v13  ;;  %v356_v23 = vmul.f32 %v2100_v0, %v221_v9  ;;  %v235_v9 = vld [vmem:[%s2105_s20 + $0x1e8] sm:$0xff] }
  0x39   : > { %v615_v21 = vmax.f32 %v487_v12, 0.0  ;;  %2003 = vst [vmem:[%s2142_s26 + $0x98] sm:$0xff] %v1763_v15   ;;  %v1768_v26 = vpack.c.bf16 %v613_v16, %v612_v10  ;;  %v490_v28 = vadd.f32 %v2110_v1, %v355_v18  ;;  %v357_v29 = vmul.f32 %v2100_v0, %v222_v14  ;;  %v236_v14 = vld [vmem:[%s2105_s20 + $0x1f0] sm:$0xff] }
  0x3a   : > { %v616_v27 = vmax.f32 %v488_v17, 0.0  ;;  %v617_v32 = vmax.f32 %v489_v22, 0.0  ;;  %v491_v33 = vadd.f32 %v2110_v1, %v356_v23  ;;  %v358_v34 = vmul.f32 %v2100_v0, %v223_v19  ;;  %v237_v19 = vld [vmem:[%s2105_s20 + $0x1f8] sm:$0xff] }
  0x3b   : > { %v1773_v31 = vpack.c.bf16 %v615_v21, %v614_v20  ;;  %2004 = vst [vmem:[%s2142_s26 + $0xa0] sm:$0xff] %v1768_v26   ;;  %v618_v36 = vmax.f32 %v490_v28, 0.0  ;;  %v492_v37 = vadd.f32 %v2110_v1, %v357_v29  ;;  %v359_v38 = vmul.f32 %v2100_v0, %v224_v24  ;;  %v238_v24 = vld [vmem:[%s2105_s20 + $0x200] sm:$0xff]  ;;  %v239_v29 = vld [vmem:[%s2105_s20 + $0x208] sm:$0xff] }
  0x3c   : > { %v360_v39 = vmul.f32 %v2100_v0, %v225_v25  ;;  %v1778_v41 = vpack.c.bf16 %v617_v32, %v616_v27  ;;  %v619_v42 = vmax.f32 %v491_v33, 0.0  ;;  %v493_v43 = vadd.f32 %v2110_v1, %v358_v34  ;;  %v240_v34 = vld [vmem:[%s2105_s20 + $0x210] sm:$0xff] }
  0x3d   : > { %2005 = vst [vmem:[%s2142_s26 + $0xa8] sm:$0xff] %v1773_v31   ;;  %v361_v44 = vmul.f32 %v2100_v0, %v226_v30  ;;  %v620_v46 = vmax.f32 %v492_v37, 0.0  ;;  %v494_v47 = vadd.f32 %v2110_v1, %v359_v38  ;;  %v362_v49 = vmul.f32 %v2100_v0, %v227_v35  ;;  %v241_v35 = vld [vmem:[%s2105_s20 + $0x218] sm:$0xff] }
  0x3e   : > { %v495_v48 = vadd.f32 %v2110_v1, %v360_v39  ;;  %2006 = vst [vmem:[%s2142_s26 + $0xb0] sm:$0xff] %v1778_v41   ;;  %v1783_v51 = vpack.c.bf16 %v619_v42, %v618_v36  ;;  %v621_v52 = vmax.f32 %v493_v43, 0.0  ;;  %v363_v54 = vmul.f32 %v2100_v0, %v228_v40  ;;  %v242_v40 = vld [vmem:[%s2105_s20 + $0x220] sm:$0xff] }
  0x3f   : > { %v496_v53 = vadd.f32 %v2110_v1, %v361_v44  ;;  %v622_v56 = vmax.f32 %v494_v47, 0.0  ;;  %v497_v58 = vadd.f32 %v2110_v1, %v362_v49  ;;  %v364_v59 = vmul.f32 %v2100_v0, %v229_v45  ;;  %v243_v45 = vld [vmem:[%s2105_s20 + $0x228] sm:$0xff] }
  0x40   : > { %v623_v57 = vmax.f32 %v495_v48, 0.0  ;;  %2007 = vst [vmem:[%s2142_s26 + $0xb8] sm:$0xff] %v1783_v51   ;;  %v1788_v62 = vpack.c.bf16 %v621_v52, %v620_v46  ;;  %v498_v2 = vadd.f32 %v2110_v1, %v363_v54  ;;  %v365_v3 = vmul.f32 %v2100_v0, %v230_v50  ;;  %v244_v50 = vld [vmem:[%s2105_s20 + $0x230] sm:$0xff] }
  0x41   : > { %v624_v63 = vmax.f32 %v496_v53, 0.0  ;;  %v625_v6 = vmax.f32 %v497_v58, 0.0  ;;  %v499_v7 = vadd.f32 %v2110_v1, %v364_v59  ;;  %v366_v8 = vmul.f32 %v2100_v0, %v231_v55  ;;  %v245_v55 = vld [vmem:[%s2105_s20 + $0x238] sm:$0xff] }
  0x42   : > { %v1793_v5 = vpack.c.bf16 %v623_v57, %v622_v56  ;;  %2008 = vst [vmem:[%s2142_s26 + $0xc0] sm:$0xff] %v1788_v62   ;;  %v626_v10 = vmax.f32 %v498_v2, 0.0  ;;  %v500_v11 = vadd.f32 %v2110_v1, %v365_v3  ;;  %v367_v12 = vmul.f32 %v2100_v0, %v232_v60  ;;  %v246_v60 = vld [vmem:[%s2105_s20 + $0x240] sm:$0xff]  ;;  %v247_v3 = vld [vmem:[%s2105_s20 + $0x248] sm:$0xff] }
  0x43   : > { %v368_v13 = vmul.f32 %v2100_v0, %v233_v61  ;;  %v1798_v15 = vpack.c.bf16 %v625_v6, %v624_v63  ;;  %v627_v16 = vmax.f32 %v499_v7, 0.0  ;;  %v501_v17 = vadd.f32 %v2110_v1, %v366_v8  ;;  %v248_v8 = vld [vmem:[%s2105_s20 + $0x250] sm:$0xff] }
  0x44   : > { %2009 = vst [vmem:[%s2142_s26 + $0xc8] sm:$0xff] %v1793_v5   ;;  %v369_v18 = vmul.f32 %v2100_v0, %v234_v4  ;;  %v628_v20 = vmax.f32 %v500_v11, 0.0  ;;  %v502_v21 = vadd.f32 %v2110_v1, %v367_v12  ;;  %v370_v23 = vmul.f32 %v2100_v0, %v235_v9  ;;  %v249_v9 = vld [vmem:[%s2105_s20 + $0x258] sm:$0xff] }
  0x45   : > { %v503_v22 = vadd.f32 %v2110_v1, %v368_v13  ;;  %2010 = vst [vmem:[%s2142_s26 + $0xd0] sm:$0xff] %v1798_v15   ;;  %v1803_v25 = vpack.c.bf16 %v627_v16, %v626_v10  ;;  %v629_v26 = vmax.f32 %v501_v17, 0.0  ;;  %v371_v28 = vmul.f32 %v2100_v0, %v236_v14  ;;  %v250_v14 = vld [vmem:[%s2105_s20 + $0x260] sm:$0xff] }
  0x46   : > { %v504_v27 = vadd.f32 %v2110_v1, %v369_v18  ;;  %v630_v30 = vmax.f32 %v502_v21, 0.0  ;;  %v505_v32 = vadd.f32 %v2110_v1, %v370_v23  ;;  %v372_v33 = vmul.f32 %v2100_v0, %v237_v19  ;;  %v251_v19 = vld [vmem:[%s2105_s20 + $0x268] sm:$0xff] }
  0x47   : > { %v631_v31 = vmax.f32 %v503_v22, 0.0  ;;  %2011 = vst [vmem:[%s2142_s26 + $0xd8] sm:$0xff] %v1803_v25   ;;  %v1808_v36 = vpack.c.bf16 %v629_v26, %v628_v20  ;;  %v506_v38 = vadd.f32 %v2110_v1, %v371_v28  ;;  %v373_v39 = vmul.f32 %v2100_v0, %v238_v24  ;;  %v252_v24 = vld [vmem:[%s2105_s20 + $0x270] sm:$0xff] }
  0x48   : > { %v632_v37 = vmax.f32 %v504_v27, 0.0  ;;  %v633_v42 = vmax.f32 %v505_v32, 0.0  ;;  %v507_v43 = vadd.f32 %v2110_v1, %v372_v33  ;;  %v374_v44 = vmul.f32 %v2100_v0, %v239_v29  ;;  %v253_v29 = vld [vmem:[%s2105_s20 + $0x278] sm:$0xff] }
  0x49   : > { %v1813_v41 = vpack.c.bf16 %v631_v31, %v630_v30  ;;  %2012 = vst [vmem:[%s2142_s26 + $0xe0] sm:$0xff] %v1808_v36   ;;  %v634_v46 = vmax.f32 %v506_v38, 0.0  ;;  %v508_v47 = vadd.f32 %v2110_v1, %v373_v39  ;;  %v375_v48 = vmul.f32 %v2100_v0, %v240_v34  ;;  %v254_v34 = vld [vmem:[%s2105_s20 + $0x280] sm:$0xff]  ;;  %v255_v39 = vld [vmem:[%s2105_s20 + $0x288] sm:$0xff] }
  0x4a   : > { %v376_v49 = vmul.f32 %v2100_v0, %v241_v35  ;;  %v1818_v51 = vpack.c.bf16 %v633_v42, %v632_v37  ;;  %v635_v52 = vmax.f32 %v507_v43, 0.0  ;;  %v509_v53 = vadd.f32 %v2110_v1, %v374_v44  ;;  %v256_v44 = vld [vmem:[%s2105_s20 + $0x290] sm:$0xff] }
  0x4b   : > { %2013 = vst [vmem:[%s2142_s26 + $0xe8] sm:$0xff] %v1813_v41   ;;  %v377_v54 = vmul.f32 %v2100_v0, %v242_v40  ;;  %v636_v56 = vmax.f32 %v508_v47, 0.0  ;;  %v510_v57 = vadd.f32 %v2110_v1, %v375_v48  ;;  %v378_v59 = vmul.f32 %v2100_v0, %v243_v45  ;;  %v257_v45 = vld [vmem:[%s2105_s20 + $0x298] sm:$0xff] }
  0x4c   : > { %v511_v58 = vadd.f32 %v2110_v1, %v376_v49  ;;  %2014 = vst [vmem:[%s2142_s26 + $0xf0] sm:$0xff] %v1818_v51   ;;  %v1823_v61 = vpack.c.bf16 %v635_v52, %v634_v46  ;;  %v637_v62 = vmax.f32 %v509_v53, 0.0  ;;  %v379_v2 = vmul.f32 %v2100_v0, %v244_v50  ;;  %v258_v50 = vld [vmem:[%s2105_s20 + $0x2a0] sm:$0xff] }
  0x4d   : > { %v512_v63 = vadd.f32 %v2110_v1, %v377_v54  ;;  %v638_v4 = vmax.f32 %v510_v57, 0.0  ;;  %v513_v6 = vadd.f32 %v2110_v1, %v378_v59  ;;  %v380_v7 = vmul.f32 %v2100_v0, %v245_v55  ;;  %v259_v55 = vld [vmem:[%s2105_s20 + $0x2a8] sm:$0xff] }
  0x4e   : > { %v639_v5 = vmax.f32 %v511_v58, 0.0  ;;  %2015 = vst [vmem:[%s2142_s26 + $0xf8] sm:$0xff] %v1823_v61   ;;  %v1828_v10 = vpack.c.bf16 %v637_v62, %v636_v56  ;;  %v514_v12 = vadd.f32 %v2110_v1, %v379_v2  ;;  %v381_v13 = vmul.f32 %v2100_v0, %v246_v60  ;;  %v260_v60 = vld [vmem:[%s2105_s20 + $0x2b0] sm:$0xff] }
  0x4f   : > { %v640_v11 = vmax.f32 %v512_v63, 0.0  ;;  %v641_v16 = vmax.f32 %v513_v6, 0.0  ;;  %v515_v17 = vadd.f32 %v2110_v1, %v380_v7  ;;  %v382_v18 = vmul.f32 %v2100_v0, %v247_v3  ;;  %v261_v3 = vld [vmem:[%s2105_s20 + $0x2b8] sm:$0xff] }
  0x50   : > { %v1833_v15 = vpack.c.bf16 %v639_v5, %v638_v4  ;;  %2016 = vst [vmem:[%s2142_s26 + $0x100] sm:$0xff] %v1828_v10   ;;  %v642_v20 = vmax.f32 %v514_v12, 0.0  ;;  %v516_v21 = vadd.f32 %v2110_v1, %v381_v13  ;;  %v383_v22 = vmul.f32 %v2100_v0, %v248_v8  ;;  %v262_v8 = vld [vmem:[%s2105_s20 + $0x2c0] sm:$0xff]  ;;  %v263_v13 = vld [vmem:[%s2105_s20 + $0x2c8] sm:$0xff] }
  0x51   : > { %v384_v23 = vmul.f32 %v2100_v0, %v249_v9  ;;  %v1838_v25 = vpack.c.bf16 %v641_v16, %v640_v11  ;;  %v643_v26 = vmax.f32 %v515_v17, 0.0  ;;  %v517_v27 = vadd.f32 %v2110_v1, %v382_v18  ;;  %v264_v18 = vld [vmem:[%s2105_s20 + $0x2d0] sm:$0xff] }
  0x52   : > { %2017 = vst [vmem:[%s2142_s26 + $0x108] sm:$0xff] %v1833_v15   ;;  %v385_v28 = vmul.f32 %v2100_v0, %v250_v14  ;;  %v644_v30 = vmax.f32 %v516_v21, 0.0  ;;  %v518_v31 = vadd.f32 %v2110_v1, %v383_v22  ;;  %v386_v33 = vmul.f32 %v2100_v0, %v251_v19  ;;  %v265_v19 = vld [vmem:[%s2105_s20 + $0x2d8] sm:$0xff] }
  0x53   : > { %v519_v32 = vadd.f32 %v2110_v1, %v384_v23  ;;  %2018 = vst [vmem:[%s2142_s26 + $0x110] sm:$0xff] %v1838_v25   ;;  %v1843_v35 = vpack.c.bf16 %v643_v26, %v642_v20  ;;  %v645_v36 = vmax.f32 %v517_v27, 0.0  ;;  %v387_v38 = vmul.f32 %v2100_v0, %v252_v24  ;;  %v266_v24 = vld [vmem:[%s2105_s20 + $0x2e0] sm:$0xff] }
  0x54   : > { %v520_v37 = vadd.f32 %v2110_v1, %v385_v28  ;;  %v646_v40 = vmax.f32 %v518_v31, 0.0  ;;  %v521_v42 = vadd.f32 %v2110_v1, %v386_v33  ;;  %v388_v43 = vmul.f32 %v2100_v0, %v253_v29  ;;  %v267_v29 = vld [vmem:[%s2105_s20 + $0x2e8] sm:$0xff] }
  0x55   : > { %v647_v41 = vmax.f32 %v519_v32, 0.0  ;;  %2019 = vst [vmem:[%s2142_s26 + $0x118] sm:$0xff] %v1843_v35   ;;  %v1848_v46 = vpack.c.bf16 %v645_v36, %v644_v30  ;;  %v522_v48 = vadd.f32 %v2110_v1, %v387_v38  ;;  %v389_v49 = vmul.f32 %v2100_v0, %v254_v34  ;;  %v268_v34 = vld [vmem:[%s2105_s20 + $0x2f0] sm:$0xff] }
  0x56   : > { %v648_v47 = vmax.f32 %v520_v37, 0.0  ;;  %v649_v52 = vmax.f32 %v521_v42, 0.0  ;;  %v523_v53 = vadd.f32 %v2110_v1, %v388_v43  ;;  %v390_v54 = vmul.f32 %v2100_v0, %v255_v39  ;;  %v269_v39 = vld [vmem:[%s2105_s20 + $0x2f8] sm:$0xff] }
  0x57   : > { %v1853_v51 = vpack.c.bf16 %v647_v41, %v646_v40  ;;  %2020 = vst [vmem:[%s2142_s26 + $0x120] sm:$0xff] %v1848_v46   ;;  %v650_v56 = vmax.f32 %v522_v48, 0.0  ;;  %v524_v57 = vadd.f32 %v2110_v1, %v389_v49  ;;  %v391_v58 = vmul.f32 %v2100_v0, %v256_v44  ;;  %v270_v44 = vld [vmem:[%s2105_s20 + $0x300] sm:$0xff]  ;;  %v271_v49 = vld [vmem:[%s2105_s20 + $0x308] sm:$0xff] }
  0x58   : > { %v392_v59 = vmul.f32 %v2100_v0, %v257_v45  ;;  %v1858_v61 = vpack.c.bf16 %v649_v52, %v648_v47  ;;  %v651_v62 = vmax.f32 %v523_v53, 0.0  ;;  %v525_v63 = vadd.f32 %v2110_v1, %v390_v54  ;;  %v272_v54 = vld [vmem:[%s2105_s20 + $0x310] sm:$0xff] }
  0x59   : > { %2021 = vst [vmem:[%s2142_s26 + $0x128] sm:$0xff] %v1853_v51   ;;  %v393_v2 = vmul.f32 %v2100_v0, %v258_v50  ;;  %v652_v4 = vmax.f32 %v524_v57, 0.0  ;;  %v526_v5 = vadd.f32 %v2110_v1, %v391_v58  ;;  %v394_v7 = vmul.f32 %v2100_v0, %v259_v55  ;;  %v273_v55 = vld [vmem:[%s2105_s20 + $0x318] sm:$0xff] }
  0x5a   : > { %v527_v6 = vadd.f32 %v2110_v1, %v392_v59  ;;  %2022 = vst [vmem:[%s2142_s26 + $0x130] sm:$0xff] %v1858_v61   ;;  %v1863_v9 = vpack.c.bf16 %v651_v62, %v650_v56  ;;  %v653_v10 = vmax.f32 %v525_v63, 0.0  ;;  %v395_v12 = vmul.f32 %v2100_v0, %v260_v60  ;;  %v274_v60 = vld [vmem:[%s2105_s20 + $0x320] sm:$0xff] }
  0x5b   : > { %v528_v11 = vadd.f32 %v2110_v1, %v393_v2  ;;  %v654_v14 = vmax.f32 %v526_v5, 0.0  ;;  %v529_v16 = vadd.f32 %v2110_v1, %v394_v7  ;;  %v396_v17 = vmul.f32 %v2100_v0, %v261_v3  ;;  %v275_v3 = vld [vmem:[%s2105_s20 + $0x328] sm:$0xff] }
  0x5c   : > { %v655_v15 = vmax.f32 %v527_v6, 0.0  ;;  %2023 = vst [vmem:[%s2142_s26 + $0x138] sm:$0xff] %v1863_v9   ;;  %v1868_v20 = vpack.c.bf16 %v653_v10, %v652_v4  ;;  %v530_v22 = vadd.f32 %v2110_v1, %v395_v12  ;;  %v397_v23 = vmul.f32 %v2100_v0, %v262_v8  ;;  %v276_v8 = vld [vmem:[%s2105_s20 + $0x330] sm:$0xff] }
  0x5d   : > { %v656_v21 = vmax.f32 %v528_v11, 0.0  ;;  %v657_v26 = vmax.f32 %v529_v16, 0.0  ;;  %v531_v27 = vadd.f32 %v2110_v1, %v396_v17  ;;  %v398_v28 = vmul.f32 %v2100_v0, %v263_v13  ;;  %v277_v13 = vld [vmem:[%s2105_s20 + $0x338] sm:$0xff] }
  0x5e   : > { %v1873_v25 = vpack.c.bf16 %v655_v15, %v654_v14  ;;  %2024 = vst [vmem:[%s2142_s26 + $0x140] sm:$0xff] %v1868_v20   ;;  %v658_v30 = vmax.f32 %v530_v22, 0.0  ;;  %v532_v31 = vadd.f32 %v2110_v1, %v397_v23  ;;  %v399_v32 = vmul.f32 %v2100_v0, %v264_v18  ;;  %v278_v18 = vld [vmem:[%s2105_s20 + $0x340] sm:$0xff]  ;;  %v279_v23 = vld [vmem:[%s2105_s20 + $0x348] sm:$0xff] }
  0x5f   : > { %v400_v33 = vmul.f32 %v2100_v0, %v265_v19  ;;  %v1878_v35 = vpack.c.bf16 %v657_v26, %v656_v21  ;;  %v659_v36 = vmax.f32 %v531_v27, 0.0  ;;  %v533_v37 = vadd.f32 %v2110_v1, %v398_v28  ;;  %v280_v28 = vld [vmem:[%s2105_s20 + $0x350] sm:$0xff] }
  0x60   : > { %2025 = vst [vmem:[%s2142_s26 + $0x148] sm:$0xff] %v1873_v25   ;;  %v401_v38 = vmul.f32 %v2100_v0, %v266_v24  ;;  %v660_v40 = vmax.f32 %v532_v31, 0.0  ;;  %v534_v41 = vadd.f32 %v2110_v1, %v399_v32  ;;  %v402_v43 = vmul.f32 %v2100_v0, %v267_v29  ;;  %v281_v29 = vld [vmem:[%s2105_s20 + $0x358] sm:$0xff]  ;;  %v2483_v32 = vld [vmem:[%s2581_s2] ss:$0 sm:$0xff] }
  0x61   : > { %v535_v42 = vadd.f32 %v2110_v1, %v400_v33  ;;  %2026 = vst [vmem:[%s2142_s26 + $0x150] sm:$0xff] %v1878_v35   ;;  %v1883_v45 = vpack.c.bf16 %v659_v36, %v658_v30  ;;  %v661_v46 = vmax.f32 %v533_v37, 0.0  ;;  %v403_v48 = vmul.f32 %v2100_v0, %v268_v34  ;;  %v282_v34 = vld [vmem:[%s2105_s20 + $0x360] sm:$0xff] }
  0x62   : > { %v536_v47 = vadd.f32 %v2110_v1, %v401_v38  ;;  %v662_v50 = vmax.f32 %v534_v41, 0.0  ;;  %v537_v52 = vadd.f32 %v2110_v1, %v402_v43  ;;  %v404_v53 = vmul.f32 %v2100_v0, %v269_v39  ;;  %v283_v39 = vld [vmem:[%s2105_s20 + $0x368] sm:$0xff] }
  0x63   : > { %v663_v51 = vmax.f32 %v535_v42, 0.0  ;;  %2027 = vst [vmem:[%s2142_s26 + $0x158] sm:$0xff] %v1883_v45   ;;  %v1888_v56 = vpack.c.bf16 %v661_v46, %v660_v40  ;;  %v538_v58 = vadd.f32 %v2110_v1, %v403_v48  ;;  %v405_v59 = vmul.f32 %v2100_v0, %v270_v44  ;;  %v284_v44 = vld [vmem:[%s2105_s20 + $0x370] sm:$0xff] }
  0x64   : > { %v664_v57 = vmax.f32 %v536_v47, 0.0  ;;  %v665_v62 = vmax.f32 %v537_v52, 0.0  ;;  %v539_v63 = vadd.f32 %v2110_v1, %v404_v53  ;;  %v406_v2 = vmul.f32 %v2100_v0, %v271_v49  ;;  %v285_v49 = vld [vmem:[%s2105_s20 + $0x378] sm:$0xff] }
  0x65   : > { %v1893_v61 = vpack.c.bf16 %v663_v51, %v662_v50  ;;  %2028 = vst [vmem:[%s2142_s26 + $0x160] sm:$0xff] %v1888_v56   ;;  %v666_v4 = vmax.f32 %v538_v58, 0.0  ;;  %v540_v5 = vadd.f32 %v2110_v1, %v405_v59  ;;  %v407_v6 = vmul.f32 %v2100_v0, %v272_v54  ;;  %v286_v54 = vld [vmem:[%s2105_s20 + $0x380] sm:$0xff]  ;;  %v287_v59 = vld [vmem:[%s2105_s20 + $0x388] sm:$0xff] }
  0x66   : > { %v408_v7 = vmul.f32 %v2100_v0, %v273_v55  ;;  %v1898_v9 = vpack.c.bf16 %v665_v62, %v664_v57  ;;  %v667_v10 = vmax.f32 %v539_v63, 0.0  ;;  %v541_v11 = vadd.f32 %v2110_v1, %v406_v2  ;;  %v288_v2 = vld [vmem:[%s2105_s20 + $0x390] sm:$0xff] }
  0x67   : > { %2029 = vst [vmem:[%s2142_s26 + $0x168] sm:$0xff] %v1893_v61   ;;  %v409_v12 = vmul.f32 %v2100_v0, %v274_v60  ;;  %v668_v14 = vmax.f32 %v540_v5, 0.0  ;;  %v542_v15 = vadd.f32 %v2110_v1, %v407_v6  ;;  %v410_v17 = vmul.f32 %v2100_v0, %v275_v3  ;;  %v289_v3 = vld [vmem:[%s2105_s20 + $0x398] sm:$0xff] }
  0x68   : > { %v543_v16 = vadd.f32 %v2110_v1, %v408_v7  ;;  %2030 = vst [vmem:[%s2142_s26 + $0x170] sm:$0xff] %v1898_v9   ;;  %v1903_v19 = vpack.c.bf16 %v667_v10, %v666_v4  ;;  %v669_v20 = vmax.f32 %v541_v11, 0.0  ;;  %v411_v22 = vmul.f32 %v2100_v0, %v276_v8  ;;  %v290_v8 = vld [vmem:[%s2105_s20 + $0x3a0] sm:$0xff] }
  0x69   : > { %v544_v21 = vadd.f32 %v2110_v1, %v409_v12  ;;  %v670_v24 = vmax.f32 %v542_v15, 0.0  ;;  %v545_v26 = vadd.f32 %v2110_v1, %v410_v17  ;;  %v412_v27 = vmul.f32 %v2100_v0, %v277_v13  ;;  %v2489_v1 = vld [vmem:[%s2580_s1] ss:$0 sm:$0xff]  ;;  %v291_v13 = vld [vmem:[%s2105_s20 + $0x3a8] sm:$0xff] }
  0x6a   : > { %v671_v25 = vmax.f32 %v543_v16, 0.0  ;;  %2031 = vst [vmem:[%s2142_s26 + $0x178] sm:$0xff] %v1903_v19   ;;  %v1908_v30 = vpack.c.bf16 %v669_v20, %v668_v14  ;;  %v546_v33 = vadd.f32 %v2483_v32, %v411_v22  ;;  %v413_v0 = vmul.f32 %v2489_v1, %v278_v18  ;;  %v292_v18 = vld [vmem:[%s2105_s20 + $0x3b0] sm:$0xff] }
  0x6b   : > { %v672_v31 = vmax.f32 %v544_v21, 0.0  ;;  %v673_v36 = vmax.f32 %v545_v26, 0.0  ;;  %v547_v37 = vadd.f32 %v2483_v32, %v412_v27  ;;  %v414_v38 = vmul.f32 %v2489_v1, %v279_v23  ;;  %v293_v23 = vld [vmem:[%s2105_s20 + $0x3b8] sm:$0xff] }
  0x6c   : > { %v1913_v35 = vpack.c.bf16 %v671_v25, %v670_v24  ;;  %2032 = vst [vmem:[%s2142_s26 + $0x180] sm:$0xff] %v1908_v30   ;;  %v674_v40 = vmax.f32 %v546_v33, 0.0  ;;  %v548_v41 = vadd.f32 %v2483_v32, %v413_v0  ;;  %v415_v42 = vmul.f32 %v2489_v1, %v280_v28  ;;  %v294_v28 = vld [vmem:[%s2105_s20 + $0x3c0] sm:$0xff]  ;;  %v295_v0 = vld [vmem:[%s2105_s20 + $0x3c8] sm:$0xff] }
  0x6d   : > { %v416_v43 = vmul.f32 %v2489_v1, %v281_v29  ;;  %v1918_v45 = vpack.c.bf16 %v673_v36, %v672_v31  ;;  %v675_v46 = vmax.f32 %v547_v37, 0.0  ;;  %v549_v47 = vadd.f32 %v2483_v32, %v414_v38  ;;  %v296_v38 = vld [vmem:[%s2105_s20 + $0x3d0] sm:$0xff] }
  0x6e   : > { %2033 = vst [vmem:[%s2142_s26 + $0x188] sm:$0xff] %v1913_v35   ;;  %v417_v48 = vmul.f32 %v2489_v1, %v282_v34  ;;  %v676_v50 = vmax.f32 %v548_v41, 0.0  ;;  %v550_v51 = vadd.f32 %v2483_v32, %v415_v42  ;;  %v418_v53 = vmul.f32 %v2489_v1, %v283_v39  ;;  %v297_v39 = vld [vmem:[%s2105_s20 + $0x3d8] sm:$0xff] }
  0x6f   : > { %v551_v52 = vadd.f32 %v2483_v32, %v416_v43  ;;  %2034 = vst [vmem:[%s2142_s26 + $0x190] sm:$0xff] %v1918_v45   ;;  %v1923_v55 = vpack.c.bf16 %v675_v46, %v674_v40  ;;  %v677_v56 = vmax.f32 %v549_v47, 0.0  ;;  %v419_v58 = vmul.f32 %v2489_v1, %v284_v44  ;;  %v298_v44 = vld [vmem:[%s2105_s20 + $0x3e0] sm:$0xff] }
  0x70   : > { %v552_v57 = vadd.f32 %v2483_v32, %v417_v48  ;;  %v678_v60 = vmax.f32 %v550_v51, 0.0  ;;  %v553_v62 = vadd.f32 %v2483_v32, %v418_v53  ;;  %v420_v63 = vmul.f32 %v2489_v1, %v285_v49  ;;  %v299_v49 = vld [vmem:[%s2105_s20 + $0x3e8] sm:$0xff] }
  0x71   : > { %v679_v61 = vmax.f32 %v551_v52, 0.0  ;;  %2035 = vst [vmem:[%s2142_s26 + $0x198] sm:$0xff] %v1923_v55   ;;  %v1928_v4 = vpack.c.bf16 %v677_v56, %v676_v50  ;;  %v554_v6 = vadd.f32 %v2483_v32, %v419_v58  ;;  %v421_v7 = vmul.f32 %v2489_v1, %v286_v54  ;;  %v300_v54 = vld [vmem:[%s2105_s20 + $0x3f0] sm:$0xff] }
  0x72   : > { %v680_v5 = vmax.f32 %v552_v57, 0.0  ;;  %v681_v10 = vmax.f32 %v553_v62, 0.0  ;;  %v555_v11 = vadd.f32 %v2483_v32, %v420_v63  ;;  %v422_v12 = vmul.f32 %v2489_v1, %v287_v59  ;;  %v301_v59 = vld [vmem:[%s2105_s20 + $0x3f8] sm:$0xff] }
  0x73   : > { %v1933_v9 = vpack.c.bf16 %v679_v61, %v678_v60  ;;  %2036 = vst [vmem:[%s2142_s26 + $0x1a0] sm:$0xff] %v1928_v4   ;;  %v682_v14 = vmax.f32 %v554_v6, 0.0  ;;  %v556_v15 = vadd.f32 %v2483_v32, %v421_v7  ;;  %v423_v16 = vmul.f32 %v2489_v1, %v288_v2 }
  0x74   : > { %v424_v17 = vmul.f32 %v2489_v1, %v289_v3  ;;  %v1938_v19 = vpack.c.bf16 %v681_v10, %v680_v5  ;;  %v683_v20 = vmax.f32 %v555_v11, 0.0  ;;  %v557_v21 = vadd.f32 %v2483_v32, %v422_v12 }
  0x75   : > { %2037 = vst [vmem:[%s2142_s26 + $0x1a8] sm:$0xff] %v1933_v9   ;;  %v425_v22 = vmul.f32 %v2489_v1, %v290_v8  ;;  %v684_v24 = vmax.f32 %v556_v15, 0.0  ;;  %v558_v25 = vadd.f32 %v2483_v32, %v423_v16  ;;  %v426_v27 = vmul.f32 %v2489_v1, %v291_v13 }
  0x76   : > { %v559_v26 = vadd.f32 %v2483_v32, %v424_v17  ;;  %2038 = vst [vmem:[%s2142_s26 + $0x1b0] sm:$0xff] %v1938_v19   ;;  %v1943_v29 = vpack.c.bf16 %v683_v20, %v682_v14  ;;  %v685_v30 = vmax.f32 %v557_v21, 0.0  ;;  %v427_v33 = vmul.f32 %v2489_v1, %v292_v18 }
  0x77   : > { %v560_v31 = vadd.f32 %v2483_v32, %v425_v22  ;;  %v686_v34 = vmax.f32 %v558_v25, 0.0  ;;  %v561_v36 = vadd.f32 %v2483_v32, %v426_v27  ;;  %v428_v37 = vmul.f32 %v2489_v1, %v293_v23 }
  0x78   : > { %v687_v35 = vmax.f32 %v559_v26, 0.0  ;;  %2039 = vst [vmem:[%s2142_s26 + $0x1b8] sm:$0xff] %v1943_v29   ;;  %v1948_v40 = vpack.c.bf16 %v685_v30, %v684_v24  ;;  %v562_v42 = vadd.f32 %v2483_v32, %v427_v33  ;;  %v429_v43 = vmul.f32 %v2489_v1, %v294_v28 }
  0x79   : > { %v688_v41 = vmax.f32 %v560_v31, 0.0  ;;  %v689_v46 = vmax.f32 %v561_v36, 0.0  ;;  %v563_v47 = vadd.f32 %v2483_v32, %v428_v37  ;;  %v430_v48 = vmul.f32 %v2489_v1, %v295_v0 }
  0x7a   : > { %v1953_v45 = vpack.c.bf16 %v687_v35, %v686_v34  ;;  %2040 = vst [vmem:[%s2142_s26 + $0x1c0] sm:$0xff] %v1948_v40   ;;  %v690_v50 = vmax.f32 %v562_v42, 0.0  ;;  %v564_v51 = vadd.f32 %v2483_v32, %v429_v43  ;;  %v431_v52 = vmul.f32 %v2489_v1, %v296_v38 }
  0x7b   : > { %v432_v53 = vmul.f32 %v2489_v1, %v297_v39  ;;  %v1958_v55 = vpack.c.bf16 %v689_v46, %v688_v41  ;;  %v691_v56 = vmax.f32 %v563_v47, 0.0  ;;  %v565_v57 = vadd.f32 %v2483_v32, %v430_v48 }
  0x7c   : > { %2041 = vst [vmem:[%s2142_s26 + $0x1c8] sm:$0xff] %v1953_v45   ;;  %v433_v58 = vmul.f32 %v2489_v1, %v298_v44  ;;  %v692_v60 = vmax.f32 %v564_v51, 0.0  ;;  %v566_v61 = vadd.f32 %v2483_v32, %v431_v52  ;;  %v434_v63 = vmul.f32 %v2489_v1, %v299_v49 }
  0x7d   : > { %v567_v62 = vadd.f32 %v2483_v32, %v432_v53  ;;  %2042 = vst [vmem:[%s2142_s26 + $0x1d0] sm:$0xff] %v1958_v55   ;;  %v1963_v2 = vpack.c.bf16 %v691_v56, %v690_v50  ;;  %v693_v3 = vmax.f32 %v565_v57, 0.0  ;;  %v435_v5 = vmul.f32 %v2489_v1, %v300_v54 }
  0x7e   : > { %v568_v4 = vadd.f32 %v2483_v32, %v433_v58  ;;  %v694_v6 = vmax.f32 %v566_v61, 0.0  ;;  %v569_v8 = vadd.f32 %v2483_v32, %v434_v63  ;;  %v436_v9 = vmul.f32 %v2489_v1, %v301_v59 }
  0x7f   : > { %v695_v7 = vmax.f32 %v567_v62, 0.0  ;;  %2043 = vst [vmem:[%s2142_s26 + $0x1d8] sm:$0xff] %v1963_v2   ;;  %v1968_v10 = vpack.c.bf16 %v693_v3, %v692_v60  ;;  %v570_v12 = vadd.f32 %v2483_v32, %v435_v5 }
  0x80   : > { %v696_v11 = vmax.f32 %v568_v4, 0.0  ;;  %v697_v14 = vmax.f32 %v569_v8, 0.0  ;;  %v571_v15 = vadd.f32 %v2483_v32, %v436_v9 }
  0x81   : > { %v1973_v13 = vpack.c.bf16 %v695_v7, %v694_v6  ;;  %2044 = vst [vmem:[%s2142_s26 + $0x1e0] sm:$0xff] %v1968_v10   ;;  %v698_v16 = vmax.f32 %v570_v12, 0.0 }
  0x82   : > { %v1978_v17 = vpack.c.bf16 %v697_v14, %v696_v11  ;;  %v699_v18 = vmax.f32 %v571_v15, 0.0 }
  0x83   : > { %2045 = vst [vmem:[%s2142_s26 + $0x1e8] sm:$0xff] %v1973_v13  }
  0x84   : > { %2046 = vst [vmem:[%s2142_s26 + $0x1f0] sm:$0xff] %v1978_v17   ;;  %v1983_v19 = vpack.c.bf16 %v699_v18, %v698_v16 }
  0x86   : > { %2047 = vst [vmem:[%s2142_s26 + $0x1f8] sm:$0xff] %v1983_v19  }
  0x87 PF: > { %s13_s12 = sadd.s32 1, %s2064_s12  }
  0x88   : > { %p10_p4 = scmp.ge.s32.totalorder %s13_s12, 4  }
  0x8a   :  { %12 = sbr.rel (!%p10_p4) target bundleno = 1 (0x1), region = 62 }

// kernel: generator_forward.15
= control target key start
LH: loop header
LB: loop body
LE: loop exit
PB: predicated region body
PF: predicated region fallthrough
CT: control target
= control target key end

     0   :  { %s7033_s9 = smov 0   ;;  %s7496_s0 = inlined_call_operand.vmem [shape: bf16[4,2048,256], index: 0, kind: input, shape index: {}]   ;;  %s7497_s1 = inlined_call_operand.vmem [shape: bf16[4,256,128], index: 1, kind: input, shape index: {}]   ;;  %s7498_s2 = inlined_call_operand.vmem [shape: bf16[4,2048,128], index: 2, kind: output, shape index: {}]  }
   0x1 LB: > { %s4489_s10 = sadd.s32 4294967295, %s7015_s9   ;;  %p4493_p0 = scmp.ge.s32.totalorder %s7015_s9, 1  ;;  %s7015_s9 = sphi %s7033_s9, %s12_s9  }
   0x2   : > { %p122_p1 = scmp.lt.s32.totalorder %s7015_s9, 5 }
   0x4   : > { %p123_p2 = pnand %p4493_p0, %p122_p1 }
   0x5   : > { %p149_p3 = scmp.lt.s32.totalorder (!%p123_p2), %s4489_s10, 3  ;;  %v7017_v0 = vmov (!%p123_p2), 0  }
   0x6   : > { %126 = sbr.rel (%p123_p2) target bundleno = 813 (0x32d), region = 28  ;;  %1829 = vmatprep.subr.bf16.mxu0 (!%p123_p2), %v7017_v0  ;;  %6056 = vmatprep.subr.bf16.mxu1 (!%p123_p2), %v7017_v0 }
   0xd   : > { %s7500_s10 = smov (!%p149_p3, %s4489_s10), 3 }
   0xe   : > { %s5031_s11 = sshll.u32 %s7500_s10, 7  ;;  %s5030_s15 = sshll.u32 %s7500_s10, 11 }
   0xf   : > { %s7049_s14 = scalar_lea.vmem %s7497_s1, %s5031_s11  ;;  %s7066_s18 = scalar_lea.vmem %s7496_s0, %s5030_s15 }
  0x10   : > { %v6097_v1 = vld [vmem:[%s7049_s14] sm:$0xff]   ;;  %v6098_v2 = vld [vmem:[%s7049_s14 + $0x8] sm:$0xff]   ;;  %v6099_v3 = vld [vmem:[%s7049_s14 + $0x10] sm:$0xff]   ;;  %s5032_s19 = sshll.u32 %s7500_s10, 10 }
  0x11   : > { %1830 = vmatpush1.bf16.msra.mxu0 %v6097_v1  ;;  %6072 = vmatpush1.bf16.msra.mxu1 %v6097_v1  ;;  %v6100_v4 = vld [vmem:[%s7049_s14 + $0x18] sm:$0xff]   ;;  %v6101_v5 = vld [vmem:[%s7049_s14 + $0x20] sm:$0xff]   ;;  %v6102_v7 = vld [vmem:[%s7049_s14 + $0x28] sm:$0xff]   ;;  %s7225_s22 = scalar_lea.vmem %s7498_s2, %s5032_s19 }
  0x12   : > { %1831 = vmatprep.subr.bf16.mxu0 %v7017_v0  ;;  %6057 = vmatprep.subr.bf16.mxu1 %v7017_v0  ;;  %v6115_v6 = vld [vmem:[%s7066_s18 + $0x4] ss:$8 sps:$4 sm:$0xff]   ;;  %v6103_v9 = vld [vmem:[%s7049_s14 + $0x30] sm:$0xff]   ;;  %v6104_v10 = vld [vmem:[%s7049_s14 + $0x38] sm:$0xff]  }
  0x13   : > { %v6118_v8 = vld [vmem:[%s7066_s18 + $0x404] ss:$8 sps:$4 sm:$0xff]   ;;  %1861 = vmatprep.mubr.bf16.mxu0 %v6115_v6  ;;  %v6107_v13 = vld [vmem:[%s7049_s14 + $0x50] sm:$0xff]   ;;  %v6108_v14 = vld [vmem:[%s7049_s14 + $0x58] sm:$0xff]  }
  0x14   : > { %2373 = vmatprep.mubr.bf16.mxu1 %v6118_v8  ;;  %v6105_v11 = vld [vmem:[%s7049_s14 + $0x40] sm:$0xff]   ;;  %v6106_v12 = vld [vmem:[%s7049_s14 + $0x48] sm:$0xff]   ;;  %v6111_v17 = vld [vmem:[%s7049_s14 + $0x70] sm:$0xff]  }
  0x15   : > { %1832 = vmatpush1.bf16.msra.mxu0 %v6098_v2  ;;  %6073 = vmatpush1.bf16.msra.mxu1 %v6098_v2  ;;  %v6109_v15 = vld [vmem:[%s7049_s14 + $0x60] sm:$0xff]   ;;  %v6110_v16 = vld [vmem:[%s7049_s14 + $0x68] sm:$0xff]   ;;  %v6112_v18 = vld [vmem:[%s7049_s14 + $0x78] sm:$0xff]  }
  0x16   : > { %1833 = vmatprep.subr.bf16.mxu0 %v7017_v0  ;;  %6058 = vmatprep.subr.bf16.mxu1 %v7017_v0  ;;  %v6113_v19 = vld [vmem:[%s7066_s18] ss:$8 sps:$4 sm:$0xff]   ;;  %v6119_v21 = vld [vmem:[%s7066_s18 + $0x14] ss:$8 sps:$4 sm:$0xff]   ;;  %v6123_v23 = vld [vmem:[%s7066_s18 + $0x10] ss:$8 sps:$4 sm:$0xff]  }
  0x17   : > { %v6116_v20 = vld [vmem:[%s7066_s18 + $0x400] ss:$8 sps:$4 sm:$0xff]   ;;  %v6121_v22 = vld [vmem:[%s7066_s18 + $0x414] ss:$8 sps:$4 sm:$0xff]   ;;  %v6124_v24 = vld [vmem:[%s7066_s18 + $0x410] ss:$8 sps:$4 sm:$0xff]  }
  0x18   : > { %v6125_v25 = vld [vmem:[%s7066_s18 + $0x24] ss:$8 sps:$4 sm:$0xff]   ;;  %v6129_v27 = vld [vmem:[%s7066_s18 + $0x20] ss:$8 sps:$4 sm:$0xff]   ;;  %v6131_v29 = vld [vmem:[%s7066_s18 + $0x34] ss:$8 sps:$4 sm:$0xff]  }
  0x19   : > { %1834 = vmatpush1.bf16.msra.mxu0 %v6099_v3  ;;  %6074 = vmatpush1.bf16.msra.mxu1 %v6099_v3  ;;  %v6127_v26 = vld [vmem:[%s7066_s18 + $0x424] ss:$8 sps:$4 sm:$0xff]   ;;  %v6130_v28 = vld [vmem:[%s7066_s18 + $0x420] ss:$8 sps:$4 sm:$0xff]   ;;  %v6133_v30 = vld [vmem:[%s7066_s18 + $0x434] ss:$8 sps:$4 sm:$0xff]  }
  0x1a   : > { %1835 = vmatprep.subr.bf16.mxu0 %v7017_v0  ;;  %6059 = vmatprep.subr.bf16.mxu1 %v7017_v0  ;;  %v6135_v31 = vld [vmem:[%s7066_s18 + $0x30] ss:$8 sps:$4 sm:$0xff]   ;;  %v6137_v33 = vld [vmem:[%s7066_s18 + $0x44] ss:$8 sps:$4 sm:$0xff]   ;;  %v6141_v35 = vld [vmem:[%s7066_s18 + $0x40] ss:$8 sps:$4 sm:$0xff]  }
  0x1b   : > { %v6136_v32 = vld [vmem:[%s7066_s18 + $0x430] ss:$8 sps:$4 sm:$0xff]   ;;  %v6139_v34 = vld [vmem:[%s7066_s18 + $0x444] ss:$8 sps:$4 sm:$0xff]   ;;  %v6142_v36 = vld [vmem:[%s7066_s18 + $0x440] ss:$8 sps:$4 sm:$0xff]  }
  0x1c   : > { %v6143_v37 = vld [vmem:[%s7066_s18 + $0x54] ss:$8 sps:$4 sm:$0xff]   ;;  %v6147_v39 = vld [vmem:[%s7066_s18 + $0x50] ss:$8 sps:$4 sm:$0xff]   ;;  %v6149_v41 = vld [vmem:[%s7066_s18 + $0x64] ss:$8 sps:$4 sm:$0xff]  }
  0x1d   : > { %1836 = vmatpush1.bf16.msra.mxu0 %v6100_v4  ;;  %6075 = vmatpush1.bf16.msra.mxu1 %v6100_v4  ;;  %v6145_v38 = vld [vmem:[%s7066_s18 + $0x454] ss:$8 sps:$4 sm:$0xff]   ;;  %v6148_v40 = vld [vmem:[%s7066_s18 + $0x450] ss:$8 sps:$4 sm:$0xff]   ;;  %v6151_v42 = vld [vmem:[%s7066_s18 + $0x464] ss:$8 sps:$4 sm:$0xff]  }
  0x1e   : > { %1837 = vmatprep.subr.bf16.mxu0 %v7017_v0  ;;  %6060 = vmatprep.subr.bf16.mxu1 %v7017_v0  ;;  %v6153_v43 = vld [vmem:[%s7066_s18 + $0x60] ss:$8 sps:$4 sm:$0xff]   ;;  %v6155_v45 = vld [vmem:[%s7066_s18 + $0x74] ss:$8 sps:$4 sm:$0xff]   ;;  %v6159_v47 = vld [vmem:[%s7066_s18 + $0x70] ss:$8 sps:$4 sm:$0xff]  }
  0x1f   : > { %v6154_v44 = vld [vmem:[%s7066_s18 + $0x460] ss:$8 sps:$4 sm:$0xff]   ;;  %v6157_v46 = vld [vmem:[%s7066_s18 + $0x474] ss:$8 sps:$4 sm:$0xff]   ;;  %v6160_v48 = vld [vmem:[%s7066_s18 + $0x470] ss:$8 sps:$4 sm:$0xff]  }
  0x20   : > { %v6161_v49 = vld [vmem:[%s7066_s18 + $0x84] ss:$8 sps:$4 sm:$0xff]   ;;  %v6165_v51 = vld [vmem:[%s7066_s18 + $0x80] ss:$8 sps:$4 sm:$0xff]   ;;  %v6167_v53 = vld [vmem:[%s7066_s18 + $0x94] ss:$8 sps:$4 sm:$0xff]  }
  0x21   : > { %1838 = vmatpush1.bf16.msra.mxu0 %v6101_v5  ;;  %6076 = vmatpush1.bf16.msra.mxu1 %v6101_v5  ;;  %v6163_v50 = vld [vmem:[%s7066_s18 + $0x484] ss:$8 sps:$4 sm:$0xff]   ;;  %v6166_v52 = vld [vmem:[%s7066_s18 + $0x480] ss:$8 sps:$4 sm:$0xff]   ;;  %v6169_v54 = vld [vmem:[%s7066_s18 + $0x494] ss:$8 sps:$4 sm:$0xff]  }
  0x22   : > { %1839 = vmatprep.subr.bf16.mxu0 %v7017_v0  ;;  %6061 = vmatprep.subr.bf16.mxu1 %v7017_v0  ;;  %v6171_v55 = vld [vmem:[%s7066_s18 + $0x90] ss:$8 sps:$4 sm:$0xff]   ;;  %v6173_v57 = vld [vmem:[%s7066_s18 + $0xa4] ss:$8 sps:$4 sm:$0xff]   ;;  %v6177_v59 = vld [vmem:[%s7066_s18 + $0xa0] ss:$8 sps:$4 sm:$0xff]  }
  0x23   : > { %v6172_v56 = vld [vmem:[%s7066_s18 + $0x490] ss:$8 sps:$4 sm:$0xff]   ;;  %v6175_v58 = vld [vmem:[%s7066_s18 + $0x4a4] ss:$8 sps:$4 sm:$0xff]   ;;  %v6178_v60 = vld [vmem:[%s7066_s18 + $0x4a0] ss:$8 sps:$4 sm:$0xff]  }
  0x24   : > { %v6179_v61 = vld [vmem:[%s7066_s18 + $0xb4] ss:$8 sps:$4 sm:$0xff]   ;;  %v6183_v63 = vld [vmem:[%s7066_s18 + $0xb0] ss:$8 sps:$4 sm:$0xff]   ;;  %v6185_v1 = vld [vmem:[%s7066_s18 + $0xc4] ss:$8 sps:$4 sm:$0xff]  }
  0x25   : > { %1840 = vmatpush1.bf16.msra.mxu0 %v6102_v7  ;;  %6077 = vmatpush1.bf16.msra.mxu1 %v6102_v7  ;;  %v6181_v62 = vld [vmem:[%s7066_s18 + $0x4b4] ss:$8 sps:$4 sm:$0xff]   ;;  %v6187_v2 = vld [vmem:[%s7066_s18 + $0x4c4] ss:$8 sps:$4 sm:$0xff]   ;;  %v6189_v3 = vld [vmem:[%s7066_s18 + $0xc0] ss:$8 sps:$4 sm:$0xff]  }
  0x26   : > { %1841 = vmatprep.subr.bf16.mxu0 %v7017_v0  ;;  %6062 = vmatprep.subr.bf16.mxu1 %v7017_v0  ;;  %v6190_v4 = vld [vmem:[%s7066_s18 + $0x4c0] ss:$8 sps:$4 sm:$0xff]   ;;  %v6191_v5 = vld [vmem:[%s7066_s18 + $0xd4] ss:$8 sps:$4 sm:$0xff]   ;;  %v6195_v7 = vld [vmem:[%s7066_s18 + $0xd0] ss:$8 sps:$4 sm:$0xff]  }
  0x27   : > { %v6193_v6 = vld [vmem:[%s7066_s18 + $0x4d4] ss:$8 sps:$4 sm:$0xff]   ;;  %v6196_v8 = vld [vmem:[%s7066_s18 + $0x4d0] ss:$8 sps:$4 sm:$0xff]  }
  0x29   : > { %1842 = vmatpush1.bf16.msra.mxu0 %v6103_v9  ;;  %6078 = vmatpush1.bf16.msra.mxu1 %v6103_v9  ;;  %v6197_v9 = vld [vmem:[%s7066_s18 + $0xe4] ss:$8 sps:$4 sm:$0xff]  }
  0x2a   : > { %1843 = vmatprep.subr.bf16.mxu0 %v7017_v0  ;;  %6063 = vmatprep.subr.bf16.mxu1 %v7017_v0 }
  0x2d   : > { %1844 = vmatpush1.bf16.msra.mxu0 %v6104_v10  ;;  %6079 = vmatpush1.bf16.msra.mxu1 %v6104_v10  ;;  %v6199_v10 = vld [vmem:[%s7066_s18 + $0x4e4] ss:$8 sps:$4 sm:$0xff]  }
  0x2e   : > { %1845 = vmatprep.subr.bf16.mxu0 %v7017_v0  ;;  %6064 = vmatprep.subr.bf16.mxu1 %v7017_v0 }
  0x31   : > { %1846 = vmatpush1.bf16.msra.mxu0 %v6105_v11  ;;  %6080 = vmatpush1.bf16.msra.mxu1 %v6105_v11  ;;  %v6201_v11 = vld [vmem:[%s7066_s18 + $0xe0] ss:$8 sps:$4 sm:$0xff]  }
  0x32   : > { %1847 = vmatprep.subr.bf16.mxu0 %v7017_v0  ;;  %6065 = vmatprep.subr.bf16.mxu1 %v7017_v0 }
  0x35   : > { %1848 = vmatpush1.bf16.msra.mxu0 %v6106_v12  ;;  %6081 = vmatpush1.bf16.msra.mxu1 %v6106_v12  ;;  %v6202_v12 = vld [vmem:[%s7066_s18 + $0x4e0] ss:$8 sps:$4 sm:$0xff]  }
  0x36   : > { %1849 = vmatprep.subr.bf16.mxu0 %v7017_v0  ;;  %6066 = vmatprep.subr.bf16.mxu1 %v7017_v0 }
  0x39   : > { %1850 = vmatpush1.bf16.msra.mxu0 %v6107_v13  ;;  %6082 = vmatpush1.bf16.msra.mxu1 %v6107_v13  ;;  %v6203_v13 = vld [vmem:[%s7066_s18 + $0xf4] ss:$8 sps:$4 sm:$0xff]  }
  0x3a   : > { %1851 = vmatprep.subr.bf16.mxu0 %v7017_v0  ;;  %6067 = vmatprep.subr.bf16.mxu1 %v7017_v0 }
  0x3d   : > { %1852 = vmatpush1.bf16.msra.mxu0 %v6108_v14  ;;  %6083 = vmatpush1.bf16.msra.mxu1 %v6108_v14  ;;  %v6205_v14 = vld [vmem:[%s7066_s18 + $0x4f4] ss:$8 sps:$4 sm:$0xff]  }
  0x3e   : > { %1853 = vmatprep.subr.bf16.mxu0 %v7017_v0  ;;  %6068 = vmatprep.subr.bf16.mxu1 %v7017_v0 }
  0x41   : > { %1854 = vmatpush1.bf16.msra.mxu0 %v6109_v15  ;;  %6084 = vmatpush1.bf16.msra.mxu1 %v6109_v15  ;;  %v6207_v15 = vld [vmem:[%s7066_s18 + $0xf0] ss:$8 sps:$4 sm:$0xff]  }
  0x42   : > { %1855 = vmatprep.subr.bf16.mxu0 %v7017_v0  ;;  %6069 = vmatprep.subr.bf16.mxu1 %v7017_v0 }
  0x45   : > { %1856 = vmatpush1.bf16.msra.mxu0 %v6110_v16  ;;  %6085 = vmatpush1.bf16.msra.mxu1 %v6110_v16  ;;  %v6208_v16 = vld [vmem:[%s7066_s18 + $0x4f0] ss:$8 sps:$4 sm:$0xff]  }
  0x46   : > { %1857 = vmatprep.subr.bf16.mxu0 %v7017_v0  ;;  %6070 = vmatprep.subr.bf16.mxu1 %v7017_v0 }
  0x49   : > { %1858 = vmatpush1.bf16.msra.mxu0 %v6111_v17  ;;  %6086 = vmatpush1.bf16.msra.mxu1 %v6111_v17  ;;  %v6209_v17 = vld [vmem:[%s7066_s18 + $0x104] ss:$8 sps:$4 sm:$0xff]  }
  0x4a   : > { %1859 = vmatprep.subr.bf16.mxu0 %v7017_v0  ;;  %6071 = vmatprep.subr.bf16.mxu1 %v7017_v0  ;;  %v6184_v0 = vld [vmem:[%s7066_s18 + $0x4b0] ss:$8 sps:$4 sm:$0xff]  }
  0x4d   : > { %1860 = vmatpush1.bf16.msra.mxu0 %v6112_v18  ;;  %6087 = vmatpush1.bf16.msra.mxu1 %v6112_v18  ;;  %v6211_v18 = vld [vmem:[%s7066_s18 + $0x504] ss:$8 sps:$4 sm:$0xff]  }
  0x50   : > { %1862 = vmatmul.mubr.bf16.vlgmr.msra.gmra.mrb[0].mxu0 %v6113_v19  ;;  %2374 = vmatmul.mubr.bf16.vlgmr.msra.gmra.mrb[0].mxu1 %v6116_v20  ;;  %v6213_v19 = vld [vmem:[%s7066_s18 + $0x100] ss:$8 sps:$4 sm:$0xff]  }
  0x51   : > { %1869 = vmatprep.mubr.bf16.mxu0 %v6119_v21  ;;  %2381 = vmatprep.mubr.bf16.mxu1 %v6121_v22  ;;  %v6214_v20 = vld [vmem:[%s7066_s18 + $0x500] ss:$8 sps:$4 sm:$0xff]   ;;  %v6215_v21 = vld [vmem:[%s7066_s18 + $0x114] ss:$8 sps:$4 sm:$0xff]  }
  0x52   : > { %v6217_v22 = vld [vmem:[%s7066_s18 + $0x514] ss:$8 sps:$4 sm:$0xff]  }
  0x58   : > { %1870 = vmatmul.mubr.bf16.gmra.mrb[4].mxu0 %v6123_v23  ;;  %2382 = vmatmul.mubr.bf16.gmra.mrb[4].mxu1 %v6124_v24  ;;  %v6219_v23 = vld [vmem:[%s7066_s18 + $0x110] ss:$8 sps:$4 sm:$0xff]  }
  0x59   : > { %1877 = vmatprep.mubr.bf16.mxu0 %v6125_v25  ;;  %2389 = vmatprep.mubr.bf16.mxu1 %v6127_v26  ;;  %v6220_v24 = vld [vmem:[%s7066_s18 + $0x510] ss:$8 sps:$4 sm:$0xff]   ;;  %v6221_v25 = vld [vmem:[%s7066_s18 + $0x124] ss:$8 sps:$4 sm:$0xff]  }
  0x5a   : > { %v6223_v26 = vld [vmem:[%s7066_s18 + $0x524] ss:$8 sps:$4 sm:$0xff]  }
  0x60   : > { %1878 = vmatmul.mubr.bf16.gmra.mrb[8].mxu0 %v6129_v27  ;;  %2390 = vmatmul.mubr.bf16.gmra.mrb[8].mxu1 %v6130_v28  ;;  %v6225_v27 = vld [vmem:[%s7066_s18 + $0x120] ss:$8 sps:$4 sm:$0xff]  }
  0x61   : > { %1885 = vmatprep.mubr.bf16.mxu0 %v6131_v29  ;;  %2397 = vmatprep.mubr.bf16.mxu1 %v6133_v30  ;;  %v6226_v28 = vld [vmem:[%s7066_s18 + $0x520] ss:$8 sps:$4 sm:$0xff]   ;;  %v6227_v29 = vld [vmem:[%s7066_s18 + $0x134] ss:$8 sps:$4 sm:$0xff]  }
  0x62   : > { %v6229_v30 = vld [vmem:[%s7066_s18 + $0x534] ss:$8 sps:$4 sm:$0xff]  }
  0x68   : > { %1886 = vmatmul.mubr.bf16.gmra.mrb[12].mxu0 %v6135_v31  ;;  %2398 = vmatmul.mubr.bf16.gmra.mrb[12].mxu1 %v6136_v32  ;;  %v6231_v31 = vld [vmem:[%s7066_s18 + $0x130] ss:$8 sps:$4 sm:$0xff]  }
  0x69   : > { %1893 = vmatprep.mubr.bf16.mxu0 %v6137_v33  ;;  %2405 = vmatprep.mubr.bf16.mxu1 %v6139_v34  ;;  %v6232_v32 = vld [vmem:[%s7066_s18 + $0x530] ss:$8 sps:$4 sm:$0xff]   ;;  %v6233_v33 = vld [vmem:[%s7066_s18 + $0x144] ss:$8 sps:$4 sm:$0xff]  }
  0x6a   : > { %v6235_v34 = vld [vmem:[%s7066_s18 + $0x544] ss:$8 sps:$4 sm:$0xff]  }
  0x70   : > { %1894 = vmatmul.mubr.bf16.gmra.mrb[16].mxu0 %v6141_v35  ;;  %2406 = vmatmul.mubr.bf16.gmra.mrb[16].mxu1 %v6142_v36  ;;  %v6237_v35 = vld [vmem:[%s7066_s18 + $0x140] ss:$8 sps:$4 sm:$0xff]  }
  0x71   : > { %1901 = vmatprep.mubr.bf16.mxu0 %v6143_v37  ;;  %2413 = vmatprep.mubr.bf16.mxu1 %v6145_v38  ;;  %v6238_v36 = vld [vmem:[%s7066_s18 + $0x540] ss:$8 sps:$4 sm:$0xff]   ;;  %v6239_v37 = vld [vmem:[%s7066_s18 + $0x154] ss:$8 sps:$4 sm:$0xff]  }
  0x72   : > { %v6241_v38 = vld [vmem:[%s7066_s18 + $0x554] ss:$8 sps:$4 sm:$0xff]  }
  0x78   : > { %1902 = vmatmul.mubr.bf16.gmra.mrb[20].mxu0 %v6147_v39  ;;  %2414 = vmatmul.mubr.bf16.gmra.mrb[20].mxu1 %v6148_v40  ;;  %v6243_v39 = vld [vmem:[%s7066_s18 + $0x150] ss:$8 sps:$4 sm:$0xff]  }
  0x79   : > { %1909 = vmatprep.mubr.bf16.mxu0 %v6149_v41  ;;  %2421 = vmatprep.mubr.bf16.mxu1 %v6151_v42  ;;  %v6244_v40 = vld [vmem:[%s7066_s18 + $0x550] ss:$8 sps:$4 sm:$0xff]   ;;  %v6245_v41 = vld [vmem:[%s7066_s18 + $0x164] ss:$8 sps:$4 sm:$0xff]  }
  0x7a   : > { %v6247_v42 = vld [vmem:[%s7066_s18 + $0x564] ss:$8 sps:$4 sm:$0xff]  }
  0x80   : > { %1910 = vmatmul.mubr.bf16.gmra.mrb[24].mxu0 %v6153_v43  ;;  %2422 = vmatmul.mubr.bf16.gmra.mrb[24].mxu1 %v6154_v44  ;;  %v6249_v43 = vld [vmem:[%s7066_s18 + $0x160] ss:$8 sps:$4 sm:$0xff]  }
  0x81   : > { %1917 = vmatprep.mubr.bf16.mxu0 %v6155_v45  ;;  %2429 = vmatprep.mubr.bf16.mxu1 %v6157_v46  ;;  %v6250_v44 = vld [vmem:[%s7066_s18 + $0x560] ss:$8 sps:$4 sm:$0xff]   ;;  %v6251_v45 = vld [vmem:[%s7066_s18 + $0x174] ss:$8 sps:$4 sm:$0xff]  }
  0x82   : > { %v6253_v46 = vld [vmem:[%s7066_s18 + $0x574] ss:$8 sps:$4 sm:$0xff]  }
  0x88   : > { %1918 = vmatmul.mubr.bf16.gmra.mrb[28].mxu0 %v6159_v47  ;;  %2430 = vmatmul.mubr.bf16.gmra.mrb[28].mxu1 %v6160_v48  ;;  %v6255_v47 = vld [vmem:[%s7066_s18 + $0x170] ss:$8 sps:$4 sm:$0xff]  }
  0x89   : > { %1925 = vmatprep.mubr.bf16.mxu0 %v6161_v49  ;;  %2437 = vmatprep.mubr.bf16.mxu1 %v6163_v50  ;;  %v6256_v48 = vld [vmem:[%s7066_s18 + $0x570] ss:$8 sps:$4 sm:$0xff]   ;;  %v6257_v49 = vld [vmem:[%s7066_s18 + $0x184] ss:$8 sps:$4 sm:$0xff]  }
  0x8a   : > { %v6259_v50 = vld [vmem:[%s7066_s18 + $0x584] ss:$8 sps:$4 sm:$0xff]  }
  0x90   : > { %1926 = vmatmul.mubr.bf16.gmra.mrb[32].mxu0 %v6165_v51  ;;  %2438 = vmatmul.mubr.bf16.gmra.mrb[32].mxu1 %v6166_v52  ;;  %v6261_v51 = vld [vmem:[%s7066_s18 + $0x180] ss:$8 sps:$4 sm:$0xff]  }
  0x91   : > { %1933 = vmatprep.mubr.bf16.mxu0 %v6167_v53  ;;  %2445 = vmatprep.mubr.bf16.mxu1 %v6169_v54  ;;  %v6262_v52 = vld [vmem:[%s7066_s18 + $0x580] ss:$8 sps:$4 sm:$0xff]   ;;  %v6263_v53 = vld [vmem:[%s7066_s18 + $0x194] ss:$8 sps:$4 sm:$0xff]  }
  0x92   : > { %v6265_v54 = vld [vmem:[%s7066_s18 + $0x594] ss:$8 sps:$4 sm:$0xff]  }
  0x98   : > { %1934 = vmatmul.mubr.bf16.gmra.mrb[36].mxu0 %v6171_v55  ;;  %2446 = vmatmul.mubr.bf16.gmra.mrb[36].mxu1 %v6172_v56  ;;  %v6267_v55 = vld [vmem:[%s7066_s18 + $0x190] ss:$8 sps:$4 sm:$0xff]  }
  0x99   : > { %1941 = vmatprep.mubr.bf16.mxu0 %v6173_v57  ;;  %2453 = vmatprep.mubr.bf16.mxu1 %v6175_v58  ;;  %v6268_v56 = vld [vmem:[%s7066_s18 + $0x590] ss:$8 sps:$4 sm:$0xff]   ;;  %v6269_v57 = vld [vmem:[%s7066_s18 + $0x1a4] ss:$8 sps:$4 sm:$0xff]  }
  0x9a   : > { %v6271_v58 = vld [vmem:[%s7066_s18 + $0x5a4] ss:$8 sps:$4 sm:$0xff]  }
  0xa0   : > { %1942 = vmatmul.mubr.bf16.gmra.mrb[40].mxu0 %v6177_v59  ;;  %2454 = vmatmul.mubr.bf16.gmra.mrb[40].mxu1 %v6178_v60  ;;  %v6273_v59 = vld [vmem:[%s7066_s18 + $0x1a0] ss:$8 sps:$4 sm:$0xff]  }
  0xa1   : > { %1949 = vmatprep.mubr.bf16.mxu0 %v6179_v61  ;;  %2461 = vmatprep.mubr.bf16.mxu1 %v6181_v62  ;;  %v6274_v60 = vld [vmem:[%s7066_s18 + $0x5a0] ss:$8 sps:$4 sm:$0xff]   ;;  %v6275_v61 = vld [vmem:[%s7066_s18 + $0x1b4] ss:$8 sps:$4 sm:$0xff]  }
  0xa2   : > { %v6277_v62 = vld [vmem:[%s7066_s18 + $0x5b4] ss:$8 sps:$4 sm:$0xff]  }
  0xa8   : > { %1950 = vmatmul.mubr.bf16.gmra.mrb[44].mxu0 %v6183_v63  ;;  %2462 = vmatmul.mubr.bf16.gmra.mrb[44].mxu1 %v6184_v0 }
  0xa9   : > { %1957 = vmatprep.mubr.bf16.mxu0 %v6185_v1  ;;  %2469 = vmatprep.mubr.bf16.mxu1 %v6187_v2 }
  0xb0   : > { %1958 = vmatmul.mubr.bf16.gmra.mrb[48].mxu0 %v6189_v3  ;;  %2470 = vmatmul.mubr.bf16.gmra.mrb[48].mxu1 %v6190_v4  ;;  %v6279_v3 = vld [vmem:[%s7066_s18 + $0x1b0] ss:$8 sps:$4 sm:$0xff]  }
  0xb1   : > { %1965 = vmatprep.mubr.bf16.mxu0 %v6191_v5  ;;  %2477 = vmatprep.mubr.bf16.mxu1 %v6193_v6  ;;  %v6280_v4 = vld [vmem:[%s7066_s18 + $0x5b0] ss:$8 sps:$4 sm:$0xff]  }
  0xb8   : > { %1966 = vmatmul.mubr.bf16.gmra.mrb[52].mxu0 %v6195_v7  ;;  %2478 = vmatmul.mubr.bf16.gmra.mrb[52].mxu1 %v6196_v8  ;;  %v6281_v7 = vld [vmem:[%s7066_s18 + $0x1c4] ss:$8 sps:$4 sm:$0xff]  }
  0xb9   : > { %1973 = vmatprep.mubr.bf16.mxu0 %v6197_v9  ;;  %2485 = vmatprep.mubr.bf16.mxu1 %v6199_v10  ;;  %v6283_v8 = vld [vmem:[%s7066_s18 + $0x5c4] ss:$8 sps:$4 sm:$0xff]  }
  0xc0   : > { %1974 = vmatmul.mubr.bf16.gmra.mrb[56].mxu0 %v6201_v11  ;;  %2486 = vmatmul.mubr.bf16.gmra.mrb[56].mxu1 %v6202_v12 }
  0xc1   : > { %1981 = vmatprep.mubr.bf16.mxu0 %v6203_v13  ;;  %2493 = vmatprep.mubr.bf16.mxu1 %v6205_v14 }
  0xc8   : > { %1982 = vmatmul.mubr.bf16.gmra.mrb[60].mxu0 %v6207_v15  ;;  %2494 = vmatmul.mubr.bf16.gmra.mrb[60].mxu1 %v6208_v16  ;;  %v6285_v15 = vld [vmem:[%s7066_s18 + $0x1c0] ss:$8 sps:$4 sm:$0xff]  }
  0xc9   : > { %1989 = vmatprep.mubr.bf16.mxu0 %v6209_v17  ;;  %2501 = vmatprep.mubr.bf16.mxu1 %v6211_v18  ;;  %v6286_v16 = vld [vmem:[%s7066_s18 + $0x5c0] ss:$8 sps:$4 sm:$0xff]  }
  0xd0   : > { %1990 = vmatmul.mubr.bf16.gmra.mrb[64].mxu0 %v6213_v19  ;;  %2502 = vmatmul.mubr.bf16.gmra.mrb[64].mxu1 %v6214_v20  ;;  %v6287_v19 = vld [vmem:[%s7066_s18 + $0x1d4] ss:$8 sps:$4 sm:$0xff]  }
  0xd1   : > { %1997 = vmatprep.mubr.bf16.mxu0 %v6215_v21  ;;  %2509 = vmatprep.mubr.bf16.mxu1 %v6217_v22  ;;  %v6289_v20 = vld [vmem:[%s7066_s18 + $0x5d4] ss:$8 sps:$4 sm:$0xff]  }
  0xd8   : > { %1998 = vmatmul.mubr.bf16.gmra.mrb[68].mxu0 %v6219_v23  ;;  %2510 = vmatmul.mubr.bf16.gmra.mrb[68].mxu1 %v6220_v24 }
  0xd9   : > { %2005 = vmatprep.mubr.bf16.mxu0 %v6221_v25  ;;  %2517 = vmatprep.mubr.bf16.mxu1 %v6223_v26 }
  0xe0   : > { %2006 = vmatmul.mubr.bf16.gmra.mrb[72].mxu0 %v6225_v27  ;;  %2518 = vmatmul.mubr.bf16.gmra.mrb[72].mxu1 %v6226_v28 }
  0xe1   : > { %2013 = vmatprep.mubr.bf16.mxu0 %v6227_v29  ;;  %2525 = vmatprep.mubr.bf16.mxu1 %v6229_v30 }
  0xe8   : > { %2014 = vmatmul.mubr.bf16.gmra.mrb[76].mxu0 %v6231_v31  ;;  %2526 = vmatmul.mubr.bf16.gmra.mrb[76].mxu1 %v6232_v32 }
  0xe9   : > { %2021 = vmatprep.mubr.bf16.mxu0 %v6233_v33  ;;  %2533 = vmatprep.mubr.bf16.mxu1 %v6235_v34  ;;  %v6291_v33 = vld [vmem:[%s7066_s18 + $0x1d0] ss:$8 sps:$4 sm:$0xff]  }
  0xea   : > { %v6292_v34 = vld [vmem:[%s7066_s18 + $0x5d0] ss:$8 sps:$4 sm:$0xff]  }
  0xf0   : > { %2022 = vmatmul.mubr.bf16.gmra.mrb[80].mxu0 %v6237_v35  ;;  %2534 = vmatmul.mubr.bf16.gmra.mrb[80].mxu1 %v6238_v36 }
  0xf1   : > { %2029 = vmatprep.mubr.bf16.mxu0 %v6239_v37  ;;  %2541 = vmatprep.mubr.bf16.mxu1 %v6241_v38  ;;  %v6293_v37 = vld [vmem:[%s7066_s18 + $0x1e4] ss:$8 sps:$4 sm:$0xff]  }
  0xf2   : > { %v6295_v38 = vld [vmem:[%s7066_s18 + $0x5e4] ss:$8 sps:$4 sm:$0xff]  }
  0xf8   : > { %2030 = vmatmul.mubr.bf16.gmra.mrb[84].mxu0 %v6243_v39  ;;  %2542 = vmatmul.mubr.bf16.gmra.mrb[84].mxu1 %v6244_v40 }
  0xf9   : > { %2037 = vmatprep.mubr.bf16.mxu0 %v6245_v41  ;;  %2549 = vmatprep.mubr.bf16.mxu1 %v6247_v42 }
 0x100   : > { %2038 = vmatmul.mubr.bf16.gmra.mrb[88].mxu0 %v6249_v43  ;;  %2550 = vmatmul.mubr.bf16.gmra.mrb[88].mxu1 %v6250_v44 }
 0x101   : > { %2045 = vmatprep.mubr.bf16.mxu0 %v6251_v45  ;;  %2557 = vmatprep.mubr.bf16.mxu1 %v6253_v46 }
 0x108   : > { %2046 = vmatmul.mubr.bf16.gmra.mrb[92].mxu0 %v6255_v47  ;;  %2558 = vmatmul.mubr.bf16.gmra.mrb[92].mxu1 %v6256_v48 }
 0x109   : > { %2053 = vmatprep.mubr.bf16.mxu0 %v6257_v49  ;;  %2565 = vmatprep.mubr.bf16.mxu1 %v6259_v50 }
 0x110   : > { %2054 = vmatmul.mubr.bf16.gmra.mrb[96].mxu0 %v6261_v51  ;;  %2566 = vmatmul.mubr.bf16.gmra.mrb[96].mxu1 %v6262_v52  ;;  %v6297_v51 = vld [vmem:[%s7066_s18 + $0x1e0] ss:$8 sps:$4 sm:$0xff]  }
 0x111   : > { %2061 = vmatprep.mubr.bf16.mxu0 %v6263_v53  ;;  %2573 = vmatprep.mubr.bf16.mxu1 %v6265_v54  ;;  %v6298_v52 = vld [vmem:[%s7066_s18 + $0x5e0] ss:$8 sps:$4 sm:$0xff]  }
 0x118   : > { %2062 = vmatmul.mubr.bf16.gmra.mrb[100].mxu0 %v6267_v55  ;;  %2574 = vmatmul.mubr.bf16.gmra.mrb[100].mxu1 %v6268_v56  ;;  %v6299_v55 = vld [vmem:[%s7066_s18 + $0x1f4] ss:$8 sps:$4 sm:$0xff]  }
 0x119   : > { %2069 = vmatprep.mubr.bf16.mxu0 %v6269_v57  ;;  %2581 = vmatprep.mubr.bf16.mxu1 %v6271_v58  ;;  %v6301_v56 = vld [vmem:[%s7066_s18 + $0x5f4] ss:$8 sps:$4 sm:$0xff]  }
 0x120   : > { %2070 = vmatmul.mubr.bf16.gmra.mrb[104].mxu0 %v6273_v59  ;;  %2582 = vmatmul.mubr.bf16.gmra.mrb[104].mxu1 %v6274_v60 }
 0x121   : > { %2077 = vmatprep.mubr.bf16.mxu0 %v6275_v61  ;;  %2589 = vmatprep.mubr.bf16.mxu1 %v6277_v62 }
 0x123   : > { %v1863_v63 = vpop.f32.mrb[0].mxu0  ;;  %v2375_v0 = vpop.f32.mrb[0].mxu1 }
 0x124   : > { %6497 = vtanh.f32 %v1863_v63  ;;  %v1865_v1 = vpop.f32.mrb[1].mxu0  ;;  %v2377_v2 = vpop.f32.mrb[1].mxu1 }
 0x125   : > { %6499 = vtanh.f32 %v2375_v0  ;;  %v1866_v5 = vpop.f32.mrb[2].mxu0  ;;  %v2378_v6 = vpop.f32.mrb[2].mxu1 }
 0x126   : > { %6501 = vtanh.f32 %v1866_v5  ;;  %v1868_v9 = vpop.f32.mrb[3].mxu0  ;;  %v2380_v10 = vpop.f32.mrb[3].mxu1  ;;  %v6303_v5 = vld [vmem:[%s7066_s18 + $0x1f0] ss:$8 sps:$4 sm:$0xff]  }
 0x127   : > { %6503 = vtanh.f32 %v2378_v6  ;;  %v6304_v6 = vld [vmem:[%s7066_s18 + $0x5f0] ss:$8 sps:$4 sm:$0xff]   ;;  %v6305_v9 = vld [vmem:[%s7066_s18 + $0x204] ss:$8 sps:$4 sm:$0xff]  }
 0x128   : > { %2078 = vmatmul.mubr.bf16.gmra.mrb[108].mxu0 %v6279_v3  ;;  %2590 = vmatmul.mubr.bf16.gmra.mrb[108].mxu1 %v6280_v4  ;;  %v6307_v10 = vld [vmem:[%s7066_s18 + $0x604] ss:$8 sps:$4 sm:$0xff]  }
 0x129   : > { %2085 = vmatprep.mubr.bf16.mxu0 %v6281_v7  ;;  %2597 = vmatprep.mubr.bf16.mxu1 %v6283_v8 }
 0x12b   : > { %v1871_v11 = vpop.f32.mrb[4].mxu0  ;;  %v2383_v12 = vpop.f32.mrb[4].mxu1 }
 0x12c   : > { %6505 = vtanh.f32 %v1871_v11  ;;  %v1873_v13 = vpop.f32.mrb[5].mxu0  ;;  %v2385_v14 = vpop.f32.mrb[5].mxu1 }
 0x12d   : > { %6507 = vtanh.f32 %v2383_v12  ;;  %v1874_v17 = vpop.f32.mrb[6].mxu0  ;;  %v2386_v18 = vpop.f32.mrb[6].mxu1 }
 0x12e   : > { %v6498_v21 = vpop.eup %6497  ;;  %6509 = vtanh.f32 %v1874_v17  ;;  %v1876_v22 = vpop.f32.mrb[7].mxu0 }
 0x12f   : > { %v2388_v23 = vpop.f32.mrb[7].mxu1  ;;  %v6500_v24 = vpop.eup %6499  ;;  %6511 = vtanh.f32 %v2386_v18 }
 0x130   : > { %v6502_v25 = vpop.eup %6501  ;;  %2086 = vmatmul.mubr.bf16.gmra.mrb[112].mxu0 %v6285_v15  ;;  %2598 = vmatmul.mubr.bf16.gmra.mrb[112].mxu1 %v6286_v16  ;;  %v6309_v23 = vld [vmem:[%s7066_s18 + $0x200] ss:$8 sps:$4 sm:$0xff]  }
 0x131   : > { %v6504_v26 = vpop.eup %6503  ;;  %v5292_v27 = vpack.c.bf16 %v6502_v25, %v6498_v21  ;;  %2093 = vmatprep.mubr.bf16.mxu0 %v6287_v19  ;;  %2605 = vmatprep.mubr.bf16.mxu1 %v6289_v20 }
 0x132   : > { %v5612_v28 = vpack.c.bf16 %v6504_v26, %v6500_v24  ;;  %v6310_v24 = vld [vmem:[%s7066_s18 + $0x600] ss:$8 sps:$4 sm:$0xff]  }
 0x133   : > { %5293 = vst [vmem:[%s7225_s22] sm:$0xff] %v5292_v27   ;;  %v1879_v29 = vpop.f32.mrb[8].mxu0  ;;  %v2391_v30 = vpop.f32.mrb[8].mxu1  ;;  %v6311_v27 = vld [vmem:[%s7066_s18 + $0x214] ss:$8 sps:$4 sm:$0xff]  }
 0x134   : > { %5992 = vst [vmem:[%s7225_s22 + $0x200] sm:$0xff] %v5612_v28   ;;  %6513 = vtanh.f32 %v1879_v29  ;;  %v1881_v31 = vpop.f32.mrb[9].mxu0  ;;  %v2393_v32 = vpop.f32.mrb[9].mxu1  ;;  %v6313_v28 = vld [vmem:[%s7066_s18 + $0x614] ss:$8 sps:$4 sm:$0xff]  }
 0x135   : > { %6515 = vtanh.f32 %v2391_v30  ;;  %v1882_v35 = vpop.f32.mrb[10].mxu0  ;;  %v2394_v36 = vpop.f32.mrb[10].mxu1 }
 0x136   : > { %v6506_v39 = vpop.eup %6505  ;;  %6517 = vtanh.f32 %v1882_v35  ;;  %v1884_v40 = vpop.f32.mrb[11].mxu0 }
 0x137   : > { %v2396_v41 = vpop.f32.mrb[11].mxu1  ;;  %v6508_v42 = vpop.eup %6507  ;;  %6519 = vtanh.f32 %v2394_v36 }
 0x138   : > { %v6510_v43 = vpop.eup %6509  ;;  %2094 = vmatmul.mubr.bf16.gmra.mrb[116].mxu0 %v6291_v33  ;;  %2606 = vmatmul.mubr.bf16.gmra.mrb[116].mxu1 %v6292_v34  ;;  %v6315_v41 = vld [vmem:[%s7066_s18 + $0x210] ss:$8 sps:$4 sm:$0xff]  }
 0x139   : > { %v6512_v44 = vpop.eup %6511  ;;  %v5297_v45 = vpack.c.bf16 %v6510_v43, %v6506_v39  ;;  %2101 = vmatprep.mubr.bf16.mxu0 %v6293_v37  ;;  %2613 = vmatprep.mubr.bf16.mxu1 %v6295_v38 }
 0x13a   : > { %v5617_v46 = vpack.c.bf16 %v6512_v44, %v6508_v42  ;;  %v6316_v42 = vld [vmem:[%s7066_s18 + $0x610] ss:$8 sps:$4 sm:$0xff]  }
 0x13b   : > { %5929 = vst [vmem:[%s7225_s22 + $0x8] sm:$0xff] %v5297_v45   ;;  %v1887_v47 = vpop.f32.mrb[12].mxu0  ;;  %v2399_v48 = vpop.f32.mrb[12].mxu1  ;;  %v6317_v45 = vld [vmem:[%s7066_s18 + $0x224] ss:$8 sps:$4 sm:$0xff]  }
 0x13c   : > { %5993 = vst [vmem:[%s7225_s22 + $0x208] sm:$0xff] %v5617_v46   ;;  %6521 = vtanh.f32 %v1887_v47  ;;  %v1889_v49 = vpop.f32.mrb[13].mxu0  ;;  %v2401_v50 = vpop.f32.mrb[13].mxu1  ;;  %v6319_v46 = vld [vmem:[%s7066_s18 + $0x624] ss:$8 sps:$4 sm:$0xff]  }
 0x13d   : > { %6523 = vtanh.f32 %v2399_v48  ;;  %v1890_v53 = vpop.f32.mrb[14].mxu0  ;;  %v2402_v54 = vpop.f32.mrb[14].mxu1 }
 0x13e   : > { %v6514_v57 = vpop.eup %6513  ;;  %6525 = vtanh.f32 %v1890_v53  ;;  %v1892_v58 = vpop.f32.mrb[15].mxu0 }
 0x13f   : > { %v2404_v59 = vpop.f32.mrb[15].mxu1  ;;  %v6516_v60 = vpop.eup %6515  ;;  %6527 = vtanh.f32 %v2402_v54 }
 0x140   : > { %v6518_v61 = vpop.eup %6517  ;;  %2102 = vmatmul.mubr.bf16.gmra.mrb[120].mxu0 %v6297_v51  ;;  %2614 = vmatmul.mubr.bf16.gmra.mrb[120].mxu1 %v6298_v52  ;;  %v6321_v59 = vld [vmem:[%s7066_s18 + $0x220] ss:$8 sps:$4 sm:$0xff]  }
 0x141   : > { %v6520_v62 = vpop.eup %6519  ;;  %v5302_v63 = vpack.c.bf16 %v6518_v61, %v6514_v57  ;;  %2109 = vmatprep.mubr.bf16.mxu0 %v6299_v55  ;;  %2621 = vmatprep.mubr.bf16.mxu1 %v6301_v56 }
 0x142   : > { %v5622_v0 = vpack.c.bf16 %v6520_v62, %v6516_v60  ;;  %v6322_v60 = vld [vmem:[%s7066_s18 + $0x620] ss:$8 sps:$4 sm:$0xff]  }
 0x143   : > { %5930 = vst [vmem:[%s7225_s22 + $0x10] sm:$0xff] %v5302_v63   ;;  %v1895_v1 = vpop.f32.mrb[16].mxu0  ;;  %v2407_v2 = vpop.f32.mrb[16].mxu1  ;;  %v6323_v63 = vld [vmem:[%s7066_s18 + $0x234] ss:$8 sps:$4 sm:$0xff]  }
 0x144   : > { %5994 = vst [vmem:[%s7225_s22 + $0x210] sm:$0xff] %v5622_v0   ;;  %6529 = vtanh.f32 %v1895_v1  ;;  %v1897_v3 = vpop.f32.mrb[17].mxu0  ;;  %v2409_v4 = vpop.f32.mrb[17].mxu1  ;;  %v6325_v0 = vld [vmem:[%s7066_s18 + $0x634] ss:$8 sps:$4 sm:$0xff]  }
 0x145   : > { %6531 = vtanh.f32 %v2407_v2  ;;  %v1898_v7 = vpop.f32.mrb[18].mxu0  ;;  %v2410_v8 = vpop.f32.mrb[18].mxu1 }
 0x146   : > { %v6522_v11 = vpop.eup %6521  ;;  %6533 = vtanh.f32 %v1898_v7  ;;  %v1900_v12 = vpop.f32.mrb[19].mxu0 }
 0x147   : > { %v2412_v13 = vpop.f32.mrb[19].mxu1  ;;  %v6524_v14 = vpop.eup %6523  ;;  %6535 = vtanh.f32 %v2410_v8 }
 0x148   : > { %v6526_v15 = vpop.eup %6525  ;;  %2110 = vmatmul.mubr.bf16.gmra.mrb[124].mxu0 %v6303_v5  ;;  %2622 = vmatmul.mubr.bf16.gmra.mrb[124].mxu1 %v6304_v6  ;;  %v6327_v13 = vld [vmem:[%s7066_s18 + $0x230] ss:$8 sps:$4 sm:$0xff]  }
 0x149   : > { %v6528_v16 = vpop.eup %6527  ;;  %v5307_v17 = vpack.c.bf16 %v6526_v15, %v6522_v11  ;;  %2117 = vmatprep.mubr.bf16.mxu0 %v6305_v9  ;;  %2629 = vmatprep.mubr.bf16.mxu1 %v6307_v10 }
 0x14a   : > { %v5627_v18 = vpack.c.bf16 %v6528_v16, %v6524_v14  ;;  %v6328_v14 = vld [vmem:[%s7066_s18 + $0x630] ss:$8 sps:$4 sm:$0xff]  }
 0x14b   : > { %5931 = vst [vmem:[%s7225_s22 + $0x18] sm:$0xff] %v5307_v17   ;;  %v1903_v19 = vpop.f32.mrb[20].mxu0  ;;  %v2415_v20 = vpop.f32.mrb[20].mxu1  ;;  %v6329_v17 = vld [vmem:[%s7066_s18 + $0x244] ss:$8 sps:$4 sm:$0xff]  }
 0x14c   : > { %5995 = vst [vmem:[%s7225_s22 + $0x218] sm:$0xff] %v5627_v18   ;;  %6537 = vtanh.f32 %v1903_v19  ;;  %v1905_v21 = vpop.f32.mrb[21].mxu0  ;;  %v2417_v22 = vpop.f32.mrb[21].mxu1  ;;  %v6331_v18 = vld [vmem:[%s7066_s18 + $0x644] ss:$8 sps:$4 sm:$0xff]  }
 0x14d   : > { %6539 = vtanh.f32 %v2415_v20  ;;  %v1906_v25 = vpop.f32.mrb[22].mxu0  ;;  %v2418_v26 = vpop.f32.mrb[22].mxu1 }
 0x14e   : > { %v6530_v29 = vpop.eup %6529  ;;  %6541 = vtanh.f32 %v1906_v25  ;;  %v1908_v30 = vpop.f32.mrb[23].mxu0 }
 0x14f   : > { %v2420_v31 = vpop.f32.mrb[23].mxu1  ;;  %v6532_v32 = vpop.eup %6531  ;;  %6543 = vtanh.f32 %v2418_v26 }
 0x150   : > { %v6534_v33 = vpop.eup %6533  ;;  %2118 = vmatmul.mubr.bf16.gmra.mrb[128].mxu0 %v6309_v23  ;;  %2630 = vmatmul.mubr.bf16.gmra.mrb[128].mxu1 %v6310_v24  ;;  %v6333_v31 = vld [vmem:[%s7066_s18 + $0x240] ss:$8 sps:$4 sm:$0xff]  }
 0x151   : > { %v6536_v34 = vpop.eup %6535  ;;  %v5312_v35 = vpack.c.bf16 %v6534_v33, %v6530_v29  ;;  %2125 = vmatprep.mubr.bf16.mxu0 %v6311_v27  ;;  %2637 = vmatprep.mubr.bf16.mxu1 %v6313_v28 }
 0x152   : > { %v5632_v36 = vpack.c.bf16 %v6536_v34, %v6532_v32  ;;  %v6334_v32 = vld [vmem:[%s7066_s18 + $0x640] ss:$8 sps:$4 sm:$0xff]  }
 0x153   : > { %5932 = vst [vmem:[%s7225_s22 + $0x20] sm:$0xff] %v5312_v35   ;;  %v1911_v37 = vpop.f32.mrb[24].mxu0  ;;  %v2423_v38 = vpop.f32.mrb[24].mxu1  ;;  %v6335_v35 = vld [vmem:[%s7066_s18 + $0x254] ss:$8 sps:$4 sm:$0xff]  }
 0x154   : > { %5996 = vst [vmem:[%s7225_s22 + $0x220] sm:$0xff] %v5632_v36   ;;  %6545 = vtanh.f32 %v1911_v37  ;;  %v1913_v39 = vpop.f32.mrb[25].mxu0  ;;  %v2425_v40 = vpop.f32.mrb[25].mxu1  ;;  %v6337_v36 = vld [vmem:[%s7066_s18 + $0x654] ss:$8 sps:$4 sm:$0xff]  }
 0x155   : > { %6547 = vtanh.f32 %v2423_v38  ;;  %v1914_v43 = vpop.f32.mrb[26].mxu0  ;;  %v2426_v44 = vpop.f32.mrb[26].mxu1 }
 0x156   : > { %v6538_v47 = vpop.eup %6537  ;;  %6549 = vtanh.f32 %v1914_v43  ;;  %v1916_v48 = vpop.f32.mrb[27].mxu0 }
 0x157   : > { %v2428_v49 = vpop.f32.mrb[27].mxu1  ;;  %v6540_v50 = vpop.eup %6539  ;;  %6551 = vtanh.f32 %v2426_v44 }
 0x158   : > { %v6542_v51 = vpop.eup %6541  ;;  %2126 = vmatmul.mubr.bf16.gmra.mrb[132].mxu0 %v6315_v41  ;;  %2638 = vmatmul.mubr.bf16.gmra.mrb[132].mxu1 %v6316_v42  ;;  %v6339_v49 = vld [vmem:[%s7066_s18 + $0x250] ss:$8 sps:$4 sm:$0xff]  }
 0x159   : > { %v6544_v52 = vpop.eup %6543  ;;  %v5317_v53 = vpack.c.bf16 %v6542_v51, %v6538_v47  ;;  %2133 = vmatprep.mubr.bf16.mxu0 %v6317_v45  ;;  %2645 = vmatprep.mubr.bf16.mxu1 %v6319_v46 }
 0x15a   : > { %v5637_v54 = vpack.c.bf16 %v6544_v52, %v6540_v50  ;;  %v6340_v50 = vld [vmem:[%s7066_s18 + $0x650] ss:$8 sps:$4 sm:$0xff]  }
 0x15b   : > { %5933 = vst [vmem:[%s7225_s22 + $0x28] sm:$0xff] %v5317_v53   ;;  %v1919_v55 = vpop.f32.mrb[28].mxu0  ;;  %v2431_v56 = vpop.f32.mrb[28].mxu1  ;;  %v6341_v53 = vld [vmem:[%s7066_s18 + $0x264] ss:$8 sps:$4 sm:$0xff]  }
 0x15c   : > { %5997 = vst [vmem:[%s7225_s22 + $0x228] sm:$0xff] %v5637_v54   ;;  %6553 = vtanh.f32 %v1919_v55  ;;  %v1921_v57 = vpop.f32.mrb[29].mxu0  ;;  %v2433_v58 = vpop.f32.mrb[29].mxu1  ;;  %v6343_v54 = vld [vmem:[%s7066_s18 + $0x664] ss:$8 sps:$4 sm:$0xff]  }
 0x15d   : > { %6555 = vtanh.f32 %v2431_v56  ;;  %v1922_v61 = vpop.f32.mrb[30].mxu0  ;;  %v2434_v62 = vpop.f32.mrb[30].mxu1 }
 0x15e   : > { %v6546_v1 = vpop.eup %6545  ;;  %6557 = vtanh.f32 %v1922_v61  ;;  %v1924_v2 = vpop.f32.mrb[31].mxu0 }
 0x15f   : > { %v2436_v3 = vpop.f32.mrb[31].mxu1  ;;  %v6548_v4 = vpop.eup %6547  ;;  %6559 = vtanh.f32 %v2434_v62 }
 0x160   : > { %v6550_v5 = vpop.eup %6549  ;;  %2134 = vmatmul.mubr.bf16.gmra.mrb[136].mxu0 %v6321_v59  ;;  %2646 = vmatmul.mubr.bf16.gmra.mrb[136].mxu1 %v6322_v60  ;;  %v6345_v3 = vld [vmem:[%s7066_s18 + $0x260] ss:$8 sps:$4 sm:$0xff]  }
 0x161   : > { %v6552_v6 = vpop.eup %6551  ;;  %v5322_v7 = vpack.c.bf16 %v6550_v5, %v6546_v1  ;;  %2141 = vmatprep.mubr.bf16.mxu0 %v6323_v63  ;;  %2653 = vmatprep.mubr.bf16.mxu1 %v6325_v0 }
 0x162   : > { %v5642_v8 = vpack.c.bf16 %v6552_v6, %v6548_v4  ;;  %v6346_v4 = vld [vmem:[%s7066_s18 + $0x660] ss:$8 sps:$4 sm:$0xff]  }
 0x163   : > { %5934 = vst [vmem:[%s7225_s22 + $0x30] sm:$0xff] %v5322_v7   ;;  %v1927_v9 = vpop.f32.mrb[32].mxu0  ;;  %v2439_v10 = vpop.f32.mrb[32].mxu1  ;;  %v6347_v7 = vld [vmem:[%s7066_s18 + $0x274] ss:$8 sps:$4 sm:$0xff]  }
 0x164   : > { %5998 = vst [vmem:[%s7225_s22 + $0x230] sm:$0xff] %v5642_v8   ;;  %6561 = vtanh.f32 %v1927_v9  ;;  %v1929_v11 = vpop.f32.mrb[33].mxu0  ;;  %v2441_v12 = vpop.f32.mrb[33].mxu1  ;;  %v6349_v8 = vld [vmem:[%s7066_s18 + $0x674] ss:$8 sps:$4 sm:$0xff]  }
 0x165   : > { %6563 = vtanh.f32 %v2439_v10  ;;  %v1930_v15 = vpop.f32.mrb[34].mxu0  ;;  %v2442_v16 = vpop.f32.mrb[34].mxu1 }
 0x166   : > { %v6554_v19 = vpop.eup %6553  ;;  %6565 = vtanh.f32 %v1930_v15  ;;  %v1932_v20 = vpop.f32.mrb[35].mxu0 }
 0x167   : > { %v2444_v21 = vpop.f32.mrb[35].mxu1  ;;  %v6556_v22 = vpop.eup %6555  ;;  %6567 = vtanh.f32 %v2442_v16 }
 0x168   : > { %v6558_v23 = vpop.eup %6557  ;;  %2142 = vmatmul.mubr.bf16.gmra.mrb[140].mxu0 %v6327_v13  ;;  %2654 = vmatmul.mubr.bf16.gmra.mrb[140].mxu1 %v6328_v14  ;;  %v6351_v21 = vld [vmem:[%s7066_s18 + $0x270] ss:$8 sps:$4 sm:$0xff]  }
 0x169   : > { %v6560_v24 = vpop.eup %6559  ;;  %v5327_v25 = vpack.c.bf16 %v6558_v23, %v6554_v19  ;;  %2149 = vmatprep.mubr.bf16.mxu0 %v6329_v17  ;;  %2661 = vmatprep.mubr.bf16.mxu1 %v6331_v18 }
 0x16a   : > { %v5647_v26 = vpack.c.bf16 %v6560_v24, %v6556_v22  ;;  %v6352_v22 = vld [vmem:[%s7066_s18 + $0x670] ss:$8 sps:$4 sm:$0xff]  }
 0x16b   : > { %5935 = vst [vmem:[%s7225_s22 + $0x38] sm:$0xff] %v5327_v25   ;;  %v1935_v27 = vpop.f32.mrb[36].mxu0  ;;  %v2447_v28 = vpop.f32.mrb[36].mxu1  ;;  %v6353_v25 = vld [vmem:[%s7066_s18 + $0x284] ss:$8 sps:$4 sm:$0xff]  }
 0x16c   : > { %5999 = vst [vmem:[%s7225_s22 + $0x238] sm:$0xff] %v5647_v26   ;;  %6569 = vtanh.f32 %v1935_v27  ;;  %v1937_v29 = vpop.f32.mrb[37].mxu0  ;;  %v2449_v30 = vpop.f32.mrb[37].mxu1  ;;  %v6355_v26 = vld [vmem:[%s7066_s18 + $0x684] ss:$8 sps:$4 sm:$0xff]  }
 0x16d   : > { %6571 = vtanh.f32 %v2447_v28  ;;  %v1938_v33 = vpop.f32.mrb[38].mxu0  ;;  %v2450_v34 = vpop.f32.mrb[38].mxu1 }
 0x16e   : > { %v6562_v37 = vpop.eup %6561  ;;  %6573 = vtanh.f32 %v1938_v33  ;;  %v1940_v38 = vpop.f32.mrb[39].mxu0 }
 0x16f   : > { %v2452_v39 = vpop.f32.mrb[39].mxu1  ;;  %v6564_v40 = vpop.eup %6563  ;;  %6575 = vtanh.f32 %v2450_v34 }
 0x170   : > { %v6566_v41 = vpop.eup %6565  ;;  %2150 = vmatmul.mubr.bf16.gmra.mrb[144].mxu0 %v6333_v31  ;;  %2662 = vmatmul.mubr.bf16.gmra.mrb[144].mxu1 %v6334_v32  ;;  %v6357_v39 = vld [vmem:[%s7066_s18 + $0x280] ss:$8 sps:$4 sm:$0xff]  }
 0x171   : > { %v6568_v42 = vpop.eup %6567  ;;  %v5332_v43 = vpack.c.bf16 %v6566_v41, %v6562_v37  ;;  %2157 = vmatprep.mubr.bf16.mxu0 %v6335_v35  ;;  %2669 = vmatprep.mubr.bf16.mxu1 %v6337_v36 }
 0x172   : > { %v5652_v44 = vpack.c.bf16 %v6568_v42, %v6564_v40  ;;  %v6358_v40 = vld [vmem:[%s7066_s18 + $0x680] ss:$8 sps:$4 sm:$0xff]  }
 0x173   : > { %5936 = vst [vmem:[%s7225_s22 + $0x40] sm:$0xff] %v5332_v43   ;;  %v1943_v45 = vpop.f32.mrb[40].mxu0  ;;  %v2455_v46 = vpop.f32.mrb[40].mxu1  ;;  %v6359_v43 = vld [vmem:[%s7066_s18 + $0x294] ss:$8 sps:$4 sm:$0xff]  }
 0x174   : > { %6000 = vst [vmem:[%s7225_s22 + $0x240] sm:$0xff] %v5652_v44   ;;  %6577 = vtanh.f32 %v1943_v45  ;;  %v1945_v47 = vpop.f32.mrb[41].mxu0  ;;  %v2457_v48 = vpop.f32.mrb[41].mxu1  ;;  %v6361_v44 = vld [vmem:[%s7066_s18 + $0x694] ss:$8 sps:$4 sm:$0xff]  }
 0x175   : > { %6579 = vtanh.f32 %v2455_v46  ;;  %v1946_v51 = vpop.f32.mrb[42].mxu0  ;;  %v2458_v52 = vpop.f32.mrb[42].mxu1 }
 0x176   : > { %v6570_v55 = vpop.eup %6569  ;;  %6581 = vtanh.f32 %v1946_v51  ;;  %v1948_v56 = vpop.f32.mrb[43].mxu0 }
 0x177   : > { %v2460_v57 = vpop.f32.mrb[43].mxu1  ;;  %v6572_v58 = vpop.eup %6571  ;;  %6583 = vtanh.f32 %v2458_v52 }
 0x178   : > { %v6574_v59 = vpop.eup %6573  ;;  %2158 = vmatmul.mubr.bf16.gmra.mrb[148].mxu0 %v6339_v49  ;;  %2670 = vmatmul.mubr.bf16.gmra.mrb[148].mxu1 %v6340_v50  ;;  %v6363_v57 = vld [vmem:[%s7066_s18 + $0x290] ss:$8 sps:$4 sm:$0xff]  }
 0x179   : > { %v6576_v60 = vpop.eup %6575  ;;  %v5337_v61 = vpack.c.bf16 %v6574_v59, %v6570_v55  ;;  %2165 = vmatprep.mubr.bf16.mxu0 %v6341_v53  ;;  %2677 = vmatprep.mubr.bf16.mxu1 %v6343_v54 }
 0x17a   : > { %v5657_v62 = vpack.c.bf16 %v6576_v60, %v6572_v58  ;;  %v6364_v58 = vld [vmem:[%s7066_s18 + $0x690] ss:$8 sps:$4 sm:$0xff]  }
 0x17b   : > { %5937 = vst [vmem:[%s7225_s22 + $0x48] sm:$0xff] %v5337_v61   ;;  %v1951_v63 = vpop.f32.mrb[44].mxu0  ;;  %v2463_v0 = vpop.f32.mrb[44].mxu1  ;;  %v6365_v61 = vld [vmem:[%s7066_s18 + $0x2a4] ss:$8 sps:$4 sm:$0xff]  }
 0x17c   : > { %6001 = vst [vmem:[%s7225_s22 + $0x248] sm:$0xff] %v5657_v62   ;;  %6585 = vtanh.f32 %v1951_v63  ;;  %v1953_v1 = vpop.f32.mrb[45].mxu0  ;;  %v2465_v2 = vpop.f32.mrb[45].mxu1  ;;  %v6367_v62 = vld [vmem:[%s7066_s18 + $0x6a4] ss:$8 sps:$4 sm:$0xff]  }
 0x17d   : > { %6587 = vtanh.f32 %v2463_v0  ;;  %v1954_v5 = vpop.f32.mrb[46].mxu0  ;;  %v2466_v6 = vpop.f32.mrb[46].mxu1 }
 0x17e   : > { %v6578_v9 = vpop.eup %6577  ;;  %6589 = vtanh.f32 %v1954_v5  ;;  %v1956_v10 = vpop.f32.mrb[47].mxu0 }
 0x17f   : > { %v2468_v11 = vpop.f32.mrb[47].mxu1  ;;  %v6580_v12 = vpop.eup %6579  ;;  %6591 = vtanh.f32 %v2466_v6 }
 0x180   : > { %v6582_v13 = vpop.eup %6581  ;;  %2166 = vmatmul.mubr.bf16.gmra.mrb[152].mxu0 %v6345_v3  ;;  %2678 = vmatmul.mubr.bf16.gmra.mrb[152].mxu1 %v6346_v4  ;;  %v6369_v11 = vld [vmem:[%s7066_s18 + $0x2a0] ss:$8 sps:$4 sm:$0xff]  }
 0x181   : > { %v6584_v14 = vpop.eup %6583  ;;  %v5342_v15 = vpack.c.bf16 %v6582_v13, %v6578_v9  ;;  %2173 = vmatprep.mubr.bf16.mxu0 %v6347_v7  ;;  %2685 = vmatprep.mubr.bf16.mxu1 %v6349_v8 }
 0x182   : > { %v5662_v16 = vpack.c.bf16 %v6584_v14, %v6580_v12  ;;  %v6370_v12 = vld [vmem:[%s7066_s18 + $0x6a0] ss:$8 sps:$4 sm:$0xff]  }
 0x183   : > { %5938 = vst [vmem:[%s7225_s22 + $0x50] sm:$0xff] %v5342_v15   ;;  %v1959_v17 = vpop.f32.mrb[48].mxu0  ;;  %v2471_v18 = vpop.f32.mrb[48].mxu1  ;;  %v6371_v15 = vld [vmem:[%s7066_s18 + $0x2b4] ss:$8 sps:$4 sm:$0xff]  }
 0x184   : > { %6002 = vst [vmem:[%s7225_s22 + $0x250] sm:$0xff] %v5662_v16   ;;  %6593 = vtanh.f32 %v1959_v17  ;;  %v1961_v19 = vpop.f32.mrb[49].mxu0  ;;  %v2473_v20 = vpop.f32.mrb[49].mxu1  ;;  %v6373_v16 = vld [vmem:[%s7066_s18 + $0x6b4] ss:$8 sps:$4 sm:$0xff]  }
 0x185   : > { %6595 = vtanh.f32 %v2471_v18  ;;  %v1962_v23 = vpop.f32.mrb[50].mxu0  ;;  %v2474_v24 = vpop.f32.mrb[50].mxu1 }
 0x186   : > { %v6586_v27 = vpop.eup %6585  ;;  %6597 = vtanh.f32 %v1962_v23  ;;  %v1964_v28 = vpop.f32.mrb[51].mxu0 }
 0x187   : > { %v2476_v29 = vpop.f32.mrb[51].mxu1  ;;  %v6588_v30 = vpop.eup %6587  ;;  %6599 = vtanh.f32 %v2474_v24 }
 0x188   : > { %v6590_v31 = vpop.eup %6589  ;;  %2174 = vmatmul.mubr.bf16.gmra.mrb[156].mxu0 %v6351_v21  ;;  %2686 = vmatmul.mubr.bf16.gmra.mrb[156].mxu1 %v6352_v22  ;;  %v6375_v29 = vld [vmem:[%s7066_s18 + $0x2b0] ss:$8 sps:$4 sm:$0xff]  }
 0x189   : > { %v6592_v32 = vpop.eup %6591  ;;  %v5347_v33 = vpack.c.bf16 %v6590_v31, %v6586_v27  ;;  %2181 = vmatprep.mubr.bf16.mxu0 %v6353_v25  ;;  %2693 = vmatprep.mubr.bf16.mxu1 %v6355_v26 }
 0x18a   : > { %v5667_v34 = vpack.c.bf16 %v6592_v32, %v6588_v30  ;;  %v6376_v30 = vld [vmem:[%s7066_s18 + $0x6b0] ss:$8 sps:$4 sm:$0xff]  }
 0x18b   : > { %5939 = vst [vmem:[%s7225_s22 + $0x58] sm:$0xff] %v5347_v33   ;;  %v1967_v35 = vpop.f32.mrb[52].mxu0  ;;  %v2479_v36 = vpop.f32.mrb[52].mxu1  ;;  %v6377_v33 = vld [vmem:[%s7066_s18 + $0x2c4] ss:$8 sps:$4 sm:$0xff]  }
 0x18c   : > { %6003 = vst [vmem:[%s7225_s22 + $0x258] sm:$0xff] %v5667_v34   ;;  %6601 = vtanh.f32 %v1967_v35  ;;  %v1969_v37 = vpop.f32.mrb[53].mxu0  ;;  %v2481_v38 = vpop.f32.mrb[53].mxu1  ;;  %v6379_v34 = vld [vmem:[%s7066_s18 + $0x6c4] ss:$8 sps:$4 sm:$0xff]  }
 0x18d   : > { %6603 = vtanh.f32 %v2479_v36  ;;  %v1970_v41 = vpop.f32.mrb[54].mxu0  ;;  %v2482_v42 = vpop.f32.mrb[54].mxu1 }
 0x18e   : > { %v6594_v45 = vpop.eup %6593  ;;  %6605 = vtanh.f32 %v1970_v41  ;;  %v1972_v46 = vpop.f32.mrb[55].mxu0 }
 0x18f   : > { %v2484_v47 = vpop.f32.mrb[55].mxu1  ;;  %v6596_v48 = vpop.eup %6595  ;;  %6607 = vtanh.f32 %v2482_v42 }
 0x190   : > { %v6598_v49 = vpop.eup %6597  ;;  %2182 = vmatmul.mubr.bf16.gmra.mrb[160].mxu0 %v6357_v39  ;;  %2694 = vmatmul.mubr.bf16.gmra.mrb[160].mxu1 %v6358_v40  ;;  %v6381_v47 = vld [vmem:[%s7066_s18 + $0x2c0] ss:$8 sps:$4 sm:$0xff]  }
 0x191   : > { %v6600_v50 = vpop.eup %6599  ;;  %v5352_v51 = vpack.c.bf16 %v6598_v49, %v6594_v45  ;;  %2189 = vmatprep.mubr.bf16.mxu0 %v6359_v43  ;;  %2701 = vmatprep.mubr.bf16.mxu1 %v6361_v44 }
 0x192   : > { %v5672_v52 = vpack.c.bf16 %v6600_v50, %v6596_v48  ;;  %v6382_v48 = vld [vmem:[%s7066_s18 + $0x6c0] ss:$8 sps:$4 sm:$0xff]  }
 0x193   : > { %5940 = vst [vmem:[%s7225_s22 + $0x60] sm:$0xff] %v5352_v51   ;;  %v1975_v53 = vpop.f32.mrb[56].mxu0  ;;  %v2487_v54 = vpop.f32.mrb[56].mxu1  ;;  %v6383_v51 = vld [vmem:[%s7066_s18 + $0x2d4] ss:$8 sps:$4 sm:$0xff]  }
 0x194   : > { %6004 = vst [vmem:[%s7225_s22 + $0x260] sm:$0xff] %v5672_v52   ;;  %6609 = vtanh.f32 %v1975_v53  ;;  %v1977_v55 = vpop.f32.mrb[57].mxu0  ;;  %v2489_v56 = vpop.f32.mrb[57].mxu1  ;;  %v6385_v52 = vld [vmem:[%s7066_s18 + $0x6d4] ss:$8 sps:$4 sm:$0xff]  }
 0x195   : > { %6611 = vtanh.f32 %v2487_v54  ;;  %v1978_v59 = vpop.f32.mrb[58].mxu0  ;;  %v2490_v60 = vpop.f32.mrb[58].mxu1 }
 0x196   : > { %v6602_v63 = vpop.eup %6601  ;;  %6613 = vtanh.f32 %v1978_v59  ;;  %v1980_v0 = vpop.f32.mrb[59].mxu0 }
 0x197   : > { %v2492_v1 = vpop.f32.mrb[59].mxu1  ;;  %v6604_v2 = vpop.eup %6603  ;;  %6615 = vtanh.f32 %v2490_v60 }
 0x198   : > { %v6606_v3 = vpop.eup %6605  ;;  %2190 = vmatmul.mubr.bf16.gmra.mrb[164].mxu0 %v6363_v57  ;;  %2702 = vmatmul.mubr.bf16.gmra.mrb[164].mxu1 %v6364_v58  ;;  %v6387_v1 = vld [vmem:[%s7066_s18 + $0x2d0] ss:$8 sps:$4 sm:$0xff]  }
 0x199   : > { %v6608_v4 = vpop.eup %6607  ;;  %v5357_v5 = vpack.c.bf16 %v6606_v3, %v6602_v63  ;;  %2197 = vmatprep.mubr.bf16.mxu0 %v6365_v61  ;;  %2709 = vmatprep.mubr.bf16.mxu1 %v6367_v62 }
 0x19a   : > { %v5677_v6 = vpack.c.bf16 %v6608_v4, %v6604_v2  ;;  %v6388_v2 = vld [vmem:[%s7066_s18 + $0x6d0] ss:$8 sps:$4 sm:$0xff]  }
 0x19b   : > { %5941 = vst [vmem:[%s7225_s22 + $0x68] sm:$0xff] %v5357_v5   ;;  %v1983_v7 = vpop.f32.mrb[60].mxu0  ;;  %v2495_v8 = vpop.f32.mrb[60].mxu1  ;;  %v6389_v5 = vld [vmem:[%s7066_s18 + $0x2e4] ss:$8 sps:$4 sm:$0xff]  }
 0x19c   : > { %6005 = vst [vmem:[%s7225_s22 + $0x268] sm:$0xff] %v5677_v6   ;;  %6617 = vtanh.f32 %v1983_v7  ;;  %v1985_v9 = vpop.f32.mrb[61].mxu0  ;;  %v2497_v10 = vpop.f32.mrb[61].mxu1  ;;  %v6391_v6 = vld [vmem:[%s7066_s18 + $0x6e4] ss:$8 sps:$4 sm:$0xff]  }
 0x19d   : > { %6619 = vtanh.f32 %v2495_v8  ;;  %v1986_v13 = vpop.f32.mrb[62].mxu0  ;;  %v2498_v14 = vpop.f32.mrb[62].mxu1 }
 0x19e   : > { %v6610_v17 = vpop.eup %6609  ;;  %6621 = vtanh.f32 %v1986_v13  ;;  %v1988_v18 = vpop.f32.mrb[63].mxu0 }
 0x19f   : > { %v2500_v19 = vpop.f32.mrb[63].mxu1  ;;  %v6612_v20 = vpop.eup %6611  ;;  %6623 = vtanh.f32 %v2498_v14 }
 0x1a0   : > { %v6614_v21 = vpop.eup %6613  ;;  %2198 = vmatmul.mubr.bf16.gmra.mrb[168].mxu0 %v6369_v11  ;;  %2710 = vmatmul.mubr.bf16.gmra.mrb[168].mxu1 %v6370_v12  ;;  %v6393_v19 = vld [vmem:[%s7066_s18 + $0x2e0] ss:$8 sps:$4 sm:$0xff]  }
 0x1a1   : > { %v6616_v22 = vpop.eup %6615  ;;  %v5362_v23 = vpack.c.bf16 %v6614_v21, %v6610_v17  ;;  %2205 = vmatprep.mubr.bf16.mxu0 %v6371_v15  ;;  %2717 = vmatprep.mubr.bf16.mxu1 %v6373_v16 }
 0x1a2   : > { %v5682_v24 = vpack.c.bf16 %v6616_v22, %v6612_v20  ;;  %v6394_v20 = vld [vmem:[%s7066_s18 + $0x6e0] ss:$8 sps:$4 sm:$0xff]  }
 0x1a3   : > { %5942 = vst [vmem:[%s7225_s22 + $0x70] sm:$0xff] %v5362_v23   ;;  %v1991_v25 = vpop.f32.mrb[64].mxu0  ;;  %v2503_v26 = vpop.f32.mrb[64].mxu1  ;;  %v6395_v23 = vld [vmem:[%s7066_s18 + $0x2f4] ss:$8 sps:$4 sm:$0xff]  }
 0x1a4   : > { %6006 = vst [vmem:[%s7225_s22 + $0x270] sm:$0xff] %v5682_v24   ;;  %6625 = vtanh.f32 %v1991_v25  ;;  %v1993_v27 = vpop.f32.mrb[65].mxu0  ;;  %v2505_v28 = vpop.f32.mrb[65].mxu1  ;;  %v6397_v24 = vld [vmem:[%s7066_s18 + $0x6f4] ss:$8 sps:$4 sm:$0xff]  }
 0x1a5   : > { %6627 = vtanh.f32 %v2503_v26  ;;  %v1994_v31 = vpop.f32.mrb[66].mxu0  ;;  %v2506_v32 = vpop.f32.mrb[66].mxu1 }
 0x1a6   : > { %v6618_v35 = vpop.eup %6617  ;;  %6629 = vtanh.f32 %v1994_v31  ;;  %v1996_v36 = vpop.f32.mrb[67].mxu0 }
 0x1a7   : > { %v2508_v37 = vpop.f32.mrb[67].mxu1  ;;  %v6620_v38 = vpop.eup %6619  ;;  %6631 = vtanh.f32 %v2506_v32 }
 0x1a8   : > { %v6622_v39 = vpop.eup %6621  ;;  %2206 = vmatmul.mubr.bf16.gmra.mrb[172].mxu0 %v6375_v29  ;;  %2718 = vmatmul.mubr.bf16.gmra.mrb[172].mxu1 %v6376_v30  ;;  %v6399_v37 = vld [vmem:[%s7066_s18 + $0x2f0] ss:$8 sps:$4 sm:$0xff]  }
 0x1a9   : > { %v6624_v40 = vpop.eup %6623  ;;  %v5367_v41 = vpack.c.bf16 %v6622_v39, %v6618_v35  ;;  %2213 = vmatprep.mubr.bf16.mxu0 %v6377_v33  ;;  %2725 = vmatprep.mubr.bf16.mxu1 %v6379_v34 }
 0x1aa   : > { %v5687_v42 = vpack.c.bf16 %v6624_v40, %v6620_v38  ;;  %v6400_v38 = vld [vmem:[%s7066_s18 + $0x6f0] ss:$8 sps:$4 sm:$0xff]  }
 0x1ab   : > { %5943 = vst [vmem:[%s7225_s22 + $0x78] sm:$0xff] %v5367_v41   ;;  %v1999_v43 = vpop.f32.mrb[68].mxu0  ;;  %v2511_v44 = vpop.f32.mrb[68].mxu1  ;;  %v6401_v41 = vld [vmem:[%s7066_s18 + $0x304] ss:$8 sps:$4 sm:$0xff]  }
 0x1ac   : > { %6007 = vst [vmem:[%s7225_s22 + $0x278] sm:$0xff] %v5687_v42   ;;  %6633 = vtanh.f32 %v1999_v43  ;;  %v2001_v45 = vpop.f32.mrb[69].mxu0  ;;  %v2513_v46 = vpop.f32.mrb[69].mxu1  ;;  %v6403_v42 = vld [vmem:[%s7066_s18 + $0x704] ss:$8 sps:$4 sm:$0xff]  }
 0x1ad   : > { %6635 = vtanh.f32 %v2511_v44  ;;  %v2002_v49 = vpop.f32.mrb[70].mxu0  ;;  %v2514_v50 = vpop.f32.mrb[70].mxu1 }
 0x1ae   : > { %v6626_v53 = vpop.eup %6625  ;;  %6637 = vtanh.f32 %v2002_v49  ;;  %v2004_v54 = vpop.f32.mrb[71].mxu0 }
 0x1af   : > { %v2516_v55 = vpop.f32.mrb[71].mxu1  ;;  %v6628_v56 = vpop.eup %6627  ;;  %6639 = vtanh.f32 %v2514_v50 }
 0x1b0   : > { %v6630_v57 = vpop.eup %6629  ;;  %2214 = vmatmul.mubr.bf16.gmra.mrb[176].mxu0 %v6381_v47  ;;  %2726 = vmatmul.mubr.bf16.gmra.mrb[176].mxu1 %v6382_v48  ;;  %v6405_v55 = vld [vmem:[%s7066_s18 + $0x300] ss:$8 sps:$4 sm:$0xff]  }
 0x1b1   : > { %v6632_v58 = vpop.eup %6631  ;;  %v5372_v59 = vpack.c.bf16 %v6630_v57, %v6626_v53  ;;  %2221 = vmatprep.mubr.bf16.mxu0 %v6383_v51  ;;  %2733 = vmatprep.mubr.bf16.mxu1 %v6385_v52 }
 0x1b2   : > { %v5692_v60 = vpack.c.bf16 %v6632_v58, %v6628_v56  ;;  %v6406_v56 = vld [vmem:[%s7066_s18 + $0x700] ss:$8 sps:$4 sm:$0xff]  }
 0x1b3   : > { %5944 = vst [vmem:[%s7225_s22 + $0x80] sm:$0xff] %v5372_v59   ;;  %v2007_v61 = vpop.f32.mrb[72].mxu0  ;;  %v2519_v62 = vpop.f32.mrb[72].mxu1  ;;  %v6407_v59 = vld [vmem:[%s7066_s18 + $0x314] ss:$8 sps:$4 sm:$0xff]  }
 0x1b4   : > { %6008 = vst [vmem:[%s7225_s22 + $0x280] sm:$0xff] %v5692_v60   ;;  %6641 = vtanh.f32 %v2007_v61  ;;  %v2009_v63 = vpop.f32.mrb[73].mxu0  ;;  %v2521_v0 = vpop.f32.mrb[73].mxu1  ;;  %v6409_v60 = vld [vmem:[%s7066_s18 + $0x714] ss:$8 sps:$4 sm:$0xff]  }
 0x1b5   : > { %6643 = vtanh.f32 %v2519_v62  ;;  %v2010_v3 = vpop.f32.mrb[74].mxu0  ;;  %v2522_v4 = vpop.f32.mrb[74].mxu1 }
 0x1b6   : > { %v6634_v7 = vpop.eup %6633  ;;  %6645 = vtanh.f32 %v2010_v3  ;;  %v2012_v8 = vpop.f32.mrb[75].mxu0 }
 0x1b7   : > { %v2524_v9 = vpop.f32.mrb[75].mxu1  ;;  %v6636_v10 = vpop.eup %6635  ;;  %6647 = vtanh.f32 %v2522_v4 }
 0x1b8   : > { %v6638_v11 = vpop.eup %6637  ;;  %2222 = vmatmul.mubr.bf16.gmra.mrb[180].mxu0 %v6387_v1  ;;  %2734 = vmatmul.mubr.bf16.gmra.mrb[180].mxu1 %v6388_v2  ;;  %v6411_v9 = vld [vmem:[%s7066_s18 + $0x310] ss:$8 sps:$4 sm:$0xff]  }
 0x1b9   : > { %v6640_v12 = vpop.eup %6639  ;;  %v5377_v13 = vpack.c.bf16 %v6638_v11, %v6634_v7  ;;  %2229 = vmatprep.mubr.bf16.mxu0 %v6389_v5  ;;  %2741 = vmatprep.mubr.bf16.mxu1 %v6391_v6 }
 0x1ba   : > { %v5697_v14 = vpack.c.bf16 %v6640_v12, %v6636_v10  ;;  %v6412_v10 = vld [vmem:[%s7066_s18 + $0x710] ss:$8 sps:$4 sm:$0xff]  }
 0x1bb   : > { %5945 = vst [vmem:[%s7225_s22 + $0x88] sm:$0xff] %v5377_v13   ;;  %v2015_v15 = vpop.f32.mrb[76].mxu0  ;;  %v2527_v16 = vpop.f32.mrb[76].mxu1  ;;  %v6413_v13 = vld [vmem:[%s7066_s18 + $0x324] ss:$8 sps:$4 sm:$0xff]  }
 0x1bc   : > { %6009 = vst [vmem:[%s7225_s22 + $0x288] sm:$0xff] %v5697_v14   ;;  %6649 = vtanh.f32 %v2015_v15  ;;  %v2017_v17 = vpop.f32.mrb[77].mxu0  ;;  %v2529_v18 = vpop.f32.mrb[77].mxu1  ;;  %v6415_v14 = vld [vmem:[%s7066_s18 + $0x724] ss:$8 sps:$4 sm:$0xff]  }
 0x1bd   : > { %6651 = vtanh.f32 %v2527_v16  ;;  %v2018_v21 = vpop.f32.mrb[78].mxu0  ;;  %v2530_v22 = vpop.f32.mrb[78].mxu1 }
 0x1be   : > { %v6642_v25 = vpop.eup %6641  ;;  %6653 = vtanh.f32 %v2018_v21  ;;  %v2020_v26 = vpop.f32.mrb[79].mxu0 }
 0x1bf   : > { %v2532_v27 = vpop.f32.mrb[79].mxu1  ;;  %v6644_v28 = vpop.eup %6643  ;;  %6655 = vtanh.f32 %v2530_v22 }
 0x1c0   : > { %v6646_v29 = vpop.eup %6645  ;;  %2230 = vmatmul.mubr.bf16.gmra.mrb[184].mxu0 %v6393_v19  ;;  %2742 = vmatmul.mubr.bf16.gmra.mrb[184].mxu1 %v6394_v20  ;;  %v6417_v27 = vld [vmem:[%s7066_s18 + $0x320] ss:$8 sps:$4 sm:$0xff]  }
 0x1c1   : > { %v6648_v30 = vpop.eup %6647  ;;  %v5382_v31 = vpack.c.bf16 %v6646_v29, %v6642_v25  ;;  %2237 = vmatprep.mubr.bf16.mxu0 %v6395_v23  ;;  %2749 = vmatprep.mubr.bf16.mxu1 %v6397_v24 }
 0x1c2   : > { %v5702_v32 = vpack.c.bf16 %v6648_v30, %v6644_v28  ;;  %v6418_v28 = vld [vmem:[%s7066_s18 + $0x720] ss:$8 sps:$4 sm:$0xff]  }
 0x1c3   : > { %5946 = vst [vmem:[%s7225_s22 + $0x90] sm:$0xff] %v5382_v31   ;;  %v2023_v33 = vpop.f32.mrb[80].mxu0  ;;  %v2535_v34 = vpop.f32.mrb[80].mxu1  ;;  %v6419_v31 = vld [vmem:[%s7066_s18 + $0x334] ss:$8 sps:$4 sm:$0xff]  }
 0x1c4   : > { %6010 = vst [vmem:[%s7225_s22 + $0x290] sm:$0xff] %v5702_v32   ;;  %6657 = vtanh.f32 %v2023_v33  ;;  %v2025_v35 = vpop.f32.mrb[81].mxu0  ;;  %v2537_v36 = vpop.f32.mrb[81].mxu1  ;;  %v6421_v32 = vld [vmem:[%s7066_s18 + $0x734] ss:$8 sps:$4 sm:$0xff]  }
 0x1c5   : > { %6659 = vtanh.f32 %v2535_v34  ;;  %v2026_v39 = vpop.f32.mrb[82].mxu0  ;;  %v2538_v40 = vpop.f32.mrb[82].mxu1 }
 0x1c6   : > { %v6650_v43 = vpop.eup %6649  ;;  %6661 = vtanh.f32 %v2026_v39  ;;  %v2028_v44 = vpop.f32.mrb[83].mxu0 }
 0x1c7   : > { %v2540_v45 = vpop.f32.mrb[83].mxu1  ;;  %v6652_v46 = vpop.eup %6651  ;;  %6663 = vtanh.f32 %v2538_v40 }
 0x1c8   : > { %v6654_v47 = vpop.eup %6653  ;;  %2238 = vmatmul.mubr.bf16.gmra.mrb[188].mxu0 %v6399_v37  ;;  %2750 = vmatmul.mubr.bf16.gmra.mrb[188].mxu1 %v6400_v38  ;;  %v6423_v45 = vld [vmem:[%s7066_s18 + $0x330] ss:$8 sps:$4 sm:$0xff]  }
 0x1c9   : > { %v6656_v48 = vpop.eup %6655  ;;  %v5387_v49 = vpack.c.bf16 %v6654_v47, %v6650_v43  ;;  %2245 = vmatprep.mubr.bf16.mxu0 %v6401_v41  ;;  %2757 = vmatprep.mubr.bf16.mxu1 %v6403_v42 }
 0x1ca   : > { %v5707_v50 = vpack.c.bf16 %v6656_v48, %v6652_v46  ;;  %v6424_v46 = vld [vmem:[%s7066_s18 + $0x730] ss:$8 sps:$4 sm:$0xff]  }
 0x1cb   : > { %5947 = vst [vmem:[%s7225_s22 + $0x98] sm:$0xff] %v5387_v49   ;;  %v2031_v51 = vpop.f32.mrb[84].mxu0  ;;  %v2543_v52 = vpop.f32.mrb[84].mxu1  ;;  %v6425_v49 = vld [vmem:[%s7066_s18 + $0x344] ss:$8 sps:$4 sm:$0xff]  }
 0x1cc   : > { %6011 = vst [vmem:[%s7225_s22 + $0x298] sm:$0xff] %v5707_v50   ;;  %6665 = vtanh.f32 %v2031_v51  ;;  %v2033_v53 = vpop.f32.mrb[85].mxu0  ;;  %v2545_v54 = vpop.f32.mrb[85].mxu1  ;;  %v6427_v50 = vld [vmem:[%s7066_s18 + $0x744] ss:$8 sps:$4 sm:$0xff]  }
 0x1cd   : > { %6667 = vtanh.f32 %v2543_v52  ;;  %v2034_v57 = vpop.f32.mrb[86].mxu0  ;;  %v2546_v58 = vpop.f32.mrb[86].mxu1 }
 0x1ce   : > { %v6658_v61 = vpop.eup %6657  ;;  %6669 = vtanh.f32 %v2034_v57  ;;  %v2036_v62 = vpop.f32.mrb[87].mxu0 }
 0x1cf   : > { %v2548_v63 = vpop.f32.mrb[87].mxu1  ;;  %v6660_v0 = vpop.eup %6659  ;;  %6671 = vtanh.f32 %v2546_v58 }
 0x1d0   : > { %v6662_v1 = vpop.eup %6661  ;;  %2246 = vmatmul.mubr.bf16.gmra.mrb[192].mxu0 %v6405_v55  ;;  %2758 = vmatmul.mubr.bf16.gmra.mrb[192].mxu1 %v6406_v56  ;;  %v6429_v63 = vld [vmem:[%s7066_s18 + $0x340] ss:$8 sps:$4 sm:$0xff]  }
 0x1d1   : > { %v6664_v2 = vpop.eup %6663  ;;  %v5392_v3 = vpack.c.bf16 %v6662_v1, %v6658_v61  ;;  %2253 = vmatprep.mubr.bf16.mxu0 %v6407_v59  ;;  %2765 = vmatprep.mubr.bf16.mxu1 %v6409_v60 }
 0x1d2   : > { %v5712_v4 = vpack.c.bf16 %v6664_v2, %v6660_v0  ;;  %v6430_v0 = vld [vmem:[%s7066_s18 + $0x740] ss:$8 sps:$4 sm:$0xff]  }
 0x1d3   : > { %5948 = vst [vmem:[%s7225_s22 + $0xa0] sm:$0xff] %v5392_v3   ;;  %v2039_v5 = vpop.f32.mrb[88].mxu0  ;;  %v2551_v6 = vpop.f32.mrb[88].mxu1  ;;  %v6431_v3 = vld [vmem:[%s7066_s18 + $0x354] ss:$8 sps:$4 sm:$0xff]  }
 0x1d4   : > { %6012 = vst [vmem:[%s7225_s22 + $0x2a0] sm:$0xff] %v5712_v4   ;;  %6673 = vtanh.f32 %v2039_v5  ;;  %v2041_v7 = vpop.f32.mrb[89].mxu0  ;;  %v2553_v8 = vpop.f32.mrb[89].mxu1  ;;  %v6433_v4 = vld [vmem:[%s7066_s18 + $0x754] ss:$8 sps:$4 sm:$0xff]  }
 0x1d5   : > { %6675 = vtanh.f32 %v2551_v6  ;;  %v2042_v11 = vpop.f32.mrb[90].mxu0  ;;  %v2554_v12 = vpop.f32.mrb[90].mxu1 }
 0x1d6   : > { %v6666_v15 = vpop.eup %6665  ;;  %6677 = vtanh.f32 %v2042_v11  ;;  %v2044_v16 = vpop.f32.mrb[91].mxu0 }
 0x1d7   : > { %v2556_v17 = vpop.f32.mrb[91].mxu1  ;;  %v6668_v18 = vpop.eup %6667  ;;  %6679 = vtanh.f32 %v2554_v12 }
 0x1d8   : > { %v6670_v19 = vpop.eup %6669  ;;  %2254 = vmatmul.mubr.bf16.gmra.mrb[196].mxu0 %v6411_v9  ;;  %2766 = vmatmul.mubr.bf16.gmra.mrb[196].mxu1 %v6412_v10  ;;  %v6435_v17 = vld [vmem:[%s7066_s18 + $0x350] ss:$8 sps:$4 sm:$0xff]  }
 0x1d9   : > { %v6672_v20 = vpop.eup %6671  ;;  %v5397_v21 = vpack.c.bf16 %v6670_v19, %v6666_v15  ;;  %2261 = vmatprep.mubr.bf16.mxu0 %v6413_v13  ;;  %2773 = vmatprep.mubr.bf16.mxu1 %v6415_v14 }
 0x1da   : > { %v5717_v22 = vpack.c.bf16 %v6672_v20, %v6668_v18  ;;  %v6436_v18 = vld [vmem:[%s7066_s18 + $0x750] ss:$8 sps:$4 sm:$0xff]  }
 0x1db   : > { %5949 = vst [vmem:[%s7225_s22 + $0xa8] sm:$0xff] %v5397_v21   ;;  %v2047_v23 = vpop.f32.mrb[92].mxu0  ;;  %v2559_v24 = vpop.f32.mrb[92].mxu1  ;;  %v6437_v21 = vld [vmem:[%s7066_s18 + $0x364] ss:$8 sps:$4 sm:$0xff]  }
 0x1dc   : > { %6013 = vst [vmem:[%s7225_s22 + $0x2a8] sm:$0xff] %v5717_v22   ;;  %6681 = vtanh.f32 %v2047_v23  ;;  %v2049_v25 = vpop.f32.mrb[93].mxu0  ;;  %v2561_v26 = vpop.f32.mrb[93].mxu1  ;;  %v6439_v22 = vld [vmem:[%s7066_s18 + $0x764] ss:$8 sps:$4 sm:$0xff]  }
 0x1dd   : > { %6683 = vtanh.f32 %v2559_v24  ;;  %v2050_v29 = vpop.f32.mrb[94].mxu0  ;;  %v2562_v30 = vpop.f32.mrb[94].mxu1 }
 0x1de   : > { %v6674_v33 = vpop.eup %6673  ;;  %6685 = vtanh.f32 %v2050_v29  ;;  %v2052_v34 = vpop.f32.mrb[95].mxu0 }
 0x1df   : > { %v2564_v35 = vpop.f32.mrb[95].mxu1  ;;  %v6676_v36 = vpop.eup %6675  ;;  %6687 = vtanh.f32 %v2562_v30 }
 0x1e0   : > { %v6678_v37 = vpop.eup %6677  ;;  %2262 = vmatmul.mubr.bf16.gmra.mrb[200].mxu0 %v6417_v27  ;;  %2774 = vmatmul.mubr.bf16.gmra.mrb[200].mxu1 %v6418_v28  ;;  %v6441_v35 = vld [vmem:[%s7066_s18 + $0x360] ss:$8 sps:$4 sm:$0xff]  }
 0x1e1   : > { %v6680_v38 = vpop.eup %6679  ;;  %v5402_v39 = vpack.c.bf16 %v6678_v37, %v6674_v33  ;;  %2269 = vmatprep.mubr.bf16.mxu0 %v6419_v31  ;;  %2781 = vmatprep.mubr.bf16.mxu1 %v6421_v32 }
 0x1e2   : > { %v5722_v40 = vpack.c.bf16 %v6680_v38, %v6676_v36  ;;  %v6442_v36 = vld [vmem:[%s7066_s18 + $0x760] ss:$8 sps:$4 sm:$0xff]  }
 0x1e3   : > { %5950 = vst [vmem:[%s7225_s22 + $0xb0] sm:$0xff] %v5402_v39   ;;  %v2055_v41 = vpop.f32.mrb[96].mxu0  ;;  %v2567_v42 = vpop.f32.mrb[96].mxu1  ;;  %v6443_v39 = vld [vmem:[%s7066_s18 + $0x374] ss:$8 sps:$4 sm:$0xff]  }
 0x1e4   : > { %6014 = vst [vmem:[%s7225_s22 + $0x2b0] sm:$0xff] %v5722_v40   ;;  %6689 = vtanh.f32 %v2055_v41  ;;  %v2057_v43 = vpop.f32.mrb[97].mxu0  ;;  %v2569_v44 = vpop.f32.mrb[97].mxu1  ;;  %v6445_v40 = vld [vmem:[%s7066_s18 + $0x774] ss:$8 sps:$4 sm:$0xff]  }
 0x1e5   : > { %6691 = vtanh.f32 %v2567_v42  ;;  %v2058_v47 = vpop.f32.mrb[98].mxu0  ;;  %v2570_v48 = vpop.f32.mrb[98].mxu1 }
 0x1e6   : > { %v6682_v51 = vpop.eup %6681  ;;  %6693 = vtanh.f32 %v2058_v47  ;;  %v2060_v52 = vpop.f32.mrb[99].mxu0 }
 0x1e7   : > { %v2572_v53 = vpop.f32.mrb[99].mxu1  ;;  %v6684_v54 = vpop.eup %6683  ;;  %6695 = vtanh.f32 %v2570_v48 }
 0x1e8   : > { %v6686_v55 = vpop.eup %6685  ;;  %2270 = vmatmul.mubr.bf16.gmra.mrb[204].mxu0 %v6423_v45  ;;  %2782 = vmatmul.mubr.bf16.gmra.mrb[204].mxu1 %v6424_v46  ;;  %v6447_v53 = vld [vmem:[%s7066_s18 + $0x370] ss:$8 sps:$4 sm:$0xff]  }
 0x1e9   : > { %v6688_v56 = vpop.eup %6687  ;;  %v5407_v57 = vpack.c.bf16 %v6686_v55, %v6682_v51  ;;  %2277 = vmatprep.mubr.bf16.mxu0 %v6425_v49  ;;  %2789 = vmatprep.mubr.bf16.mxu1 %v6427_v50 }
 0x1ea   : > { %v5727_v58 = vpack.c.bf16 %v6688_v56, %v6684_v54  ;;  %v6448_v54 = vld [vmem:[%s7066_s18 + $0x770] ss:$8 sps:$4 sm:$0xff]  }
 0x1eb   : > { %5951 = vst [vmem:[%s7225_s22 + $0xb8] sm:$0xff] %v5407_v57   ;;  %v2063_v59 = vpop.f32.mrb[100].mxu0  ;;  %v2575_v60 = vpop.f32.mrb[100].mxu1  ;;  %v6449_v57 = vld [vmem:[%s7066_s18 + $0x384] ss:$8 sps:$4 sm:$0xff]  }
 0x1ec   : > { %6015 = vst [vmem:[%s7225_s22 + $0x2b8] sm:$0xff] %v5727_v58   ;;  %6697 = vtanh.f32 %v2063_v59  ;;  %v2065_v61 = vpop.f32.mrb[101].mxu0  ;;  %v2577_v62 = vpop.f32.mrb[101].mxu1  ;;  %v6451_v58 = vld [vmem:[%s7066_s18 + $0x784] ss:$8 sps:$4 sm:$0xff]  }
 0x1ed   : > { %6699 = vtanh.f32 %v2575_v60  ;;  %v2066_v1 = vpop.f32.mrb[102].mxu0  ;;  %v2578_v2 = vpop.f32.mrb[102].mxu1 }
 0x1ee   : > { %v6690_v5 = vpop.eup %6689  ;;  %6701 = vtanh.f32 %v2066_v1  ;;  %v2068_v6 = vpop.f32.mrb[103].mxu0 }
 0x1ef   : > { %v2580_v7 = vpop.f32.mrb[103].mxu1  ;;  %v6692_v8 = vpop.eup %6691  ;;  %6703 = vtanh.f32 %v2578_v2 }
 0x1f0   : > { %v6694_v9 = vpop.eup %6693  ;;  %2278 = vmatmul.mubr.bf16.gmra.mrb[208].mxu0 %v6429_v63  ;;  %2790 = vmatmul.mubr.bf16.gmra.mrb[208].mxu1 %v6430_v0  ;;  %v6453_v7 = vld [vmem:[%s7066_s18 + $0x380] ss:$8 sps:$4 sm:$0xff]  }
 0x1f1   : > { %v6696_v10 = vpop.eup %6695  ;;  %v5412_v11 = vpack.c.bf16 %v6694_v9, %v6690_v5  ;;  %2285 = vmatprep.mubr.bf16.mxu0 %v6431_v3  ;;  %2797 = vmatprep.mubr.bf16.mxu1 %v6433_v4 }
 0x1f2   : > { %v5732_v12 = vpack.c.bf16 %v6696_v10, %v6692_v8  ;;  %v6454_v8 = vld [vmem:[%s7066_s18 + $0x780] ss:$8 sps:$4 sm:$0xff]  }
 0x1f3   : > { %5952 = vst [vmem:[%s7225_s22 + $0xc0] sm:$0xff] %v5412_v11   ;;  %v2071_v13 = vpop.f32.mrb[104].mxu0  ;;  %v2583_v14 = vpop.f32.mrb[104].mxu1  ;;  %v6455_v11 = vld [vmem:[%s7066_s18 + $0x394] ss:$8 sps:$4 sm:$0xff]  }
 0x1f4   : > { %6016 = vst [vmem:[%s7225_s22 + $0x2c0] sm:$0xff] %v5732_v12   ;;  %6705 = vtanh.f32 %v2071_v13  ;;  %v2073_v15 = vpop.f32.mrb[105].mxu0  ;;  %v2585_v16 = vpop.f32.mrb[105].mxu1  ;;  %v6457_v12 = vld [vmem:[%s7066_s18 + $0x794] ss:$8 sps:$4 sm:$0xff]  }
 0x1f5   : > { %6707 = vtanh.f32 %v2583_v14  ;;  %v2074_v19 = vpop.f32.mrb[106].mxu0  ;;  %v2586_v20 = vpop.f32.mrb[106].mxu1 }
 0x1f6   : > { %v6698_v23 = vpop.eup %6697  ;;  %6709 = vtanh.f32 %v2074_v19  ;;  %v2076_v24 = vpop.f32.mrb[107].mxu0 }
 0x1f7   : > { %v2588_v25 = vpop.f32.mrb[107].mxu1  ;;  %v6700_v26 = vpop.eup %6699  ;;  %6711 = vtanh.f32 %v2586_v20 }
 0x1f8   : > { %v6702_v27 = vpop.eup %6701  ;;  %2286 = vmatmul.mubr.bf16.gmra.mrb[212].mxu0 %v6435_v17  ;;  %2798 = vmatmul.mubr.bf16.gmra.mrb[212].mxu1 %v6436_v18  ;;  %v6459_v25 = vld [vmem:[%s7066_s18 + $0x390] ss:$8 sps:$4 sm:$0xff]  }
 0x1f9   : > { %v6704_v28 = vpop.eup %6703  ;;  %v5417_v29 = vpack.c.bf16 %v6702_v27, %v6698_v23  ;;  %2293 = vmatprep.mubr.bf16.mxu0 %v6437_v21  ;;  %2805 = vmatprep.mubr.bf16.mxu1 %v6439_v22 }
 0x1fa   : > { %v5737_v30 = vpack.c.bf16 %v6704_v28, %v6700_v26  ;;  %v6460_v26 = vld [vmem:[%s7066_s18 + $0x790] ss:$8 sps:$4 sm:$0xff]  }
 0x1fb   : > { %5953 = vst [vmem:[%s7225_s22 + $0xc8] sm:$0xff] %v5417_v29   ;;  %v2079_v31 = vpop.f32.mrb[108].mxu0  ;;  %v2591_v32 = vpop.f32.mrb[108].mxu1  ;;  %v6461_v29 = vld [vmem:[%s7066_s18 + $0x3a4] ss:$8 sps:$4 sm:$0xff]  }
 0x1fc   : > { %6017 = vst [vmem:[%s7225_s22 + $0x2c8] sm:$0xff] %v5737_v30   ;;  %6713 = vtanh.f32 %v2079_v31  ;;  %v2081_v33 = vpop.f32.mrb[109].mxu0  ;;  %v2593_v34 = vpop.f32.mrb[109].mxu1  ;;  %v6463_v30 = vld [vmem:[%s7066_s18 + $0x7a4] ss:$8 sps:$4 sm:$0xff]  }
 0x1fd   : > { %6715 = vtanh.f32 %v2591_v32  ;;  %v2082_v37 = vpop.f32.mrb[110].mxu0  ;;  %v2594_v38 = vpop.f32.mrb[110].mxu1 }
 0x1fe   : > { %v6706_v41 = vpop.eup %6705  ;;  %6717 = vtanh.f32 %v2082_v37  ;;  %v2084_v42 = vpop.f32.mrb[111].mxu0 }
 0x1ff   : > { %v2596_v43 = vpop.f32.mrb[111].mxu1  ;;  %v6708_v44 = vpop.eup %6707  ;;  %6719 = vtanh.f32 %v2594_v38 }
 0x200   : > { %v6710_v45 = vpop.eup %6709  ;;  %2294 = vmatmul.mubr.bf16.gmra.mrb[216].mxu0 %v6441_v35  ;;  %2806 = vmatmul.mubr.bf16.gmra.mrb[216].mxu1 %v6442_v36  ;;  %v6465_v43 = vld [vmem:[%s7066_s18 + $0x3a0] ss:$8 sps:$4 sm:$0xff]  }
 0x201   : > { %v6712_v46 = vpop.eup %6711  ;;  %v5422_v47 = vpack.c.bf16 %v6710_v45, %v6706_v41  ;;  %2301 = vmatprep.mubr.bf16.mxu0 %v6443_v39  ;;  %2813 = vmatprep.mubr.bf16.mxu1 %v6445_v40 }
 0x202   : > { %v5742_v48 = vpack.c.bf16 %v6712_v46, %v6708_v44  ;;  %v6466_v44 = vld [vmem:[%s7066_s18 + $0x7a0] ss:$8 sps:$4 sm:$0xff]  }
 0x203   : > { %5954 = vst [vmem:[%s7225_s22 + $0xd0] sm:$0xff] %v5422_v47   ;;  %v2087_v49 = vpop.f32.mrb[112].mxu0  ;;  %v2599_v50 = vpop.f32.mrb[112].mxu1  ;;  %v6467_v47 = vld [vmem:[%s7066_s18 + $0x3b4] ss:$8 sps:$4 sm:$0xff]  }
 0x204   : > { %6018 = vst [vmem:[%s7225_s22 + $0x2d0] sm:$0xff] %v5742_v48   ;;  %6721 = vtanh.f32 %v2087_v49  ;;  %v2089_v51 = vpop.f32.mrb[113].mxu0  ;;  %v2601_v52 = vpop.f32.mrb[113].mxu1  ;;  %v6469_v48 = vld [vmem:[%s7066_s18 + $0x7b4] ss:$8 sps:$4 sm:$0xff]  }
 0x205   : > { %6723 = vtanh.f32 %v2599_v50  ;;  %v2090_v55 = vpop.f32.mrb[114].mxu0  ;;  %v2602_v56 = vpop.f32.mrb[114].mxu1 }
 0x206   : > { %v6714_v59 = vpop.eup %6713  ;;  %6725 = vtanh.f32 %v2090_v55  ;;  %v2092_v60 = vpop.f32.mrb[115].mxu0 }
 0x207   : > { %v2604_v61 = vpop.f32.mrb[115].mxu1  ;;  %v6716_v62 = vpop.eup %6715  ;;  %6727 = vtanh.f32 %v2602_v56 }
 0x208   : > { %v6718_v63 = vpop.eup %6717  ;;  %2302 = vmatmul.mubr.bf16.gmra.mrb[220].mxu0 %v6447_v53  ;;  %2814 = vmatmul.mubr.bf16.gmra.mrb[220].mxu1 %v6448_v54  ;;  %v6471_v61 = vld [vmem:[%s7066_s18 + $0x3b0] ss:$8 sps:$4 sm:$0xff]  }
 0x209   : > { %v6720_v0 = vpop.eup %6719  ;;  %v5427_v1 = vpack.c.bf16 %v6718_v63, %v6714_v59  ;;  %2309 = vmatprep.mubr.bf16.mxu0 %v6449_v57  ;;  %2821 = vmatprep.mubr.bf16.mxu1 %v6451_v58 }
 0x20a   : > { %v5747_v2 = vpack.c.bf16 %v6720_v0, %v6716_v62  ;;  %v6472_v62 = vld [vmem:[%s7066_s18 + $0x7b0] ss:$8 sps:$4 sm:$0xff]  }
 0x20b   : > { %5955 = vst [vmem:[%s7225_s22 + $0xd8] sm:$0xff] %v5427_v1   ;;  %v2095_v3 = vpop.f32.mrb[116].mxu0  ;;  %v2607_v4 = vpop.f32.mrb[116].mxu1  ;;  %v6473_v1 = vld [vmem:[%s7066_s18 + $0x3c4] ss:$8 sps:$4 sm:$0xff]  }
 0x20c   : > { %6019 = vst [vmem:[%s7225_s22 + $0x2d8] sm:$0xff] %v5747_v2   ;;  %6729 = vtanh.f32 %v2095_v3  ;;  %v2097_v5 = vpop.f32.mrb[117].mxu0  ;;  %v2609_v6 = vpop.f32.mrb[117].mxu1  ;;  %v6475_v2 = vld [vmem:[%s7066_s18 + $0x7c4] ss:$8 sps:$4 sm:$0xff]  }
 0x20d   : > { %6731 = vtanh.f32 %v2607_v4  ;;  %v2098_v9 = vpop.f32.mrb[118].mxu0  ;;  %v2610_v10 = vpop.f32.mrb[118].mxu1 }
 0x20e   : > { %v6722_v13 = vpop.eup %6721  ;;  %6733 = vtanh.f32 %v2098_v9  ;;  %v2100_v14 = vpop.f32.mrb[119].mxu0 }
 0x20f   : > { %v2612_v15 = vpop.f32.mrb[119].mxu1  ;;  %v6724_v16 = vpop.eup %6723  ;;  %6735 = vtanh.f32 %v2610_v10 }
 0x210   : > { %v6726_v17 = vpop.eup %6725  ;;  %2310 = vmatmul.mubr.bf16.gmra.mrb[224].mxu0 %v6453_v7  ;;  %2822 = vmatmul.mubr.bf16.gmra.mrb[224].mxu1 %v6454_v8  ;;  %v6477_v15 = vld [vmem:[%s7066_s18 + $0x3c0] ss:$8 sps:$4 sm:$0xff]  }
 0x211   : > { %v6728_v18 = vpop.eup %6727  ;;  %v5432_v19 = vpack.c.bf16 %v6726_v17, %v6722_v13  ;;  %2317 = vmatprep.mubr.bf16.mxu0 %v6455_v11  ;;  %2829 = vmatprep.mubr.bf16.mxu1 %v6457_v12 }
 0x212   : > { %v5752_v20 = vpack.c.bf16 %v6728_v18, %v6724_v16  ;;  %v6478_v16 = vld [vmem:[%s7066_s18 + $0x7c0] ss:$8 sps:$4 sm:$0xff]  }
 0x213   : > { %5956 = vst [vmem:[%s7225_s22 + $0xe0] sm:$0xff] %v5432_v19   ;;  %v2103_v21 = vpop.f32.mrb[120].mxu0  ;;  %v2615_v22 = vpop.f32.mrb[120].mxu1  ;;  %v6479_v19 = vld [vmem:[%s7066_s18 + $0x3d4] ss:$8 sps:$4 sm:$0xff]  }
 0x214   : > { %6020 = vst [vmem:[%s7225_s22 + $0x2e0] sm:$0xff] %v5752_v20   ;;  %6737 = vtanh.f32 %v2103_v21  ;;  %v2105_v23 = vpop.f32.mrb[121].mxu0  ;;  %v2617_v24 = vpop.f32.mrb[121].mxu1  ;;  %v6481_v20 = vld [vmem:[%s7066_s18 + $0x7d4] ss:$8 sps:$4 sm:$0xff]  }
 0x215   : > { %6739 = vtanh.f32 %v2615_v22  ;;  %v2106_v27 = vpop.f32.mrb[122].mxu0  ;;  %v2618_v28 = vpop.f32.mrb[122].mxu1 }
 0x216   : > { %v6730_v31 = vpop.eup %6729  ;;  %6741 = vtanh.f32 %v2106_v27  ;;  %v2108_v32 = vpop.f32.mrb[123].mxu0 }
 0x217   : > { %v2620_v33 = vpop.f32.mrb[123].mxu1  ;;  %v6732_v34 = vpop.eup %6731  ;;  %6743 = vtanh.f32 %v2618_v28 }
 0x218   : > { %v6734_v35 = vpop.eup %6733  ;;  %2318 = vmatmul.mubr.bf16.gmra.mrb[228].mxu0 %v6459_v25  ;;  %2830 = vmatmul.mubr.bf16.gmra.mrb[228].mxu1 %v6460_v26  ;;  %v6483_v33 = vld [vmem:[%s7066_s18 + $0x3d0] ss:$8 sps:$4 sm:$0xff]  }
 0x219   : > { %v6736_v36 = vpop.eup %6735  ;;  %v5437_v37 = vpack.c.bf16 %v6734_v35, %v6730_v31  ;;  %2325 = vmatprep.mubr.bf16.mxu0 %v6461_v29  ;;  %2837 = vmatprep.mubr.bf16.mxu1 %v6463_v30 }
 0x21a   : > { %v5757_v38 = vpack.c.bf16 %v6736_v36, %v6732_v34  ;;  %v6484_v34 = vld [vmem:[%s7066_s18 + $0x7d0] ss:$8 sps:$4 sm:$0xff]  }
 0x21b   : > { %5957 = vst [vmem:[%s7225_s22 + $0xe8] sm:$0xff] %v5437_v37   ;;  %v2111_v39 = vpop.f32.mrb[124].mxu0  ;;  %v2623_v40 = vpop.f32.mrb[124].mxu1  ;;  %v6485_v37 = vld [vmem:[%s7066_s18 + $0x3e4] ss:$8 sps:$4 sm:$0xff]  }
 0x21c   : > { %6021 = vst [vmem:[%s7225_s22 + $0x2e8] sm:$0xff] %v5757_v38   ;;  %6745 = vtanh.f32 %v2111_v39  ;;  %v2113_v41 = vpop.f32.mrb[125].mxu0  ;;  %v2625_v42 = vpop.f32.mrb[125].mxu1  ;;  %v6487_v38 = vld [vmem:[%s7066_s18 + $0x7e4] ss:$8 sps:$4 sm:$0xff]  }
 0x21d   : > { %6747 = vtanh.f32 %v2623_v40  ;;  %v2114_v45 = vpop.f32.mrb[126].mxu0  ;;  %v2626_v46 = vpop.f32.mrb[126].mxu1 }
 0x21e   : > { %v6738_v49 = vpop.eup %6737  ;;  %6749 = vtanh.f32 %v2114_v45  ;;  %v2116_v50 = vpop.f32.mrb[127].mxu0 }
 0x21f   : > { %v2628_v51 = vpop.f32.mrb[127].mxu1  ;;  %v6740_v52 = vpop.eup %6739  ;;  %6751 = vtanh.f32 %v2626_v46 }
 0x220   : > { %v6742_v53 = vpop.eup %6741  ;;  %2326 = vmatmul.mubr.bf16.gmra.mrb[232].mxu0 %v6465_v43  ;;  %2838 = vmatmul.mubr.bf16.gmra.mrb[232].mxu1 %v6466_v44  ;;  %v6489_v51 = vld [vmem:[%s7066_s18 + $0x3e0] ss:$8 sps:$4 sm:$0xff]  }
 0x221   : > { %v6744_v54 = vpop.eup %6743  ;;  %v5442_v55 = vpack.c.bf16 %v6742_v53, %v6738_v49  ;;  %2333 = vmatprep.mubr.bf16.mxu0 %v6467_v47  ;;  %2845 = vmatprep.mubr.bf16.mxu1 %v6469_v48 }
 0x222   : > { %v5762_v56 = vpack.c.bf16 %v6744_v54, %v6740_v52  ;;  %v6490_v52 = vld [vmem:[%s7066_s18 + $0x7e0] ss:$8 sps:$4 sm:$0xff]  }
 0x223   : > { %5958 = vst [vmem:[%s7225_s22 + $0xf0] sm:$0xff] %v5442_v55   ;;  %v2119_v57 = vpop.f32.mrb[128].mxu0  ;;  %v2631_v58 = vpop.f32.mrb[128].mxu1  ;;  %v6491_v55 = vld [vmem:[%s7066_s18 + $0x3f4] ss:$8 sps:$4 sm:$0xff]  }
 0x224   : > { %6022 = vst [vmem:[%s7225_s22 + $0x2f0] sm:$0xff] %v5762_v56   ;;  %6753 = vtanh.f32 %v2119_v57  ;;  %v2121_v59 = vpop.f32.mrb[129].mxu0  ;;  %v2633_v60 = vpop.f32.mrb[129].mxu1  ;;  %v6493_v56 = vld [vmem:[%s7066_s18 + $0x7f4] ss:$8 sps:$4 sm:$0xff]  }
 0x225   : > { %6755 = vtanh.f32 %v2631_v58  ;;  %v2122_v63 = vpop.f32.mrb[130].mxu0  ;;  %v2634_v0 = vpop.f32.mrb[130].mxu1 }
 0x226   : > { %v6746_v3 = vpop.eup %6745  ;;  %6757 = vtanh.f32 %v2122_v63  ;;  %v2124_v4 = vpop.f32.mrb[131].mxu0 }
 0x227   : > { %v2636_v5 = vpop.f32.mrb[131].mxu1  ;;  %v6748_v6 = vpop.eup %6747  ;;  %6759 = vtanh.f32 %v2634_v0 }
 0x228   : > { %v6750_v7 = vpop.eup %6749  ;;  %2334 = vmatmul.mubr.bf16.gmra.mrb[236].mxu0 %v6471_v61  ;;  %2846 = vmatmul.mubr.bf16.gmra.mrb[236].mxu1 %v6472_v62  ;;  %v6495_v5 = vld [vmem:[%s7066_s18 + $0x3f0] ss:$8 sps:$4 sm:$0xff]  }
 0x229   : > { %v6752_v8 = vpop.eup %6751  ;;  %v5447_v9 = vpack.c.bf16 %v6750_v7, %v6746_v3  ;;  %2341 = vmatprep.mubr.bf16.mxu0 %v6473_v1  ;;  %2853 = vmatprep.mubr.bf16.mxu1 %v6475_v2 }
 0x22a   : > { %v5767_v10 = vpack.c.bf16 %v6752_v8, %v6748_v6  ;;  %v6496_v6 = vld [vmem:[%s7066_s18 + $0x7f0] ss:$8 sps:$4 sm:$0xff]  }
 0x22b   : > { %5959 = vst [vmem:[%s7225_s22 + $0xf8] sm:$0xff] %v5447_v9   ;;  %v2127_v11 = vpop.f32.mrb[132].mxu0  ;;  %v2639_v12 = vpop.f32.mrb[132].mxu1 }
 0x22c   : > { %6023 = vst [vmem:[%s7225_s22 + $0x2f8] sm:$0xff] %v5767_v10   ;;  %6761 = vtanh.f32 %v2127_v11  ;;  %v2129_v13 = vpop.f32.mrb[133].mxu0  ;;  %v2641_v14 = vpop.f32.mrb[133].mxu1 }
 0x22d   : > { %6763 = vtanh.f32 %v2639_v12  ;;  %v2130_v17 = vpop.f32.mrb[134].mxu0  ;;  %v2642_v18 = vpop.f32.mrb[134].mxu1 }
 0x22e   : > { %v6754_v21 = vpop.eup %6753  ;;  %6765 = vtanh.f32 %v2130_v17  ;;  %v2132_v22 = vpop.f32.mrb[135].mxu0 }
 0x22f   : > { %v2644_v23 = vpop.f32.mrb[135].mxu1  ;;  %v6756_v24 = vpop.eup %6755  ;;  %6767 = vtanh.f32 %v2642_v18 }
 0x230   : > { %v6758_v25 = vpop.eup %6757  ;;  %2342 = vmatmul.mubr.bf16.gmra.mrb[240].mxu0 %v6477_v15  ;;  %2854 = vmatmul.mubr.bf16.gmra.mrb[240].mxu1 %v6478_v16 }
 0x231   : > { %v6760_v26 = vpop.eup %6759  ;;  %v5452_v27 = vpack.c.bf16 %v6758_v25, %v6754_v21  ;;  %2349 = vmatprep.mubr.bf16.mxu0 %v6479_v19  ;;  %2861 = vmatprep.mubr.bf16.mxu1 %v6481_v20 }
 0x232   : > { %v5772_v28 = vpack.c.bf16 %v6760_v26, %v6756_v24 }
 0x233   : > { %5960 = vst [vmem:[%s7225_s22 + $0x100] sm:$0xff] %v5452_v27   ;;  %v2135_v29 = vpop.f32.mrb[136].mxu0  ;;  %v2647_v30 = vpop.f32.mrb[136].mxu1 }
 0x234   : > { %6024 = vst [vmem:[%s7225_s22 + $0x300] sm:$0xff] %v5772_v28   ;;  %6769 = vtanh.f32 %v2135_v29  ;;  %v2137_v31 = vpop.f32.mrb[137].mxu0  ;;  %v2649_v32 = vpop.f32.mrb[137].mxu1 }
 0x235   : > { %6771 = vtanh.f32 %v2647_v30  ;;  %v2138_v35 = vpop.f32.mrb[138].mxu0  ;;  %v2650_v36 = vpop.f32.mrb[138].mxu1 }
 0x236   : > { %v6762_v39 = vpop.eup %6761  ;;  %6773 = vtanh.f32 %v2138_v35  ;;  %v2140_v40 = vpop.f32.mrb[139].mxu0 }
 0x237   : > { %v2652_v41 = vpop.f32.mrb[139].mxu1  ;;  %v6764_v42 = vpop.eup %6763  ;;  %6775 = vtanh.f32 %v2650_v36 }
 0x238   : > { %v6766_v43 = vpop.eup %6765  ;;  %2350 = vmatmul.mubr.bf16.gmra.mrb[244].mxu0 %v6483_v33  ;;  %2862 = vmatmul.mubr.bf16.gmra.mrb[244].mxu1 %v6484_v34 }
 0x239   : > { %v6768_v44 = vpop.eup %6767  ;;  %v5457_v45 = vpack.c.bf16 %v6766_v43, %v6762_v39  ;;  %2357 = vmatprep.mubr.bf16.mxu0 %v6485_v37  ;;  %2869 = vmatprep.mubr.bf16.mxu1 %v6487_v38 }
 0x23a   : > { %v5777_v46 = vpack.c.bf16 %v6768_v44, %v6764_v42 }
 0x23b   : > { %5961 = vst [vmem:[%s7225_s22 + $0x108] sm:$0xff] %v5457_v45   ;;  %v2143_v47 = vpop.f32.mrb[140].mxu0  ;;  %v2655_v48 = vpop.f32.mrb[140].mxu1 }
 0x23c   : > { %6025 = vst [vmem:[%s7225_s22 + $0x308] sm:$0xff] %v5777_v46   ;;  %6777 = vtanh.f32 %v2143_v47  ;;  %v2145_v49 = vpop.f32.mrb[141].mxu0  ;;  %v2657_v50 = vpop.f32.mrb[141].mxu1 }
 0x23d   : > { %6779 = vtanh.f32 %v2655_v48  ;;  %v2146_v53 = vpop.f32.mrb[142].mxu0  ;;  %v2658_v54 = vpop.f32.mrb[142].mxu1 }
 0x23e   : > { %v6770_v57 = vpop.eup %6769  ;;  %6781 = vtanh.f32 %v2146_v53  ;;  %v2148_v58 = vpop.f32.mrb[143].mxu0 }
 0x23f   : > { %v2660_v59 = vpop.f32.mrb[143].mxu1  ;;  %v6772_v60 = vpop.eup %6771  ;;  %6783 = vtanh.f32 %v2658_v54 }
 0x240   : > { %v6774_v61 = vpop.eup %6773  ;;  %2358 = vmatmul.mubr.bf16.gmra.mrb[248].mxu0 %v6489_v51  ;;  %2870 = vmatmul.mubr.bf16.gmra.mrb[248].mxu1 %v6490_v52 }
 0x241   : > { %v6776_v62 = vpop.eup %6775  ;;  %v5462_v63 = vpack.c.bf16 %v6774_v61, %v6770_v57  ;;  %2365 = vmatprep.mubr.bf16.mxu0 %v6491_v55  ;;  %2877 = vmatprep.mubr.bf16.mxu1 %v6493_v56 }
 0x242   : > { %v5782_v0 = vpack.c.bf16 %v6776_v62, %v6772_v60 }
 0x243   : > { %5962 = vst [vmem:[%s7225_s22 + $0x110] sm:$0xff] %v5462_v63   ;;  %v2151_v1 = vpop.f32.mrb[144].mxu0  ;;  %v2663_v2 = vpop.f32.mrb[144].mxu1 }
 0x244   : > { %6026 = vst [vmem:[%s7225_s22 + $0x310] sm:$0xff] %v5782_v0   ;;  %6785 = vtanh.f32 %v2151_v1  ;;  %v2153_v3 = vpop.f32.mrb[145].mxu0  ;;  %v2665_v4 = vpop.f32.mrb[145].mxu1 }
 0x245   : > { %6787 = vtanh.f32 %v2663_v2  ;;  %v2154_v7 = vpop.f32.mrb[146].mxu0  ;;  %v2666_v8 = vpop.f32.mrb[146].mxu1 }
 0x246   : > { %v6778_v9 = vpop.eup %6777  ;;  %6789 = vtanh.f32 %v2154_v7  ;;  %v2156_v10 = vpop.f32.mrb[147].mxu0 }
 0x247   : > { %v2668_v11 = vpop.f32.mrb[147].mxu1  ;;  %v6780_v12 = vpop.eup %6779  ;;  %6791 = vtanh.f32 %v2666_v8 }
 0x248   : > { %v6782_v13 = vpop.eup %6781  ;;  %2366 = vmatmul.mubr.bf16.gmra.mrb[252].mxu0 %v6495_v5  ;;  %2878 = vmatmul.mubr.bf16.gmra.mrb[252].mxu1 %v6496_v6 }
 0x249   : > { %v6784_v14 = vpop.eup %6783  ;;  %v5467_v15 = vpack.c.bf16 %v6782_v13, %v6778_v9 }
 0x24a   : > { %v5787_v16 = vpack.c.bf16 %v6784_v14, %v6780_v12 }
 0x24b   : > { %5963 = vst [vmem:[%s7225_s22 + $0x118] sm:$0xff] %v5467_v15   ;;  %v2159_v17 = vpop.f32.mrb[148].mxu0  ;;  %v2671_v18 = vpop.f32.mrb[148].mxu1 }
 0x24c   : > { %6027 = vst [vmem:[%s7225_s22 + $0x318] sm:$0xff] %v5787_v16   ;;  %6793 = vtanh.f32 %v2159_v17  ;;  %v2161_v19 = vpop.f32.mrb[149].mxu0  ;;  %v2673_v20 = vpop.f32.mrb[149].mxu1 }
 0x24d   : > { %6795 = vtanh.f32 %v2671_v18  ;;  %v2162_v21 = vpop.f32.mrb[150].mxu0  ;;  %v2674_v22 = vpop.f32.mrb[150].mxu1 }
 0x24e   : > { %v6786_v23 = vpop.eup %6785  ;;  %6797 = vtanh.f32 %v2162_v21  ;;  %v2164_v24 = vpop.f32.mrb[151].mxu0 }
 0x24f   : > { %v2676_v25 = vpop.f32.mrb[151].mxu1  ;;  %v6788_v26 = vpop.eup %6787  ;;  %6799 = vtanh.f32 %v2674_v22 }
 0x250   : > { %v6790_v27 = vpop.eup %6789 }
 0x251   : > { %v6792_v28 = vpop.eup %6791  ;;  %v5472_v29 = vpack.c.bf16 %v6790_v27, %v6786_v23 }
 0x252   : > { %v5792_v30 = vpack.c.bf16 %v6792_v28, %v6788_v26 }
 0x253   : > { %5964 = vst [vmem:[%s7225_s22 + $0x120] sm:$0xff] %v5472_v29   ;;  %v2167_v31 = vpop.f32.mrb[152].mxu0  ;;  %v2679_v32 = vpop.f32.mrb[152].mxu1 }
 0x254   : > { %6028 = vst [vmem:[%s7225_s22 + $0x320] sm:$0xff] %v5792_v30   ;;  %6801 = vtanh.f32 %v2167_v31  ;;  %v2169_v33 = vpop.f32.mrb[153].mxu0  ;;  %v2681_v34 = vpop.f32.mrb[153].mxu1 }
 0x255   : > { %6803 = vtanh.f32 %v2679_v32  ;;  %v2170_v35 = vpop.f32.mrb[154].mxu0  ;;  %v2682_v36 = vpop.f32.mrb[154].mxu1 }
 0x256   : > { %v6794_v37 = vpop.eup %6793  ;;  %6805 = vtanh.f32 %v2170_v35  ;;  %v2172_v38 = vpop.f32.mrb[155].mxu0 }
 0x257   : > { %v2684_v39 = vpop.f32.mrb[155].mxu1  ;;  %v6796_v40 = vpop.eup %6795  ;;  %6807 = vtanh.f32 %v2682_v36 }
 0x258   : > { %v6798_v41 = vpop.eup %6797 }
 0x259   : > { %v6800_v42 = vpop.eup %6799  ;;  %v5477_v43 = vpack.c.bf16 %v6798_v41, %v6794_v37 }
 0x25a   : > { %v5797_v44 = vpack.c.bf16 %v6800_v42, %v6796_v40 }
 0x25b   : > { %5965 = vst [vmem:[%s7225_s22 + $0x128] sm:$0xff] %v5477_v43   ;;  %v2175_v45 = vpop.f32.mrb[156].mxu0  ;;  %v2687_v46 = vpop.f32.mrb[156].mxu1 }
 0x25c   : > { %6029 = vst [vmem:[%s7225_s22 + $0x328] sm:$0xff] %v5797_v44   ;;  %6809 = vtanh.f32 %v2175_v45  ;;  %v2177_v47 = vpop.f32.mrb[157].mxu0  ;;  %v2689_v48 = vpop.f32.mrb[157].mxu1 }
 0x25d   : > { %6811 = vtanh.f32 %v2687_v46  ;;  %v2178_v49 = vpop.f32.mrb[158].mxu0  ;;  %v2690_v50 = vpop.f32.mrb[158].mxu1 }
 0x25e   : > { %v6802_v51 = vpop.eup %6801  ;;  %6813 = vtanh.f32 %v2178_v49  ;;  %v2180_v52 = vpop.f32.mrb[159].mxu0 }
 0x25f   : > { %v2692_v53 = vpop.f32.mrb[159].mxu1  ;;  %v6804_v54 = vpop.eup %6803  ;;  %6815 = vtanh.f32 %v2690_v50 }
 0x260   : > { %v6806_v55 = vpop.eup %6805 }
 0x261   : > { %v6808_v56 = vpop.eup %6807  ;;  %v5482_v57 = vpack.c.bf16 %v6806_v55, %v6802_v51 }
 0x262   : > { %v5802_v58 = vpack.c.bf16 %v6808_v56, %v6804_v54 }
 0x263   : > { %5966 = vst [vmem:[%s7225_s22 + $0x130] sm:$0xff] %v5482_v57   ;;  %v2183_v59 = vpop.f32.mrb[160].mxu0  ;;  %v2695_v60 = vpop.f32.mrb[160].mxu1 }
 0x264   : > { %6030 = vst [vmem:[%s7225_s22 + $0x330] sm:$0xff] %v5802_v58   ;;  %6817 = vtanh.f32 %v2183_v59  ;;  %v2185_v61 = vpop.f32.mrb[161].mxu0  ;;  %v2697_v62 = vpop.f32.mrb[161].mxu1 }
 0x265   : > { %6819 = vtanh.f32 %v2695_v60  ;;  %v2186_v63 = vpop.f32.mrb[162].mxu0  ;;  %v2698_v0 = vpop.f32.mrb[162].mxu1 }
 0x266   : > { %v6810_v1 = vpop.eup %6809  ;;  %6821 = vtanh.f32 %v2186_v63  ;;  %v2188_v2 = vpop.f32.mrb[163].mxu0 }
 0x267   : > { %v2700_v3 = vpop.f32.mrb[163].mxu1  ;;  %v6812_v4 = vpop.eup %6811  ;;  %6823 = vtanh.f32 %v2698_v0 }
 0x268   : > { %v6814_v5 = vpop.eup %6813 }
 0x269   : > { %v6816_v6 = vpop.eup %6815  ;;  %v5487_v7 = vpack.c.bf16 %v6814_v5, %v6810_v1 }
 0x26a   : > { %v5807_v8 = vpack.c.bf16 %v6816_v6, %v6812_v4 }
 0x26b   : > { %5967 = vst [vmem:[%s7225_s22 + $0x138] sm:$0xff] %v5487_v7   ;;  %v2191_v9 = vpop.f32.mrb[164].mxu0  ;;  %v2703_v10 = vpop.f32.mrb[164].mxu1 }
 0x26c   : > { %6031 = vst [vmem:[%s7225_s22 + $0x338] sm:$0xff] %v5807_v8   ;;  %6825 = vtanh.f32 %v2191_v9  ;;  %v2193_v11 = vpop.f32.mrb[165].mxu0  ;;  %v2705_v12 = vpop.f32.mrb[165].mxu1 }
 0x26d   : > { %6827 = vtanh.f32 %v2703_v10  ;;  %v2194_v13 = vpop.f32.mrb[166].mxu0  ;;  %v2706_v14 = vpop.f32.mrb[166].mxu1 }
 0x26e   : > { %v6818_v15 = vpop.eup %6817  ;;  %6829 = vtanh.f32 %v2194_v13  ;;  %v2196_v16 = vpop.f32.mrb[167].mxu0 }
 0x26f   : > { %v2708_v17 = vpop.f32.mrb[167].mxu1  ;;  %v6820_v18 = vpop.eup %6819  ;;  %6831 = vtanh.f32 %v2706_v14 }
 0x270   : > { %v6822_v19 = vpop.eup %6821 }
 0x271   : > { %v6824_v20 = vpop.eup %6823  ;;  %v5492_v21 = vpack.c.bf16 %v6822_v19, %v6818_v15 }
 0x272   : > { %v5812_v22 = vpack.c.bf16 %v6824_v20, %v6820_v18 }
 0x273   : > { %5968 = vst [vmem:[%s7225_s22 + $0x140] sm:$0xff] %v5492_v21   ;;  %v2199_v23 = vpop.f32.mrb[168].mxu0  ;;  %v2711_v24 = vpop.f32.mrb[168].mxu1 }
 0x274   : > { %6032 = vst [vmem:[%s7225_s22 + $0x340] sm:$0xff] %v5812_v22   ;;  %6833 = vtanh.f32 %v2199_v23  ;;  %v2201_v25 = vpop.f32.mrb[169].mxu0  ;;  %v2713_v26 = vpop.f32.mrb[169].mxu1 }
 0x275   : > { %6835 = vtanh.f32 %v2711_v24  ;;  %v2202_v27 = vpop.f32.mrb[170].mxu0  ;;  %v2714_v28 = vpop.f32.mrb[170].mxu1 }
 0x276   : > { %v6826_v29 = vpop.eup %6825  ;;  %6837 = vtanh.f32 %v2202_v27  ;;  %v2204_v30 = vpop.f32.mrb[171].mxu0 }
 0x277   : > { %v2716_v31 = vpop.f32.mrb[171].mxu1  ;;  %v6828_v32 = vpop.eup %6827  ;;  %6839 = vtanh.f32 %v2714_v28 }
 0x278   : > { %v6830_v33 = vpop.eup %6829 }
 0x279   : > { %v6832_v34 = vpop.eup %6831  ;;  %v5497_v35 = vpack.c.bf16 %v6830_v33, %v6826_v29 }
 0x27a   : > { %v5817_v36 = vpack.c.bf16 %v6832_v34, %v6828_v32 }
 0x27b   : > { %5969 = vst [vmem:[%s7225_s22 + $0x148] sm:$0xff] %v5497_v35   ;;  %v2207_v37 = vpop.f32.mrb[172].mxu0  ;;  %v2719_v38 = vpop.f32.mrb[172].mxu1 }
 0x27c   : > { %6033 = vst [vmem:[%s7225_s22 + $0x348] sm:$0xff] %v5817_v36   ;;  %6841 = vtanh.f32 %v2207_v37  ;;  %v2209_v39 = vpop.f32.mrb[173].mxu0  ;;  %v2721_v40 = vpop.f32.mrb[173].mxu1 }
 0x27d   : > { %6843 = vtanh.f32 %v2719_v38  ;;  %v2210_v41 = vpop.f32.mrb[174].mxu0  ;;  %v2722_v42 = vpop.f32.mrb[174].mxu1 }
 0x27e   : > { %v6834_v43 = vpop.eup %6833  ;;  %6845 = vtanh.f32 %v2210_v41  ;;  %v2212_v44 = vpop.f32.mrb[175].mxu0 }
 0x27f   : > { %v2724_v45 = vpop.f32.mrb[175].mxu1  ;;  %v6836_v46 = vpop.eup %6835  ;;  %6847 = vtanh.f32 %v2722_v42 }
 0x280   : > { %v6838_v47 = vpop.eup %6837 }
 0x281   : > { %v6840_v48 = vpop.eup %6839  ;;  %v5502_v49 = vpack.c.bf16 %v6838_v47, %v6834_v43 }
 0x282   : > { %v5822_v50 = vpack.c.bf16 %v6840_v48, %v6836_v46 }
 0x283   : > { %5970 = vst [vmem:[%s7225_s22 + $0x150] sm:$0xff] %v5502_v49   ;;  %v2215_v51 = vpop.f32.mrb[176].mxu0  ;;  %v2727_v52 = vpop.f32.mrb[176].mxu1 }
 0x284   : > { %6034 = vst [vmem:[%s7225_s22 + $0x350] sm:$0xff] %v5822_v50   ;;  %6849 = vtanh.f32 %v2215_v51  ;;  %v2217_v53 = vpop.f32.mrb[177].mxu0  ;;  %v2729_v54 = vpop.f32.mrb[177].mxu1 }
 0x285   : > { %6851 = vtanh.f32 %v2727_v52  ;;  %v2218_v55 = vpop.f32.mrb[178].mxu0  ;;  %v2730_v56 = vpop.f32.mrb[178].mxu1 }
 0x286   : > { %v6842_v57 = vpop.eup %6841  ;;  %6853 = vtanh.f32 %v2218_v55  ;;  %v2220_v58 = vpop.f32.mrb[179].mxu0 }
 0x287   : > { %v2732_v59 = vpop.f32.mrb[179].mxu1  ;;  %v6844_v60 = vpop.eup %6843  ;;  %6855 = vtanh.f32 %v2730_v56 }
 0x288   : > { %v6846_v61 = vpop.eup %6845 }
 0x289   : > { %v6848_v62 = vpop.eup %6847  ;;  %v5507_v63 = vpack.c.bf16 %v6846_v61, %v6842_v57 }
 0x28a   : > { %v5827_v0 = vpack.c.bf16 %v6848_v62, %v6844_v60 }
 0x28b   : > { %5971 = vst [vmem:[%s7225_s22 + $0x158] sm:$0xff] %v5507_v63   ;;  %v2223_v1 = vpop.f32.mrb[180].mxu0  ;;  %v2735_v2 = vpop.f32.mrb[180].mxu1 }
 0x28c   : > { %6035 = vst [vmem:[%s7225_s22 + $0x358] sm:$0xff] %v5827_v0   ;;  %6857 = vtanh.f32 %v2223_v1  ;;  %v2225_v3 = vpop.f32.mrb[181].mxu0  ;;  %v2737_v4 = vpop.f32.mrb[181].mxu1 }
 0x28d   : > { %6859 = vtanh.f32 %v2735_v2  ;;  %v2226_v5 = vpop.f32.mrb[182].mxu0  ;;  %v2738_v6 = vpop.f32.mrb[182].mxu1 }
 0x28e   : > { %v6850_v7 = vpop.eup %6849  ;;  %6861 = vtanh.f32 %v2226_v5  ;;  %v2228_v8 = vpop.f32.mrb[183].mxu0 }
 0x28f   : > { %v2740_v9 = vpop.f32.mrb[183].mxu1  ;;  %v6852_v10 = vpop.eup %6851  ;;  %6863 = vtanh.f32 %v2738_v6 }
 0x290   : > { %v6854_v11 = vpop.eup %6853 }
 0x291   : > { %v6856_v12 = vpop.eup %6855  ;;  %v5512_v13 = vpack.c.bf16 %v6854_v11, %v6850_v7 }
 0x292   : > { %v5832_v14 = vpack.c.bf16 %v6856_v12, %v6852_v10 }
 0x293   : > { %5972 = vst [vmem:[%s7225_s22 + $0x160] sm:$0xff] %v5512_v13   ;;  %v2231_v15 = vpop.f32.mrb[184].mxu0  ;;  %v2743_v16 = vpop.f32.mrb[184].mxu1 }
 0x294   : > { %6036 = vst [vmem:[%s7225_s22 + $0x360] sm:$0xff] %v5832_v14   ;;  %6865 = vtanh.f32 %v2231_v15  ;;  %v2233_v17 = vpop.f32.mrb[185].mxu0  ;;  %v2745_v18 = vpop.f32.mrb[185].mxu1 }
 0x295   : > { %6867 = vtanh.f32 %v2743_v16  ;;  %v2234_v19 = vpop.f32.mrb[186].mxu0  ;;  %v2746_v20 = vpop.f32.mrb[186].mxu1 }
 0x296   : > { %v6858_v21 = vpop.eup %6857  ;;  %6869 = vtanh.f32 %v2234_v19  ;;  %v2236_v22 = vpop.f32.mrb[187].mxu0 }
 0x297   : > { %v2748_v23 = vpop.f32.mrb[187].mxu1  ;;  %v6860_v24 = vpop.eup %6859  ;;  %6871 = vtanh.f32 %v2746_v20 }
 0x298   : > { %v6862_v25 = vpop.eup %6861 }
 0x299   : > { %v6864_v26 = vpop.eup %6863  ;;  %v5517_v27 = vpack.c.bf16 %v6862_v25, %v6858_v21 }
 0x29a   : > { %v5837_v28 = vpack.c.bf16 %v6864_v26, %v6860_v24 }
 0x29b   : > { %5973 = vst [vmem:[%s7225_s22 + $0x168] sm:$0xff] %v5517_v27   ;;  %v2239_v29 = vpop.f32.mrb[188].mxu0  ;;  %v2751_v30 = vpop.f32.mrb[188].mxu1 }
 0x29c   : > { %6037 = vst [vmem:[%s7225_s22 + $0x368] sm:$0xff] %v5837_v28   ;;  %6873 = vtanh.f32 %v2239_v29  ;;  %v2241_v31 = vpop.f32.mrb[189].mxu0  ;;  %v2753_v32 = vpop.f32.mrb[189].mxu1 }
 0x29d   : > { %6875 = vtanh.f32 %v2751_v30  ;;  %v2242_v33 = vpop.f32.mrb[190].mxu0  ;;  %v2754_v34 = vpop.f32.mrb[190].mxu1 }
 0x29e   : > { %v6866_v35 = vpop.eup %6865  ;;  %6877 = vtanh.f32 %v2242_v33  ;;  %v2244_v36 = vpop.f32.mrb[191].mxu0 }
 0x29f   : > { %v2756_v37 = vpop.f32.mrb[191].mxu1  ;;  %v6868_v38 = vpop.eup %6867  ;;  %6879 = vtanh.f32 %v2754_v34 }
 0x2a0   : > { %v6870_v39 = vpop.eup %6869 }
 0x2a1   : > { %v6872_v40 = vpop.eup %6871  ;;  %v5522_v41 = vpack.c.bf16 %v6870_v39, %v6866_v35 }
 0x2a2   : > { %v5842_v42 = vpack.c.bf16 %v6872_v40, %v6868_v38 }
 0x2a3   : > { %5974 = vst [vmem:[%s7225_s22 + $0x170] sm:$0xff] %v5522_v41   ;;  %v2247_v43 = vpop.f32.mrb[192].mxu0  ;;  %v2759_v44 = vpop.f32.mrb[192].mxu1 }
 0x2a4   : > { %6038 = vst [vmem:[%s7225_s22 + $0x370] sm:$0xff] %v5842_v42   ;;  %6881 = vtanh.f32 %v2247_v43  ;;  %v2249_v45 = vpop.f32.mrb[193].mxu0  ;;  %v2761_v46 = vpop.f32.mrb[193].mxu1 }
 0x2a5   : > { %6883 = vtanh.f32 %v2759_v44  ;;  %v2250_v47 = vpop.f32.mrb[194].mxu0  ;;  %v2762_v48 = vpop.f32.mrb[194].mxu1 }
 0x2a6   : > { %v6874_v49 = vpop.eup %6873  ;;  %6885 = vtanh.f32 %v2250_v47  ;;  %v2252_v50 = vpop.f32.mrb[195].mxu0 }
 0x2a7   : > { %v2764_v51 = vpop.f32.mrb[195].mxu1  ;;  %v6876_v52 = vpop.eup %6875  ;;  %6887 = vtanh.f32 %v2762_v48 }
 0x2a8   : > { %v6878_v53 = vpop.eup %6877 }
 0x2a9   : > { %v6880_v54 = vpop.eup %6879  ;;  %v5527_v55 = vpack.c.bf16 %v6878_v53, %v6874_v49 }
 0x2aa   : > { %v5847_v56 = vpack.c.bf16 %v6880_v54, %v6876_v52 }
 0x2ab   : > { %5975 = vst [vmem:[%s7225_s22 + $0x178] sm:$0xff] %v5527_v55   ;;  %v2255_v57 = vpop.f32.mrb[196].mxu0  ;;  %v2767_v58 = vpop.f32.mrb[196].mxu1 }
 0x2ac   : > { %6039 = vst [vmem:[%s7225_s22 + $0x378] sm:$0xff] %v5847_v56   ;;  %6889 = vtanh.f32 %v2255_v57  ;;  %v2257_v59 = vpop.f32.mrb[197].mxu0  ;;  %v2769_v60 = vpop.f32.mrb[197].mxu1 }
 0x2ad   : > { %6891 = vtanh.f32 %v2767_v58  ;;  %v2258_v61 = vpop.f32.mrb[198].mxu0  ;;  %v2770_v62 = vpop.f32.mrb[198].mxu1 }
 0x2ae   : > { %v6882_v63 = vpop.eup %6881  ;;  %6893 = vtanh.f32 %v2258_v61  ;;  %v2260_v0 = vpop.f32.mrb[199].mxu0 }
 0x2af   : > { %v2772_v1 = vpop.f32.mrb[199].mxu1  ;;  %v6884_v2 = vpop.eup %6883  ;;  %6895 = vtanh.f32 %v2770_v62 }
 0x2b0   : > { %v6886_v3 = vpop.eup %6885 }
 0x2b1   : > { %v6888_v4 = vpop.eup %6887  ;;  %v5532_v5 = vpack.c.bf16 %v6886_v3, %v6882_v63 }
 0x2b2   : > { %v5852_v6 = vpack.c.bf16 %v6888_v4, %v6884_v2 }
 0x2b3   : > { %5976 = vst [vmem:[%s7225_s22 + $0x180] sm:$0xff] %v5532_v5   ;;  %v2263_v7 = vpop.f32.mrb[200].mxu0  ;;  %v2775_v8 = vpop.f32.mrb[200].mxu1 }
 0x2b4   : > { %6040 = vst [vmem:[%s7225_s22 + $0x380] sm:$0xff] %v5852_v6   ;;  %6897 = vtanh.f32 %v2263_v7  ;;  %v2265_v9 = vpop.f32.mrb[201].mxu0  ;;  %v2777_v10 = vpop.f32.mrb[201].mxu1 }
 0x2b5   : > { %6899 = vtanh.f32 %v2775_v8  ;;  %v2266_v11 = vpop.f32.mrb[202].mxu0  ;;  %v2778_v12 = vpop.f32.mrb[202].mxu1 }
 0x2b6   : > { %v6890_v13 = vpop.eup %6889  ;;  %6901 = vtanh.f32 %v2266_v11  ;;  %v2268_v14 = vpop.f32.mrb[203].mxu0 }
 0x2b7   : > { %v2780_v15 = vpop.f32.mrb[203].mxu1  ;;  %v6892_v16 = vpop.eup %6891  ;;  %6903 = vtanh.f32 %v2778_v12 }
 0x2b8   : > { %v6894_v17 = vpop.eup %6893 }
 0x2b9   : > { %v6896_v18 = vpop.eup %6895  ;;  %v5537_v19 = vpack.c.bf16 %v6894_v17, %v6890_v13 }
 0x2ba   : > { %v5857_v20 = vpack.c.bf16 %v6896_v18, %v6892_v16 }
 0x2bb   : > { %5977 = vst [vmem:[%s7225_s22 + $0x188] sm:$0xff] %v5537_v19   ;;  %v2271_v21 = vpop.f32.mrb[204].mxu0  ;;  %v2783_v22 = vpop.f32.mrb[204].mxu1 }
 0x2bc   : > { %6041 = vst [vmem:[%s7225_s22 + $0x388] sm:$0xff] %v5857_v20   ;;  %6905 = vtanh.f32 %v2271_v21  ;;  %v2273_v23 = vpop.f32.mrb[205].mxu0  ;;  %v2785_v24 = vpop.f32.mrb[205].mxu1 }
 0x2bd   : > { %6907 = vtanh.f32 %v2783_v22  ;;  %v2274_v25 = vpop.f32.mrb[206].mxu0  ;;  %v2786_v26 = vpop.f32.mrb[206].mxu1 }
 0x2be   : > { %v6898_v27 = vpop.eup %6897  ;;  %6909 = vtanh.f32 %v2274_v25  ;;  %v2276_v28 = vpop.f32.mrb[207].mxu0 }
 0x2bf   : > { %v2788_v29 = vpop.f32.mrb[207].mxu1  ;;  %v6900_v30 = vpop.eup %6899  ;;  %6911 = vtanh.f32 %v2786_v26 }
 0x2c0   : > { %v6902_v31 = vpop.eup %6901 }
 0x2c1   : > { %v6904_v32 = vpop.eup %6903  ;;  %v5542_v33 = vpack.c.bf16 %v6902_v31, %v6898_v27 }
 0x2c2   : > { %v5862_v34 = vpack.c.bf16 %v6904_v32, %v6900_v30 }
 0x2c3   : > { %5978 = vst [vmem:[%s7225_s22 + $0x190] sm:$0xff] %v5542_v33   ;;  %v2279_v35 = vpop.f32.mrb[208].mxu0  ;;  %v2791_v36 = vpop.f32.mrb[208].mxu1 }
 0x2c4   : > { %6042 = vst [vmem:[%s7225_s22 + $0x390] sm:$0xff] %v5862_v34   ;;  %6913 = vtanh.f32 %v2279_v35  ;;  %v2281_v37 = vpop.f32.mrb[209].mxu0  ;;  %v2793_v38 = vpop.f32.mrb[209].mxu1 }
 0x2c5   : > { %6915 = vtanh.f32 %v2791_v36  ;;  %v2282_v39 = vpop.f32.mrb[210].mxu0  ;;  %v2794_v40 = vpop.f32.mrb[210].mxu1 }
 0x2c6   : > { %v6906_v41 = vpop.eup %6905  ;;  %6917 = vtanh.f32 %v2282_v39  ;;  %v2284_v42 = vpop.f32.mrb[211].mxu0 }
 0x2c7   : > { %v2796_v43 = vpop.f32.mrb[211].mxu1  ;;  %v6908_v44 = vpop.eup %6907  ;;  %6919 = vtanh.f32 %v2794_v40 }
 0x2c8   : > { %v6910_v45 = vpop.eup %6909 }
 0x2c9   : > { %v6912_v46 = vpop.eup %6911  ;;  %v5547_v47 = vpack.c.bf16 %v6910_v45, %v6906_v41 }
 0x2ca   : > { %v5867_v48 = vpack.c.bf16 %v6912_v46, %v6908_v44 }
 0x2cb   : > { %5979 = vst [vmem:[%s7225_s22 + $0x198] sm:$0xff] %v5547_v47   ;;  %v2287_v49 = vpop.f32.mrb[212].mxu0  ;;  %v2799_v50 = vpop.f32.mrb[212].mxu1 }
 0x2cc   : > { %6043 = vst [vmem:[%s7225_s22 + $0x398] sm:$0xff] %v5867_v48   ;;  %6921 = vtanh.f32 %v2287_v49  ;;  %v2289_v51 = vpop.f32.mrb[213].mxu0  ;;  %v2801_v52 = vpop.f32.mrb[213].mxu1 }
 0x2cd   : > { %6923 = vtanh.f32 %v2799_v50  ;;  %v2290_v53 = vpop.f32.mrb[214].mxu0  ;;  %v2802_v54 = vpop.f32.mrb[214].mxu1 }
 0x2ce   : > { %v6914_v55 = vpop.eup %6913  ;;  %6925 = vtanh.f32 %v2290_v53  ;;  %v2292_v56 = vpop.f32.mrb[215].mxu0 }
 0x2cf   : > { %v2804_v57 = vpop.f32.mrb[215].mxu1  ;;  %v6916_v58 = vpop.eup %6915  ;;  %6927 = vtanh.f32 %v2802_v54 }
 0x2d0   : > { %v6918_v59 = vpop.eup %6917 }
 0x2d1   : > { %v6920_v60 = vpop.eup %6919  ;;  %v5552_v61 = vpack.c.bf16 %v6918_v59, %v6914_v55 }
 0x2d2   : > { %v5872_v62 = vpack.c.bf16 %v6920_v60, %v6916_v58 }
 0x2d3   : > { %5980 = vst [vmem:[%s7225_s22 + $0x1a0] sm:$0xff] %v5552_v61   ;;  %v2295_v63 = vpop.f32.mrb[216].mxu0  ;;  %v2807_v0 = vpop.f32.mrb[216].mxu1 }
 0x2d4   : > { %6044 = vst [vmem:[%s7225_s22 + $0x3a0] sm:$0xff] %v5872_v62   ;;  %6929 = vtanh.f32 %v2295_v63  ;;  %v2297_v1 = vpop.f32.mrb[217].mxu0  ;;  %v2809_v2 = vpop.f32.mrb[217].mxu1 }
 0x2d5   : > { %6931 = vtanh.f32 %v2807_v0  ;;  %v2298_v3 = vpop.f32.mrb[218].mxu0  ;;  %v2810_v4 = vpop.f32.mrb[218].mxu1 }
 0x2d6   : > { %v6922_v5 = vpop.eup %6921  ;;  %6933 = vtanh.f32 %v2298_v3  ;;  %v2300_v6 = vpop.f32.mrb[219].mxu0 }
 0x2d7   : > { %v2812_v7 = vpop.f32.mrb[219].mxu1  ;;  %v6924_v8 = vpop.eup %6923  ;;  %6935 = vtanh.f32 %v2810_v4 }
 0x2d8   : > { %v6926_v9 = vpop.eup %6925 }
 0x2d9   : > { %v6928_v10 = vpop.eup %6927  ;;  %v5557_v11 = vpack.c.bf16 %v6926_v9, %v6922_v5 }
 0x2da   : > { %v5877_v12 = vpack.c.bf16 %v6928_v10, %v6924_v8 }
 0x2db   : > { %5981 = vst [vmem:[%s7225_s22 + $0x1a8] sm:$0xff] %v5557_v11   ;;  %v2303_v13 = vpop.f32.mrb[220].mxu0  ;;  %v2815_v14 = vpop.f32.mrb[220].mxu1 }
 0x2dc   : > { %6045 = vst [vmem:[%s7225_s22 + $0x3a8] sm:$0xff] %v5877_v12   ;;  %6937 = vtanh.f32 %v2303_v13  ;;  %v2305_v15 = vpop.f32.mrb[221].mxu0  ;;  %v2817_v16 = vpop.f32.mrb[221].mxu1 }
 0x2dd   : > { %6939 = vtanh.f32 %v2815_v14  ;;  %v2306_v17 = vpop.f32.mrb[222].mxu0  ;;  %v2818_v18 = vpop.f32.mrb[222].mxu1 }
 0x2de   : > { %v6930_v19 = vpop.eup %6929  ;;  %6941 = vtanh.f32 %v2306_v17  ;;  %v2308_v20 = vpop.f32.mrb[223].mxu0 }
 0x2df   : > { %v2820_v21 = vpop.f32.mrb[223].mxu1  ;;  %v6932_v22 = vpop.eup %6931  ;;  %6943 = vtanh.f32 %v2818_v18 }
 0x2e0   : > { %v6934_v23 = vpop.eup %6933 }
 0x2e1   : > { %v6936_v24 = vpop.eup %6935  ;;  %v5562_v25 = vpack.c.bf16 %v6934_v23, %v6930_v19 }
 0x2e2   : > { %v5882_v26 = vpack.c.bf16 %v6936_v24, %v6932_v22 }
 0x2e3   : > { %5982 = vst [vmem:[%s7225_s22 + $0x1b0] sm:$0xff] %v5562_v25   ;;  %v2311_v27 = vpop.f32.mrb[224].mxu0  ;;  %v2823_v28 = vpop.f32.mrb[224].mxu1 }
 0x2e4   : > { %6046 = vst [vmem:[%s7225_s22 + $0x3b0] sm:$0xff] %v5882_v26   ;;  %6945 = vtanh.f32 %v2311_v27  ;;  %v2313_v29 = vpop.f32.mrb[225].mxu0  ;;  %v2825_v30 = vpop.f32.mrb[225].mxu1 }
 0x2e5   : > { %6947 = vtanh.f32 %v2823_v28  ;;  %v2314_v31 = vpop.f32.mrb[226].mxu0  ;;  %v2826_v32 = vpop.f32.mrb[226].mxu1 }
 0x2e6   : > { %v6938_v33 = vpop.eup %6937  ;;  %6949 = vtanh.f32 %v2314_v31  ;;  %v2316_v34 = vpop.f32.mrb[227].mxu0 }
 0x2e7   : > { %v2828_v35 = vpop.f32.mrb[227].mxu1  ;;  %v6940_v36 = vpop.eup %6939  ;;  %6951 = vtanh.f32 %v2826_v32 }
 0x2e8   : > { %v6942_v37 = vpop.eup %6941 }
 0x2e9   : > { %v6944_v38 = vpop.eup %6943  ;;  %v5567_v39 = vpack.c.bf16 %v6942_v37, %v6938_v33 }
 0x2ea   : > { %v5887_v40 = vpack.c.bf16 %v6944_v38, %v6940_v36 }
 0x2eb   : > { %5983 = vst [vmem:[%s7225_s22 + $0x1b8] sm:$0xff] %v5567_v39   ;;  %v2319_v41 = vpop.f32.mrb[228].mxu0  ;;  %v2831_v42 = vpop.f32.mrb[228].mxu1 }
 0x2ec   : > { %6047 = vst [vmem:[%s7225_s22 + $0x3b8] sm:$0xff] %v5887_v40   ;;  %6953 = vtanh.f32 %v2319_v41  ;;  %v2321_v43 = vpop.f32.mrb[229].mxu0  ;;  %v2833_v44 = vpop.f32.mrb[229].mxu1 }
 0x2ed   : > { %6955 = vtanh.f32 %v2831_v42  ;;  %v2322_v45 = vpop.f32.mrb[230].mxu0  ;;  %v2834_v46 = vpop.f32.mrb[230].mxu1 }
 0x2ee   : > { %v6946_v47 = vpop.eup %6945  ;;  %6957 = vtanh.f32 %v2322_v45  ;;  %v2324_v48 = vpop.f32.mrb[231].mxu0 }
 0x2ef   : > { %v2836_v49 = vpop.f32.mrb[231].mxu1  ;;  %v6948_v50 = vpop.eup %6947  ;;  %6959 = vtanh.f32 %v2834_v46 }
 0x2f0   : > { %v6950_v51 = vpop.eup %6949 }
 0x2f1   : > { %v6952_v52 = vpop.eup %6951  ;;  %v5572_v53 = vpack.c.bf16 %v6950_v51, %v6946_v47 }
 0x2f2   : > { %v5892_v54 = vpack.c.bf16 %v6952_v52, %v6948_v50 }
 0x2f3   : > { %5984 = vst [vmem:[%s7225_s22 + $0x1c0] sm:$0xff] %v5572_v53   ;;  %v2327_v55 = vpop.f32.mrb[232].mxu0  ;;  %v2839_v56 = vpop.f32.mrb[232].mxu1 }
 0x2f4   : > { %6048 = vst [vmem:[%s7225_s22 + $0x3c0] sm:$0xff] %v5892_v54   ;;  %6961 = vtanh.f32 %v2327_v55  ;;  %v2329_v57 = vpop.f32.mrb[233].mxu0  ;;  %v2841_v58 = vpop.f32.mrb[233].mxu1 }
 0x2f5   : > { %6963 = vtanh.f32 %v2839_v56  ;;  %v2330_v59 = vpop.f32.mrb[234].mxu0  ;;  %v2842_v60 = vpop.f32.mrb[234].mxu1 }
 0x2f6   : > { %v6954_v61 = vpop.eup %6953  ;;  %6965 = vtanh.f32 %v2330_v59  ;;  %v2332_v62 = vpop.f32.mrb[235].mxu0 }
 0x2f7   : > { %v2844_v63 = vpop.f32.mrb[235].mxu1  ;;  %v6956_v0 = vpop.eup %6955  ;;  %6967 = vtanh.f32 %v2842_v60 }
 0x2f8   : > { %v6958_v1 = vpop.eup %6957 }
 0x2f9   : > { %v6960_v2 = vpop.eup %6959  ;;  %v5577_v3 = vpack.c.bf16 %v6958_v1, %v6954_v61 }
 0x2fa   : > { %v5897_v4 = vpack.c.bf16 %v6960_v2, %v6956_v0 }
 0x2fb   : > { %5985 = vst [vmem:[%s7225_s22 + $0x1c8] sm:$0xff] %v5577_v3   ;;  %v2335_v5 = vpop.f32.mrb[236].mxu0  ;;  %v2847_v6 = vpop.f32.mrb[236].mxu1 }
 0x2fc   : > { %6049 = vst [vmem:[%s7225_s22 + $0x3c8] sm:$0xff] %v5897_v4   ;;  %6969 = vtanh.f32 %v2335_v5  ;;  %v2337_v7 = vpop.f32.mrb[237].mxu0  ;;  %v2849_v8 = vpop.f32.mrb[237].mxu1 }
 0x2fd   : > { %6971 = vtanh.f32 %v2847_v6  ;;  %v2338_v9 = vpop.f32.mrb[238].mxu0  ;;  %v2850_v10 = vpop.f32.mrb[238].mxu1 }
 0x2fe   : > { %v6962_v11 = vpop.eup %6961  ;;  %6973 = vtanh.f32 %v2338_v9  ;;  %v2340_v12 = vpop.f32.mrb[239].mxu0 }
 0x2ff   : > { %v2852_v13 = vpop.f32.mrb[239].mxu1  ;;  %v6964_v14 = vpop.eup %6963  ;;  %6975 = vtanh.f32 %v2850_v10 }
 0x300   : > { %v6966_v15 = vpop.eup %6965 }
 0x301   : > { %v6968_v16 = vpop.eup %6967  ;;  %v5582_v17 = vpack.c.bf16 %v6966_v15, %v6962_v11 }
 0x302   : > { %v5902_v18 = vpack.c.bf16 %v6968_v16, %v6964_v14 }
 0x303   : > { %5986 = vst [vmem:[%s7225_s22 + $0x1d0] sm:$0xff] %v5582_v17   ;;  %v2343_v19 = vpop.f32.mrb[240].mxu0  ;;  %v2855_v20 = vpop.f32.mrb[240].mxu1 }
 0x304   : > { %6050 = vst [vmem:[%s7225_s22 + $0x3d0] sm:$0xff] %v5902_v18   ;;  %6977 = vtanh.f32 %v2343_v19  ;;  %v2345_v21 = vpop.f32.mrb[241].mxu0  ;;  %v2857_v22 = vpop.f32.mrb[241].mxu1 }
 0x305   : > { %6979 = vtanh.f32 %v2855_v20  ;;  %v2346_v23 = vpop.f32.mrb[242].mxu0  ;;  %v2858_v24 = vpop.f32.mrb[242].mxu1 }
 0x306   : > { %v6970_v25 = vpop.eup %6969  ;;  %6981 = vtanh.f32 %v2346_v23  ;;  %v2348_v26 = vpop.f32.mrb[243].mxu0 }
 0x307   : > { %v2860_v27 = vpop.f32.mrb[243].mxu1  ;;  %v6972_v28 = vpop.eup %6971  ;;  %6983 = vtanh.f32 %v2858_v24 }
 0x308   : > { %v6974_v29 = vpop.eup %6973 }
 0x309   : > { %v6976_v30 = vpop.eup %6975  ;;  %v5587_v31 = vpack.c.bf16 %v6974_v29, %v6970_v25 }
 0x30a   : > { %v5907_v32 = vpack.c.bf16 %v6976_v30, %v6972_v28 }
 0x30b   : > { %5987 = vst [vmem:[%s7225_s22 + $0x1d8] sm:$0xff] %v5587_v31   ;;  %v2351_v33 = vpop.f32.mrb[244].mxu0  ;;  %v2863_v34 = vpop.f32.mrb[244].mxu1 }
 0x30c   : > { %6051 = vst [vmem:[%s7225_s22 + $0x3d8] sm:$0xff] %v5907_v32   ;;  %6985 = vtanh.f32 %v2351_v33  ;;  %v2353_v35 = vpop.f32.mrb[245].mxu0  ;;  %v2865_v36 = vpop.f32.mrb[245].mxu1 }
 0x30d   : > { %6987 = vtanh.f32 %v2863_v34  ;;  %v2354_v37 = vpop.f32.mrb[246].mxu0  ;;  %v2866_v38 = vpop.f32.mrb[246].mxu1 }
 0x30e   : > { %v6978_v39 = vpop.eup %6977  ;;  %6989 = vtanh.f32 %v2354_v37  ;;  %v2356_v40 = vpop.f32.mrb[247].mxu0 }
 0x30f   : > { %v2868_v41 = vpop.f32.mrb[247].mxu1  ;;  %v6980_v42 = vpop.eup %6979  ;;  %6991 = vtanh.f32 %v2866_v38 }
 0x310   : > { %v6982_v43 = vpop.eup %6981 }
 0x311   : > { %v6984_v44 = vpop.eup %6983  ;;  %v5592_v45 = vpack.c.bf16 %v6982_v43, %v6978_v39 }
 0x312   : > { %v5912_v46 = vpack.c.bf16 %v6984_v44, %v6980_v42 }
 0x313   : > { %5988 = vst [vmem:[%s7225_s22 + $0x1e0] sm:$0xff] %v5592_v45   ;;  %v2359_v47 = vpop.f32.mrb[248].mxu0  ;;  %v2871_v48 = vpop.f32.mrb[248].mxu1 }
 0x314   : > { %6052 = vst [vmem:[%s7225_s22 + $0x3e0] sm:$0xff] %v5912_v46   ;;  %6993 = vtanh.f32 %v2359_v47  ;;  %v2361_v49 = vpop.f32.mrb[249].mxu0  ;;  %v2873_v50 = vpop.f32.mrb[249].mxu1 }
 0x315   : > { %6995 = vtanh.f32 %v2871_v48  ;;  %v2362_v51 = vpop.f32.mrb[250].mxu0  ;;  %v2874_v52 = vpop.f32.mrb[250].mxu1 }
 0x316   : > { %v6986_v53 = vpop.eup %6985  ;;  %6997 = vtanh.f32 %v2362_v51  ;;  %v2364_v54 = vpop.f32.mrb[251].mxu0 }
 0x317   : > { %v2876_v55 = vpop.f32.mrb[251].mxu1  ;;  %v6988_v56 = vpop.eup %6987  ;;  %6999 = vtanh.f32 %v2874_v52 }
 0x318   : > { %v6990_v57 = vpop.eup %6989 }
 0x319   : > { %v6992_v58 = vpop.eup %6991  ;;  %v5597_v59 = vpack.c.bf16 %v6990_v57, %v6986_v53 }
 0x31a   : > { %v5917_v60 = vpack.c.bf16 %v6992_v58, %v6988_v56 }
 0x31b   : > { %5989 = vst [vmem:[%s7225_s22 + $0x1e8] sm:$0xff] %v5597_v59   ;;  %v2367_v61 = vpop.f32.mrb[252].mxu0  ;;  %v2879_v62 = vpop.f32.mrb[252].mxu1 }
 0x31c   : > { %6053 = vst [vmem:[%s7225_s22 + $0x3e8] sm:$0xff] %v5917_v60   ;;  %7001 = vtanh.f32 %v2367_v61  ;;  %v2369_v63 = vpop.f32.mrb[253].mxu0  ;;  %v2881_v0 = vpop.f32.mrb[253].mxu1 }
 0x31d   : > { %7003 = vtanh.f32 %v2879_v62  ;;  %v2370_v1 = vpop.f32.mrb[254].mxu0  ;;  %v2882_v2 = vpop.f32.mrb[254].mxu1 }
 0x31e   : > { %v6994_v3 = vpop.eup %6993  ;;  %7005 = vtanh.f32 %v2370_v1  ;;  %v2372_v4 = vpop.f32.mrb[255].mxu0 }
 0x31f   : > { %v2884_v5 = vpop.f32.mrb[255].mxu1  ;;  %v6996_v6 = vpop.eup %6995  ;;  %7007 = vtanh.f32 %v2882_v2 }
 0x320   : > { %v6998_v7 = vpop.eup %6997 }
 0x321   : > { %v7000_v8 = vpop.eup %6999  ;;  %v5602_v9 = vpack.c.bf16 %v6998_v7, %v6994_v3 }
 0x322   : > { %v5922_v10 = vpack.c.bf16 %v7000_v8, %v6996_v6 }
 0x323   : > { %5990 = vst [vmem:[%s7225_s22 + $0x1f0] sm:$0xff] %v5602_v9  }
 0x324   : > { %6054 = vst [vmem:[%s7225_s22 + $0x3f0] sm:$0xff] %v5922_v10  }
 0x326   : > { %v7002_v11 = vpop.eup %7001 }
 0x327   : > { %v7004_v12 = vpop.eup %7003 }
 0x328   : > { %v7006_v13 = vpop.eup %7005 }
 0x329   : > { %v7008_v14 = vpop.eup %7007  ;;  %v5607_v15 = vpack.c.bf16 %v7006_v13, %v7002_v11 }
 0x32a   : > { %v5927_v16 = vpack.c.bf16 %v7008_v14, %v7004_v12 }
 0x32b   : > { %5991 = vst [vmem:[%s7225_s22 + $0x1f8] sm:$0xff] %v5607_v15  }
 0x32c   : > { %6055 = vst [vmem:[%s7225_s22 + $0x3f8] sm:$0xff] %v5927_v16  }
 0x32d PF: > { %s12_s9 = sadd.s32 1, %s7015_s9  }
 0x32e   : > { %p9_p4 = scmp.ge.s32.totalorder %s12_s9, 6  }
 0x330   :  { %11 = sbr.rel (!%p9_p4) target bundleno = 1 (0x1), region = 61 }

</bundles_post_ra>
